<compile_context>
chip_gen: v7x
topology: tpu7x:2x2x1
jax: 0.10.0
libtpu: 0.0.40
codegen_flags: <defaults>
</compile_context>

<pallas_src>
import functools
import math
from dataclasses import dataclass

import jax
import jax.numpy as jnp
from jax.experimental import pallas as pl
from jax.experimental.pallas import tpu as pltpu


def _round_up(x, m):
    return ((x + m - 1) // m) * m


# ----------------------------------------------------------------------------
# Tiled matmul (bf16 MXU, f32 accumulation)
# ----------------------------------------------------------------------------

def _mm_kernel(a_ref, b_ref, o_ref, acc_ref):
    @pl.when(pl.program_id(2) == 0)
    def _():
        acc_ref[...] = jnp.zeros_like(acc_ref)
    acc_ref[...] += jnp.dot(a_ref[...], b_ref[...], preferred_element_type=jnp.float32)

    @pl.when(pl.program_id(2) == pl.num_programs(2) - 1)
    def _():
        o_ref[...] = acc_ref[...].astype(o_ref.dtype)


def _mm_bias_kernel(a_ref, b_ref, bias_ref, o_ref, acc_ref):
    @pl.when(pl.program_id(2) == 0)
    def _():
        acc_ref[...] = jnp.zeros_like(acc_ref)
    acc_ref[...] += jnp.dot(a_ref[...], b_ref[...], preferred_element_type=jnp.float32)

    @pl.when(pl.program_id(2) == pl.num_programs(2) - 1)
    def _():
        o_ref[...] = (acc_ref[...] + bias_ref[...]).astype(o_ref.dtype)


def pallas_matmul(a, b, bias=None):
    """o = a @ b (+ bias).  Tiled bf16 MXU matmul, f32 accumulation, lane-dense padded output."""
    M, K = a.shape
    K2, N = b.shape
    assert K == K2
    a = a.astype(jnp.bfloat16)
    b = b.astype(jnp.bfloat16)
    tm = min(256, _round_up(M, 16))
    tn = min(256, _round_up(N, 128))
    tk = min(512, _round_up(K, 128))
    Mp, Np, Kp = _round_up(M, tm), _round_up(N, tn), _round_up(K, tk)
    if (Mp, Kp) != (M, K):
        a = jnp.pad(a, ((0, Mp - M), (0, Kp - K)))
    if (Kp, Np) != (K, N):
        b = jnp.pad(b, ((0, Kp - K), (0, Np - N)))
    in_specs = [pl.BlockSpec((tm, tk), lambda i, j, k: (i, k)),
                pl.BlockSpec((tk, tn), lambda i, j, k: (k, j))]
    args = [a, b]
    kernel = _mm_kernel
    if bias is not None:
        bias = jnp.reshape(bias, (1, N)).astype(jnp.float32)
        if Np != N:
            bias = jnp.pad(bias, ((0, 0), (0, Np - N)))
        in_specs.append(pl.BlockSpec((1, tn), lambda i, j, k: (0, j)))
        args.append(bias)
        kernel = _mm_bias_kernel
    out = pl.pallas_call(
        kernel,
        grid=(Mp // tm, Np // tn, Kp // tk),
        in_specs=in_specs,
        out_specs=pl.BlockSpec((tm, tn), lambda i, j, k: (i, j)),
        out_shape=jax.ShapeDtypeStruct((Mp, Np), jnp.float32),
        scratch_shapes=[pltpu.VMEM((tm, tn), jnp.float32)],
        compiler_params=pltpu.CompilerParams(
            dimension_semantics=("parallel", "parallel", "arbitrary")),
    )(*args)
    if (Mp, Np) != (M, N):
        out = out[:M, :N]
    return out


# ----------------------------------------------------------------------------
# RMS input normalization (two tiled passes)
# ----------------------------------------------------------------------------

def _rms_stats_kernel(x_ref, o_ref):
    @pl.when(pl.program_id(0) == 0)
    def _():
        o_ref[...] = jnp.zeros_like(o_ref)
    x = x_ref[...]
    o_ref[...] += jnp.sum(x * x, axis=-1, keepdims=True)


def _rms_scale_kernel(x_ref, s_ref, o_ref):
    o_ref[...] = x_ref[...] * s_ref[...]


def rms_normalize(x, eps=1e-8):
    """RMSNormalizeInput(dims=(1,2), keepdim=True): x [B,M,L] -> (x/std, std[B,1,1]).
    TODO(synk): upstream RMSNormalizeInput source unavailable; uses sqrt(mean(x^2)+eps)."""
    B, M, L = x.shape
    R = B * M
    Rp = _round_up(R, 8)
    tL = min(2048, _round_up(L, 128))
    Lp = _round_up(L, tL)
    x2 = jnp.pad(x.astype(jnp.float32).reshape(R, L), ((0, Rp - R), (0, Lp - L)))
    ss = pl.pallas_call(
        _rms_stats_kernel,
        grid=(Lp // tL,),
        in_specs=[pl.BlockSpec((Rp, tL), lambda l: (0, l))],
        out_specs=pl.BlockSpec((Rp, 1), lambda l: (0, 0)),
        out_shape=jax.ShapeDtypeStruct((Rp, 1), jnp.float32),
        compiler_params=pltpu.CompilerParams(dimension_semantics=("arbitrary",)),
    )(x2)
    ms = jnp.sum(ss[:R, 0].reshape(B, M), axis=1) / (M * L)
    std = jnp.sqrt(ms + eps)
    inv_rows = jnp.pad(jnp.broadcast_to((1.0 / std)[:, None], (B, M)).reshape(R, 1),
                       ((0, Rp - R), (0, 0)))
    y = pl.pallas_call(
        _rms_scale_kernel,
        grid=(Lp // tL,),
        in_specs=[pl.BlockSpec((Rp, tL), lambda l: (0, l)),
                  pl.BlockSpec((Rp, 1), lambda l: (0, 0))],
        out_specs=pl.BlockSpec((Rp, tL), lambda l: (0, l)),
        out_shape=jax.ShapeDtypeStruct((Rp, Lp), jnp.float32),
        compiler_params=pltpu.CompilerParams(dimension_semantics=("parallel",)),
    )(x2, inv_rows)
    return y[:R, :L].reshape(B, M, L), std.reshape(B, 1, 1)


# ----------------------------------------------------------------------------
# Grouped PReLU + LayerNorm over the last dim (per-head norms, output projection norm)
# ----------------------------------------------------------------------------

def _group_prelu_ln_kernel(x_ref, a_ref, g_ref, b_ref, o_ref, *, true_d, eps):
    x = x_ref[...]                                            # (1, tr, Dp) f32
    x = jnp.where(x >= 0, x, a_ref[...] * x)                  # PReLU (scalar per group)
    inv_d = 1.0 / true_d                                      # padded lanes are zero
    mu = jnp.sum(x, axis=-1, keepdims=True) * inv_d
    var = jnp.sum(x * x, axis=-1, keepdims=True) * inv_d - mu * mu
    xhat = (x - mu) * jax.lax.rsqrt(var + eps)
    o_ref[...] = xhat * g_ref[...] + b_ref[...]


def grouped_prelu_layernorm(x, gamma, beta, alpha=None, eps=1e-5):
    """x [G,M,D]; gamma/beta [G,D]; alpha [G] or None.  One batched call for all groups."""
    G, M, D = x.shape
    Dp = _round_up(D, 128)
    tr = min(128, _round_up(M, 8))
    Mp = _round_up(M, tr)
    xp = jnp.pad(x.astype(jnp.float32), ((0, 0), (0, Mp - M), (0, Dp - D)))
    g = jnp.pad(gamma.astype(jnp.float32), ((0, 0), (0, Dp - D)))[:, None, :]
    bb = jnp.pad(beta.astype(jnp.float32), ((0, 0), (0, Dp - D)))[:, None, :]
    if alpha is None:
        alpha = jnp.ones((G,), jnp.float32)
    a = jnp.reshape(jnp.asarray(alpha, jnp.float32), (G, 1, 1))
    y = pl.pallas_call(
        functools.partial(_group_prelu_ln_kernel, true_d=D, eps=eps),
        grid=(G, Mp // tr),
        in_specs=[pl.BlockSpec((1, tr, Dp), lambda gi, r: (gi, r, 0)),
                  pl.BlockSpec((1, 1, 1), lambda gi, r: (gi, 0, 0)),
                  pl.BlockSpec((1, 1, Dp), lambda gi, r: (gi, 0, 0)),
                  pl.BlockSpec((1, 1, Dp), lambda gi, r: (gi, 0, 0))],
        out_specs=pl.BlockSpec((1, tr, Dp), lambda gi, r: (gi, r, 0)),
        out_shape=jax.ShapeDtypeStruct((G, Mp, Dp), jnp.float32),
        compiler_params=pltpu.CompilerParams(dimension_semantics=("parallel", "parallel")),
    )(xp, a, g, bb)
    return y[:, :M, :D]


# ----------------------------------------------------------------------------
# Channel LayerNorm (LayerNormalization4D): reduce over C, keep F lane-dense
# ----------------------------------------------------------------------------

def _chan_ln_kernel(x_ref, g_ref, b_ref, o_ref, *, eps):
    x = x_ref[...]                                            # (1, C, tT, Fp)
    mu = jnp.mean(x, axis=1, keepdims=True)
    var = jnp.mean((x - mu) ** 2, axis=1, keepdims=True)
    o_ref[...] = (x - mu) * jax.lax.rsqrt(var + eps) * g_ref[...] + b_ref[...]


def layernorm_channel(x, gamma, beta, eps):
    B, C, T, F = x.shape
    Fp = _round_up(F, 128)
    tT = min(64, _round_up(T, 8))
    Tp = _round_up(T, tT)
    xp = jnp.pad(x.astype(jnp.float32), ((0, 0), (0, 0), (0, Tp - T), (0, Fp - F)))
    g = jnp.reshape(gamma.astype(jnp.float32), (1, C, 1, 1))
    b = jnp.reshape(beta.astype(jnp.float32), (1, C, 1, 1))
    y = pl.pallas_call(
        functools.partial(_chan_ln_kernel, eps=eps),
        grid=(B, Tp // tT),
        in_specs=[pl.BlockSpec((1, C, tT, Fp), lambda bi, t: (bi, 0, t, 0)),
                  pl.BlockSpec((1, C, 1, 1), lambda bi, t: (0, 0, 0, 0)),
                  pl.BlockSpec((1, C, 1, 1), lambda bi, t: (0, 0, 0, 0))],
        out_specs=pl.BlockSpec((1, C, tT, Fp), lambda bi, t: (bi, 0, t, 0)),
        out_shape=jax.ShapeDtypeStruct((B, C, Tp, Fp), jnp.float32),
        compiler_params=pltpu.CompilerParams(dimension_semantics=("parallel", "parallel")),
    )(xp, g, b)
    return y[:, :, :T, :F]


# ----------------------------------------------------------------------------
# GroupNorm(1, C): two tiled passes (stats accumulation, then affine normalize)
# ----------------------------------------------------------------------------

def _gn_stats_kernel(x_ref, s1_ref, s2_ref):
    @pl.when(pl.program_id(1) == 0)
    def _():
        s1_ref[...] = jnp.zeros_like(s1_ref)
        s2_ref[...] = jnp.zeros_like(s2_ref)
    x = x_ref[0]                                              # (tr, Fp)
    s1_ref[...] += jnp.sum(x, axis=0, keepdims=True)[None]
    s2_ref[...] += jnp.sum(x * x, axis=0, keepdims=True)[None]


def _gn_affine_kernel(x_ref, a_ref, b_ref, o_ref):
    o_ref[...] = x_ref[...] * a_ref[...] + b_ref[...]


def group_norm1(x, gamma, beta, eps):
    B, C, T, F = x.shape
    Fp = _round_up(F, 128)
    xp = jnp.pad(x.astype(jnp.float32), ((0, 0), (0, 0), (0, 0), (0, Fp - F)))
    R = C * T
    tr = min(512, _round_up(R, 8))
    Rp = _round_up(R, tr)
    xr = jnp.pad(xp.reshape(B, R, Fp), ((0, 0), (0, Rp - R), (0, 0)))
    s1, s2 = pl.pallas_call(
        _gn_stats_kernel,
        grid=(B, Rp // tr),
        in_specs=[pl.BlockSpec((1, tr, Fp), lambda bi, r: (bi, r, 0))],
        out_specs=(pl.BlockSpec((1, 1, Fp), lambda bi, r: (bi, 0, 0)),
                   pl.BlockSpec((1, 1, Fp), lambda bi, r: (bi, 0, 0))),
        out_shape=(jax.ShapeDtypeStruct((B, 1, Fp), jnp.float32),
                   jax.ShapeDtypeStruct((B, 1, Fp), jnp.float32)),
        compiler_params=pltpu.CompilerParams(dimension_semantics=("parallel", "arbitrary")),
    )(xr)
    cnt = C * T * F
    mean = jnp.sum(s1[:, 0, :], axis=-1) / cnt
    var = jnp.sum(s2[:, 0, :], axis=-1) / cnt - mean * mean
    rstd = jax.lax.rsqrt(var + eps)
    a = (gamma[None, :] * rstd[:, None]).reshape(B, C, 1, 1).astype(jnp.float32)
    bb = (beta[None, :] - mean[:, None] * gamma[None, :] * rstd[:, None]
          ).reshape(B, C, 1, 1).astype(jnp.float32)
    tT = min(64, _round_up(T, 8))
    Tp = _round_up(T, tT)
    xt = jnp.pad(xp, ((0, 0), (0, 0), (0, Tp - T), (0, 0)))
    y = pl.pallas_call(
        _gn_affine_kernel,
        grid=(B, Tp // tT),
        in_specs=[pl.BlockSpec((1, C, tT, Fp), lambda bi, t: (bi, 0, t, 0)),
                  pl.BlockSpec((1, C, 1, 1), lambda bi, t: (bi, 0, 0, 0)),
                  pl.BlockSpec((1, C, 1, 1), lambda bi, t: (bi, 0, 0, 0))],
        out_specs=pl.BlockSpec((1, C, tT, Fp), lambda bi, t: (bi, 0, t, 0)),
        out_shape=jax.ShapeDtypeStruct((B, C, Tp, Fp), jnp.float32),
        compiler_params=pltpu.CompilerParams(dimension_semantics=("parallel", "parallel")),
    )(xt, a, bb)
    return y[:, :, :T, :F]


# ----------------------------------------------------------------------------
# Bidirectional LSTM: one kernel, in-kernel time loop, lane-aligned (padded) gates
# ----------------------------------------------------------------------------

def _bilstm_kernel(xp_ref, whh_ref, hf_out_ref, hb_out_ref, hf, cf, hb, cb, *, hp, length):
    h4 = 4 * hp
    hf[...] = jnp.zeros_like(hf)
    cf[...] = jnp.zeros_like(cf)
    hb[...] = jnp.zeros_like(hb)
    cb[...] = jnp.zeros_like(cb)

    def cell(gates, c_prev):
        i = jax.nn.sigmoid(gates[:, 0 * hp:1 * hp])
        f = jax.nn.sigmoid(gates[:, 1 * hp:2 * hp])
        g = jnp.tanh(gates[:, 2 * hp:3 * hp])
        o = jax.nn.sigmoid(gates[:, 3 * hp:4 * hp])
        c = f * c_prev + i * g
        return o * jnp.tanh(c), c

    def step(t, carry):
        tb = length - 1 - t
        x_f = xp_ref[t]                                       # (tnb, 8*hp)
        x_b = xp_ref[tb]
        gf = x_f[:, :h4] + jnp.dot(hf[...].astype(jnp.bfloat16), whh_ref[0],
                                   preferred_element_type=jnp.float32)
        gb = x_b[:, h4:] + jnp.dot(hb[...].astype(jnp.bfloat16), whh_ref[1],
                                   preferred_element_type=jnp.float32)
        h_f, c_f = cell(gf, cf[...])
        h_b, c_b = cell(gb, cb[...])
        hf[...] = h_f
        cf[...] = c_f
        hb[...] = h_b
        cb[...] = c_b
        hf_out_ref[t] = h_f
        hb_out_ref[tb] = h_b
        return carry

    jax.lax.fori_loop(0, length, step, 0)


def _pad_lstm_ih(w_ih, b, H, Hp):
    Din = w_ih.shape[1]
    w = jnp.pad(w_ih.reshape(4, H, Din), ((0, 0), (0, Hp - H), (0, 0)))
    bp = jnp.pad(b.reshape(4, H), ((0, 0), (0, Hp - H)))
    return w.reshape(4 * Hp, Din).T, bp.reshape(4 * Hp)


def _pad_lstm_hh(w_hh, H, Hp):
    w = jnp.pad(w_hh.reshape(4, H, H), ((0, 0), (0, Hp - H), (0, Hp - H)))
    return w.reshape(4 * Hp, Hp).T


def _pad_bilstm_lin_w(w, H, Hp):
    _, C, ks = w.shape
    w2 = jnp.pad(w.reshape(2, H, C, ks), ((0, 0), (0, Hp - H), (0, 0), (0, 0)))
    return w2.reshape(2 * Hp, C, ks)


def _pick_lstm_batch_tile(L, Hp, N):
    budget = 4 * 1024 * 1024
    per_row = max(1, L * 8 * Hp * 4)
    t = max(8, min(64, (budget // per_row) // 8 * 8))
    return min(t, _round_up(N, 8))


def bilstm(xseq, p, prefix, hidden):
    """Bidirectional single-layer LSTM.  xseq [N,L,Din] -> [N,L,2*Hp] (padded lanes are zero).
    TODO(synk): very long sequences should chunk L with manual double-buffered DMA."""
    N, L, Din = xseq.shape
    H = hidden
    Hp = _round_up(H, 128)
    wf, bf_ = _pad_lstm_ih(p[f'{prefix}_w_ih_f'], p[f'{prefix}_b_f'], H, Hp)
    wb, bb_ = _pad_lstm_ih(p[f'{prefix}_w_ih_b'], p[f'{prefix}_b_b'], H, Hp)
    xproj = pallas_matmul(xseq.reshape(N * L, Din),
                          jnp.concatenate([wf, wb], axis=1),
                          jnp.concatenate([bf_, bb_], axis=0))        # (N*L, 8Hp) f32
    xproj = xproj.reshape(N, L, 8 * Hp).transpose(1, 0, 2)            # (L, N, 8Hp)
    whh = jnp.stack([_pad_lstm_hh(p[f'{prefix}_w_hh_f'], H, Hp),
                     _pad_lstm_hh(p[f'{prefix}_w_hh_b'], H, Hp)], 0).astype(jnp.bfloat16)
    tnb = _pick_lstm_batch_tile(L, Hp, N)
    Np = _round_up(N, tnb)
    xproj = jnp.pad(xproj, ((0, 0), (0, Np - N), (0, 0)))
    hf, hb = pl.pallas_call(
        functools.partial(_bilstm_kernel, hp=Hp, length=L),
        grid=(Np // tnb,),
        in_specs=[pl.BlockSpec((L, tnb, 8 * Hp), lambda n: (0, n, 0)),
                  pl.BlockSpec((2, Hp, 4 * Hp), lambda n: (0, 0, 0))],
        out_specs=(pl.BlockSpec((L, tnb, Hp), lambda n: (0, n, 0)),
                   pl.BlockSpec((L, tnb, Hp), lambda n: (0, n, 0))),
        out_shape=(jax.ShapeDtypeStruct((L, Np, Hp), jnp.float32),
                   jax.ShapeDtypeStruct((L, Np, Hp), jnp.float32)),
        scratch_shapes=[pltpu.VMEM((tnb, Hp), jnp.float32)] * 4,
        compiler_params=pltpu.CompilerParams(dimension_semantics=("parallel",)),
    )(xproj, whh)
    h = jnp.concatenate([hf[:, :N, :], hb[:, :N, :]], axis=-1)        # (L, N, 2Hp)
    return h.transpose(1, 0, 2)


# ----------------------------------------------------------------------------
# Flash-style attention (online softmax)
# ----------------------------------------------------------------------------

def _flash_attn_kernel(q_ref, k_ref, v_ref, o_ref, m_sc, l_sc, acc_sc, *, scale, kv_len, tkv):
    ki = pl.program_id(2)

    @pl.when(ki == 0)
    def _():
        m_sc[...] = jnp.full_like(m_sc, -jnp.inf)
        l_sc[...] = jnp.zeros_like(l_sc)
        acc_sc[...] = jnp.zeros_like(acc_sc)

    s = jnp.einsum('bqd,bkd->bqk', q_ref[...], k_ref[...],
                   preferred_element_type=jnp.float32) * scale
    col = ki * tkv + jax.lax.broadcasted_iota(jnp.int32, s.shape, 2)
    s = jnp.where(col < kv_len, s, -1e30)                     # mask padded kv positions
    m_new = jnp.maximum(m_sc[...], s.max(-1, keepdims=True))
    alpha = jnp.exp(m_sc[...] - m_new)
    p = jnp.exp(s - m_new)
    l_sc[...] = alpha * l_sc[...] + p.sum(-1, keepdims=True)
    acc_sc[...] = alpha * acc_sc[...] + jnp.einsum(
        'bqk,bkd->bqd', p.astype(v_ref.dtype), v_ref[...],
        preferred_element_type=jnp.float32)
    m_sc[...] = m_new

    @pl.when(ki == pl.num_programs(2) - 1)
    def _():
        o_ref[...] = (acc_sc[...] * pl.reciprocal(l_sc[...], approx=True)).astype(o_ref.dtype)


def pallas_attention(q, k, v, scale):
    """Softmax attention over the frame axis, tiled flash-style.  q/k [G,T,Dk], v [G,T,Dv]."""
    G, T, Dk = q.shape
    Dv = v.shape[-1]
    tt = min(128, _round_up(T, 16))
    Tp = _round_up(T, tt)
    Dkp = _round_up(Dk, 128)
    Dvp = _round_up(Dv, 128)
    qp = jnp.pad(q.astype(jnp.bfloat16), ((0, 0), (0, Tp - T), (0, Dkp - Dk)))
    kp = jnp.pad(k.astype(jnp.bfloat16), ((0, 0), (0, Tp - T), (0, Dkp - Dk)))
    vp = jnp.pad(v.astype(jnp.bfloat16), ((0, 0), (0, Tp - T), (0, Dvp - Dv)))
    out = pl.pallas_call(
        functools.partial(_flash_attn_kernel, scale=scale, kv_len=T, tkv=tt),
        grid=(G, Tp // tt, Tp // tt),
        in_specs=[pl.BlockSpec((1, tt, Dkp), lambda g, qi, ki: (g, qi, 0)),
                  pl.BlockSpec((1, tt, Dkp), lambda g, qi, ki: (g, ki, 0)),
                  pl.BlockSpec((1, tt, Dvp), lambda g, qi, ki: (g, ki, 0))],
        out_specs=pl.BlockSpec((1, tt, Dvp), lambda g, qi, ki: (g, qi, 0)),
        out_shape=jax.ShapeDtypeStruct((G, Tp, Dvp), jnp.float32),
        scratch_shapes=[pltpu.VMEM((1, tt, 1), jnp.float32),
                        pltpu.VMEM((1, tt, 1), jnp.float32),
                        pltpu.VMEM((1, tt, Dvp), jnp.float32)],
        compiler_params=pltpu.CompilerParams(
            dimension_semantics=("parallel", "parallel", "arbitrary")),
    )(qp, kp, vp)
    return out[:, :T, :Dv]


# ----------------------------------------------------------------------------
# Config & parameters
# ----------------------------------------------------------------------------

@dataclass(frozen=True)
class Config:
    n_fft: int = 128
    hop_length: int = 64
    n_audio_channel: int = 1
    n_layers: int = 6
    ks_F: int = 3
    ks_T: int = 3
    hidden: int = 192
    n_head: int = 4
    qk_dim: int = 4
    emb_dim: int = 48
    emb_ks: int = 4
    emb_hs: int = 1
    eps: float = 1e-5

    @property
    def n_freqs(self):
        return self.n_fft // 2 + 1


def init_params(key, cfg):
    C, H, ks = cfg.emb_dim, cfg.hidden, cfg.emb_ks
    Fq, nh, E = cfg.n_freqs, cfg.n_head, cfg.qk_dim
    Cin = 2 * cfg.n_audio_channel

    keys = iter(jax.random.split(key, 256))
    nk = lambda: next(keys)
    nrm = lambda k, shape: 0.1 * jax.random.normal(k, shape, jnp.float32)

    params = {'embed': dict(
        w=nrm(nk(), (C, Cin, cfg.ks_T, cfg.ks_F)),
        b=jnp.zeros((C,), jnp.float32),
        gn_g=jnp.ones((C,), jnp.float32),
        gn_b=jnp.zeros((C,), jnp.float32))}

    blocks = []
    for _ in range(cfg.n_layers):
        blk = {'intra_norm_g': jnp.ones((C,)), 'intra_norm_b': jnp.zeros((C,)),
               'inter_norm_g': jnp.ones((C,)), 'inter_norm_b': jnp.zeros((C,))}
        Din = C * ks
        for nm in ('intra', 'inter'):
            blk[f'{nm}_w_ih_f'] = nrm(nk(), (4 * H, Din))
            blk[f'{nm}_w_hh_f'] = nrm(nk(), (4 * H, H))
            blk[f'{nm}_b_f'] = jnp.zeros((4 * H,))          # b_ih + b_hh (summed)
            blk[f'{nm}_w_ih_b'] = nrm(nk(), (4 * H, Din))
            blk[f'{nm}_w_hh_b'] = nrm(nk(), (4 * H, H))
            blk[f'{nm}_b_b'] = jnp.zeros((4 * H,))
            blk[f'{nm}_lin_w'] = nrm(nk(), (2 * H, C, ks))   # ConvTranspose1d weight
            blk[f'{nm}_lin_b'] = jnp.zeros((C,))
        blk['Wq'] = nrm(nk(), (C, nh * E)); blk['bq'] = jnp.zeros((nh * E,))
        blk['Wk'] = nrm(nk(), (C, nh * E)); blk['bk'] = jnp.zeros((nh * E,))
        blk['Wv'] = nrm(nk(), (C, C));      blk['bv'] = jnp.zeros((C,))
        blk['aq'] = 0.25 * jnp.ones((nh,)); blk['ak'] = 0.25 * jnp.ones((nh,))
        blk['av'] = 0.25 * jnp.ones((nh,))
        blk['gq'] = jnp.ones((nh, E, Fq));      blk['bq_ln'] = jnp.zeros((nh, E, Fq))
        blk['gk'] = jnp.ones((nh, E, Fq));      blk['bk_ln'] = jnp.zeros((nh, E, Fq))
        blk['gv'] = jnp.ones((nh, C // nh, Fq)); blk['bv_ln'] = jnp.zeros((nh, C // nh, Fq))
        blk['Wp'] = nrm(nk(), (C, C)); blk['bp'] = jnp.zeros((C,))
        blk['ap'] = jnp.float32(0.25)
        blk['gp'] = jnp.ones((C, Fq)); blk['bp_ln'] = jnp.zeros((C, Fq))
        blocks.append(blk)
    params['blocks'] = blocks
    return params


# ----------------------------------------------------------------------------
# Glue (framing / im2col / reshapes) around the Pallas kernels
# ----------------------------------------------------------------------------

def stft_features(x, cfg):
    """x [B, M, L] -> [B, 2M, T, F]: centered STFT (reflect pad, periodic Hann)."""
    B, M, L = x.shape
    n_fft, hop = cfg.n_fft, cfg.hop_length
    pad = n_fft // 2
    xp = jnp.pad(x, ((0, 0), (0, 0), (pad, pad)), mode='reflect')
    n_frames = (xp.shape[-1] - n_fft) // hop + 1
    idx = (jnp.arange(n_frames) * hop)[:, None] + jnp.arange(n_fft)[None, :]
    frames = xp[:, :, idx]                                   # [B, M, T, n_fft]
    n = jnp.arange(n_fft, dtype=jnp.float32)
    f = jnp.arange(cfg.n_freqs, dtype=jnp.float32)
    win = 0.5 - 0.5 * jnp.cos(2.0 * jnp.pi * n / n_fft)
    ang = 2.0 * jnp.pi * n[:, None] * f[None, :] / n_fft
    w_ri = jnp.concatenate([win[:, None] * jnp.cos(ang),
                            -win[:, None] * jnp.sin(ang)], axis=1)   # [n_fft, 2F]
    spec = pallas_matmul(frames.reshape(B * M * n_frames, n_fft), w_ri)
    spec = spec.reshape(B, M, n_frames, 2, cfg.n_freqs)
    return jnp.concatenate([spec[:, :, :, 0, :], spec[:, :, :, 1, :]], axis=1)


def dimension_embedding(x, p, cfg):
    """Conv2d(2M -> emb_dim, 3x3, padding='same') + GroupNorm(1, emb_dim)."""
    B, Cin, T, F = x.shape
    w, b = p['w'], p['b']
    Cout, _, kh, kw = w.shape
    xp = jnp.pad(x, ((0, 0), (0, 0), (kh // 2, kh // 2), (kw // 2, kw // 2)))
    cols = [xp[:, :, i:i + T, j:j + F] for i in range(kh) for j in range(kw)]
    patches = jnp.stack(cols, axis=2)                        # [B, Cin, kh*kw, T, F]
    patches = patches.transpose(0, 3, 4, 1, 2).reshape(B * T * F, Cin * kh * kw)
    y = pallas_matmul(patches, w.reshape(Cout, -1).T, b)
    y = y.reshape(B, T, F, Cout).transpose(0, 3, 1, 2)
    return group_norm1(y, p['gn_g'], p['gn_b'], cfg.eps)


def unfold1d(x, ks, hs):
    """F.unfold along the last axis: [N, C, Q] -> [N, L, C*ks] (channel-major)."""
    N, C, Q = x.shape
    L = (Q - ks) // hs + 1
    cols = [x[:, :, k:k + (L - 1) * hs + 1:hs] for k in range(ks)]
    u = jnp.stack(cols, axis=2).reshape(N, C * ks, L)
    return u.transpose(0, 2, 1)


def conv_transpose1d(h, w, b, ks, hs):
    """ConvTranspose1d as matmul + dense overlap-add.  h [N,L,D], w [D,C,ks]."""
    N, L, D = h.shape
    _, C, _ = w.shape
    P = pallas_matmul(h.reshape(N * L, D), w.reshape(D, C * ks)).reshape(N, L, C, ks)
    Qlen = (L - 1) * hs + ks
    if hs == 1:
        out = sum(jnp.pad(P[:, :, :, kk].transpose(0, 2, 1),
                          ((0, 0), (0, 0), (kk, ks - 1 - kk)))
                  for kk in range(ks))
    else:
        # TODO(synk): strided overlap-add kept as XLA scatter-add (emb_hs == 1 in this model).
        out = jnp.zeros((N, C, Qlen), jnp.float32)
        for kk in range(ks):
            out = out.at[:, :, kk:kk + (L - 1) * hs + 1:hs].add(
                P[:, :, :, kk].transpose(0, 2, 1))
    return out + b[None, :, None]


def tf_gridnet_block(x, p, cfg):
    B, C, T0, Q0 = x.shape
    ks, hs, H, eps = cfg.emb_ks, cfg.emb_hs, cfg.hidden, cfg.eps
    Hp = _round_up(H, 128)
    T = -(-(T0 - ks) // hs) * hs + ks
    Q = -(-(Q0 - ks) // hs) * hs + ks
    x = jnp.pad(x, ((0, 0), (0, 0), (0, T - T0), (0, Q - Q0)))

    # ---- intra (BLSTM over frequency) ----
    inp = x
    h = layernorm_channel(x, p['intra_norm_g'], p['intra_norm_b'], eps)
    h = h.transpose(0, 2, 1, 3).reshape(B * T, C, Q)
    h = bilstm(unfold1d(h, ks, hs), p, 'intra', H)
    h = conv_transpose1d(h, _pad_bilstm_lin_w(p['intra_lin_w'], H, Hp),
                         p['intra_lin_b'], ks, hs)
    x = inp + h.reshape(B, T, C, Q).transpose(0, 2, 1, 3)

    # ---- inter (BLSTM over time) ----
    inp = x
    h = layernorm_channel(x, p['inter_norm_g'], p['inter_norm_b'], eps)
    h = h.transpose(0, 3, 1, 2).reshape(B * Q, C, T)
    h = bilstm(unfold1d(h, ks, hs), p, 'inter', H)
    h = conv_transpose1d(h, _pad_bilstm_lin_w(p['inter_lin_w'], H, Hp),
                         p['inter_lin_b'], ks, hs)
    x = inp + h.reshape(B, Q, C, T).transpose(0, 2, 3, 1)

    x = x[:, :, :T0, :Q0]

    # ---- full-band multi-head self-attention over frames ----
    nh, E = cfg.n_head, cfg.qk_dim
    Ch, Fq = C // nh, Q0
    xp_ = x.transpose(0, 2, 3, 1).reshape(B * T0 * Fq, C)
    w_qkv = jnp.concatenate([p['Wq'], p['Wk'], p['Wv']], axis=1)
    b_qkv = jnp.concatenate([p['bq'], p['bk'], p['bv']], axis=0)
    qkv = pallas_matmul(xp_, w_qkv, b_qkv)
    q = qkv[:, :nh * E].reshape(B, T0, Fq, nh, E)
    k = qkv[:, nh * E:2 * nh * E].reshape(B, T0, Fq, nh, E)
    v = qkv[:, 2 * nh * E:].reshape(B, T0, Fq, nh, Ch)

    def to_heads(t, d):                                  # [B,T0,Fq,nh,d] -> [nh, B*T0, d*Fq]
        return t.transpose(3, 0, 1, 4, 2).reshape(nh, B * T0, d * Fq)

    # fused per-head PReLU + LayerNorm: one call for (Q,K) heads, one for V heads
    qk = jnp.concatenate([to_heads(q, E), to_heads(k, E)], axis=0)
    g_qk = jnp.concatenate([p['gq'].reshape(nh, -1), p['gk'].reshape(nh, -1)], axis=0)
    b_qk = jnp.concatenate([p['bq_ln'].reshape(nh, -1), p['bk_ln'].reshape(nh, -1)], axis=0)
    a_qk = jnp.concatenate([p['aq'], p['ak']], axis=0)
    qk_n = grouped_prelu_layernorm(qk, g_qk, b_qk, a_qk, eps)
    v_n = grouped_prelu_layernorm(to_heads(v, Ch), p['gv'].reshape(nh, -1),
                                  p['bv_ln'].reshape(nh, -1), p['av'], eps)
    Qa = qk_n[:nh].reshape(nh * B, T0, E * Fq)
    Ka = qk_n[nh:].reshape(nh * B, T0, E * Fq)
    Va = v_n.reshape(nh * B, T0, Ch * Fq)
    att = pallas_attention(Qa, Ka, Va, 1.0 / math.sqrt(E * Fq))      # [nh*B, T0, Ch*Fq]
    att = att.reshape(nh, B, T0, Ch, Fq).transpose(1, 0, 3, 2, 4).reshape(B, C, T0, Fq)

    # concat projection: 1x1 conv + PReLU + LayerNorm over (C, F)
    a2 = att.transpose(0, 2, 3, 1).reshape(B * T0 * Fq, C)
    proj = pallas_matmul(a2, p['Wp'], p['bp']).reshape(B, T0, Fq, C)
    proj = proj.transpose(0, 1, 3, 2).reshape(1, B * T0, C * Fq)
    proj = grouped_prelu_layernorm(proj, p['gp'].reshape(1, -1), p['bp_ln'].reshape(1, -1),
                                   jnp.reshape(p['ap'], (1,)), eps)[0]
    proj = proj.reshape(B, T0, C, Fq).transpose(0, 2, 1, 3)
    return proj + x


def tfgridnet_encoder(audio, params, cfg):
    audio_length = audio.shape[-1]
    x = audio
    if x.ndim == 2:
        x = x[:, None, :]
    x, std = rms_normalize(x)
    x = stft_features(x, cfg)
    x = dimension_embedding(x, params['embed'], cfg)
    for blk in params['blocks']:
        x = tf_gridnet_block(x, blk, cfg)
    return x, std, audio_length


# ----------------------------------------------------------------------------
# Demo
# ----------------------------------------------------------------------------

if __name__ == "__main__":
    # Small config consistent with the module's structure.
    cfg = Config(n_fft=32, hop_length=16, n_audio_channel=1, n_layers=2,
                 ks_F=3, ks_T=3, hidden=32, n_head=2, qk_dim=4,
                 emb_dim=16, emb_ks=4, emb_hs=1, eps=1e-5)

    key = jax.random.PRNGKey(0)
    pkey, dkey = jax.random.split(key)
    params = init_params(pkey, cfg)

    B, L = 2, 128                                  # -> 9 frames x 17 freq bins
    audio = jax.random.normal(dkey, (B, L), jnp.float32)

    @jax.jit
    def run(a, p):
        return tfgridnet_encoder(a, p, cfg)

    emb, std, audio_length = run(audio, params)
    jax.block_until_ready((emb, std))
    assert emb.shape == (B, cfg.emb_dim, 1 + L // cfg.hop_length, cfg.n_freqs)
    assert std.shape == (B, 1, 1)
    print("KERNEL_OK")
</pallas_src>

<mosaic_0001>
module attributes {stable_mosaic.version = 11 : i64} {
  func.func @_rms_scale_kernel(%arg0: i32, %arg1: memref<8x128xf32, #tpu.memory_space<vmem>>, %arg2: memref<8x1xf32, #tpu.memory_space<vmem>>, %arg3: memref<8x128xf32, #tpu.memory_space<vmem>>) attributes {dimension_semantics = [#tpu.dimension_semantics<parallel>], iteration_bounds = array<i64: 1>, scalar_prefetch = 0 : i64, scratch_operands = 0 : i64, tpu.core_type = #tpu.core_type<tc>, window_params = [{transform_indices = @transform_0, window_bounds = array<i64: 8, 128>}, {pipeline_mode = #tpu.pipeline_mode<synchronous>, transform_indices = @transform_1, window_bounds = array<i64: 8, 1>}, {transform_indices = @transform_2, window_bounds = array<i64: 8, 128>}]} {
    %c0 = arith.constant 0 : index
    %c0_0 = arith.constant 0 : index
    %0 = vector.load %arg1[%c0, %c0_0] : memref<8x128xf32, #tpu.memory_space<vmem>>, vector<8x128xf32>
    %c0_1 = arith.constant 0 : index
    %c0_2 = arith.constant 0 : index
    %1 = vector.load %arg2[%c0_1, %c0_2] : memref<8x1xf32, #tpu.memory_space<vmem>>, vector<8x1xf32>
    %2 = vector.broadcast %1 : vector<8x1xf32> to vector<8x128xf32>
    %3 = arith.mulf %0, %2 : vector<8x128xf32>
    %c0_3 = arith.constant 0 : index
    %c0_4 = arith.constant 0 : index
    %4 = vector.load %arg3[%c0_3, %c0_4] : memref<8x128xf32, #tpu.memory_space<vmem>>, vector<8x128xf32>
    tpu.vector_store %arg3[%c0_3, %c0_4], %3 {strides = array<i32>} : memref<8x128xf32, #tpu.memory_space<vmem>>, vector<8x128xf32>,
    return
  }
  func.func @transform_0(%arg0: i32) -> (i32, i32) {
    %c0_i32 = arith.constant 0 : i32
    %c0_i32_0 = arith.constant 0 : i32
    return %c0_i32, %arg0 : i32, i32
  }
  func.func @transform_1(%arg0: i32) -> (i32, i32) {
    %c0_i32 = arith.constant 0 : i32
    %c0_i32_0 = arith.constant 0 : i32
    %c0_i32_1 = arith.constant 0 : i32
    return %c0_i32, %c0_i32_0 : i32, i32
  }
  func.func @transform_2(%arg0: i32) -> (i32, i32) {
    %c0_i32 = arith.constant 0 : i32
    %c0_i32_0 = arith.constant 0 : i32
    return %c0_i32, %arg0 : i32, i32
  }
}

module attributes {stable_mosaic.version = 11 : i64} {
  func.func @_rms_stats_kernel(%arg0: i32, %arg1: memref<8x128xf32, #tpu.memory_space<vmem>>, %arg2: memref<8x1xf32, #tpu.memory_space<vmem>>) attributes {dimension_semantics = [#tpu.dimension_semantics<arbitrary>], iteration_bounds = array<i64: 1>, scalar_prefetch = 0 : i64, scratch_operands = 0 : i64, tpu.core_type = #tpu.core_type<tc>, window_params = [{transform_indices = @transform_0, window_bounds = array<i64: 8, 128>}, {pipeline_mode = #tpu.pipeline_mode<synchronous>, transform_indices = @transform_1, window_bounds = array<i64: 8, 1>}]} {
    %c0_i32 = arith.constant 0 : i32
    %0 = arith.cmpi eq, %arg0, %c0_i32 : i32
    %1 = arith.extui %0 : i1 to i32
    %c0_i32_0 = arith.constant 0 : i32
    %2 = arith.cmpi ne, %1, %c0_i32_0 : i32
    scf.if %2 {
      %cst_6 = arith.constant 0.000000e+00 : f32
      %10 = vector.broadcast %cst_6 : f32 to vector<8x1xf32>
      %c0_7 = arith.constant 0 : index
      %c0_8 = arith.constant 0 : index
      %11 = vector.load %arg2[%c0_7, %c0_8] : memref<8x1xf32, #tpu.memory_space<vmem>>, vector<8x1xf32>
      tpu.vector_store %arg2[%c0_7, %c0_8], %10 {strides = array<i32>} : memref<8x1xf32, #tpu.memory_space<vmem>>, vector<8x1xf32>,
    } else {
    }
    %c0 = arith.constant 0 : index
    %c0_1 = arith.constant 0 : index
    %3 = vector.load %arg1[%c0, %c0_1] : memref<8x128xf32, #tpu.memory_space<vmem>>, vector<8x128xf32>
    %c0_2 = arith.constant 0 : index
    %c0_3 = arith.constant 0 : index
    %4 = vector.load %arg2[%c0_2, %c0_3] : memref<8x1xf32, #tpu.memory_space<vmem>>, vector<8x1xf32>
    %5 = arith.mulf %3, %3 : vector<8x128xf32>
    %cst = arith.constant dense<0.000000e+00> : vector<8xf32>
    %6 = vector.multi_reduction <add>, %5, %cst [1] : vector<8x128xf32> to vector<8xf32>
    %7 = vector.shape_cast %6 : vector<8xf32> to vector<8x1xf32>
    %8 = arith.addf %4, %7 : vector<8x1xf32>
    %c0_4 = arith.constant 0 : index
    %c0_5 = arith.constant 0 : index
    %9 = vector.load %arg2[%c0_4, %c0_5] : memref<8x1xf32, #tpu.memory_space<vmem>>, vector<8x1xf32>
    tpu.vector_store %arg2[%c0_4, %c0_5], %8 {strides = array<i32>} : memref<8x1xf32, #tpu.memory_space<vmem>>, vector<8x1xf32>,
    return
  }
  func.func @transform_0(%arg0: i32) -> (i32, i32) {
    %c0_i32 = arith.constant 0 : i32
    %c0_i32_0 = arith.constant 0 : i32
    return %c0_i32, %arg0 : i32, i32
  }
  func.func @transform_1(%arg0: i32) -> (i32, i32) {
    %c0_i32 = arith.constant 0 : i32
    %c0_i32_0 = arith.constant 0 : i32
    %c0_i32_1 = arith.constant 0 : i32
    return %c0_i32, %c0_i32_0 : i32, i32
  }
}

module attributes {stable_mosaic.version = 11 : i64} {
  func.func @_mm_kernel(%arg0: i32, %arg1: i32, %arg2: i32, %arg3: memref<32x128xbf16, #tpu.memory_space<vmem>>, %arg4: memref<128x128xbf16, #tpu.memory_space<vmem>>, %arg5: memref<32x128xf32, #tpu.memory_space<vmem>>, %arg6: memref<32x128xf32, #tpu.memory_space<vmem>>) attributes {dimension_semantics = [#tpu.dimension_semantics<parallel>, #tpu.dimension_semantics<parallel>, #tpu.dimension_semantics<arbitrary>], iteration_bounds = array<i64: 1, 1, 1>, scalar_prefetch = 0 : i64, scratch_operands = 1 : i64, tpu.core_type = #tpu.core_type<tc>, window_params = [{transform_indices = @transform_0, window_bounds = array<i64: 32, 128>}, {transform_indices = @transform_1, window_bounds = array<i64: 128, 128>}, {transform_indices = @transform_2, window_bounds = array<i64: 32, 128>}]} {
    %c0_i32 = arith.constant 0 : i32
    %0 = arith.cmpi eq, %arg2, %c0_i32 : i32
    %1 = arith.extui %0 : i1 to i32
    %c0_i32_0 = arith.constant 0 : i32
    %2 = arith.cmpi ne, %1, %c0_i32_0 : i32
    scf.if %2 {
      %cst_10 = arith.constant 0.000000e+00 : f32
      %12 = vector.broadcast %cst_10 : f32 to vector<32x128xf32>
      %c0_11 = arith.constant 0 : index
      %c0_12 = arith.constant 0 : index
      %13 = vector.load %arg6[%c0_11, %c0_12] : memref<32x128xf32, #tpu.memory_space<vmem>>, vector<32x128xf32>
      tpu.vector_store %arg6[%c0_11, %c0_12], %12 {strides = array<i32>} : memref<32x128xf32, #tpu.memory_space<vmem>>, vector<32x128xf32>,
    } else {
    }
    %c0 = arith.constant 0 : index
    %c0_1 = arith.constant 0 : index
    %3 = vector.load %arg6[%c0, %c0_1] : memref<32x128xf32, #tpu.memory_space<vmem>>, vector<32x128xf32>
    %c0_2 = arith.constant 0 : index
    %c0_3 = arith.constant 0 : index
    %4 = vector.load %arg3[%c0_2, %c0_3] : memref<32x128xbf16, #tpu.memory_space<vmem>>, vector<32x128xbf16>
    %c0_4 = arith.constant 0 : index
    %c0_5 = arith.constant 0 : index
    %5 = vector.load %arg4[%c0_4, %c0_5] : memref<128x128xbf16, #tpu.memory_space<vmem>>, vector<128x128xbf16>
    %cst = arith.constant dense<0.000000e+00> : vector<32x128xf32>
    %6 = tpu.matmul %4, %5, %cst {dimension_numbers = #tpu.dot_dimension_numbers<[1], [0], [0], [1], [0, 0, 1, 1], [], []>} : vector<32x128xbf16>, vector<128x128xbf16>, vector<32x128xf32> -> vector<32x128xf32>
    %7 = arith.addf %3, %6 : vector<32x128xf32>
    %c0_6 = arith.constant 0 : index
    %c0_7 = arith.constant 0 : index
    %8 = vector.load %arg6[%c0_6, %c0_7] : memref<32x128xf32, #tpu.memory_space<vmem>>, vector<32x128xf32>
    tpu.vector_store %arg6[%c0_6, %c0_7], %7 {strides = array<i32>} : memref<32x128xf32, #tpu.memory_space<vmem>>, vector<32x128xf32>,
    %c0_i32_8 = arith.constant 0 : i32
    %9 = arith.cmpi eq, %arg2, %c0_i32_8 : i32
    %10 = arith.extui %9 : i1 to i32
    %c0_i32_9 = arith.constant 0 : i32
    %11 = arith.cmpi ne, %10, %c0_i32_9 : i32
    scf.if %11 {
      %c0_10 = arith.constant 0 : index
      %c0_11 = arith.constant 0 : index
      %12 = vector.load %arg6[%c0_10, %c0_11] : memref<32x128xf32, #tpu.memory_space<vmem>>, vector<32x128xf32>
      %c0_12 = arith.constant 0 : index
      %c0_13 = arith.constant 0 : index
      %13 = vector.load %arg5[%c0_12, %c0_13] : memref<32x128xf32, #tpu.memory_space<vmem>>, vector<32x128xf32>
      tpu.vector_store %arg5[%c0_12, %c0_13], %12 {strides = array<i32>} : memref<32x128xf32, #tpu.memory_space<vmem>>, vector<32x128xf32>,
    } else {
    }
    return
  }
  func.func @transform_0(%arg0: i32, %arg1: i32, %arg2: i32) -> (i32, i32) {
    %c0_i32 = arith.constant 0 : i32
    return %arg0, %arg2 : i32, i32
  }
  func.func @transform_1(%arg0: i32, %arg1: i32, %arg2: i32) -> (i32, i32) {
    %c0_i32 = arith.constant 0 : i32
    return %arg2, %arg1 : i32, i32
  }
  func.func @transform_2(%arg0: i32, %arg1: i32, %arg2: i32) -> (i32, i32) {
    %c0_i32 = arith.constant 0 : i32
    return %arg0, %arg1 : i32, i32
  }
}

module attributes {stable_mosaic.version = 11 : i64} {
  func.func @_mm_bias_kernel(%arg0: i32, %arg1: i32, %arg2: i32, %arg3: memref<256x128xbf16, #tpu.memory_space<vmem>>, %arg4: memref<128x128xbf16, #tpu.memory_space<vmem>>, %arg5: memref<1x128xf32, #tpu.memory_space<vmem>>, %arg6: memref<256x128xf32, #tpu.memory_space<vmem>>, %arg7: memref<256x128xf32, #tpu.memory_space<vmem>>) attributes {dimension_semantics = [#tpu.dimension_semantics<parallel>, #tpu.dimension_semantics<parallel>, #tpu.dimension_semantics<arbitrary>], iteration_bounds = array<i64: 2, 1, 1>, scalar_prefetch = 0 : i64, scratch_operands = 1 : i64, tpu.core_type = #tpu.core_type<tc>, window_params = [{transform_indices = @transform_0, window_bounds = array<i64: 256, 128>}, {transform_indices = @transform_1, window_bounds = array<i64: 128, 128>}, {transform_indices = @transform_2, window_bounds = array<i64: 1, 128>}, {transform_indices = @transform_3, window_bounds = array<i64: 256, 128>}]} {
    %c0_i32 = arith.constant 0 : i32
    %0 = arith.cmpi eq, %arg2, %c0_i32 : i32
    %1 = arith.extui %0 : i1 to i32
    %c0_i32_0 = arith.constant 0 : i32
    %2 = arith.cmpi ne, %1, %c0_i32_0 : i32
    scf.if %2 {
      %cst_10 = arith.constant 0.000000e+00 : f32
      %12 = vector.broadcast %cst_10 : f32 to vector<256x128xf32>
      %c0_11 = arith.constant 0 : index
      %c0_12 = arith.constant 0 : index
      %13 = vector.load %arg7[%c0_11, %c0_12] : memref<256x128xf32, #tpu.memory_space<vmem>>, vector<256x128xf32>
      tpu.vector_store %arg7[%c0_11, %c0_12], %12 {strides = array<i32>} : memref<256x128xf32, #tpu.memory_space<vmem>>, vector<256x128xf32>,
    } else {
    }
    %c0 = arith.constant 0 : index
    %c0_1 = arith.constant 0 : index
    %3 = vector.load %arg7[%c0, %c0_1] : memref<256x128xf32, #tpu.memory_space<vmem>>, vector<256x128xf32>
    %c0_2 = arith.constant 0 : index
    %c0_3 = arith.constant 0 : index
    %4 = vector.load %arg3[%c0_2, %c0_3] : memref<256x128xbf16, #tpu.memory_space<vmem>>, vector<256x128xbf16>
    %c0_4 = arith.constant 0 : index
    %c0_5 = arith.constant 0 : index
    %5 = vector.load %arg4[%c0_4, %c0_5] : memref<128x128xbf16, #tpu.memory_space<vmem>>, vector<128x128xbf16>
    %cst = arith.constant dense<0.000000e+00> : vector<256x128xf32>
    %6 = tpu.matmul %4, %5, %cst {dimension_numbers = #tpu.dot_dimension_numbers<[1], [0], [0], [1], [0, 0, 1, 1], [], []>} : vector<256x128xbf16>, vector<128x128xbf16>, vector<256x128xf32> -> vector<256x128xf32>
    %7 = arith.addf %3, %6 : vector<256x128xf32>
    %c0_6 = arith.constant 0 : index
    %c0_7 = arith.constant 0 : index
    %8 = vector.load %arg7[%c0_6, %c0_7] : memref<256x128xf32, #tpu.memory_space<vmem>>, vector<256x128xf32>
    tpu.vector_store %arg7[%c0_6, %c0_7], %7 {strides = array<i32>} : memref<256x128xf32, #tpu.memory_space<vmem>>, vector<256x128xf32>,
    %c0_i32_8 = arith.constant 0 : i32
    %9 = arith.cmpi eq, %arg2, %c0_i32_8 : i32
    %10 = arith.extui %9 : i1 to i32
    %c0_i32_9 = arith.constant 0 : i32
    %11 = arith.cmpi ne, %10, %c0_i32_9 : i32
    scf.if %11 {
      %c0_10 = arith.constant 0 : index
      %c0_11 = arith.constant 0 : index
      %12 = vector.load %arg7[%c0_10, %c0_11] : memref<256x128xf32, #tpu.memory_space<vmem>>, vector<256x128xf32>
      %c0_12 = arith.constant 0 : index
      %c0_13 = arith.constant 0 : index
      %13 = vector.load %arg5[%c0_12, %c0_13] : memref<1x128xf32, #tpu.memory_space<vmem>>, vector<1x128xf32>
      %14 = vector.broadcast %13 : vector<1x128xf32> to vector<256x128xf32>
      %15 = arith.addf %12, %14 : vector<256x128xf32>
      %c0_14 = arith.constant 0 : index
      %c0_15 = arith.constant 0 : index
      %16 = vector.load %arg6[%c0_14, %c0_15] : memref<256x128xf32, #tpu.memory_space<vmem>>, vector<256x128xf32>
      tpu.vector_store %arg6[%c0_14, %c0_15], %15 {strides = array<i32>} : memref<256x128xf32, #tpu.memory_space<vmem>>, vector<256x128xf32>,
    } else {
    }
    return
  }
  func.func @transform_0(%arg0: i32, %arg1: i32, %arg2: i32) -> (i32, i32) {
    %c0_i32 = arith.constant 0 : i32
    return %arg0, %arg2 : i32, i32
  }
  func.func @transform_1(%arg0: i32, %arg1: i32, %arg2: i32) -> (i32, i32) {
    %c0_i32 = arith.constant 0 : i32
    return %arg2, %arg1 : i32, i32
  }
  func.func @transform_2(%arg0: i32, %arg1: i32, %arg2: i32) -> (i32, i32) {
    %c0_i32 = arith.constant 0 : i32
    %c0_i32_0 = arith.constant 0 : i32
    return %c0_i32, %arg1 : i32, i32
  }
  func.func @transform_3(%arg0: i32, %arg1: i32, %arg2: i32) -> (i32, i32) {
    %c0_i32 = arith.constant 0 : i32
    return %arg0, %arg1 : i32, i32
  }
}

module attributes {stable_mosaic.version = 11 : i64} {
  func.func @_gn_affine_kernel(%arg0: i32, %arg1: i32, %arg2: memref<1x16x16x128xf32, #tpu.memory_space<vmem>>, %arg3: memref<1x16x1x1xf32, #tpu.memory_space<vmem>>, %arg4: memref<1x16x1x1xf32, #tpu.memory_space<vmem>>, %arg5: memref<1x16x16x128xf32, #tpu.memory_space<vmem>>) attributes {dimension_semantics = [#tpu.dimension_semantics<parallel>, #tpu.dimension_semantics<parallel>], iteration_bounds = array<i64: 2, 1>, scalar_prefetch = 0 : i64, scratch_operands = 0 : i64, tpu.core_type = #tpu.core_type<tc>, window_params = [{transform_indices = @transform_0, window_bounds = array<i64: 1, 16, 16, 128>}, {transform_indices = @transform_1, window_bounds = array<i64: 1, 16, 1, 1>}, {transform_indices = @transform_2, window_bounds = array<i64: 1, 16, 1, 1>}, {transform_indices = @transform_3, window_bounds = array<i64: 1, 16, 16, 128>}]} {
    %c0 = arith.constant 0 : index
    %c0_0 = arith.constant 0 : index
    %c0_1 = arith.constant 0 : index
    %c0_2 = arith.constant 0 : index
    %0 = vector.load %arg2[%c0, %c0_0, %c0_1, %c0_2] : memref<1x16x16x128xf32, #tpu.memory_space<vmem>>, vector<1x16x16x128xf32>
    %c0_3 = arith.constant 0 : index
    %c0_4 = arith.constant 0 : index
    %c0_5 = arith.constant 0 : index
    %c0_6 = arith.constant 0 : index
    %1 = vector.load %arg3[%c0_3, %c0_4, %c0_5, %c0_6] : memref<1x16x1x1xf32, #tpu.memory_space<vmem>>, vector<1x16x1x1xf32>
    %2 = vector.broadcast %1 : vector<1x16x1x1xf32> to vector<1x16x16x128xf32>
    %3 = arith.mulf %0, %2 : vector<1x16x16x128xf32>
    %c0_7 = arith.constant 0 : index
    %c0_8 = arith.constant 0 : index
    %c0_9 = arith.constant 0 : index
    %c0_10 = arith.constant 0 : index
    %4 = vector.load %arg4[%c0_7, %c0_8, %c0_9, %c0_10] : memref<1x16x1x1xf32, #tpu.memory_space<vmem>>, vector<1x16x1x1xf32>
    %5 = vector.broadcast %4 : vector<1x16x1x1xf32> to vector<1x16x16x128xf32>
    %6 = arith.addf %3, %5 : vector<1x16x16x128xf32>
    %c0_11 = arith.constant 0 : index
    %c0_12 = arith.constant 0 : index
    %c0_13 = arith.constant 0 : index
    %c0_14 = arith.constant 0 : index
    %7 = vector.load %arg5[%c0_11, %c0_12, %c0_13, %c0_14] : memref<1x16x16x128xf32, #tpu.memory_space<vmem>>, vector<1x16x16x128xf32>
    tpu.vector_store %arg5[%c0_11, %c0_12, %c0_13, %c0_14], %6 {strides = array<i32>} : memref<1x16x16x128xf32, #tpu.memory_space<vmem>>, vector<1x16x16x128xf32>,
    return
  }
  func.func @transform_0(%arg0: i32, %arg1: i32) -> (i32, i32, i32, i32) {
    %c0_i32 = arith.constant 0 : i32
    %c0_i32_0 = arith.constant 0 : i32
    %c0_i32_1 = arith.constant 0 : i32
    return %arg0, %c0_i32, %arg1, %c0_i32_0 : i32, i32, i32, i32
  }
  func.func @transform_1(%arg0: i32, %arg1: i32) -> (i32, i32, i32, i32) {
    %c0_i32 = arith.constant 0 : i32
    %c0_i32_0 = arith.constant 0 : i32
    %c0_i32_1 = arith.constant 0 : i32
    %c0_i32_2 = arith.constant 0 : i32
    return %arg0, %c0_i32, %c0_i32_0, %c0_i32_1 : i32, i32, i32, i32
  }
  func.func @transform_2(%arg0: i32, %arg1: i32) -> (i32, i32, i32, i32) {
    %c0_i32 = arith.constant 0 : i32
    %c0_i32_0 = arith.constant 0 : i32
    %c0_i32_1 = arith.constant 0 : i32
    %c0_i32_2 = arith.constant 0 : i32
    return %arg0, %c0_i32, %c0_i32_0, %c0_i32_1 : i32, i32, i32, i32
  }
  func.func @transform_3(%arg0: i32, %arg1: i32) -> (i32, i32, i32, i32) {
    %c0_i32 = arith.constant 0 : i32
    %c0_i32_0 = arith.constant 0 : i32
    %c0_i32_1 = arith.constant 0 : i32
    return %arg0, %c0_i32, %arg1, %c0_i32_0 : i32, i32, i32, i32
  }
}

module attributes {stable_mosaic.version = 11 : i64} {
  func.func @_gn_stats_kernel(%arg0: i32, %arg1: i32, %arg2: memref<1x144x128xf32, #tpu.memory_space<vmem>>, %arg3: memref<1x1x128xf32, #tpu.memory_space<vmem>>, %arg4: memref<1x1x128xf32, #tpu.memory_space<vmem>>) attributes {dimension_semantics = [#tpu.dimension_semantics<parallel>, #tpu.dimension_semantics<arbitrary>], iteration_bounds = array<i64: 2, 1>, scalar_prefetch = 0 : i64, scratch_operands = 0 : i64, tpu.core_type = #tpu.core_type<tc>, window_params = [{transform_indices = @transform_0, window_bounds = array<i64: 1, 144, 128>}, {transform_indices = @transform_1, window_bounds = array<i64: 1, 1, 128>}, {transform_indices = @transform_2, window_bounds = array<i64: 1, 1, 128>}]} {
    %c0_i32 = arith.constant 0 : i32
    %0 = arith.cmpi eq, %arg1, %c0_i32 : i32
    %1 = arith.extui %0 : i1 to i32
    %c0_i32_0 = arith.constant 0 : i32
    %2 = arith.cmpi ne, %1, %c0_i32_0 : i32
    scf.if %2 {
      %cst_16 = arith.constant 0.000000e+00 : f32
      %18 = vector.broadcast %cst_16 : f32 to vector<1x1x128xf32>
      %c0_17 = arith.constant 0 : index
      %c0_18 = arith.constant 0 : index
      %c0_19 = arith.constant 0 : index
      %19 = vector.load %arg3[%c0_17, %c0_18, %c0_19] : memref<1x1x128xf32, #tpu.memory_space<vmem>>, vector<1x1x128xf32>
      tpu.vector_store %arg3[%c0_17, %c0_18, %c0_19], %18 {strides = array<i32>} : memref<1x1x128xf32, #tpu.memory_space<vmem>>, vector<1x1x128xf32>,
      %cst_20 = arith.constant 0.000000e+00 : f32
      %20 = vector.broadcast %cst_20 : f32 to vector<1x1x128xf32>
      %c0_21 = arith.constant 0 : index
      %c0_22 = arith.constant 0 : index
      %c0_23 = arith.constant 0 : index
      %21 = vector.load %arg4[%c0_21, %c0_22, %c0_23] : memref<1x1x128xf32, #tpu.memory_space<vmem>>, vector<1x1x128xf32>
      tpu.vector_store %arg4[%c0_21, %c0_22, %c0_23], %20 {strides = array<i32>} : memref<1x1x128xf32, #tpu.memory_space<vmem>>, vector<1x1x128xf32>,
    } else {
    }
    %c0 = arith.constant 0 : index
    %c0_1 = arith.constant 0 : index
    %c0_2 = arith.constant 0 : index
    %3 = vector.load %arg2[%c0, %c0_1, %c0_2] : memref<1x144x128xf32, #tpu.memory_space<vmem>>, vector<1x144x128xf32>
    %4 = vector.shape_cast %3 : vector<1x144x128xf32> to vector<144x128xf32>
    %c0_3 = arith.constant 0 : index
    %c0_4 = arith.constant 0 : index
    %c0_5 = arith.constant 0 : index
    %5 = vector.load %arg3[%c0_3, %c0_4, %c0_5] : memref<1x1x128xf32, #tpu.memory_space<vmem>>, vector<1x1x128xf32>
    %cst = arith.constant dense<0.000000e+00> : vector<128xf32>
    %6 = vector.multi_reduction <add>, %4, %cst [0] : vector<144x128xf32> to vector<128xf32>
    %7 = vector.shape_cast %6 : vector<128xf32> to vector<1x128xf32>
    %8 = vector.shape_cast %7 : vector<1x128xf32> to vector<1x1x128xf32>
    %9 = arith.addf %5, %8 : vector<1x1x128xf32>
    %c0_6 = arith.constant 0 : index
    %c0_7 = arith.constant 0 : index
    %c0_8 = arith.constant 0 : index
    %10 = vector.load %arg3[%c0_6, %c0_7, %c0_8] : memref<1x1x128xf32, #tpu.memory_space<vmem>>, vector<1x1x128xf32>
    tpu.vector_store %arg3[%c0_6, %c0_7, %c0_8], %9 {strides = array<i32>} : memref<1x1x128xf32, #tpu.memory_space<vmem>>, vector<1x1x128xf32>,
    %c0_9 = arith.constant 0 : index
    %c0_10 = arith.constant 0 : index
    %c0_11 = arith.constant 0 : index
    %11 = vector.load %arg4[%c0_9, %c0_10, %c0_11] : memref<1x1x128xf32, #tpu.memory_space<vmem>>, vector<1x1x128xf32>
    %12 = arith.mulf %4, %4 : vector<144x128xf32>
    %cst_12 = arith.constant dense<0.000000e+00> : vector<128xf32>
    %13 = vector.multi_reduction <add>, %12, %cst_12 [0] : vector<144x128xf32> to vector<128xf32>
    %14 = vector.shape_cast %13 : vector<128xf32> to vector<1x128xf32>
    %15 = vector.shape_cast %14 : vector<1x128xf32> to vector<1x1x128xf32>
    %16 = arith.addf %11, %15 : vector<1x1x128xf32>
    %c0_13 = arith.constant 0 : index
    %c0_14 = arith.constant 0 : index
    %c0_15 = arith.constant 0 : index
    %17 = vector.load %arg4[%c0_13, %c0_14, %c0_15] : memref<1x1x128xf32, #tpu.memory_space<vmem>>, vector<1x1x128xf32>
    tpu.vector_store %arg4[%c0_13, %c0_14, %c0_15], %16 {strides = array<i32>} : memref<1x1x128xf32, #tpu.memory_space<vmem>>, vector<1x1x128xf32>,
    return
  }
  func.func @transform_0(%arg0: i32, %arg1: i32) -> (i32, i32, i32) {
    %c0_i32 = arith.constant 0 : i32
    %c0_i32_0 = arith.constant 0 : i32
    return %arg0, %arg1, %c0_i32 : i32, i32, i32
  }
  func.func @transform_1(%arg0: i32, %arg1: i32) -> (i32, i32, i32) {
    %c0_i32 = arith.constant 0 : i32
    %c0_i32_0 = arith.constant 0 : i32
    %c0_i32_1 = arith.constant 0 : i32
    return %arg0, %c0_i32, %c0_i32_0 : i32, i32, i32
  }
  func.func @transform_2(%arg0: i32, %arg1: i32) -> (i32, i32, i32) {
    %c0_i32 = arith.constant 0 : i32
    %c0_i32_0 = arith.constant 0 : i32
    %c0_i32_1 = arith.constant 0 : i32
    return %arg0, %c0_i32, %c0_i32_0 : i32, i32, i32
  }
}

module attributes {stable_mosaic.version = 11 : i64} {
  func.func @_chan_ln_kernel(%arg0: i32, %arg1: i32, %arg2: memref<1x16x16x128xf32, #tpu.memory_space<vmem>>, %arg3: memref<1x16x1x1xf32, #tpu.memory_space<vmem>>, %arg4: memref<1x16x1x1xf32, #tpu.memory_space<vmem>>, %arg5: memref<1x16x16x128xf32, #tpu.memory_space<vmem>>) attributes {dimension_semantics = [#tpu.dimension_semantics<parallel>, #tpu.dimension_semantics<parallel>], iteration_bounds = array<i64: 2, 1>, scalar_prefetch = 0 : i64, scratch_operands = 0 : i64, tpu.core_type = #tpu.core_type<tc>, window_params = [{transform_indices = @transform_0, window_bounds = array<i64: 1, 16, 16, 128>}, {pipeline_mode = #tpu.pipeline_mode<synchronous>, transform_indices = @transform_1, window_bounds = array<i64: 1, 16, 1, 1>}, {pipeline_mode = #tpu.pipeline_mode<synchronous>, transform_indices = @transform_2, window_bounds = array<i64: 1, 16, 1, 1>}, {transform_indices = @transform_3, window_bounds = array<i64: 1, 16, 16, 128>}]} {
    %c0 = arith.constant 0 : index
    %c0_0 = arith.constant 0 : index
    %c0_1 = arith.constant 0 : index
    %c0_2 = arith.constant 0 : index
    %0 = vector.load %arg2[%c0, %c0_0, %c0_1, %c0_2] : memref<1x16x16x128xf32, #tpu.memory_space<vmem>>, vector<1x16x16x128xf32>
    %cst = arith.constant dense<0.000000e+00> : vector<1x16x128xf32>
    %1 = vector.multi_reduction <add>, %0, %cst [1] : vector<1x16x16x128xf32> to vector<1x16x128xf32>
    %2 = vector.shape_cast %1 : vector<1x16x128xf32> to vector<1x1x16x128xf32>
    %cst_3 = arith.constant 1.600000e+01 : f32
    %3 = vector.broadcast %cst_3 : f32 to vector<1x1x16x128xf32>
    %4 = arith.divf %2, %3 : vector<1x1x16x128xf32>
    %5 = vector.broadcast %4 : vector<1x1x16x128xf32> to vector<1x16x16x128xf32>
    %6 = arith.subf %0, %5 : vector<1x16x16x128xf32>
    %7 = arith.mulf %6, %6 : vector<1x16x16x128xf32>
    %cst_4 = arith.constant dense<0.000000e+00> : vector<1x16x128xf32>
    %8 = vector.multi_reduction <add>, %7, %cst_4 [1] : vector<1x16x16x128xf32> to vector<1x16x128xf32>
    %9 = vector.shape_cast %8 : vector<1x16x128xf32> to vector<1x1x16x128xf32>
    %cst_5 = arith.constant 1.600000e+01 : f32
    %10 = vector.broadcast %cst_5 : f32 to vector<1x1x16x128xf32>
    %11 = arith.divf %9, %10 : vector<1x1x16x128xf32>
    %12 = vector.broadcast %4 : vector<1x1x16x128xf32> to vector<1x16x16x128xf32>
    %13 = arith.subf %0, %12 : vector<1x16x16x128xf32>
    %cst_6 = arith.constant 9.99999974E-6 : f32
    %14 = vector.broadcast %cst_6 : f32 to vector<1x1x16x128xf32>
    %15 = arith.addf %11, %14 : vector<1x1x16x128xf32>
    %16 = math.rsqrt %15 : vector<1x1x16x128xf32>
    %17 = vector.broadcast %16 : vector<1x1x16x128xf32> to vector<1x16x16x128xf32>
    %18 = arith.mulf %13, %17 : vector<1x16x16x128xf32>
    %c0_7 = arith.constant 0 : index
    %c0_8 = arith.constant 0 : index
    %c0_9 = arith.constant 0 : index
    %c0_10 = arith.constant 0 : index
    %19 = vector.load %arg3[%c0_7, %c0_8, %c0_9, %c0_10] : memref<1x16x1x1xf32, #tpu.memory_space<vmem>>, vector<1x16x1x1xf32>
    %20 = vector.broadcast %19 : vector<1x16x1x1xf32> to vector<1x16x16x128xf32>
    %21 = arith.mulf %18, %20 : vector<1x16x16x128xf32>
    %c0_11 = arith.constant 0 : index
    %c0_12 = arith.constant 0 : index
    %c0_13 = arith.constant 0 : index
    %c0_14 = arith.constant 0 : index
    %22 = vector.load %arg4[%c0_11, %c0_12, %c0_13, %c0_14] : memref<1x16x1x1xf32, #tpu.memory_space<vmem>>, vector<1x16x1x1xf32>
    %23 = vector.broadcast %22 : vector<1x16x1x1xf32> to vector<1x16x16x128xf32>
    %24 = arith.addf %21, %23 : vector<1x16x16x128xf32>
    %c0_15 = arith.constant 0 : index
    %c0_16 = arith.constant 0 : index
    %c0_17 = arith.constant 0 : index
    %c0_18 = arith.constant 0 : index
    %25 = vector.load %arg5[%c0_15, %c0_16, %c0_17, %c0_18] : memref<1x16x16x128xf32, #tpu.memory_space<vmem>>, vector<1x16x16x128xf32>
    tpu.vector_store %arg5[%c0_15, %c0_16, %c0_17, %c0_18], %24 {strides = array<i32>} : memref<1x16x16x128xf32, #tpu.memory_space<vmem>>, vector<1x16x16x128xf32>,
    return
  }
  func.func @transform_0(%arg0: i32, %arg1: i32) -> (i32, i32, i32, i32) {
    %c0_i32 = arith.constant 0 : i32
    %c0_i32_0 = arith.constant 0 : i32
    %c0_i32_1 = arith.constant 0 : i32
    return %arg0, %c0_i32, %arg1, %c0_i32_0 : i32, i32, i32, i32
  }
  func.func @transform_1(%arg0: i32, %arg1: i32) -> (i32, i32, i32, i32) {
    %c0_i32 = arith.constant 0 : i32
    %c0_i32_0 = arith.constant 0 : i32
    %c0_i32_1 = arith.constant 0 : i32
    %c0_i32_2 = arith.constant 0 : i32
    %c0_i32_3 = arith.constant 0 : i32
    return %c0_i32, %c0_i32_0, %c0_i32_1, %c0_i32_2 : i32, i32, i32, i32
  }
  func.func @transform_2(%arg0: i32, %arg1: i32) -> (i32, i32, i32, i32) {
    %c0_i32 = arith.constant 0 : i32
    %c0_i32_0 = arith.constant 0 : i32
    %c0_i32_1 = arith.constant 0 : i32
    %c0_i32_2 = arith.constant 0 : i32
    %c0_i32_3 = arith.constant 0 : i32
    return %c0_i32, %c0_i32_0, %c0_i32_1, %c0_i32_2 : i32, i32, i32, i32
  }
  func.func @transform_3(%arg0: i32, %arg1: i32) -> (i32, i32, i32, i32) {
    %c0_i32 = arith.constant 0 : i32
    %c0_i32_0 = arith.constant 0 : i32
    %c0_i32_1 = arith.constant 0 : i32
    return %arg0, %c0_i32, %arg1, %c0_i32_0 : i32, i32, i32, i32
  }
}

module attributes {stable_mosaic.version = 11 : i64} {
  func.func @_mm_bias_kernel(%arg0: i32, %arg1: i32, %arg2: i32, %arg3: memref<256x128xbf16, #tpu.memory_space<vmem>>, %arg4: memref<128x256xbf16, #tpu.memory_space<vmem>>, %arg5: memref<1x256xf32, #tpu.memory_space<vmem>>, %arg6: memref<256x256xf32, #tpu.memory_space<vmem>>, %arg7: memref<256x256xf32, #tpu.memory_space<vmem>>) attributes {dimension_semantics = [#tpu.dimension_semantics<parallel>, #tpu.dimension_semantics<parallel>, #tpu.dimension_semantics<arbitrary>], iteration_bounds = array<i64: 1, 4, 1>, scalar_prefetch = 0 : i64, scratch_operands = 1 : i64, tpu.core_type = #tpu.core_type<tc>, window_params = [{transform_indices = @transform_0, window_bounds = array<i64: 256, 128>}, {transform_indices = @transform_1, window_bounds = array<i64: 128, 256>}, {transform_indices = @transform_2, window_bounds = array<i64: 1, 256>}, {transform_indices = @transform_3, window_bounds = array<i64: 256, 256>}]} {
    %c0_i32 = arith.constant 0 : i32
    %0 = arith.cmpi eq, %arg2, %c0_i32 : i32
    %1 = arith.extui %0 : i1 to i32
    %c0_i32_0 = arith.constant 0 : i32
    %2 = arith.cmpi ne, %1, %c0_i32_0 : i32
    scf.if %2 {
      %cst_10 = arith.constant 0.000000e+00 : f32
      %12 = vector.broadcast %cst_10 : f32 to vector<256x256xf32>
      %c0_11 = arith.constant 0 : index
      %c0_12 = arith.constant 0 : index
      %13 = vector.load %arg7[%c0_11, %c0_12] : memref<256x256xf32, #tpu.memory_space<vmem>>, vector<256x256xf32>
      tpu.vector_store %arg7[%c0_11, %c0_12], %12 {strides = array<i32>} : memref<256x256xf32, #tpu.memory_space<vmem>>, vector<256x256xf32>,
    } else {
    }
    %c0 = arith.constant 0 : index
    %c0_1 = arith.constant 0 : index
    %3 = vector.load %arg7[%c0, %c0_1] : memref<256x256xf32, #tpu.memory_space<vmem>>, vector<256x256xf32>
    %c0_2 = arith.constant 0 : index
    %c0_3 = arith.constant 0 : index
    %4 = vector.load %arg3[%c0_2, %c0_3] : memref<256x128xbf16, #tpu.memory_space<vmem>>, vector<256x128xbf16>
    %c0_4 = arith.constant 0 : index
    %c0_5 = arith.constant 0 : index
    %5 = vector.load %arg4[%c0_4, %c0_5] : memref<128x256xbf16, #tpu.memory_space<vmem>>, vector<128x256xbf16>
    %cst = arith.constant dense<0.000000e+00> : vector<256x256xf32>
    %6 = tpu.matmul %4, %5, %cst {dimension_numbers = #tpu.dot_dimension_numbers<[1], [0], [0], [1], [0, 0, 1, 1], [], []>} : vector<256x128xbf16>, vector<128x256xbf16>, vector<256x256xf32> -> vector<256x256xf32>
    %7 = arith.addf %3, %6 : vector<256x256xf32>
    %c0_6 = arith.constant 0 : index
    %c0_7 = arith.constant 0 : index
    %8 = vector.load %arg7[%c0_6, %c0_7] : memref<256x256xf32, #tpu.memory_space<vmem>>, vector<256x256xf32>
    tpu.vector_store %arg7[%c0_6, %c0_7], %7 {strides = array<i32>} : memref<256x256xf32, #tpu.memory_space<vmem>>, vector<256x256xf32>,
    %c0_i32_8 = arith.constant 0 : i32
    %9 = arith.cmpi eq, %arg2, %c0_i32_8 : i32
    %10 = arith.extui %9 : i1 to i32
    %c0_i32_9 = arith.constant 0 : i32
    %11 = arith.cmpi ne, %10, %c0_i32_9 : i32
    scf.if %11 {
      %c0_10 = arith.constant 0 : index
      %c0_11 = arith.constant 0 : index
      %12 = vector.load %arg7[%c0_10, %c0_11] : memref<256x256xf32, #tpu.memory_space<vmem>>, vector<256x256xf32>
      %c0_12 = arith.constant 0 : index
      %c0_13 = arith.constant 0 : index
      %13 = vector.load %arg5[%c0_12, %c0_13] : memref<1x256xf32, #tpu.memory_space<vmem>>, vector<1x256xf32>
      %14 = vector.broadcast %13 : vector<1x256xf32> to vector<256x256xf32>
      %15 = arith.addf %12, %14 : vector<256x256xf32>
      %c0_14 = arith.constant 0 : index
      %c0_15 = arith.constant 0 : index
      %16 = vector.load %arg6[%c0_14, %c0_15] : memref<256x256xf32, #tpu.memory_space<vmem>>, vector<256x256xf32>
      tpu.vector_store %arg6[%c0_14, %c0_15], %15 {strides = array<i32>} : memref<256x256xf32, #tpu.memory_space<vmem>>, vector<256x256xf32>,
    } else {
    }
    return
  }
  func.func @transform_0(%arg0: i32, %arg1: i32, %arg2: i32) -> (i32, i32) {
    %c0_i32 = arith.constant 0 : i32
    return %arg0, %arg2 : i32, i32
  }
  func.func @transform_1(%arg0: i32, %arg1: i32, %arg2: i32) -> (i32, i32) {
    %c0_i32 = arith.constant 0 : i32
    return %arg2, %arg1 : i32, i32
  }
  func.func @transform_2(%arg0: i32, %arg1: i32, %arg2: i32) -> (i32, i32) {
    %c0_i32 = arith.constant 0 : i32
    %c0_i32_0 = arith.constant 0 : i32
    return %c0_i32, %arg1 : i32, i32
  }
  func.func @transform_3(%arg0: i32, %arg1: i32, %arg2: i32) -> (i32, i32) {
    %c0_i32 = arith.constant 0 : i32
    return %arg0, %arg1 : i32, i32
  }
}

module attributes {stable_mosaic.version = 11 : i64} {
  func.func @_bilstm_kernel(%arg0: i32, %arg1: memref<14x24x1024xf32, #tpu.memory_space<vmem>>, %arg2: memref<2x128x512xbf16, #tpu.memory_space<vmem>>, %arg3: memref<14x24x128xf32, #tpu.memory_space<vmem>>, %arg4: memref<14x24x128xf32, #tpu.memory_space<vmem>>, %arg5: memref<24x128xf32, #tpu.memory_space<vmem>>, %arg6: memref<24x128xf32, #tpu.memory_space<vmem>>, %arg7: memref<24x128xf32, #tpu.memory_space<vmem>>, %arg8: memref<24x128xf32, #tpu.memory_space<vmem>>) attributes {dimension_semantics = [#tpu.dimension_semantics<parallel>], iteration_bounds = array<i64: 1>, scalar_prefetch = 0 : i64, scratch_operands = 4 : i64, tpu.core_type = #tpu.core_type<tc>, window_params = [{transform_indices = @transform_0, window_bounds = array<i64: 14, 24, 1024>}, {pipeline_mode = #tpu.pipeline_mode<synchronous>, transform_indices = @transform_1, window_bounds = array<i64: 2, 128, 512>}, {transform_indices = @transform_2, window_bounds = array<i64: 14, 24, 128>}, {transform_indices = @transform_3, window_bounds = array<i64: 14, 24, 128>}]} {
    %cst = arith.constant 0.000000e+00 : f32
    %0 = vector.broadcast %cst : f32 to vector<24x128xf32>
    %c0 = arith.constant 0 : index
    %c0_0 = arith.constant 0 : index
    %1 = vector.load %arg5[%c0, %c0_0] : memref<24x128xf32, #tpu.memory_space<vmem>>, vector<24x128xf32>
    tpu.vector_store %arg5[%c0, %c0_0], %0 {strides = array<i32>} : memref<24x128xf32, #tpu.memory_space<vmem>>, vector<24x128xf32>,
    %cst_1 = arith.constant 0.000000e+00 : f32
    %2 = vector.broadcast %cst_1 : f32 to vector<24x128xf32>
    %c0_2 = arith.constant 0 : index
    %c0_3 = arith.constant 0 : index
    %3 = vector.load %arg6[%c0_2, %c0_3] : memref<24x128xf32, #tpu.memory_space<vmem>>, vector<24x128xf32>
    tpu.vector_store %arg6[%c0_2, %c0_3], %2 {strides = array<i32>} : memref<24x128xf32, #tpu.memory_space<vmem>>, vector<24x128xf32>,
    %cst_4 = arith.constant 0.000000e+00 : f32
    %4 = vector.broadcast %cst_4 : f32 to vector<24x128xf32>
    %c0_5 = arith.constant 0 : index
    %c0_6 = arith.constant 0 : index
    %5 = vector.load %arg7[%c0_5, %c0_6] : memref<24x128xf32, #tpu.memory_space<vmem>>, vector<24x128xf32>
    tpu.vector_store %arg7[%c0_5, %c0_6], %4 {strides = array<i32>} : memref<24x128xf32, #tpu.memory_space<vmem>>, vector<24x128xf32>,
    %cst_7 = arith.constant 0.000000e+00 : f32
    %6 = vector.broadcast %cst_7 : f32 to vector<24x128xf32>
    %c0_8 = arith.constant 0 : index
    %c0_9 = arith.constant 0 : index
    %7 = vector.load %arg8[%c0_8, %c0_9] : memref<24x128xf32, #tpu.memory_space<vmem>>, vector<24x128xf32>
    tpu.vector_store %arg8[%c0_8, %c0_9], %6 {strides = array<i32>} : memref<24x128xf32, #tpu.memory_space<vmem>>, vector<24x128xf32>,
    %c0_i32 = arith.constant 0 : i32
    %c14_i32 = arith.constant 14 : i32
    %8 = arith.addi %c0_i32, %c14_i32 : i32
    %c1_i32 = arith.constant 1 : i32
    scf.for %arg9 = %c0_i32 to %8 step %c1_i32  : i32 {
      %c13_i32 = arith.constant 13 : i32
      %9 = arith.subi %c13_i32, %arg9 : i32
      %10 = arith.index_cast %arg9 : i32 to index
      %c0_11 = arith.constant 0 : index
      %c0_12 = arith.constant 0 : index
      %11 = vector.load %arg1[%10, %c0_11, %c0_12] : memref<14x24x1024xf32, #tpu.memory_space<vmem>>, vector<1x24x1024xf32>
      %12 = vector.shape_cast %11 : vector<1x24x1024xf32> to vector<24x1024xf32>
      %13 = arith.index_cast %9 : i32 to index
      %c0_13 = arith.constant 0 : index
      %c0_14 = arith.constant 0 : index
      %14 = vector.load %arg1[%13, %c0_13, %c0_14] : memref<14x24x1024xf32, #tpu.memory_space<vmem>>, vector<1x24x1024xf32>
      %15 = vector.shape_cast %14 : vector<1x24x1024xf32> to vector<24x1024xf32>
      %16 = vector.extract_strided_slice %12 {offsets = [0, 0], sizes = [24, 512], strides = [1, 1]} : vector<24x1024xf32> to vector<24x512xf32>
      %c0_15 = arith.constant 0 : index
      %c0_16 = arith.constant 0 : index
      %17 = vector.load %arg5[%c0_15, %c0_16] : memref<24x128xf32, #tpu.memory_space<vmem>>, vector<24x128xf32>
      %18 = arith.truncf %17 : vector<24x128xf32> to vector<24x128xbf16>
      %c0_17 = arith.constant 0 : index
      %c0_18 = arith.constant 0 : index
      %c0_19 = arith.constant 0 : index
      %19 = vector.load %arg2[%c0_17, %c0_18, %c0_19] : memref<2x128x512xbf16, #tpu.memory_space<vmem>>, vector<1x128x512xbf16>
      %20 = vector.shape_cast %19 : vector<1x128x512xbf16> to vector<128x512xbf16>
      %cst_20 = arith.constant dense<0.000000e+00> : vector<24x512xf32>
      %21 = tpu.matmul %18, %20, %cst_20 {dimension_numbers = #tpu.dot_dimension_numbers<[1], [0], [0], [1], [0, 0, 1, 1], [], []>} : vector<24x128xbf16>, vector<128x512xbf16>, vector<24x512xf32> -> vector<24x512xf32>
      %22 = arith.addf %16, %21 : vector<24x512xf32>
      %23 = vector.extract_strided_slice %15 {offsets = [0, 512], sizes = [24, 512], strides = [1, 1]} : vector<24x1024xf32> to vector<24x512xf32>
      %c0_21 = arith.constant 0 : index
      %c0_22 = arith.constant 0 : index
      %24 = vector.load %arg7[%c0_21, %c0_22] : memref<24x128xf32, #tpu.memory_space<vmem>>, vector<24x128xf32>
      %25 = arith.truncf %24 : vector<24x128xf32> to vector<24x128xbf16>
      %c1 = arith.constant 1 : index
      %c0_23 = arith.constant 0 : index
      %c0_24 = arith.constant 0 : index
      %26 = vector.load %arg2[%c1, %c0_23, %c0_24] : memref<2x128x512xbf16, #tpu.memory_space<vmem>>, vector<1x128x512xbf16>
      %27 = vector.shape_cast %26 : vector<1x128x512xbf16> to vector<128x512xbf16>
      %cst_25 = arith.constant dense<0.000000e+00> : vector<24x512xf32>
      %28 = tpu.matmul %25, %27, %cst_25 {dimension_numbers = #tpu.dot_dimension_numbers<[1], [0], [0], [1], [0, 0, 1, 1], [], []>} : vector<24x128xbf16>, vector<128x512xbf16>, vector<24x512xf32> -> vector<24x512xf32>
      %29 = arith.addf %23, %28 : vector<24x512xf32>
      %c0_26 = arith.constant 0 : index
      %c0_27 = arith.constant 0 : index
      %30 = vector.load %arg6[%c0_26, %c0_27] : memref<24x128xf32, #tpu.memory_space<vmem>>, vector<24x128xf32>
      %31 = vector.extract_strided_slice %22 {offsets = [0, 0], sizes = [24, 128], strides = [1, 1]} : vector<24x512xf32> to vector<24x128xf32>
      %32 = arith.negf %31 : vector<24x128xf32>
      %33 = math.exp %32 : vector<24x128xf32>
      %cst_28 = arith.constant 1.000000e+00 : f32
      %34 = vector.broadcast %cst_28 : f32 to vector<24x128xf32>
      %35 = arith.addf %34, %33 : vector<24x128xf32>
      %36 = arith.divf %34, %35 : vector<24x128xf32>
      %37 = vector.extract_strided_slice %22 {offsets = [0, 128], sizes = [24, 128], strides = [1, 1]} : vector<24x512xf32> to vector<24x128xf32>
      %38 = arith.negf %37 : vector<24x128xf32>
      %39 = math.exp %38 : vector<24x128xf32>
      %cst_29 = arith.constant 1.000000e+00 : f32
      %40 = vector.broadcast %cst_29 : f32 to vector<24x128xf32>
      %41 = arith.addf %40, %39 : vector<24x128xf32>
      %42 = arith.divf %40, %41 : vector<24x128xf32>
      %43 = vector.extract_strided_slice %22 {offsets = [0, 256], sizes = [24, 128], strides = [1, 1]} : vector<24x512xf32> to vector<24x128xf32>
      %44 = math.tanh %43 : vector<24x128xf32>
      %45 = vector.extract_strided_slice %22 {offsets = [0, 384], sizes = [24, 128], strides = [1, 1]} : vector<24x512xf32> to vector<24x128xf32>
      %46 = arith.negf %45 : vector<24x128xf32>
      %47 = math.exp %46 : vector<24x128xf32>
      %cst_30 = arith.constant 1.000000e+00 : f32
      %48 = vector.broadcast %cst_30 : f32 to vector<24x128xf32>
      %49 = arith.addf %48, %47 : vector<24x128xf32>
      %50 = arith.divf %48, %49 : vector<24x128xf32>
      %51 = arith.mulf %42, %30 : vector<24x128xf32>
      %52 = arith.mulf %36, %44 : vector<24x128xf32>
      %53 = arith.addf %51, %52 : vector<24x128xf32>
      %54 = math.tanh %53 : vector<24x128xf32>
      %55 = arith.mulf %50, %54 : vector<24x128xf32>
      %c0_31 = arith.constant 0 : index
      %c0_32 = arith.constant 0 : index
      %56 = vector.load %arg8[%c0_31, %c0_32] : memref<24x128xf32, #tpu.memory_space<vmem>>, vector<24x128xf32>
      %57 = vector.extract_strided_slice %29 {offsets = [0, 0], sizes = [24, 128], strides = [1, 1]} : vector<24x512xf32> to vector<24x128xf32>
      %58 = arith.negf %57 : vector<24x128xf32>
      %59 = math.exp %58 : vector<24x128xf32>
      %cst_33 = arith.constant 1.000000e+00 : f32
      %60 = vector.broadcast %cst_33 : f32 to vector<24x128xf32>
      %61 = arith.addf %60, %59 : vector<24x128xf32>
      %62 = arith.divf %60, %61 : vector<24x128xf32>
      %63 = vector.extract_strided_slice %29 {offsets = [0, 128], sizes = [24, 128], strides = [1, 1]} : vector<24x512xf32> to vector<24x128xf32>
      %64 = arith.negf %63 : vector<24x128xf32>
      %65 = math.exp %64 : vector<24x128xf32>
      %cst_34 = arith.constant 1.000000e+00 : f32
      %66 = vector.broadcast %cst_34 : f32 to vector<24x128xf32>
      %67 = arith.addf %66, %65 : vector<24x128xf32>
      %68 = arith.divf %66, %67 : vector<24x128xf32>
      %69 = vector.extract_strided_slice %29 {offsets = [0, 256], sizes = [24, 128], strides = [1, 1]} : vector<24x512xf32> to vector<24x128xf32>
      %70 = math.tanh %69 : vector<24x128xf32>
      %71 = vector.extract_strided_slice %29 {offsets = [0, 384], sizes = [24, 128], strides = [1, 1]} : vector<24x512xf32> to vector<24x128xf32>
      %72 = arith.negf %71 : vector<24x128xf32>
      %73 = math.exp %72 : vector<24x128xf32>
      %cst_35 = arith.constant 1.000000e+00 : f32
      %74 = vector.broadcast %cst_35 : f32 to vector<24x128xf32>
      %75 = arith.addf %74, %73 : vector<24x128xf32>
      %76 = arith.divf %74, %75 : vector<24x128xf32>
      %77 = arith.mulf %68, %56 : vector<24x128xf32>
      %78 = arith.mulf %62, %70 : vector<24x128xf32>
      %79 = arith.addf %77, %78 : vector<24x128xf32>
      %80 = math.tanh %79 : vector<24x128xf32>
      %81 = arith.mulf %76, %80 : vector<24x128xf32>
      %c0_36 = arith.constant 0 : index
      %c0_37 = arith.constant 0 : index
      %82 = vector.load %arg5[%c0_36, %c0_37] : memref<24x128xf32, #tpu.memory_space<vmem>>, vector<24x128xf32>
      tpu.vector_store %arg5[%c0_36, %c0_37], %55 {strides = array<i32>} : memref<24x128xf32, #tpu.memory_space<vmem>>, vector<24x128xf32>,
      %c0_38 = arith.constant 0 : index
      %c0_39 = arith.constant 0 : index
      %83 = vector.load %arg6[%c0_38, %c0_39] : memref<24x128xf32, #tpu.memory_space<vmem>>, vector<24x128xf32>
      tpu.vector_store %arg6[%c0_38, %c0_39], %53 {strides = array<i32>} : memref<24x128xf32, #tpu.memory_space<vmem>>, vector<24x128xf32>,
      %c0_40 = arith.constant 0 : index
      %c0_41 = arith.constant 0 : index
      %84 = vector.load %arg7[%c0_40, %c0_41] : memref<24x128xf32, #tpu.memory_space<vmem>>, vector<24x128xf32>
      tpu.vector_store %arg7[%c0_40, %c0_41], %81 {strides = array<i32>} : memref<24x128xf32, #tpu.memory_space<vmem>>, vector<24x128xf32>,
      %c0_42 = arith.constant 0 : index
      %c0_43 = arith.constant 0 : index
      %85 = vector.load %arg8[%c0_42, %c0_43] : memref<24x128xf32, #tpu.memory_space<vmem>>, vector<24x128xf32>
      tpu.vector_store %arg8[%c0_42, %c0_43], %79 {strides = array<i32>} : memref<24x128xf32, #tpu.memory_space<vmem>>, vector<24x128xf32>,
      %86 = arith.index_cast %arg9 : i32 to index
      %c0_44 = arith.constant 0 : index
      %c0_45 = arith.constant 0 : index
      %87 = vector.load %arg3[%86, %c0_44, %c0_45] : memref<14x24x128xf32, #tpu.memory_space<vmem>>, vector<1x24x128xf32>
      %88 = vector.shape_cast %87 : vector<1x24x128xf32> to vector<24x128xf32>
      %89 = vector.shape_cast %55 : vector<24x128xf32> to vector<1x24x128xf32>
      tpu.vector_store %arg3[%86, %c0_44, %c0_45], %89 {strides = array<i32>} : memref<14x24x128xf32, #tpu.memory_space<vmem>>, vector<1x24x128xf32>,
      %90 = arith.index_cast %9 : i32 to index
      %c0_46 = arith.constant 0 : index
      %c0_47 = arith.constant 0 : index
      %91 = vector.load %arg4[%90, %c0_46, %c0_47] : memref<14x24x128xf32, #tpu.memory_space<vmem>>, vector<1x24x128xf32>
      %92 = vector.shape_cast %91 : vector<1x24x128xf32> to vector<24x128xf32>
      %93 = vector.shape_cast %81 : vector<24x128xf32> to vector<1x24x128xf32>
      tpu.vector_store %arg4[%90, %c0_46, %c0_47], %93 {strides = array<i32>} : memref<14x24x128xf32, #tpu.memory_space<vmem>>, vector<1x24x128xf32>,
    }
    %c14_i32_10 = arith.constant 14 : i32
    return
  }
  func.func @transform_0(%arg0: i32) -> (i32, i32, i32) {
    %c0_i32 = arith.constant 0 : i32
    %c0_i32_0 = arith.constant 0 : i32
    %c0_i32_1 = arith.constant 0 : i32
    return %c0_i32, %arg0, %c0_i32_0 : i32, i32, i32
  }
  func.func @transform_1(%arg0: i32) -> (i32, i32, i32) {
    %c0_i32 = arith.constant 0 : i32
    %c0_i32_0 = arith.constant 0 : i32
    %c0_i32_1 = arith.constant 0 : i32
    %c0_i32_2 = arith.constant 0 : i32
    return %c0_i32, %c0_i32_0, %c0_i32_1 : i32, i32, i32
  }
  func.func @transform_2(%arg0: i32) -> (i32, i32, i32) {
    %c0_i32 = arith.constant 0 : i32
    %c0_i32_0 = arith.constant 0 : i32
    %c0_i32_1 = arith.constant 0 : i32
    return %c0_i32, %arg0, %c0_i32_0 : i32, i32, i32
  }
  func.func @transform_3(%arg0: i32) -> (i32, i32, i32) {
    %c0_i32 = arith.constant 0 : i32
    %c0_i32_0 = arith.constant 0 : i32
    %c0_i32_1 = arith.constant 0 : i32
    return %c0_i32, %arg0, %c0_i32_0 : i32, i32, i32
  }
}

module attributes {stable_mosaic.version = 11 : i64} {
  func.func @_mm_kernel(%arg0: i32, %arg1: i32, %arg2: i32, %arg3: memref<256x256xbf16, #tpu.memory_space<vmem>>, %arg4: memref<256x128xbf16, #tpu.memory_space<vmem>>, %arg5: memref<256x128xf32, #tpu.memory_space<vmem>>, %arg6: memref<256x128xf32, #tpu.memory_space<vmem>>) attributes {dimension_semantics = [#tpu.dimension_semantics<parallel>, #tpu.dimension_semantics<parallel>, #tpu.dimension_semantics<arbitrary>], iteration_bounds = array<i64: 1, 1, 1>, scalar_prefetch = 0 : i64, scratch_operands = 1 : i64, tpu.core_type = #tpu.core_type<tc>, window_params = [{transform_indices = @transform_0, window_bounds = array<i64: 256, 256>}, {transform_indices = @transform_1, window_bounds = array<i64: 256, 128>}, {transform_indices = @transform_2, window_bounds = array<i64: 256, 128>}]} {
    %c0_i32 = arith.constant 0 : i32
    %0 = arith.cmpi eq, %arg2, %c0_i32 : i32
    %1 = arith.extui %0 : i1 to i32
    %c0_i32_0 = arith.constant 0 : i32
    %2 = arith.cmpi ne, %1, %c0_i32_0 : i32
    scf.if %2 {
      %cst_10 = arith.constant 0.000000e+00 : f32
      %12 = vector.broadcast %cst_10 : f32 to vector<256x128xf32>
      %c0_11 = arith.constant 0 : index
      %c0_12 = arith.constant 0 : index
      %13 = vector.load %arg6[%c0_11, %c0_12] : memref<256x128xf32, #tpu.memory_space<vmem>>, vector<256x128xf32>
      tpu.vector_store %arg6[%c0_11, %c0_12], %12 {strides = array<i32>} : memref<256x128xf32, #tpu.memory_space<vmem>>, vector<256x128xf32>,
    } else {
    }
    %c0 = arith.constant 0 : index
    %c0_1 = arith.constant 0 : index
    %3 = vector.load %arg6[%c0, %c0_1] : memref<256x128xf32, #tpu.memory_space<vmem>>, vector<256x128xf32>
    %c0_2 = arith.constant 0 : index
    %c0_3 = arith.constant 0 : index
    %4 = vector.load %arg3[%c0_2, %c0_3] : memref<256x256xbf16, #tpu.memory_space<vmem>>, vector<256x256xbf16>
    %c0_4 = arith.constant 0 : index
    %c0_5 = arith.constant 0 : index
    %5 = vector.load %arg4[%c0_4, %c0_5] : memref<256x128xbf16, #tpu.memory_space<vmem>>, vector<256x128xbf16>
    %cst = arith.constant dense<0.000000e+00> : vector<256x128xf32>
    %6 = tpu.matmul %4, %5, %cst {dimension_numbers = #tpu.dot_dimension_numbers<[1], [0], [0], [1], [0, 0, 1, 1], [], []>} : vector<256x256xbf16>, vector<256x128xbf16>, vector<256x128xf32> -> vector<256x128xf32>
    %7 = arith.addf %3, %6 : vector<256x128xf32>
    %c0_6 = arith.constant 0 : index
    %c0_7 = arith.constant 0 : index
    %8 = vector.load %arg6[%c0_6, %c0_7] : memref<256x128xf32, #tpu.memory_space<vmem>>, vector<256x128xf32>
    tpu.vector_store %arg6[%c0_6, %c0_7], %7 {strides = array<i32>} : memref<256x128xf32, #tpu.memory_space<vmem>>, vector<256x128xf32>,
    %c0_i32_8 = arith.constant 0 : i32
    %9 = arith.cmpi eq, %arg2, %c0_i32_8 : i32
    %10 = arith.extui %9 : i1 to i32
    %c0_i32_9 = arith.constant 0 : i32
    %11 = arith.cmpi ne, %10, %c0_i32_9 : i32
    scf.if %11 {
      %c0_10 = arith.constant 0 : index
      %c0_11 = arith.constant 0 : index
      %12 = vector.load %arg6[%c0_10, %c0_11] : memref<256x128xf32, #tpu.memory_space<vmem>>, vector<256x128xf32>
      %c0_12 = arith.constant 0 : index
      %c0_13 = arith.constant 0 : index
      %13 = vector.load %arg5[%c0_12, %c0_13] : memref<256x128xf32, #tpu.memory_space<vmem>>, vector<256x128xf32>
      tpu.vector_store %arg5[%c0_12, %c0_13], %12 {strides = array<i32>} : memref<256x128xf32, #tpu.memory_space<vmem>>, vector<256x128xf32>,
    } else {
    }
    return
  }
  func.func @transform_0(%arg0: i32, %arg1: i32, %arg2: i32) -> (i32, i32) {
    %c0_i32 = arith.constant 0 : i32
    return %arg0, %arg2 : i32, i32
  }
  func.func @transform_1(%arg0: i32, %arg1: i32, %arg2: i32) -> (i32, i32) {
    %c0_i32 = arith.constant 0 : i32
    return %arg2, %arg1 : i32, i32
  }
  func.func @transform_2(%arg0: i32, %arg1: i32, %arg2: i32) -> (i32, i32) {
    %c0_i32 = arith.constant 0 : i32
    return %arg0, %arg1 : i32, i32
  }
}

module attributes {stable_mosaic.version = 11 : i64} {
  func.func @_mm_bias_kernel(%arg0: i32, %arg1: i32, %arg2: i32, %arg3: memref<208x128xbf16, #tpu.memory_space<vmem>>, %arg4: memref<128x256xbf16, #tpu.memory_space<vmem>>, %arg5: memref<1x256xf32, #tpu.memory_space<vmem>>, %arg6: memref<208x256xf32, #tpu.memory_space<vmem>>, %arg7: memref<208x256xf32, #tpu.memory_space<vmem>>) attributes {dimension_semantics = [#tpu.dimension_semantics<parallel>, #tpu.dimension_semantics<parallel>, #tpu.dimension_semantics<arbitrary>], iteration_bounds = array<i64: 1, 4, 1>, scalar_prefetch = 0 : i64, scratch_operands = 1 : i64, tpu.core_type = #tpu.core_type<tc>, window_params = [{transform_indices = @transform_0, window_bounds = array<i64: 208, 128>}, {transform_indices = @transform_1, window_bounds = array<i64: 128, 256>}, {transform_indices = @transform_2, window_bounds = array<i64: 1, 256>}, {transform_indices = @transform_3, window_bounds = array<i64: 208, 256>}]} {
    %c0_i32 = arith.constant 0 : i32
    %0 = arith.cmpi eq, %arg2, %c0_i32 : i32
    %1 = arith.extui %0 : i1 to i32
    %c0_i32_0 = arith.constant 0 : i32
    %2 = arith.cmpi ne, %1, %c0_i32_0 : i32
    scf.if %2 {
      %cst_10 = arith.constant 0.000000e+00 : f32
      %12 = vector.broadcast %cst_10 : f32 to vector<208x256xf32>
      %c0_11 = arith.constant 0 : index
      %c0_12 = arith.constant 0 : index
      %13 = vector.load %arg7[%c0_11, %c0_12] : memref<208x256xf32, #tpu.memory_space<vmem>>, vector<208x256xf32>
      tpu.vector_store %arg7[%c0_11, %c0_12], %12 {strides = array<i32>} : memref<208x256xf32, #tpu.memory_space<vmem>>, vector<208x256xf32>,
    } else {
    }
    %c0 = arith.constant 0 : index
    %c0_1 = arith.constant 0 : index
    %3 = vector.load %arg7[%c0, %c0_1] : memref<208x256xf32, #tpu.memory_space<vmem>>, vector<208x256xf32>
    %c0_2 = arith.constant 0 : index
    %c0_3 = arith.constant 0 : index
    %4 = vector.load %arg3[%c0_2, %c0_3] : memref<208x128xbf16, #tpu.memory_space<vmem>>, vector<208x128xbf16>
    %c0_4 = arith.constant 0 : index
    %c0_5 = arith.constant 0 : index
    %5 = vector.load %arg4[%c0_4, %c0_5] : memref<128x256xbf16, #tpu.memory_space<vmem>>, vector<128x256xbf16>
    %cst = arith.constant dense<0.000000e+00> : vector<208x256xf32>
    %6 = tpu.matmul %4, %5, %cst {dimension_numbers = #tpu.dot_dimension_numbers<[1], [0], [0], [1], [0, 0, 1, 1], [], []>} : vector<208x128xbf16>, vector<128x256xbf16>, vector<208x256xf32> -> vector<208x256xf32>
    %7 = arith.addf %3, %6 : vector<208x256xf32>
    %c0_6 = arith.constant 0 : index
    %c0_7 = arith.constant 0 : index
    %8 = vector.load %arg7[%c0_6, %c0_7] : memref<208x256xf32, #tpu.memory_space<vmem>>, vector<208x256xf32>
    tpu.vector_store %arg7[%c0_6, %c0_7], %7 {strides = array<i32>} : memref<208x256xf32, #tpu.memory_space<vmem>>, vector<208x256xf32>,
    %c0_i32_8 = arith.constant 0 : i32
    %9 = arith.cmpi eq, %arg2, %c0_i32_8 : i32
    %10 = arith.extui %9 : i1 to i32
    %c0_i32_9 = arith.constant 0 : i32
    %11 = arith.cmpi ne, %10, %c0_i32_9 : i32
    scf.if %11 {
      %c0_10 = arith.constant 0 : index
      %c0_11 = arith.constant 0 : index
      %12 = vector.load %arg7[%c0_10, %c0_11] : memref<208x256xf32, #tpu.memory_space<vmem>>, vector<208x256xf32>
      %c0_12 = arith.constant 0 : index
      %c0_13 = arith.constant 0 : index
      %13 = vector.load %arg5[%c0_12, %c0_13] : memref<1x256xf32, #tpu.memory_space<vmem>>, vector<1x256xf32>
      %14 = vector.broadcast %13 : vector<1x256xf32> to vector<208x256xf32>
      %15 = arith.addf %12, %14 : vector<208x256xf32>
      %c0_14 = arith.constant 0 : index
      %c0_15 = arith.constant 0 : index
      %16 = vector.load %arg6[%c0_14, %c0_15] : memref<208x256xf32, #tpu.memory_space<vmem>>, vector<208x256xf32>
      tpu.vector_store %arg6[%c0_14, %c0_15], %15 {strides = array<i32>} : memref<208x256xf32, #tpu.memory_space<vmem>>, vector<208x256xf32>,
    } else {
    }
    return
  }
  func.func @transform_0(%arg0: i32, %arg1: i32, %arg2: i32) -> (i32, i32) {
    %c0_i32 = arith.constant 0 : i32
    return %arg0, %arg2 : i32, i32
  }
  func.func @transform_1(%arg0: i32, %arg1: i32, %arg2: i32) -> (i32, i32) {
    %c0_i32 = arith.constant 0 : i32
    return %arg2, %arg1 : i32, i32
  }
  func.func @transform_2(%arg0: i32, %arg1: i32, %arg2: i32) -> (i32, i32) {
    %c0_i32 = arith.constant 0 : i32
    %c0_i32_0 = arith.constant 0 : i32
    return %c0_i32, %arg1 : i32, i32
  }
  func.func @transform_3(%arg0: i32, %arg1: i32, %arg2: i32) -> (i32, i32) {
    %c0_i32 = arith.constant 0 : i32
    return %arg0, %arg1 : i32, i32
  }
}

module attributes {stable_mosaic.version = 11 : i64} {
  func.func @_bilstm_kernel(%arg0: i32, %arg1: memref<6x40x1024xf32, #tpu.memory_space<vmem>>, %arg2: memref<2x128x512xbf16, #tpu.memory_space<vmem>>, %arg3: memref<6x40x128xf32, #tpu.memory_space<vmem>>, %arg4: memref<6x40x128xf32, #tpu.memory_space<vmem>>, %arg5: memref<40x128xf32, #tpu.memory_space<vmem>>, %arg6: memref<40x128xf32, #tpu.memory_space<vmem>>, %arg7: memref<40x128xf32, #tpu.memory_space<vmem>>, %arg8: memref<40x128xf32, #tpu.memory_space<vmem>>) attributes {dimension_semantics = [#tpu.dimension_semantics<parallel>], iteration_bounds = array<i64: 1>, scalar_prefetch = 0 : i64, scratch_operands = 4 : i64, tpu.core_type = #tpu.core_type<tc>, window_params = [{transform_indices = @transform_0, window_bounds = array<i64: 6, 40, 1024>}, {pipeline_mode = #tpu.pipeline_mode<synchronous>, transform_indices = @transform_1, window_bounds = array<i64: 2, 128, 512>}, {transform_indices = @transform_2, window_bounds = array<i64: 6, 40, 128>}, {transform_indices = @transform_3, window_bounds = array<i64: 6, 40, 128>}]} {
    %cst = arith.constant 0.000000e+00 : f32
    %0 = vector.broadcast %cst : f32 to vector<40x128xf32>
    %c0 = arith.constant 0 : index
    %c0_0 = arith.constant 0 : index
    %1 = vector.load %arg5[%c0, %c0_0] : memref<40x128xf32, #tpu.memory_space<vmem>>, vector<40x128xf32>
    tpu.vector_store %arg5[%c0, %c0_0], %0 {strides = array<i32>} : memref<40x128xf32, #tpu.memory_space<vmem>>, vector<40x128xf32>,
    %cst_1 = arith.constant 0.000000e+00 : f32
    %2 = vector.broadcast %cst_1 : f32 to vector<40x128xf32>
    %c0_2 = arith.constant 0 : index
    %c0_3 = arith.constant 0 : index
    %3 = vector.load %arg6[%c0_2, %c0_3] : memref<40x128xf32, #tpu.memory_space<vmem>>, vector<40x128xf32>
    tpu.vector_store %arg6[%c0_2, %c0_3], %2 {strides = array<i32>} : memref<40x128xf32, #tpu.memory_space<vmem>>, vector<40x128xf32>,
    %cst_4 = arith.constant 0.000000e+00 : f32
    %4 = vector.broadcast %cst_4 : f32 to vector<40x128xf32>
    %c0_5 = arith.constant 0 : index
    %c0_6 = arith.constant 0 : index
    %5 = vector.load %arg7[%c0_5, %c0_6] : memref<40x128xf32, #tpu.memory_space<vmem>>, vector<40x128xf32>
    tpu.vector_store %arg7[%c0_5, %c0_6], %4 {strides = array<i32>} : memref<40x128xf32, #tpu.memory_space<vmem>>, vector<40x128xf32>,
    %cst_7 = arith.constant 0.000000e+00 : f32
    %6 = vector.broadcast %cst_7 : f32 to vector<40x128xf32>
    %c0_8 = arith.constant 0 : index
    %c0_9 = arith.constant 0 : index
    %7 = vector.load %arg8[%c0_8, %c0_9] : memref<40x128xf32, #tpu.memory_space<vmem>>, vector<40x128xf32>
    tpu.vector_store %arg8[%c0_8, %c0_9], %6 {strides = array<i32>} : memref<40x128xf32, #tpu.memory_space<vmem>>, vector<40x128xf32>,
    %c0_i32 = arith.constant 0 : i32
    %c6_i32 = arith.constant 6 : i32
    %8 = arith.addi %c0_i32, %c6_i32 : i32
    %c1_i32 = arith.constant 1 : i32
    scf.for %arg9 = %c0_i32 to %8 step %c1_i32  : i32 {
      %c5_i32 = arith.constant 5 : i32
      %9 = arith.subi %c5_i32, %arg9 : i32
      %10 = arith.index_cast %arg9 : i32 to index
      %c0_11 = arith.constant 0 : index
      %c0_12 = arith.constant 0 : index
      %11 = vector.load %arg1[%10, %c0_11, %c0_12] : memref<6x40x1024xf32, #tpu.memory_space<vmem>>, vector<1x40x1024xf32>
      %12 = vector.shape_cast %11 : vector<1x40x1024xf32> to vector<40x1024xf32>
      %13 = arith.index_cast %9 : i32 to index
      %c0_13 = arith.constant 0 : index
      %c0_14 = arith.constant 0 : index
      %14 = vector.load %arg1[%13, %c0_13, %c0_14] : memref<6x40x1024xf32, #tpu.memory_space<vmem>>, vector<1x40x1024xf32>
      %15 = vector.shape_cast %14 : vector<1x40x1024xf32> to vector<40x1024xf32>
      %16 = vector.extract_strided_slice %12 {offsets = [0, 0], sizes = [40, 512], strides = [1, 1]} : vector<40x1024xf32> to vector<40x512xf32>
      %c0_15 = arith.constant 0 : index
      %c0_16 = arith.constant 0 : index
      %17 = vector.load %arg5[%c0_15, %c0_16] : memref<40x128xf32, #tpu.memory_space<vmem>>, vector<40x128xf32>
      %18 = arith.truncf %17 : vector<40x128xf32> to vector<40x128xbf16>
      %c0_17 = arith.constant 0 : index
      %c0_18 = arith.constant 0 : index
      %c0_19 = arith.constant 0 : index
      %19 = vector.load %arg2[%c0_17, %c0_18, %c0_19] : memref<2x128x512xbf16, #tpu.memory_space<vmem>>, vector<1x128x512xbf16>
      %20 = vector.shape_cast %19 : vector<1x128x512xbf16> to vector<128x512xbf16>
      %cst_20 = arith.constant dense<0.000000e+00> : vector<40x512xf32>
      %21 = tpu.matmul %18, %20, %cst_20 {dimension_numbers = #tpu.dot_dimension_numbers<[1], [0], [0], [1], [0, 0, 1, 1], [], []>} : vector<40x128xbf16>, vector<128x512xbf16>, vector<40x512xf32> -> vector<40x512xf32>
      %22 = arith.addf %16, %21 : vector<40x512xf32>
      %23 = vector.extract_strided_slice %15 {offsets = [0, 512], sizes = [40, 512], strides = [1, 1]} : vector<40x1024xf32> to vector<40x512xf32>
      %c0_21 = arith.constant 0 : index
      %c0_22 = arith.constant 0 : index
      %24 = vector.load %arg7[%c0_21, %c0_22] : memref<40x128xf32, #tpu.memory_space<vmem>>, vector<40x128xf32>
      %25 = arith.truncf %24 : vector<40x128xf32> to vector<40x128xbf16>
      %c1 = arith.constant 1 : index
      %c0_23 = arith.constant 0 : index
      %c0_24 = arith.constant 0 : index
      %26 = vector.load %arg2[%c1, %c0_23, %c0_24] : memref<2x128x512xbf16, #tpu.memory_space<vmem>>, vector<1x128x512xbf16>
      %27 = vector.shape_cast %26 : vector<1x128x512xbf16> to vector<128x512xbf16>
      %cst_25 = arith.constant dense<0.000000e+00> : vector<40x512xf32>
      %28 = tpu.matmul %25, %27, %cst_25 {dimension_numbers = #tpu.dot_dimension_numbers<[1], [0], [0], [1], [0, 0, 1, 1], [], []>} : vector<40x128xbf16>, vector<128x512xbf16>, vector<40x512xf32> -> vector<40x512xf32>
      %29 = arith.addf %23, %28 : vector<40x512xf32>
      %c0_26 = arith.constant 0 : index
      %c0_27 = arith.constant 0 : index
      %30 = vector.load %arg6[%c0_26, %c0_27] : memref<40x128xf32, #tpu.memory_space<vmem>>, vector<40x128xf32>
      %31 = vector.extract_strided_slice %22 {offsets = [0, 0], sizes = [40, 128], strides = [1, 1]} : vector<40x512xf32> to vector<40x128xf32>
      %32 = arith.negf %31 : vector<40x128xf32>
      %33 = math.exp %32 : vector<40x128xf32>
      %cst_28 = arith.constant 1.000000e+00 : f32
      %34 = vector.broadcast %cst_28 : f32 to vector<40x128xf32>
      %35 = arith.addf %34, %33 : vector<40x128xf32>
      %36 = arith.divf %34, %35 : vector<40x128xf32>
      %37 = vector.extract_strided_slice %22 {offsets = [0, 128], sizes = [40, 128], strides = [1, 1]} : vector<40x512xf32> to vector<40x128xf32>
      %38 = arith.negf %37 : vector<40x128xf32>
      %39 = math.exp %38 : vector<40x128xf32>
      %cst_29 = arith.constant 1.000000e+00 : f32
      %40 = vector.broadcast %cst_29 : f32 to vector<40x128xf32>
      %41 = arith.addf %40, %39 : vector<40x128xf32>
      %42 = arith.divf %40, %41 : vector<40x128xf32>
      %43 = vector.extract_strided_slice %22 {offsets = [0, 256], sizes = [40, 128], strides = [1, 1]} : vector<40x512xf32> to vector<40x128xf32>
      %44 = math.tanh %43 : vector<40x128xf32>
      %45 = vector.extract_strided_slice %22 {offsets = [0, 384], sizes = [40, 128], strides = [1, 1]} : vector<40x512xf32> to vector<40x128xf32>
      %46 = arith.negf %45 : vector<40x128xf32>
      %47 = math.exp %46 : vector<40x128xf32>
      %cst_30 = arith.constant 1.000000e+00 : f32
      %48 = vector.broadcast %cst_30 : f32 to vector<40x128xf32>
      %49 = arith.addf %48, %47 : vector<40x128xf32>
      %50 = arith.divf %48, %49 : vector<40x128xf32>
      %51 = arith.mulf %42, %30 : vector<40x128xf32>
      %52 = arith.mulf %36, %44 : vector<40x128xf32>
      %53 = arith.addf %51, %52 : vector<40x128xf32>
      %54 = math.tanh %53 : vector<40x128xf32>
      %55 = arith.mulf %50, %54 : vector<40x128xf32>
      %c0_31 = arith.constant 0 : index
      %c0_32 = arith.constant 0 : index
      %56 = vector.load %arg8[%c0_31, %c0_32] : memref<40x128xf32, #tpu.memory_space<vmem>>, vector<40x128xf32>
      %57 = vector.extract_strided_slice %29 {offsets = [0, 0], sizes = [40, 128], strides = [1, 1]} : vector<40x512xf32> to vector<40x128xf32>
      %58 = arith.negf %57 : vector<40x128xf32>
      %59 = math.exp %58 : vector<40x128xf32>
      %cst_33 = arith.constant 1.000000e+00 : f32
      %60 = vector.broadcast %cst_33 : f32 to vector<40x128xf32>
      %61 = arith.addf %60, %59 : vector<40x128xf32>
      %62 = arith.divf %60, %61 : vector<40x128xf32>
      %63 = vector.extract_strided_slice %29 {offsets = [0, 128], sizes = [40, 128], strides = [1, 1]} : vector<40x512xf32> to vector<40x128xf32>
      %64 = arith.negf %63 : vector<40x128xf32>
      %65 = math.exp %64 : vector<40x128xf32>
      %cst_34 = arith.constant 1.000000e+00 : f32
      %66 = vector.broadcast %cst_34 : f32 to vector<40x128xf32>
      %67 = arith.addf %66, %65 : vector<40x128xf32>
      %68 = arith.divf %66, %67 : vector<40x128xf32>
      %69 = vector.extract_strided_slice %29 {offsets = [0, 256], sizes = [40, 128], strides = [1, 1]} : vector<40x512xf32> to vector<40x128xf32>
      %70 = math.tanh %69 : vector<40x128xf32>
      %71 = vector.extract_strided_slice %29 {offsets = [0, 384], sizes = [40, 128], strides = [1, 1]} : vector<40x512xf32> to vector<40x128xf32>
      %72 = arith.negf %71 : vector<40x128xf32>
      %73 = math.exp %72 : vector<40x128xf32>
      %cst_35 = arith.constant 1.000000e+00 : f32
      %74 = vector.broadcast %cst_35 : f32 to vector<40x128xf32>
      %75 = arith.addf %74, %73 : vector<40x128xf32>
      %76 = arith.divf %74, %75 : vector<40x128xf32>
      %77 = arith.mulf %68, %56 : vector<40x128xf32>
      %78 = arith.mulf %62, %70 : vector<40x128xf32>
      %79 = arith.addf %77, %78 : vector<40x128xf32>
      %80 = math.tanh %79 : vector<40x128xf32>
      %81 = arith.mulf %76, %80 : vector<40x128xf32>
      %c0_36 = arith.constant 0 : index
      %c0_37 = arith.constant 0 : index
      %82 = vector.load %arg5[%c0_36, %c0_37] : memref<40x128xf32, #tpu.memory_space<vmem>>, vector<40x128xf32>
      tpu.vector_store %arg5[%c0_36, %c0_37], %55 {strides = array<i32>} : memref<40x128xf32, #tpu.memory_space<vmem>>, vector<40x128xf32>,
      %c0_38 = arith.constant 0 : index
      %c0_39 = arith.constant 0 : index
      %83 = vector.load %arg6[%c0_38, %c0_39] : memref<40x128xf32, #tpu.memory_space<vmem>>, vector<40x128xf32>
      tpu.vector_store %arg6[%c0_38, %c0_39], %53 {strides = array<i32>} : memref<40x128xf32, #tpu.memory_space<vmem>>, vector<40x128xf32>,
      %c0_40 = arith.constant 0 : index
      %c0_41 = arith.constant 0 : index
      %84 = vector.load %arg7[%c0_40, %c0_41] : memref<40x128xf32, #tpu.memory_space<vmem>>, vector<40x128xf32>
      tpu.vector_store %arg7[%c0_40, %c0_41], %81 {strides = array<i32>} : memref<40x128xf32, #tpu.memory_space<vmem>>, vector<40x128xf32>,
      %c0_42 = arith.constant 0 : index
      %c0_43 = arith.constant 0 : index
      %85 = vector.load %arg8[%c0_42, %c0_43] : memref<40x128xf32, #tpu.memory_space<vmem>>, vector<40x128xf32>
      tpu.vector_store %arg8[%c0_42, %c0_43], %79 {strides = array<i32>} : memref<40x128xf32, #tpu.memory_space<vmem>>, vector<40x128xf32>,
      %86 = arith.index_cast %arg9 : i32 to index
      %c0_44 = arith.constant 0 : index
      %c0_45 = arith.constant 0 : index
      %87 = vector.load %arg3[%86, %c0_44, %c0_45] : memref<6x40x128xf32, #tpu.memory_space<vmem>>, vector<1x40x128xf32>
      %88 = vector.shape_cast %87 : vector<1x40x128xf32> to vector<40x128xf32>
      %89 = vector.shape_cast %55 : vector<40x128xf32> to vector<1x40x128xf32>
      tpu.vector_store %arg3[%86, %c0_44, %c0_45], %89 {strides = array<i32>} : memref<6x40x128xf32, #tpu.memory_space<vmem>>, vector<1x40x128xf32>,
      %90 = arith.index_cast %9 : i32 to index
      %c0_46 = arith.constant 0 : index
      %c0_47 = arith.constant 0 : index
      %91 = vector.load %arg4[%90, %c0_46, %c0_47] : memref<6x40x128xf32, #tpu.memory_space<vmem>>, vector<1x40x128xf32>
      %92 = vector.shape_cast %91 : vector<1x40x128xf32> to vector<40x128xf32>
      %93 = vector.shape_cast %81 : vector<40x128xf32> to vector<1x40x128xf32>
      tpu.vector_store %arg4[%90, %c0_46, %c0_47], %93 {strides = array<i32>} : memref<6x40x128xf32, #tpu.memory_space<vmem>>, vector<1x40x128xf32>,
    }
    %c6_i32_10 = arith.constant 6 : i32
    return
  }
  func.func @transform_0(%arg0: i32) -> (i32, i32, i32) {
    %c0_i32 = arith.constant 0 : i32
    %c0_i32_0 = arith.constant 0 : i32
    %c0_i32_1 = arith.constant 0 : i32
    return %c0_i32, %arg0, %c0_i32_0 : i32, i32, i32
  }
  func.func @transform_1(%arg0: i32) -> (i32, i32, i32) {
    %c0_i32 = arith.constant 0 : i32
    %c0_i32_0 = arith.constant 0 : i32
    %c0_i32_1 = arith.constant 0 : i32
    %c0_i32_2 = arith.constant 0 : i32
    return %c0_i32, %c0_i32_0, %c0_i32_1 : i32, i32, i32
  }
  func.func @transform_2(%arg0: i32) -> (i32, i32, i32) {
    %c0_i32 = arith.constant 0 : i32
    %c0_i32_0 = arith.constant 0 : i32
    %c0_i32_1 = arith.constant 0 : i32
    return %c0_i32, %arg0, %c0_i32_0 : i32, i32, i32
  }
  func.func @transform_3(%arg0: i32) -> (i32, i32, i32) {
    %c0_i32 = arith.constant 0 : i32
    %c0_i32_0 = arith.constant 0 : i32
    %c0_i32_1 = arith.constant 0 : i32
    return %c0_i32, %arg0, %c0_i32_0 : i32, i32, i32
  }
}

module attributes {stable_mosaic.version = 11 : i64} {
  func.func @_mm_kernel(%arg0: i32, %arg1: i32, %arg2: i32, %arg3: memref<208x256xbf16, #tpu.memory_space<vmem>>, %arg4: memref<256x128xbf16, #tpu.memory_space<vmem>>, %arg5: memref<208x128xf32, #tpu.memory_space<vmem>>, %arg6: memref<208x128xf32, #tpu.memory_space<vmem>>) attributes {dimension_semantics = [#tpu.dimension_semantics<parallel>, #tpu.dimension_semantics<parallel>, #tpu.dimension_semantics<arbitrary>], iteration_bounds = array<i64: 1, 1, 1>, scalar_prefetch = 0 : i64, scratch_operands = 1 : i64, tpu.core_type = #tpu.core_type<tc>, window_params = [{transform_indices = @transform_0, window_bounds = array<i64: 208, 256>}, {transform_indices = @transform_1, window_bounds = array<i64: 256, 128>}, {transform_indices = @transform_2, window_bounds = array<i64: 208, 128>}]} {
    %c0_i32 = arith.constant 0 : i32
    %0 = arith.cmpi eq, %arg2, %c0_i32 : i32
    %1 = arith.extui %0 : i1 to i32
    %c0_i32_0 = arith.constant 0 : i32
    %2 = arith.cmpi ne, %1, %c0_i32_0 : i32
    scf.if %2 {
      %cst_10 = arith.constant 0.000000e+00 : f32
      %12 = vector.broadcast %cst_10 : f32 to vector<208x128xf32>
      %c0_11 = arith.constant 0 : index
      %c0_12 = arith.constant 0 : index
      %13 = vector.load %arg6[%c0_11, %c0_12] : memref<208x128xf32, #tpu.memory_space<vmem>>, vector<208x128xf32>
      tpu.vector_store %arg6[%c0_11, %c0_12], %12 {strides = array<i32>} : memref<208x128xf32, #tpu.memory_space<vmem>>, vector<208x128xf32>,
    } else {
    }
    %c0 = arith.constant 0 : index
    %c0_1 = arith.constant 0 : index
    %3 = vector.load %arg6[%c0, %c0_1] : memref<208x128xf32, #tpu.memory_space<vmem>>, vector<208x128xf32>
    %c0_2 = arith.constant 0 : index
    %c0_3 = arith.constant 0 : index
    %4 = vector.load %arg3[%c0_2, %c0_3] : memref<208x256xbf16, #tpu.memory_space<vmem>>, vector<208x256xbf16>
    %c0_4 = arith.constant 0 : index
    %c0_5 = arith.constant 0 : index
    %5 = vector.load %arg4[%c0_4, %c0_5] : memref<256x128xbf16, #tpu.memory_space<vmem>>, vector<256x128xbf16>
    %cst = arith.constant dense<0.000000e+00> : vector<208x128xf32>
    %6 = tpu.matmul %4, %5, %cst {dimension_numbers = #tpu.dot_dimension_numbers<[1], [0], [0], [1], [0, 0, 1, 1], [], []>} : vector<208x256xbf16>, vector<256x128xbf16>, vector<208x128xf32> -> vector<208x128xf32>
    %7 = arith.addf %3, %6 : vector<208x128xf32>
    %c0_6 = arith.constant 0 : index
    %c0_7 = arith.constant 0 : index
    %8 = vector.load %arg6[%c0_6, %c0_7] : memref<208x128xf32, #tpu.memory_space<vmem>>, vector<208x128xf32>
    tpu.vector_store %arg6[%c0_6, %c0_7], %7 {strides = array<i32>} : memref<208x128xf32, #tpu.memory_space<vmem>>, vector<208x128xf32>,
    %c0_i32_8 = arith.constant 0 : i32
    %9 = arith.cmpi eq, %arg2, %c0_i32_8 : i32
    %10 = arith.extui %9 : i1 to i32
    %c0_i32_9 = arith.constant 0 : i32
    %11 = arith.cmpi ne, %10, %c0_i32_9 : i32
    scf.if %11 {
      %c0_10 = arith.constant 0 : index
      %c0_11 = arith.constant 0 : index
      %12 = vector.load %arg6[%c0_10, %c0_11] : memref<208x128xf32, #tpu.memory_space<vmem>>, vector<208x128xf32>
      %c0_12 = arith.constant 0 : index
      %c0_13 = arith.constant 0 : index
      %13 = vector.load %arg5[%c0_12, %c0_13] : memref<208x128xf32, #tpu.memory_space<vmem>>, vector<208x128xf32>
      tpu.vector_store %arg5[%c0_12, %c0_13], %12 {strides = array<i32>} : memref<208x128xf32, #tpu.memory_space<vmem>>, vector<208x128xf32>,
    } else {
    }
    return
  }
  func.func @transform_0(%arg0: i32, %arg1: i32, %arg2: i32) -> (i32, i32) {
    %c0_i32 = arith.constant 0 : i32
    return %arg0, %arg2 : i32, i32
  }
  func.func @transform_1(%arg0: i32, %arg1: i32, %arg2: i32) -> (i32, i32) {
    %c0_i32 = arith.constant 0 : i32
    return %arg2, %arg1 : i32, i32
  }
  func.func @transform_2(%arg0: i32, %arg1: i32, %arg2: i32) -> (i32, i32) {
    %c0_i32 = arith.constant 0 : i32
    return %arg0, %arg1 : i32, i32
  }
}

module attributes {stable_mosaic.version = 11 : i64} {
  func.func @_group_prelu_ln_kernel(%arg0: i32, %arg1: i32, %arg2: memref<1x24x128xf32, #tpu.memory_space<vmem>>, %arg3: memref<1x1x1xf32, #tpu.memory_space<vmem>>, %arg4: memref<1x1x128xf32, #tpu.memory_space<vmem>>, %arg5: memref<1x1x128xf32, #tpu.memory_space<vmem>>, %arg6: memref<1x24x128xf32, #tpu.memory_space<vmem>>) attributes {dimension_semantics = [#tpu.dimension_semantics<parallel>, #tpu.dimension_semantics<parallel>], iteration_bounds = array<i64: 4, 1>, scalar_prefetch = 0 : i64, scratch_operands = 0 : i64, tpu.core_type = #tpu.core_type<tc>, window_params = [{transform_indices = @transform_0, window_bounds = array<i64: 1, 24, 128>}, {transform_indices = @transform_1, window_bounds = array<i64: 1, 1, 1>}, {transform_indices = @transform_2, window_bounds = array<i64: 1, 1, 128>}, {transform_indices = @transform_3, window_bounds = array<i64: 1, 1, 128>}, {transform_indices = @transform_4, window_bounds = array<i64: 1, 24, 128>}]} {
    %c0 = arith.constant 0 : index
    %c0_0 = arith.constant 0 : index
    %c0_1 = arith.constant 0 : index
    %0 = vector.load %arg2[%c0, %c0_0, %c0_1] : memref<1x24x128xf32, #tpu.memory_space<vmem>>, vector<1x24x128xf32>
    %cst = arith.constant 0.000000e+00 : f32
    %1 = vector.broadcast %cst : f32 to vector<1x24x128xf32>
    %2 = arith.cmpf oge, %0, %1 : vector<1x24x128xf32>
    %c0_2 = arith.constant 0 : index
    %c0_3 = arith.constant 0 : index
    %c0_4 = arith.constant 0 : index
    %3 = vector.load %arg3[%c0_2, %c0_3, %c0_4] : memref<1x1x1xf32, #tpu.memory_space<vmem>>, vector<1x1x1xf32>
    %4 = vector.broadcast %3 : vector<1x1x1xf32> to vector<1x24x128xf32>
    %5 = arith.mulf %4, %0 : vector<1x24x128xf32>
    %6 = arith.select %2, %0, %5 : vector<1x24x128xi1>, vector<1x24x128xf32>
    %cst_5 = arith.constant dense<0.000000e+00> : vector<1x24xf32>
    %7 = vector.multi_reduction <add>, %6, %cst_5 [2] : vector<1x24x128xf32> to vector<1x24xf32>
    %8 = vector.shape_cast %7 : vector<1x24xf32> to vector<1x24x1xf32>
    %cst_6 = arith.constant 0.0147058824 : f32
    %9 = vector.broadcast %cst_6 : f32 to vector<1x24x1xf32>
    %10 = arith.mulf %8, %9 : vector<1x24x1xf32>
    %11 = arith.mulf %6, %6 : vector<1x24x128xf32>
    %cst_7 = arith.constant dense<0.000000e+00> : vector<1x24xf32>
    %12 = vector.multi_reduction <add>, %11, %cst_7 [2] : vector<1x24x128xf32> to vector<1x24xf32>
    %13 = vector.shape_cast %12 : vector<1x24xf32> to vector<1x24x1xf32>
    %cst_8 = arith.constant 0.0147058824 : f32
    %14 = vector.broadcast %cst_8 : f32 to vector<1x24x1xf32>
    %15 = arith.mulf %13, %14 : vector<1x24x1xf32>
    %16 = arith.mulf %10, %10 : vector<1x24x1xf32>
    %17 = arith.subf %15, %16 : vector<1x24x1xf32>
    %18 = vector.broadcast %10 : vector<1x24x1xf32> to vector<1x24x128xf32>
    %19 = arith.subf %6, %18 : vector<1x24x128xf32>
    %cst_9 = arith.constant 9.99999974E-6 : f32
    %20 = vector.broadcast %cst_9 : f32 to vector<1x24x1xf32>
    %21 = arith.addf %17, %20 : vector<1x24x1xf32>
    %22 = math.rsqrt %21 : vector<1x24x1xf32>
    %23 = vector.broadcast %22 : vector<1x24x1xf32> to vector<1x24x128xf32>
    %24 = arith.mulf %19, %23 : vector<1x24x128xf32>
    %c0_10 = arith.constant 0 : index
    %c0_11 = arith.constant 0 : index
    %c0_12 = arith.constant 0 : index
    %25 = vector.load %arg4[%c0_10, %c0_11, %c0_12] : memref<1x1x128xf32, #tpu.memory_space<vmem>>, vector<1x1x128xf32>
    %26 = vector.broadcast %25 : vector<1x1x128xf32> to vector<1x24x128xf32>
    %27 = arith.mulf %24, %26 : vector<1x24x128xf32>
    %c0_13 = arith.constant 0 : index
    %c0_14 = arith.constant 0 : index
    %c0_15 = arith.constant 0 : index
    %28 = vector.load %arg5[%c0_13, %c0_14, %c0_15] : memref<1x1x128xf32, #tpu.memory_space<vmem>>, vector<1x1x128xf32>
    %29 = vector.broadcast %28 : vector<1x1x128xf32> to vector<1x24x128xf32>
    %30 = arith.addf %27, %29 : vector<1x24x128xf32>
    %c0_16 = arith.constant 0 : index
    %c0_17 = arith.constant 0 : index
    %c0_18 = arith.constant 0 : index
    %31 = vector.load %arg6[%c0_16, %c0_17, %c0_18] : memref<1x24x128xf32, #tpu.memory_space<vmem>>, vector<1x24x128xf32>
    tpu.vector_store %arg6[%c0_16, %c0_17, %c0_18], %30 {strides = array<i32>} : memref<1x24x128xf32, #tpu.memory_space<vmem>>, vector<1x24x128xf32>,
    return
  }
  func.func @transform_0(%arg0: i32, %arg1: i32) -> (i32, i32, i32) {
    %c0_i32 = arith.constant 0 : i32
    %c0_i32_0 = arith.constant 0 : i32
    return %arg0, %arg1, %c0_i32 : i32, i32, i32
  }
  func.func @transform_1(%arg0: i32, %arg1: i32) -> (i32, i32, i32) {
    %c0_i32 = arith.constant 0 : i32
    %c0_i32_0 = arith.constant 0 : i32
    %c0_i32_1 = arith.constant 0 : i32
    return %arg0, %c0_i32, %c0_i32_0 : i32, i32, i32
  }
  func.func @transform_2(%arg0: i32, %arg1: i32) -> (i32, i32, i32) {
    %c0_i32 = arith.constant 0 : i32
    %c0_i32_0 = arith.constant 0 : i32
    %c0_i32_1 = arith.constant 0 : i32
    return %arg0, %c0_i32, %c0_i32_0 : i32, i32, i32
  }
  func.func @transform_3(%arg0: i32, %arg1: i32) -> (i32, i32, i32) {
    %c0_i32 = arith.constant 0 : i32
    %c0_i32_0 = arith.constant 0 : i32
    %c0_i32_1 = arith.constant 0 : i32
    return %arg0, %c0_i32, %c0_i32_0 : i32, i32, i32
  }
  func.func @transform_4(%arg0: i32, %arg1: i32) -> (i32, i32, i32) {
    %c0_i32 = arith.constant 0 : i32
    %c0_i32_0 = arith.constant 0 : i32
    return %arg0, %arg1, %c0_i32 : i32, i32, i32
  }
}

module attributes {stable_mosaic.version = 11 : i64} {
  func.func @_group_prelu_ln_kernel(%arg0: i32, %arg1: i32, %arg2: memref<1x24x256xf32, #tpu.memory_space<vmem>>, %arg3: memref<1x1x1xf32, #tpu.memory_space<vmem>>, %arg4: memref<1x1x256xf32, #tpu.memory_space<vmem>>, %arg5: memref<1x1x256xf32, #tpu.memory_space<vmem>>, %arg6: memref<1x24x256xf32, #tpu.memory_space<vmem>>) attributes {dimension_semantics = [#tpu.dimension_semantics<parallel>, #tpu.dimension_semantics<parallel>], iteration_bounds = array<i64: 2, 1>, scalar_prefetch = 0 : i64, scratch_operands = 0 : i64, tpu.core_type = #tpu.core_type<tc>, window_params = [{transform_indices = @transform_0, window_bounds = array<i64: 1, 24, 256>}, {transform_indices = @transform_1, window_bounds = array<i64: 1, 1, 1>}, {transform_indices = @transform_2, window_bounds = array<i64: 1, 1, 256>}, {transform_indices = @transform_3, window_bounds = array<i64: 1, 1, 256>}, {transform_indices = @transform_4, window_bounds = array<i64: 1, 24, 256>}]} {
    %c0 = arith.constant 0 : index
    %c0_0 = arith.constant 0 : index
    %c0_1 = arith.constant 0 : index
    %0 = vector.load %arg2[%c0, %c0_0, %c0_1] : memref<1x24x256xf32, #tpu.memory_space<vmem>>, vector<1x24x256xf32>
    %cst = arith.constant 0.000000e+00 : f32
    %1 = vector.broadcast %cst : f32 to vector<1x24x256xf32>
    %2 = arith.cmpf oge, %0, %1 : vector<1x24x256xf32>
    %c0_2 = arith.constant 0 : index
    %c0_3 = arith.constant 0 : index
    %c0_4 = arith.constant 0 : index
    %3 = vector.load %arg3[%c0_2, %c0_3, %c0_4] : memref<1x1x1xf32, #tpu.memory_space<vmem>>, vector<1x1x1xf32>
    %4 = vector.broadcast %3 : vector<1x1x1xf32> to vector<1x24x256xf32>
    %5 = arith.mulf %4, %0 : vector<1x24x256xf32>
    %6 = arith.select %2, %0, %5 : vector<1x24x256xi1>, vector<1x24x256xf32>
    %cst_5 = arith.constant dense<0.000000e+00> : vector<1x24xf32>
    %7 = vector.multi_reduction <add>, %6, %cst_5 [2] : vector<1x24x256xf32> to vector<1x24xf32>
    %8 = vector.shape_cast %7 : vector<1x24xf32> to vector<1x24x1xf32>
    %cst_6 = arith.constant 0.0073529412 : f32
    %9 = vector.broadcast %cst_6 : f32 to vector<1x24x1xf32>
    %10 = arith.mulf %8, %9 : vector<1x24x1xf32>
    %11 = arith.mulf %6, %6 : vector<1x24x256xf32>
    %cst_7 = arith.constant dense<0.000000e+00> : vector<1x24xf32>
    %12 = vector.multi_reduction <add>, %11, %cst_7 [2] : vector<1x24x256xf32> to vector<1x24xf32>
    %13 = vector.shape_cast %12 : vector<1x24xf32> to vector<1x24x1xf32>
    %cst_8 = arith.constant 0.0073529412 : f32
    %14 = vector.broadcast %cst_8 : f32 to vector<1x24x1xf32>
    %15 = arith.mulf %13, %14 : vector<1x24x1xf32>
    %16 = arith.mulf %10, %10 : vector<1x24x1xf32>
    %17 = arith.subf %15, %16 : vector<1x24x1xf32>
    %18 = vector.broadcast %10 : vector<1x24x1xf32> to vector<1x24x256xf32>
    %19 = arith.subf %6, %18 : vector<1x24x256xf32>
    %cst_9 = arith.constant 9.99999974E-6 : f32
    %20 = vector.broadcast %cst_9 : f32 to vector<1x24x1xf32>
    %21 = arith.addf %17, %20 : vector<1x24x1xf32>
    %22 = math.rsqrt %21 : vector<1x24x1xf32>
    %23 = vector.broadcast %22 : vector<1x24x1xf32> to vector<1x24x256xf32>
    %24 = arith.mulf %19, %23 : vector<1x24x256xf32>
    %c0_10 = arith.constant 0 : index
    %c0_11 = arith.constant 0 : index
    %c0_12 = arith.constant 0 : index
    %25 = vector.load %arg4[%c0_10, %c0_11, %c0_12] : memref<1x1x256xf32, #tpu.memory_space<vmem>>, vector<1x1x256xf32>
    %26 = vector.broadcast %25 : vector<1x1x256xf32> to vector<1x24x256xf32>
    %27 = arith.mulf %24, %26 : vector<1x24x256xf32>
    %c0_13 = arith.constant 0 : index
    %c0_14 = arith.constant 0 : index
    %c0_15 = arith.constant 0 : index
    %28 = vector.load %arg5[%c0_13, %c0_14, %c0_15] : memref<1x1x256xf32, #tpu.memory_space<vmem>>, vector<1x1x256xf32>
    %29 = vector.broadcast %28 : vector<1x1x256xf32> to vector<1x24x256xf32>
    %30 = arith.addf %27, %29 : vector<1x24x256xf32>
    %c0_16 = arith.constant 0 : index
    %c0_17 = arith.constant 0 : index
    %c0_18 = arith.constant 0 : index
    %31 = vector.load %arg6[%c0_16, %c0_17, %c0_18] : memref<1x24x256xf32, #tpu.memory_space<vmem>>, vector<1x24x256xf32>
    tpu.vector_store %arg6[%c0_16, %c0_17, %c0_18], %30 {strides = array<i32>} : memref<1x24x256xf32, #tpu.memory_space<vmem>>, vector<1x24x256xf32>,
    return
  }
  func.func @transform_0(%arg0: i32, %arg1: i32) -> (i32, i32, i32) {
    %c0_i32 = arith.constant 0 : i32
    %c0_i32_0 = arith.constant 0 : i32
    return %arg0, %arg1, %c0_i32 : i32, i32, i32
  }
  func.func @transform_1(%arg0: i32, %arg1: i32) -> (i32, i32, i32) {
    %c0_i32 = arith.constant 0 : i32
    %c0_i32_0 = arith.constant 0 : i32
    %c0_i32_1 = arith.constant 0 : i32
    return %arg0, %c0_i32, %c0_i32_0 : i32, i32, i32
  }
  func.func @transform_2(%arg0: i32, %arg1: i32) -> (i32, i32, i32) {
    %c0_i32 = arith.constant 0 : i32
    %c0_i32_0 = arith.constant 0 : i32
    %c0_i32_1 = arith.constant 0 : i32
    return %arg0, %c0_i32, %c0_i32_0 : i32, i32, i32
  }
  func.func @transform_3(%arg0: i32, %arg1: i32) -> (i32, i32, i32) {
    %c0_i32 = arith.constant 0 : i32
    %c0_i32_0 = arith.constant 0 : i32
    %c0_i32_1 = arith.constant 0 : i32
    return %arg0, %c0_i32, %c0_i32_0 : i32, i32, i32
  }
  func.func @transform_4(%arg0: i32, %arg1: i32) -> (i32, i32, i32) {
    %c0_i32 = arith.constant 0 : i32
    %c0_i32_0 = arith.constant 0 : i32
    return %arg0, %arg1, %c0_i32 : i32, i32, i32
  }
}

module attributes {stable_mosaic.version = 11 : i64} {
  func.func @_flash_attn_kernel(%arg0: i32, %arg1: i32, %arg2: i32, %arg3: memref<1x16x128xbf16, #tpu.memory_space<vmem>>, %arg4: memref<1x16x128xbf16, #tpu.memory_space<vmem>>, %arg5: memref<1x16x256xbf16, #tpu.memory_space<vmem>>, %arg6: memref<1x16x256xf32, #tpu.memory_space<vmem>>, %arg7: memref<1x16x1xf32, #tpu.memory_space<vmem>>, %arg8: memref<1x16x1xf32, #tpu.memory_space<vmem>>, %arg9: memref<1x16x256xf32, #tpu.memory_space<vmem>>) attributes {dimension_semantics = [#tpu.dimension_semantics<parallel>, #tpu.dimension_semantics<parallel>, #tpu.dimension_semantics<arbitrary>], iteration_bounds = array<i64: 4, 1, 1>, scalar_prefetch = 0 : i64, scratch_operands = 3 : i64, tpu.core_type = #tpu.core_type<tc>, window_params = [{transform_indices = @transform_0, window_bounds = array<i64: 1, 16, 128>}, {transform_indices = @transform_1, window_bounds = array<i64: 1, 16, 128>}, {transform_indices = @transform_2, window_bounds = array<i64: 1, 16, 256>}, {transform_indices = @transform_3, window_bounds = array<i64: 1, 16, 256>}]} {
    %c0_i32 = arith.constant 0 : i32
    %0 = arith.cmpi eq, %arg2, %c0_i32 : i32
    %1 = arith.extui %0 : i1 to i32
    %c0_i32_0 = arith.constant 0 : i32
    %2 = arith.cmpi ne, %1, %c0_i32_0 : i32
    scf.if %2 {
      %cst_37 = arith.constant 0xFF800000 : f32
      %44 = vector.broadcast %cst_37 : f32 to vector<1x16x1xf32>
      %c0_38 = arith.constant 0 : index
      %c0_39 = arith.constant 0 : index
      %c0_40 = arith.constant 0 : index
      %45 = vector.load %arg7[%c0_38, %c0_39, %c0_40] : memref<1x16x1xf32, #tpu.memory_space<vmem>>, vector<1x16x1xf32>
      tpu.vector_store %arg7[%c0_38, %c0_39, %c0_40], %44 {strides = array<i32>} : memref<1x16x1xf32, #tpu.memory_space<vmem>>, vector<1x16x1xf32>,
      %cst_41 = arith.constant 0.000000e+00 : f32
      %46 = vector.broadcast %cst_41 : f32 to vector<1x16x1xf32>
      %c0_42 = arith.constant 0 : index
      %c0_43 = arith.constant 0 : index
      %c0_44 = arith.constant 0 : index
      %47 = vector.load %arg8[%c0_42, %c0_43, %c0_44] : memref<1x16x1xf32, #tpu.memory_space<vmem>>, vector<1x16x1xf32>
      tpu.vector_store %arg8[%c0_42, %c0_43, %c0_44], %46 {strides = array<i32>} : memref<1x16x1xf32, #tpu.memory_space<vmem>>, vector<1x16x1xf32>,
      %cst_45 = arith.constant 0.000000e+00 : f32
      %48 = vector.broadcast %cst_45 : f32 to vector<1x16x256xf32>
      %c0_46 = arith.constant 0 : index
      %c0_47 = arith.constant 0 : index
      %c0_48 = arith.constant 0 : index
      %49 = vector.load %arg9[%c0_46, %c0_47, %c0_48] : memref<1x16x256xf32, #tpu.memory_space<vmem>>, vector<1x16x256xf32>
      tpu.vector_store %arg9[%c0_46, %c0_47, %c0_48], %48 {strides = array<i32>} : memref<1x16x256xf32, #tpu.memory_space<vmem>>, vector<1x16x256xf32>,
    } else {
    }
    %c0 = arith.constant 0 : index
    %c0_1 = arith.constant 0 : index
    %c0_2 = arith.constant 0 : index
    %3 = vector.load %arg3[%c0, %c0_1, %c0_2] : memref<1x16x128xbf16, #tpu.memory_space<vmem>>, vector<1x16x128xbf16>
    %c0_3 = arith.constant 0 : index
    %c0_4 = arith.constant 0 : index
    %c0_5 = arith.constant 0 : index
    %4 = vector.load %arg4[%c0_3, %c0_4, %c0_5] : memref<1x16x128xbf16, #tpu.memory_space<vmem>>, vector<1x16x128xbf16>
    "tpu.trace_start"() <{level = 10 : i32, message = "bqd,bkd->bqk"}> : () -> ()
    %cst = arith.constant dense<0.000000e+00> : vector<1x16x16xf32>
    %5 = tpu.matmul %3, %4, %cst {dimension_numbers = #tpu.dot_dimension_numbers<[2], [2], [1], [1], [0, 0, 0, 1, 1, 1], [0], [0]>} : vector<1x16x128xbf16>, vector<1x16x128xbf16>, vector<1x16x16xf32> -> vector<1x16x16xf32>
    "tpu.trace_stop"() : () -> ()
    %cst_6 = arith.constant 0.12126781 : f32
    %6 = vector.broadcast %cst_6 : f32 to vector<1x16x16xf32>
    %7 = arith.mulf %5, %6 : vector<1x16x16xf32>
    %c16_i32 = arith.constant 16 : i32
    %8 = arith.muli %arg2, %c16_i32 : i32
    %9 = tpu.iota {dimensions = array<i32: 2>} : vector<1x16x16xi32>
    %10 = vector.broadcast %8 : i32 to vector<1x16x16xi32>
    %11 = arith.addi %10, %9 : vector<1x16x16xi32>
    %c9_i32 = arith.constant 9 : i32
    %12 = vector.broadcast %c9_i32 : i32 to vector<1x16x16xi32>
    %13 = arith.cmpi slt, %11, %12 : vector<1x16x16xi32>
    %cst_7 = arith.constant -1.000000e+30 : f32
    %14 = vector.broadcast %cst_7 : f32 to vector<1x16x16xf32>
    %15 = arith.select %13, %7, %14 : vector<1x16x16xi1>, vector<1x16x16xf32>
    %c0_8 = arith.constant 0 : index
    %c0_9 = arith.constant 0 : index
    %c0_10 = arith.constant 0 : index
    %16 = vector.load %arg7[%c0_8, %c0_9, %c0_10] : memref<1x16x1xf32, #tpu.memory_space<vmem>>, vector<1x16x1xf32>
    %cst_11 = arith.constant dense<0xFF800000> : vector<1x16xf32>
    %17 = vector.multi_reduction <maximumf>, %15, %cst_11 [2] : vector<1x16x16xf32> to vector<1x16xf32>
    %18 = vector.shape_cast %17 : vector<1x16xf32> to vector<1x16x1xf32>
    %19 = arith.maximumf %16, %18 : vector<1x16x1xf32>
    %c0_12 = arith.constant 0 : index
    %c0_13 = arith.constant 0 : index
    %c0_14 = arith.constant 0 : index
    %20 = vector.load %arg7[%c0_12, %c0_13, %c0_14] : memref<1x16x1xf32, #tpu.memory_space<vmem>>, vector<1x16x1xf32>
    %21 = arith.subf %20, %19 : vector<1x16x1xf32>
    %22 = math.exp %21 : vector<1x16x1xf32>
    %23 = vector.broadcast %19 : vector<1x16x1xf32> to vector<1x16x16xf32>
    %24 = arith.subf %15, %23 : vector<1x16x16xf32>
    %25 = math.exp %24 : vector<1x16x16xf32>
    %c0_15 = arith.constant 0 : index
    %c0_16 = arith.constant 0 : index
    %c0_17 = arith.constant 0 : index
    %26 = vector.load %arg8[%c0_15, %c0_16, %c0_17] : memref<1x16x1xf32, #tpu.memory_space<vmem>>, vector<1x16x1xf32>
    %27 = arith.mulf %22, %26 : vector<1x16x1xf32>
    %cst_18 = arith.constant dense<0.000000e+00> : vector<1x16xf32>
    %28 = vector.multi_reduction <add>, %25, %cst_18 [2] : vector<1x16x16xf32> to vector<1x16xf32>
    %29 = vector.shape_cast %28 : vector<1x16xf32> to vector<1x16x1xf32>
    %30 = arith.addf %27, %29 : vector<1x16x1xf32>
    %c0_19 = arith.constant 0 : index
    %c0_20 = arith.constant 0 : index
    %c0_21 = arith.constant 0 : index
    %31 = vector.load %arg8[%c0_19, %c0_20, %c0_21] : memref<1x16x1xf32, #tpu.memory_space<vmem>>, vector<1x16x1xf32>
    tpu.vector_store %arg8[%c0_19, %c0_20, %c0_21], %30 {strides = array<i32>} : memref<1x16x1xf32, #tpu.memory_space<vmem>>, vector<1x16x1xf32>,
    %c0_22 = arith.constant 0 : index
    %c0_23 = arith.constant 0 : index
    %c0_24 = arith.constant 0 : index
    %32 = vector.load %arg9[%c0_22, %c0_23, %c0_24] : memref<1x16x256xf32, #tpu.memory_space<vmem>>, vector<1x16x256xf32>
    %33 = vector.broadcast %22 : vector<1x16x1xf32> to vector<1x16x256xf32>
    %34 = arith.mulf %33, %32 : vector<1x16x256xf32>
    %35 = arith.truncf %25 : vector<1x16x16xf32> to vector<1x16x16xbf16>
    %c0_25 = arith.constant 0 : index
    %c0_26 = arith.constant 0 : index
    %c0_27 = arith.constant 0 : index
    %36 = vector.load %arg5[%c0_25, %c0_26, %c0_27] : memref<1x16x256xbf16, #tpu.memory_space<vmem>>, vector<1x16x256xbf16>
    "tpu.trace_start"() <{level = 10 : i32, message = "bqk,bkd->bqd"}> : () -> ()
    %cst_28 = arith.constant dense<0.000000e+00> : vector<1x16x256xf32>
    %37 = tpu.matmul %35, %36, %cst_28 {dimension_numbers = #tpu.dot_dimension_numbers<[2], [1], [1], [2], [0, 0, 0, 1, 1, 2], [0], [0]>} : vector<1x16x16xbf16>, vector<1x16x256xbf16>, vector<1x16x256xf32> -> vector<1x16x256xf32>
    "tpu.trace_stop"() : () -> ()
    %38 = arith.addf %34, %37 : vector<1x16x256xf32>
    %c0_29 = arith.constant 0 : index
    %c0_30 = arith.constant 0 : index
    %c0_31 = arith.constant 0 : index
    %39 = vector.load %arg9[%c0_29, %c0_30, %c0_31] : memref<1x16x256xf32, #tpu.memory_space<vmem>>, vector<1x16x256xf32>
    tpu.vector_store %arg9[%c0_29, %c0_30, %c0_31], %38 {strides = array<i32>} : memref<1x16x256xf32, #tpu.memory_space<vmem>>, vector<1x16x256xf32>,
    %c0_32 = arith.constant 0 : index
    %c0_33 = arith.constant 0 : index
    %c0_34 = arith.constant 0 : index
    %40 = vector.load %arg7[%c0_32, %c0_33, %c0_34] : memref<1x16x1xf32, #tpu.memory_space<vmem>>, vector<1x16x1xf32>
    tpu.vector_store %arg7[%c0_32, %c0_33, %c0_34], %19 {strides = array<i32>} : memref<1x16x1xf32, #tpu.memory_space<vmem>>, vector<1x16x1xf32>,
    %c0_i32_35 = arith.constant 0 : i32
    %41 = arith.cmpi eq, %arg2, %c0_i32_35 : i32
    %42 = arith.extui %41 : i1 to i32
    %c0_i32_36 = arith.constant 0 : i32
    %43 = arith.cmpi ne, %42, %c0_i32_36 : i32
    scf.if %43 {
      %c0_37 = arith.constant 0 : index
      %c0_38 = arith.constant 0 : index
      %c0_39 = arith.constant 0 : index
      %44 = vector.load %arg9[%c0_37, %c0_38, %c0_39] : memref<1x16x256xf32, #tpu.memory_space<vmem>>, vector<1x16x256xf32>
      %c0_40 = arith.constant 0 : index
      %c0_41 = arith.constant 0 : index
      %c0_42 = arith.constant 0 : index
      %45 = vector.load %arg8[%c0_40, %c0_41, %c0_42] : memref<1x16x1xf32, #tpu.memory_space<vmem>>, vector<1x16x1xf32>
      %46 = tpu.reciprocal %45 {approx = true} : vector<1x16x1xf32> -> vector<1x16x1xf32>
      %47 = vector.broadcast %46 : vector<1x16x1xf32> to vector<1x16x256xf32>
      %48 = arith.mulf %44, %47 : vector<1x16x256xf32>
      %c0_43 = arith.constant 0 : index
      %c0_44 = arith.constant 0 : index
      %c0_45 = arith.constant 0 : index
      %49 = vector.load %arg6[%c0_43, %c0_44, %c0_45] : memref<1x16x256xf32, #tpu.memory_space<vmem>>, vector<1x16x256xf32>
      tpu.vector_store %arg6[%c0_43, %c0_44, %c0_45], %48 {strides = array<i32>} : memref<1x16x256xf32, #tpu.memory_space<vmem>>, vector<1x16x256xf32>,
    } else {
    }
    return
  }
  func.func @transform_0(%arg0: i32, %arg1: i32, %arg2: i32) -> (i32, i32, i32) {
    %c0_i32 = arith.constant 0 : i32
    %c0_i32_0 = arith.constant 0 : i32
    return %arg0, %arg1, %c0_i32 : i32, i32, i32
  }
  func.func @transform_1(%arg0: i32, %arg1: i32, %arg2: i32) -> (i32, i32, i32) {
    %c0_i32 = arith.constant 0 : i32
    %c0_i32_0 = arith.constant 0 : i32
    return %arg0, %arg2, %c0_i32 : i32, i32, i32
  }
  func.func @transform_2(%arg0: i32, %arg1: i32, %arg2: i32) -> (i32, i32, i32) {
    %c0_i32 = arith.constant 0 : i32
    %c0_i32_0 = arith.constant 0 : i32
    return %arg0, %arg2, %c0_i32 : i32, i32, i32
  }
  func.func @transform_3(%arg0: i32, %arg1: i32, %arg2: i32) -> (i32, i32, i32) {
    %c0_i32 = arith.constant 0 : i32
    %c0_i32_0 = arith.constant 0 : i32
    return %arg0, %arg1, %c0_i32 : i32, i32, i32
  }
}

module attributes {stable_mosaic.version = 11 : i64} {
  func.func @_group_prelu_ln_kernel(%arg0: i32, %arg1: i32, %arg2: memref<1x24x384xf32, #tpu.memory_space<vmem>>, %arg3: memref<1x1x1xf32, #tpu.memory_space<vmem>>, %arg4: memref<1x1x384xf32, #tpu.memory_space<vmem>>, %arg5: memref<1x1x384xf32, #tpu.memory_space<vmem>>, %arg6: memref<1x24x384xf32, #tpu.memory_space<vmem>>) attributes {dimension_semantics = [#tpu.dimension_semantics<parallel>, #tpu.dimension_semantics<parallel>], iteration_bounds = array<i64: 1, 1>, scalar_prefetch = 0 : i64, scratch_operands = 0 : i64, tpu.core_type = #tpu.core_type<tc>, window_params = [{transform_indices = @transform_0, window_bounds = array<i64: 1, 24, 384>}, {transform_indices = @transform_1, window_bounds = array<i64: 1, 1, 1>}, {transform_indices = @transform_2, window_bounds = array<i64: 1, 1, 384>}, {transform_indices = @transform_3, window_bounds = array<i64: 1, 1, 384>}, {transform_indices = @transform_4, window_bounds = array<i64: 1, 24, 384>}]} {
    %c0 = arith.constant 0 : index
    %c0_0 = arith.constant 0 : index
    %c0_1 = arith.constant 0 : index
    %0 = vector.load %arg2[%c0, %c0_0, %c0_1] : memref<1x24x384xf32, #tpu.memory_space<vmem>>, vector<1x24x384xf32>
    %cst = arith.constant 0.000000e+00 : f32
    %1 = vector.broadcast %cst : f32 to vector<1x24x384xf32>
    %2 = arith.cmpf oge, %0, %1 : vector<1x24x384xf32>
    %c0_2 = arith.constant 0 : index
    %c0_3 = arith.constant 0 : index
    %c0_4 = arith.constant 0 : index
    %3 = vector.load %arg3[%c0_2, %c0_3, %c0_4] : memref<1x1x1xf32, #tpu.memory_space<vmem>>, vector<1x1x1xf32>
    %4 = vector.broadcast %3 : vector<1x1x1xf32> to vector<1x24x384xf32>
    %5 = arith.mulf %4, %0 : vector<1x24x384xf32>
    %6 = arith.select %2, %0, %5 : vector<1x24x384xi1>, vector<1x24x384xf32>
    %cst_5 = arith.constant dense<0.000000e+00> : vector<1x24xf32>
    %7 = vector.multi_reduction <add>, %6, %cst_5 [2] : vector<1x24x384xf32> to vector<1x24xf32>
    %8 = vector.shape_cast %7 : vector<1x24xf32> to vector<1x24x1xf32>
    %cst_6 = arith.constant 0.0036764706 : f32
    %9 = vector.broadcast %cst_6 : f32 to vector<1x24x1xf32>
    %10 = arith.mulf %8, %9 : vector<1x24x1xf32>
    %11 = arith.mulf %6, %6 : vector<1x24x384xf32>
    %cst_7 = arith.constant dense<0.000000e+00> : vector<1x24xf32>
    %12 = vector.multi_reduction <add>, %11, %cst_7 [2] : vector<1x24x384xf32> to vector<1x24xf32>
    %13 = vector.shape_cast %12 : vector<1x24xf32> to vector<1x24x1xf32>
    %cst_8 = arith.constant 0.0036764706 : f32
    %14 = vector.broadcast %cst_8 : f32 to vector<1x24x1xf32>
    %15 = arith.mulf %13, %14 : vector<1x24x1xf32>
    %16 = arith.mulf %10, %10 : vector<1x24x1xf32>
    %17 = arith.subf %15, %16 : vector<1x24x1xf32>
    %18 = vector.broadcast %10 : vector<1x24x1xf32> to vector<1x24x384xf32>
    %19 = arith.subf %6, %18 : vector<1x24x384xf32>
    %cst_9 = arith.constant 9.99999974E-6 : f32
    %20 = vector.broadcast %cst_9 : f32 to vector<1x24x1xf32>
    %21 = arith.addf %17, %20 : vector<1x24x1xf32>
    %22 = math.rsqrt %21 : vector<1x24x1xf32>
    %23 = vector.broadcast %22 : vector<1x24x1xf32> to vector<1x24x384xf32>
    %24 = arith.mulf %19, %23 : vector<1x24x384xf32>
    %c0_10 = arith.constant 0 : index
    %c0_11 = arith.constant 0 : index
    %c0_12 = arith.constant 0 : index
    %25 = vector.load %arg4[%c0_10, %c0_11, %c0_12] : memref<1x1x384xf32, #tpu.memory_space<vmem>>, vector<1x1x384xf32>
    %26 = vector.broadcast %25 : vector<1x1x384xf32> to vector<1x24x384xf32>
    %27 = arith.mulf %24, %26 : vector<1x24x384xf32>
    %c0_13 = arith.constant 0 : index
    %c0_14 = arith.constant 0 : index
    %c0_15 = arith.constant 0 : index
    %28 = vector.load %arg5[%c0_13, %c0_14, %c0_15] : memref<1x1x384xf32, #tpu.memory_space<vmem>>, vector<1x1x384xf32>
    %29 = vector.broadcast %28 : vector<1x1x384xf32> to vector<1x24x384xf32>
    %30 = arith.addf %27, %29 : vector<1x24x384xf32>
    %c0_16 = arith.constant 0 : index
    %c0_17 = arith.constant 0 : index
    %c0_18 = arith.constant 0 : index
    %31 = vector.load %arg6[%c0_16, %c0_17, %c0_18] : memref<1x24x384xf32, #tpu.memory_space<vmem>>, vector<1x24x384xf32>
    tpu.vector_store %arg6[%c0_16, %c0_17, %c0_18], %30 {strides = array<i32>} : memref<1x24x384xf32, #tpu.memory_space<vmem>>, vector<1x24x384xf32>,
    return
  }
  func.func @transform_0(%arg0: i32, %arg1: i32) -> (i32, i32, i32) {
    %c0_i32 = arith.constant 0 : i32
    %c0_i32_0 = arith.constant 0 : i32
    return %arg0, %arg1, %c0_i32 : i32, i32, i32
  }
  func.func @transform_1(%arg0: i32, %arg1: i32) -> (i32, i32, i32) {
    %c0_i32 = arith.constant 0 : i32
    %c0_i32_0 = arith.constant 0 : i32
    %c0_i32_1 = arith.constant 0 : i32
    return %arg0, %c0_i32, %c0_i32_0 : i32, i32, i32
  }
  func.func @transform_2(%arg0: i32, %arg1: i32) -> (i32, i32, i32) {
    %c0_i32 = arith.constant 0 : i32
    %c0_i32_0 = arith.constant 0 : i32
    %c0_i32_1 = arith.constant 0 : i32
    return %arg0, %c0_i32, %c0_i32_0 : i32, i32, i32
  }
  func.func @transform_3(%arg0: i32, %arg1: i32) -> (i32, i32, i32) {
    %c0_i32 = arith.constant 0 : i32
    %c0_i32_0 = arith.constant 0 : i32
    %c0_i32_1 = arith.constant 0 : i32
    return %arg0, %c0_i32, %c0_i32_0 : i32, i32, i32
  }
  func.func @transform_4(%arg0: i32, %arg1: i32) -> (i32, i32, i32) {
    %c0_i32 = arith.constant 0 : i32
    %c0_i32_0 = arith.constant 0 : i32
    return %arg0, %arg1, %c0_i32 : i32, i32, i32
  }
}

</mosaic_0001>

<bundles_post_ra>
// kernel: run.34
= control target key start
LH: loop header
LB: loop body
LE: loop exit
PB: predicated region body
PF: predicated region fallthrough
CT: control target
= control target key end

     0   :  { %vm12_vm0 = vcmask 7168   ;;  %v27_v1 = vmov 0.0   ;;  %s50_s0 = inlined_call_operand.vmem [shape: f32[8,128], index: 0, kind: input, shape index: {}]   ;;  %s51_s1 = inlined_call_operand.vmem [shape: f32[8,1], index: 1, kind: output, shape index: {}]  }
   0x1   :  { %v14_v0 = vld [vmem:[%s50_s0] sm:$0xff]  ;;  %13 = vst.msk [vmem:[%s51_s1] sm:$0xff] %vm12_vm0, %v27_v1 }
   0x2   :  { %v16_v2 = vmul.f32 %v14_v0, %v14_v0 }
   0x4   :  { %17 = vadd.xlane.f32.xlu0 %v16_v2 }
   0x8   :  { %v15_v3 = vld [vmem:[%s51_s1] sm:$0xff] }
  0x91   :  { %v18_v4 = vpop.xlane.xlu0 %17 }
  0x92   :  { %v19_v5 = vadd.f32 %v18_v4, %v15_v3 }
  0x94   :  { %21 = vst.msk [vmem:[%s51_s1] sm:$0xff] %vm12_vm0, %v19_v5 }

// kernel: run.35
= control target key start
LH: loop header
LB: loop body
LE: loop exit
PB: predicated region body
PF: predicated region fallthrough
CT: control target
= control target key end

     0   :  { %v26_v0 = vmov 0   ;;  %s51_s1 = inlined_call_operand.vmem [shape: f32[8,1], index: 1, kind: input, shape index: {}]   ;;  %s52_s0 = inlined_call_operand.vmem [shape: f32[8,128], index: 0, kind: input, shape index: {}]   ;;  %s53_s2 = inlined_call_operand.vmem [shape: f32[8,128], index: 2, kind: output, shape index: {}]  }
   0x1   :  { %25 = vset.pattern.permute.xlu0 %v26_v0  ;;  %v12_v1 = vld [vmem:[%s51_s1] sm:$0xff] }
   0x2   :  { %15 = vperm.xlu0 %25, %v12_v1   ;;  %v11_v2 = vld [vmem:[%s52_s0] sm:$0xff] }
  0x81   :  { %v16_v3 = vpop.permute.xlu0 %15 }
  0x82   :  { %v18_v4 = vmul.f32 %v16_v3, %v11_v2 }
  0x84   :  { %19 = vst [vmem:[%s53_s2] sm:$0xff] %v18_v4 }

// kernel: run.36
= control target key start
LH: loop header
LB: loop body
LE: loop exit
PB: predicated region body
PF: predicated region fallthrough
CT: control target
= control target key end

     0   :  { %s283_s1 = inlined_call_operand.vmem [shape: bf16[128,128], index: 1, kind: input, shape index: {}]   ;;  %s284_s0 = inlined_call_operand.vmem [shape: bf16[32,128], index: 0, kind: input, shape index: {}]   ;;  %s285_s2 = inlined_call_operand.vmem [shape: f32[32,128], index: 2, kind: output, shape index: {}]  }
   0x1   :  { %v216_v0 = vld [vmem:[%s283_s1] sm:$0xff]   ;;  %v217_v1 = vld [vmem:[%s283_s1 + $0x8] sm:$0xff]   ;;  %v218_v2 = vld [vmem:[%s283_s1 + $0x10] sm:$0xff]  }
   0x2   :  { %196 = vmatprep.subr.bf16.mxu0 %v216_v0  ;;  %v219_v3 = vld [vmem:[%s283_s1 + $0x18] sm:$0xff]   ;;  %v224_v4 = vld [vmem:[%s284_s0] sm:$0xff]   ;;  %v221_v6 = vld [vmem:[%s283_s1 + $0x28] sm:$0xff]  }
   0x3   :  { %197 = vmatpush3.bf16.msra.mxu0 %v216_v0  ;;  %212 = vmatprep.mubr.bf16.mxu0 %v224_v4  ;;  %v220_v5 = vld [vmem:[%s283_s1 + $0x20] sm:$0xff]   ;;  %v222_v7 = vld [vmem:[%s283_s1 + $0x30] sm:$0xff]   ;;  %v223_v8 = vld [vmem:[%s283_s1 + $0x38] sm:$0xff]  }
   0x4   :  { %198 = vmatprep.subr.bf16.mxu0 %v217_v1  ;;  %v225_v9 = vld [vmem:[%s284_s0 + $0x8] sm:$0xff]  }
   0x7   :  { %199 = vmatpush3.bf16.msra.mxu0 %v217_v1 }
   0x8   :  { %200 = vmatprep.subr.bf16.mxu0 %v218_v2 }
   0xb   :  { %201 = vmatpush3.bf16.msra.mxu0 %v218_v2 }
   0xc   :  { %202 = vmatprep.subr.bf16.mxu0 %v219_v3 }
   0xf   :  { %203 = vmatpush3.bf16.msra.mxu0 %v219_v3 }
  0x10   :  { %204 = vmatprep.subr.bf16.mxu0 %v220_v5 }
  0x13   :  { %205 = vmatpush3.bf16.msra.mxu0 %v220_v5 }
  0x14   :  { %206 = vmatprep.subr.bf16.mxu0 %v221_v6 }
  0x17   :  { %207 = vmatpush3.bf16.msra.mxu0 %v221_v6 }
  0x18   :  { %208 = vmatprep.subr.bf16.mxu0 %v222_v7 }
  0x1b   :  { %209 = vmatpush3.bf16.msra.mxu0 %v222_v7 }
  0x1c   :  { %210 = vmatprep.subr.bf16.mxu0 %v223_v8 }
  0x1f   :  { %211 = vmatpush3.bf16.msra.mxu0 %v223_v8 }
  0x22   :  { %213 = vmatmul.mubr.bf16.vlgmr.msra.gmra.mrb[0].mxu0 %v225_v9 }
  0xf5   :  { %v214_v10 = vpop.f32.mrb[0].mxu0 }
  0xf6   :  { %170 = vst [vmem:[%s285_s2 + $0x10] sm:$0xff] %v214_v10  ;;  %v138_v11 = vpop.f32.mrb[1].mxu0 }
  0xf7   :  { %168 = vst [vmem:[%s285_s2] sm:$0xff] %v138_v11  ;;  %v215_v12 = vpop.f32.mrb[2].mxu0 }
  0xf8   :  { %171 = vst [vmem:[%s285_s2 + $0x18] sm:$0xff] %v215_v12  ;;  %v141_v13 = vpop.f32.mrb[3].mxu0 }
  0xf9   :  { %169 = vst [vmem:[%s285_s2 + $0x8] sm:$0xff] %v141_v13 }

// kernel: run.37
= control target key start
LH: loop header
LB: loop body
LE: loop exit
PB: predicated region body
PF: predicated region fallthrough
CT: control target
= control target key end

     0   :  { %s1180_s12 = smov 0   ;;  %s1182_s13 = smov 0   ;;  %s1330_s0 = inlined_call_operand.vmem [shape: bf16[512,128], index: 0, kind: input, shape index: {}]   ;;  %s1331_s1 = inlined_call_operand.vmem [shape: bf16[128,128], index: 1, kind: input, shape index: {}]   ;;  %s1332_s2 = inlined_call_operand.vmem [shape: f32[1,128], index: 2, kind: input, shape index: {}]   ;;  %s1333_s3 = inlined_call_operand.vmem [shape: f32[512,128], index: 3, kind: output, shape index: {}]  }
   0x1   :  { %s1184_s14 = smov 0  }
   0x2 LB: > { %s32_s15 = sadd.s32 1, %s1154_s13  ;;  %p968_p0 = scmp.ge.s32.totalorder %s1158_s14, 1  ;;  %s1158_s14 = sphi %s1184_s14, %s13_s14   ;;  %s1154_s13 = sphi %s1182_s13, %s1335_s13   ;;  %s1150_s12 = sphi %s1180_s12, %s1334_s12  }
   0x3   : > { %p34_p1 = scmp.ge.s32.totalorder %s32_s15, 2  ;;  %p188_p2 = scmp.lt.s32.totalorder %s1158_s14, 3 }
   0x5   : > { %s1337_s15 = smov (%p34_p1, %s32_s15), 0  ;;  %p189_p3 = pnand %p968_p0, %p188_p2 }
   0x6   : > { %v1112_v0 = vld [vmem:[%s1331_s1] sm:$0xff] (!%p189_p3)   ;;  %s969_s18 = sshll.u32 (!%p189_p3), %s1150_s12, 5  ;;  %v1113_v1 = vld [vmem:[%s1331_s1 + $0x8] sm:$0xff] (!%p189_p3)   ;;  %v1114_v2 = vld [vmem:[%s1331_s1 + $0x10] sm:$0xff] (!%p189_p3)  }
   0x7   : > { %192 = sbr.rel (%p189_p3) target bundleno = 281 (0x119), region = 32  ;;  %p230_p4 = scmp.lt.s32.totalorder (!%p189_p3), %s969_s18, 63  ;;  %1024 = vmatprep.subr.bf16.mxu0 (!%p189_p3), %v1112_v0  ;;  %1072 = vmatprep.subr.bf16.mxu1 (!%p189_p3), %v1112_v0  ;;  %v1115_v3 = vld [vmem:[%s1331_s1 + $0x18] sm:$0xff] (!%p189_p3)   ;;  %v1116_v6 = vld [vmem:[%s1331_s1 + $0x20] sm:$0xff] (!%p189_p3)   ;;  %v1117_v7 = vld [vmem:[%s1331_s1 + $0x28] sm:$0xff] (!%p189_p3)  }
   0x8   : > { %1025 = vmatpush3.bf16.msra.mxu0 (!%p189_p3), %v1112_v0  ;;  %1080 = vmatpush3.bf16.msra.mxu1 (!%p189_p3), %v1112_v0  ;;  %v1118_v8 = vld [vmem:[%s1331_s1 + $0x30] sm:$0xff] (!%p189_p3)   ;;  %v1119_v9 = vld [vmem:[%s1331_s1 + $0x38] sm:$0xff] (!%p189_p3)   ;;  %v1250_v24 = vld [vmem:[%s1332_s2] ss:$0 sm:$0xff] (!%p189_p3) }
   0x9   : > { %1026 = vmatprep.subr.bf16.mxu0 (!%p189_p3), %v1113_v1  ;;  %1073 = vmatprep.subr.bf16.mxu1 (!%p189_p3), %v1113_v1 }
   0xc   : > { %1027 = vmatpush3.bf16.msra.mxu0 (!%p189_p3), %v1113_v1  ;;  %1081 = vmatpush3.bf16.msra.mxu1 (!%p189_p3), %v1113_v1 }
   0xd   : > { %1028 = vmatprep.subr.bf16.mxu0 (!%p189_p3), %v1114_v2  ;;  %1074 = vmatprep.subr.bf16.mxu1 (!%p189_p3), %v1114_v2 }
   0xe   : > { %s1339_s18 = smov (!%p230_p4, %s969_s18), 63 }
   0xf   : > { %s970_s23 = sshll.u32 %s1339_s18, 2  ;;  %s972_s10 = sshll.u32 %s1339_s18, 3 }
  0x10   : > { %s1213_s26 = scalar_lea.vmem %s1330_s0, %s970_s23  ;;  %1029 = vmatpush3.bf16.msra.mxu0 %v1114_v2  ;;  %1082 = vmatpush3.bf16.msra.mxu1 %v1114_v2  ;;  %s1255_s19 = scalar_lea.vmem %s1333_s3, %s972_s10 }
  0x11   : > { %v1120_v4 = vld [vmem:[%s1213_s26] sm:$0xff]   ;;  %1030 = vmatprep.subr.bf16.mxu0 %v1115_v3  ;;  %1075 = vmatprep.subr.bf16.mxu1 %v1115_v3  ;;  %v1122_v10 = vld [vmem:[%s1213_s26 + $0x8] sm:$0xff]   ;;  %v1124_v12 = vld [vmem:[%s1213_s26 + $0x10] sm:$0xff]  }
  0x12   : > { %v1121_v5 = vld [vmem:[%s1213_s26 + $0x40] sm:$0xff]   ;;  %1040 = vmatprep.mubr.bf16.mxu0 %v1120_v4  ;;  %v1123_v11 = vld [vmem:[%s1213_s26 + $0x48] sm:$0xff]   ;;  %v1125_v13 = vld [vmem:[%s1213_s26 + $0x50] sm:$0xff]  }
  0x13   : > { %1056 = vmatprep.mubr.bf16.mxu1 %v1121_v5  ;;  %v1126_v14 = vld [vmem:[%s1213_s26 + $0x18] sm:$0xff]   ;;  %v1128_v16 = vld [vmem:[%s1213_s26 + $0x20] sm:$0xff]   ;;  %v1130_v18 = vld [vmem:[%s1213_s26 + $0x28] sm:$0xff]  }
  0x14   : > { %1031 = vmatpush3.bf16.msra.mxu0 %v1115_v3  ;;  %1083 = vmatpush3.bf16.msra.mxu1 %v1115_v3  ;;  %v1127_v15 = vld [vmem:[%s1213_s26 + $0x58] sm:$0xff]   ;;  %v1129_v17 = vld [vmem:[%s1213_s26 + $0x60] sm:$0xff]   ;;  %v1131_v19 = vld [vmem:[%s1213_s26 + $0x68] sm:$0xff]  }
  0x15   : > { %1032 = vmatprep.subr.bf16.mxu0 %v1116_v6  ;;  %1076 = vmatprep.subr.bf16.mxu1 %v1116_v6  ;;  %v1132_v20 = vld [vmem:[%s1213_s26 + $0x30] sm:$0xff]   ;;  %v1134_v22 = vld [vmem:[%s1213_s26 + $0x38] sm:$0xff]  }
  0x16   : > { %v1133_v21 = vld [vmem:[%s1213_s26 + $0x70] sm:$0xff]   ;;  %v1135_v23 = vld [vmem:[%s1213_s26 + $0x78] sm:$0xff]  }
  0x18   : > { %1033 = vmatpush3.bf16.msra.mxu0 %v1116_v6  ;;  %1084 = vmatpush3.bf16.msra.mxu1 %v1116_v6 }
  0x19   : > { %1034 = vmatprep.subr.bf16.mxu0 %v1117_v7  ;;  %1077 = vmatprep.subr.bf16.mxu1 %v1117_v7 }
  0x1c   : > { %1035 = vmatpush3.bf16.msra.mxu0 %v1117_v7  ;;  %1085 = vmatpush3.bf16.msra.mxu1 %v1117_v7 }
  0x1d   : > { %1036 = vmatprep.subr.bf16.mxu0 %v1118_v8  ;;  %1078 = vmatprep.subr.bf16.mxu1 %v1118_v8 }
  0x20   : > { %1037 = vmatpush3.bf16.msra.mxu0 %v1118_v8  ;;  %1086 = vmatpush3.bf16.msra.mxu1 %v1118_v8 }
  0x21   : > { %1038 = vmatprep.subr.bf16.mxu0 %v1119_v9  ;;  %1079 = vmatprep.subr.bf16.mxu1 %v1119_v9 }
  0x24   : > { %1039 = vmatpush3.bf16.msra.mxu0 %v1119_v9  ;;  %1087 = vmatpush3.bf16.msra.mxu1 %v1119_v9 }
  0x27   : > { %1041 = vmatmul.mubr.bf16.vlgmr.msra.gmra.mrb[0].mxu0 %v1122_v10  ;;  %1057 = vmatmul.mubr.bf16.vlgmr.msra.gmra.mrb[0].mxu1 %v1123_v11 }
  0x28   : > { %1044 = vmatprep.mubr.bf16.mxu0 %v1124_v12  ;;  %1060 = vmatprep.mubr.bf16.mxu1 %v1125_v13 }
  0x2f   : > { %1045 = vmatmul.mubr.bf16.gmra.mrb[4].mxu0 %v1126_v14  ;;  %1061 = vmatmul.mubr.bf16.gmra.mrb[4].mxu1 %v1127_v15 }
  0x30   : > { %1048 = vmatprep.mubr.bf16.mxu0 %v1128_v16  ;;  %1064 = vmatprep.mubr.bf16.mxu1 %v1129_v17 }
  0x37   : > { %1049 = vmatmul.mubr.bf16.gmra.mrb[8].mxu0 %v1130_v18  ;;  %1065 = vmatmul.mubr.bf16.gmra.mrb[8].mxu1 %v1131_v19 }
  0x38   : > { %1052 = vmatprep.mubr.bf16.mxu0 %v1132_v20  ;;  %1068 = vmatprep.mubr.bf16.mxu1 %v1133_v21 }
  0x3f   : > { %1053 = vmatmul.mubr.bf16.gmra.mrb[12].mxu0 %v1134_v22  ;;  %1069 = vmatmul.mubr.bf16.gmra.mrb[12].mxu1 %v1135_v23 }
  0xfa   : > { %v1042_v25 = vpop.f32.mrb[0].mxu0  ;;  %v1058_v26 = vpop.f32.mrb[0].mxu1 }
  0xfb   : > { %v789_v27 = vadd.f32 %v1042_v25, %v1250_v24  ;;  %v805_v28 = vadd.f32 %v1058_v26, %v1250_v24  ;;  %v554_v29 = vpop.f32.mrb[1].mxu0  ;;  %v618_v30 = vpop.f32.mrb[1].mxu1 }
  0xfc   : > { %v787_v31 = vadd.f32 %v1250_v24, %v554_v29  ;;  %v803_v32 = vadd.f32 %v1250_v24, %v618_v30  ;;  %v1043_v33 = vpop.f32.mrb[2].mxu0  ;;  %v1059_v34 = vpop.f32.mrb[2].mxu1 }
  0xfd   : > { %821 = vst [vmem:[%s1255_s19 + $0x10] sm:$0xff] %v789_v27  ;;  %837 = vst [vmem:[%s1255_s19 + $0x90] sm:$0xff] %v805_v28  ;;  %v790_v35 = vadd.f32 %v1043_v33, %v1250_v24  ;;  %v806_v36 = vadd.f32 %v1059_v34, %v1250_v24  ;;  %v557_v37 = vpop.f32.mrb[3].mxu0  ;;  %v621_v38 = vpop.f32.mrb[3].mxu1 }
  0xfe   : > { %819 = vst [vmem:[%s1255_s19] sm:$0xff] %v787_v31  ;;  %835 = vst [vmem:[%s1255_s19 + $0x80] sm:$0xff] %v803_v32  ;;  %v788_v39 = vadd.f32 %v1250_v24, %v557_v37  ;;  %v804_v40 = vadd.f32 %v1250_v24, %v621_v38 }
  0xff   : > { %822 = vst [vmem:[%s1255_s19 + $0x18] sm:$0xff] %v790_v35  ;;  %838 = vst [vmem:[%s1255_s19 + $0x98] sm:$0xff] %v806_v36 }
 0x100   : > { %820 = vst [vmem:[%s1255_s19 + $0x8] sm:$0xff] %v788_v39  ;;  %836 = vst [vmem:[%s1255_s19 + $0x88] sm:$0xff] %v804_v40 }
 0x102   : > { %v1046_v41 = vpop.f32.mrb[4].mxu0  ;;  %v1062_v42 = vpop.f32.mrb[4].mxu1 }
 0x103   : > { %v793_v43 = vadd.f32 %v1046_v41, %v1250_v24  ;;  %v809_v44 = vadd.f32 %v1062_v42, %v1250_v24  ;;  %v570_v45 = vpop.f32.mrb[5].mxu0  ;;  %v634_v46 = vpop.f32.mrb[5].mxu1 }
 0x104   : > { %v791_v47 = vadd.f32 %v1250_v24, %v570_v45  ;;  %v807_v48 = vadd.f32 %v1250_v24, %v634_v46  ;;  %v1047_v49 = vpop.f32.mrb[6].mxu0  ;;  %v1063_v50 = vpop.f32.mrb[6].mxu1 }
 0x105   : > { %825 = vst [vmem:[%s1255_s19 + $0x30] sm:$0xff] %v793_v43  ;;  %841 = vst [vmem:[%s1255_s19 + $0xb0] sm:$0xff] %v809_v44  ;;  %v794_v51 = vadd.f32 %v1047_v49, %v1250_v24  ;;  %v810_v52 = vadd.f32 %v1063_v50, %v1250_v24  ;;  %v573_v53 = vpop.f32.mrb[7].mxu0  ;;  %v637_v54 = vpop.f32.mrb[7].mxu1 }
 0x106   : > { %823 = vst [vmem:[%s1255_s19 + $0x20] sm:$0xff] %v791_v47  ;;  %839 = vst [vmem:[%s1255_s19 + $0xa0] sm:$0xff] %v807_v48  ;;  %v792_v55 = vadd.f32 %v1250_v24, %v573_v53  ;;  %v808_v56 = vadd.f32 %v1250_v24, %v637_v54 }
 0x107   : > { %826 = vst [vmem:[%s1255_s19 + $0x38] sm:$0xff] %v794_v51  ;;  %842 = vst [vmem:[%s1255_s19 + $0xb8] sm:$0xff] %v810_v52 }
 0x108   : > { %824 = vst [vmem:[%s1255_s19 + $0x28] sm:$0xff] %v792_v55  ;;  %840 = vst [vmem:[%s1255_s19 + $0xa8] sm:$0xff] %v808_v56 }
 0x10a   : > { %v1050_v57 = vpop.f32.mrb[8].mxu0  ;;  %v1066_v58 = vpop.f32.mrb[8].mxu1 }
 0x10b   : > { %v797_v59 = vadd.f32 %v1050_v57, %v1250_v24  ;;  %v813_v60 = vadd.f32 %v1066_v58, %v1250_v24  ;;  %v586_v61 = vpop.f32.mrb[9].mxu0  ;;  %v650_v62 = vpop.f32.mrb[9].mxu1 }
 0x10c   : > { %v795_v63 = vadd.f32 %v1250_v24, %v586_v61  ;;  %v811_v0 = vadd.f32 %v1250_v24, %v650_v62  ;;  %v1051_v1 = vpop.f32.mrb[10].mxu0  ;;  %v1067_v2 = vpop.f32.mrb[10].mxu1 }
 0x10d   : > { %829 = vst [vmem:[%s1255_s19 + $0x50] sm:$0xff] %v797_v59  ;;  %845 = vst [vmem:[%s1255_s19 + $0xd0] sm:$0xff] %v813_v60  ;;  %v798_v3 = vadd.f32 %v1051_v1, %v1250_v24  ;;  %v814_v4 = vadd.f32 %v1067_v2, %v1250_v24  ;;  %v589_v5 = vpop.f32.mrb[11].mxu0  ;;  %v653_v6 = vpop.f32.mrb[11].mxu1 }
 0x10e   : > { %827 = vst [vmem:[%s1255_s19 + $0x40] sm:$0xff] %v795_v63  ;;  %843 = vst [vmem:[%s1255_s19 + $0xc0] sm:$0xff] %v811_v0  ;;  %v796_v7 = vadd.f32 %v1250_v24, %v589_v5  ;;  %v812_v8 = vadd.f32 %v1250_v24, %v653_v6 }
 0x10f   : > { %830 = vst [vmem:[%s1255_s19 + $0x58] sm:$0xff] %v798_v3  ;;  %846 = vst [vmem:[%s1255_s19 + $0xd8] sm:$0xff] %v814_v4 }
 0x110   : > { %828 = vst [vmem:[%s1255_s19 + $0x48] sm:$0xff] %v796_v7  ;;  %844 = vst [vmem:[%s1255_s19 + $0xc8] sm:$0xff] %v812_v8 }
 0x112   : > { %v1054_v9 = vpop.f32.mrb[12].mxu0  ;;  %v1070_v10 = vpop.f32.mrb[12].mxu1 }
 0x113   : > { %v801_v11 = vadd.f32 %v1054_v9, %v1250_v24  ;;  %v817_v12 = vadd.f32 %v1070_v10, %v1250_v24  ;;  %v602_v13 = vpop.f32.mrb[13].mxu0  ;;  %v666_v14 = vpop.f32.mrb[13].mxu1 }
 0x114   : > { %v799_v15 = vadd.f32 %v1250_v24, %v602_v13  ;;  %v815_v16 = vadd.f32 %v1250_v24, %v666_v14  ;;  %v1055_v17 = vpop.f32.mrb[14].mxu0  ;;  %v1071_v18 = vpop.f32.mrb[14].mxu1 }
 0x115   : > { %833 = vst [vmem:[%s1255_s19 + $0x70] sm:$0xff] %v801_v11  ;;  %849 = vst [vmem:[%s1255_s19 + $0xf0] sm:$0xff] %v817_v12  ;;  %v802_v19 = vadd.f32 %v1055_v17, %v1250_v24  ;;  %v818_v20 = vadd.f32 %v1071_v18, %v1250_v24  ;;  %v605_v21 = vpop.f32.mrb[15].mxu0  ;;  %v669_v22 = vpop.f32.mrb[15].mxu1 }
 0x116   : > { %831 = vst [vmem:[%s1255_s19 + $0x60] sm:$0xff] %v799_v15  ;;  %847 = vst [vmem:[%s1255_s19 + $0xe0] sm:$0xff] %v815_v16  ;;  %v800_v23 = vadd.f32 %v1250_v24, %v605_v21  ;;  %v816_v25 = vadd.f32 %v1250_v24, %v669_v22 }
 0x117   : > { %834 = vst [vmem:[%s1255_s19 + $0x78] sm:$0xff] %v802_v19  ;;  %850 = vst [vmem:[%s1255_s19 + $0xf8] sm:$0xff] %v818_v20 }
 0x118   : > { %832 = vst [vmem:[%s1255_s19 + $0x68] sm:$0xff] %v800_v23  ;;  %848 = vst [vmem:[%s1255_s19 + $0xe8] sm:$0xff] %v816_v25 }
 0x119 PF: > { %s13_s14 = sadd.s32 1, %s1158_s14   ;;  %s1334_s12 = smov %s1154_s13 }
 0x11a   : > { %p10_p5 = scmp.ge.s32.totalorder %s13_s14, 4   ;;  %s1335_s13 = smov %s1337_s15 }
 0x11c   :  { %12 = sbr.rel (!%p10_p5) target bundleno = 2 (0x2), region = 76 }

// kernel: run.39
= control target key start
LH: loop header
LB: loop body
LE: loop exit
PB: predicated region body
PF: predicated region fallthrough
CT: control target
= control target key end

     0   :  { %s922_s12 = smov 0   ;;  %s924_s13 = smov 0   ;;  %s1095_s0 = inlined_call_operand.vmem [shape: f32[2,16,16,128], index: 0, kind: input, shape index: {}]   ;;  %s1096_s1 = inlined_call_operand.vmem [shape: f32[2,16,1,1], index: 1, kind: input, shape index: {}]   ;;  %s1097_s2 = inlined_call_operand.vmem [shape: f32[2,16,1,1], index: 2, kind: input, shape index: {}]   ;;  %s1098_s3 = inlined_call_operand.vmem [shape: f32[2,16,16,128], index: 3, kind: output, shape index: {}]  }
   0x1   :  { %s926_s14 = smov 0  }
   0x2 LB: > { %s25_s15 = sadd.s32 1, %s895_s13  ;;  %p807_p0 = scmp.ge.s32.totalorder %s899_s14, 1  ;;  %s899_s14 = sphi %s926_s14, %s13_s14   ;;  %s895_s13 = sphi %s924_s13, %s1100_s13   ;;  %s891_s12 = sphi %s922_s12, %s1099_s12  }
   0x3   : > { %p27_p1 = scmp.ge.s32.totalorder %s25_s15, 2  ;;  %p176_p2 = scmp.lt.s32.totalorder %s899_s14, 3 }
   0x5   : > { %s1102_s15 = smov (%p27_p1, %s25_s15), 0  ;;  %p177_p3 = pnand %p807_p0, %p176_p2 }
   0x6   : > { %p217_p4 = scmp.lt.s32.totalorder (!%p177_p3), %s891_s12, 1  ;;  %v901_v0 = vmov (!%p177_p3), 0  }
   0x7   : > { %180 = sbr.rel (%p177_p3) target bundleno = 210 (0xd2), region = 32  ;;  %876 = vset.pattern.permute.xlu1 (!%p177_p3), %v901_v0  ;;  %875 = vset.pattern.permute.xlu0 (!%p177_p3), %v901_v0 }
   0xe   : > { %s1104_s12 = smov (!%p217_p4, %s891_s12), 1 }
   0xf   : > { %s810_s16 = sshll.u32 %s1104_s12, 4  ;;  %s848_s23 = sshll.u32 %s1104_s12, 8 }
  0x10   : > { %s229_s19 = scalar_lea.vmem %s1096_s1, %s810_s16  ;;  %s953_s22 = scalar_lea.vmem %s1097_s2, %s810_s16 }
  0x11   : > { %v816_v1 = vld [vmem:[%s229_s19 + $0x2] ss:$0 sm:$0xff]  ;;  %v814_v2 = vld [vmem:[%s229_s19] ss:$0 sm:$0xff]  ;;  %v817_v3 = vld [vmem:[%s229_s19 + $0x3] ss:$0 sm:$0xff]  ;;  %s987_s26 = scalar_lea.vmem %s1095_s0, %s848_s23  ;;  %s1005_s29 = scalar_lea.vmem %s1098_s3, %s848_s23 }
  0x12   : > { %381 = vperm.xlu1 %876, %v816_v1   ;;  %373 = vperm.xlu0 %875, %v814_v2   ;;  %v815_v4 = vld [vmem:[%s229_s19 + $0x1] ss:$0 sm:$0xff]  ;;  %v819_v5 = vld [vmem:[%s229_s19 + $0x5] ss:$0 sm:$0xff]  ;;  %v818_v6 = vld [vmem:[%s229_s19 + $0x4] ss:$0 sm:$0xff] }
  0x13   : > { %v821_v7 = vld [vmem:[%s229_s19 + $0x7] ss:$0 sm:$0xff]  ;;  %v820_v8 = vld [vmem:[%s229_s19 + $0x6] ss:$0 sm:$0xff]  ;;  %v823_v9 = vld [vmem:[%s229_s19 + $0x9] ss:$0 sm:$0xff] }
  0x14   : > { %v822_v10 = vld [vmem:[%s229_s19 + $0x8] ss:$0 sm:$0xff]  ;;  %v825_v11 = vld [vmem:[%s229_s19 + $0xb] ss:$0 sm:$0xff]  ;;  %v824_v12 = vld [vmem:[%s229_s19 + $0xa] ss:$0 sm:$0xff] }
  0x15   : > { %v827_v13 = vld [vmem:[%s229_s19 + $0xd] ss:$0 sm:$0xff]  ;;  %v826_v14 = vld [vmem:[%s229_s19 + $0xc] ss:$0 sm:$0xff]  ;;  %v829_v15 = vld [vmem:[%s229_s19 + $0xf] ss:$0 sm:$0xff] }
  0x16   : > { %385 = vperm.xlu1 %876, %v817_v3   ;;  %377 = vperm.xlu0 %875, %v815_v4   ;;  %v828_v16 = vld [vmem:[%s229_s19 + $0xe] ss:$0 sm:$0xff]  ;;  %v831_v17 = vld [vmem:[%s953_s22 + $0x1] ss:$0 sm:$0xff]  ;;  %v830_v18 = vld [vmem:[%s953_s22] ss:$0 sm:$0xff] }
  0x17   : > { %v833_v19 = vld [vmem:[%s953_s22 + $0x3] ss:$0 sm:$0xff]  ;;  %v832_v20 = vld [vmem:[%s953_s22 + $0x2] ss:$0 sm:$0xff]  ;;  %v835_v21 = vld [vmem:[%s953_s22 + $0x5] ss:$0 sm:$0xff] }
  0x18   : > { %v834_v22 = vld [vmem:[%s953_s22 + $0x4] ss:$0 sm:$0xff]  ;;  %v837_v23 = vld [vmem:[%s953_s22 + $0x7] ss:$0 sm:$0xff]  ;;  %v836_v24 = vld [vmem:[%s953_s22 + $0x6] ss:$0 sm:$0xff] }
  0x19   : > { %v839_v25 = vld [vmem:[%s953_s22 + $0x9] ss:$0 sm:$0xff]  ;;  %v838_v26 = vld [vmem:[%s953_s22 + $0x8] ss:$0 sm:$0xff]  ;;  %v841_v27 = vld [vmem:[%s953_s22 + $0xb] ss:$0 sm:$0xff] }
  0x1a   : > { %393 = vperm.xlu1 %876, %v819_v5   ;;  %389 = vperm.xlu0 %875, %v818_v6   ;;  %v840_v28 = vld [vmem:[%s953_s22 + $0xa] ss:$0 sm:$0xff]  ;;  %v843_v29 = vld [vmem:[%s953_s22 + $0xd] ss:$0 sm:$0xff]  ;;  %v842_v30 = vld [vmem:[%s953_s22 + $0xc] ss:$0 sm:$0xff] }
  0x1b   : > { %v845_v31 = vld [vmem:[%s953_s22 + $0xf] ss:$0 sm:$0xff]  ;;  %v844_v32 = vld [vmem:[%s953_s22 + $0xe] ss:$0 sm:$0xff]  ;;  %v244_v47 = vld [vmem:[%s987_s26] sm:$0xff] }
  0x1c   : > { %v245_v48 = vld [vmem:[%s987_s26 + $0x8] sm:$0xff]  ;;  %v246_v49 = vld [vmem:[%s987_s26 + $0x10] sm:$0xff]  ;;  %v247_v50 = vld [vmem:[%s987_s26 + $0x18] sm:$0xff] }
  0x1d   : > { %v248_v53 = vld [vmem:[%s987_s26 + $0x20] sm:$0xff]  ;;  %v249_v58 = vld [vmem:[%s987_s26 + $0x28] sm:$0xff]  ;;  %v250_v59 = vld [vmem:[%s987_s26 + $0x30] sm:$0xff] }
  0x1e   : > { %401 = vperm.xlu1 %876, %v821_v7   ;;  %397 = vperm.xlu0 %875, %v820_v8   ;;  %v251_v60 = vld [vmem:[%s987_s26 + $0x38] sm:$0xff]  ;;  %v254_v7 = vld [vmem:[%s987_s26 + $0x50] sm:$0xff] }
  0x1f   : > { %v255_v8 = vld [vmem:[%s987_s26 + $0x58] sm:$0xff] }
  0x22   : > { %409 = vperm.xlu1 %876, %v823_v9   ;;  %405 = vperm.xlu0 %875, %v822_v10   ;;  %v252_v9 = vld [vmem:[%s987_s26 + $0x40] sm:$0xff]  ;;  %v253_v10 = vld [vmem:[%s987_s26 + $0x48] sm:$0xff] }
  0x26   : > { %417 = vperm.xlu1 %876, %v825_v11   ;;  %413 = vperm.xlu0 %875, %v824_v12  }
  0x2a   : > { %425 = vperm.xlu1 %876, %v827_v13   ;;  %421 = vperm.xlu0 %875, %v826_v14  }
  0x2e   : > { %433 = vperm.xlu1 %876, %v829_v15   ;;  %429 = vperm.xlu0 %875, %v828_v16  }
  0x32   : > { %569 = vperm.xlu1 %876, %v831_v17   ;;  %565 = vperm.xlu0 %875, %v830_v18  }
  0x36   : > { %577 = vperm.xlu1 %876, %v833_v19   ;;  %573 = vperm.xlu0 %875, %v832_v20  }
  0x3a   : > { %585 = vperm.xlu1 %876, %v835_v21   ;;  %581 = vperm.xlu0 %875, %v834_v22   ;;  %v258_v21 = vld [vmem:[%s987_s26 + $0x70] sm:$0xff]  ;;  %v259_v22 = vld [vmem:[%s987_s26 + $0x78] sm:$0xff] }
  0x3e   : > { %593 = vperm.xlu1 %876, %v837_v23   ;;  %589 = vperm.xlu0 %875, %v836_v24   ;;  %v256_v23 = vld [vmem:[%s987_s26 + $0x60] sm:$0xff]  ;;  %v257_v24 = vld [vmem:[%s987_s26 + $0x68] sm:$0xff] }
  0x42   : > { %601 = vperm.xlu1 %876, %v839_v25   ;;  %597 = vperm.xlu0 %875, %v838_v26  }
  0x46   : > { %609 = vperm.xlu1 %876, %v841_v27   ;;  %605 = vperm.xlu0 %875, %v840_v28  }
  0x4a   : > { %617 = vperm.xlu1 %876, %v843_v29   ;;  %613 = vperm.xlu0 %875, %v842_v30  }
  0x4e   : > { %625 = vperm.xlu1 %876, %v845_v31   ;;  %621 = vperm.xlu0 %875, %v844_v32  }
  0x91   : > { %v382_v33 = vpop.permute.xlu1 %381  ;;  %v374_v34 = vpop.permute.xlu0 %373 }
  0x92   : > { %v436_v54 = vmul.f32 %v374_v34, %v244_v47  ;;  %v437_v55 = vmul.f32 %v374_v34, %v245_v48  ;;  %v440_v3 = vmul.f32 %v382_v33, %v248_v53  ;;  %v441_v4 = vmul.f32 %v382_v33, %v249_v58  ;;  %v267_v58 = vld [vmem:[%s987_s26 + $0xb8] sm:$0xff] }
  0x95   : > { %v386_v35 = vpop.permute.xlu1 %385  ;;  %v378_v36 = vpop.permute.xlu0 %377 }
  0x96   : > { %v438_v56 = vmul.f32 %v378_v36, %v246_v49  ;;  %v439_v57 = vmul.f32 %v378_v36, %v247_v50  ;;  %v442_v5 = vmul.f32 %v386_v35, %v250_v59  ;;  %v443_v6 = vmul.f32 %v386_v35, %v251_v60  ;;  %v262_v35 = vld [vmem:[%s987_s26 + $0x90] sm:$0xff]  ;;  %v263_v36 = vld [vmem:[%s987_s26 + $0x98] sm:$0xff]  ;;  %v264_v59 = vld [vmem:[%s987_s26 + $0xa0] sm:$0xff] }
  0x97   : > { %v265_v60 = vld [vmem:[%s987_s26 + $0xa8] sm:$0xff] }
  0x99   : > { %v394_v37 = vpop.permute.xlu1 %393  ;;  %v390_v38 = vpop.permute.xlu0 %389 }
  0x9a   : > { %v446_v17 = vmul.f32 %v394_v37, %v254_v7  ;;  %v447_v18 = vmul.f32 %v394_v37, %v255_v8  ;;  %v444_v19 = vmul.f32 %v390_v38, %v252_v9  ;;  %v445_v20 = vmul.f32 %v390_v38, %v253_v10  ;;  %v260_v37 = vld [vmem:[%s987_s26 + $0x80] sm:$0xff]  ;;  %v261_v38 = vld [vmem:[%s987_s26 + $0x88] sm:$0xff] }
  0x9b   : > { %v268_v7 = vld [vmem:[%s987_s26 + $0xc0] sm:$0xff]  ;;  %v269_v8 = vld [vmem:[%s987_s26 + $0xc8] sm:$0xff] }
  0x9d   : > { %v971_v39 = vpop.permute.xlu1 %401  ;;  %v973_v40 = vpop.permute.xlu0 %397 }
  0x9e   : > { %v450_v31 = vmul.f32 %v971_v39, %v258_v21  ;;  %v451_v32 = vmul.f32 %v971_v39, %v259_v22  ;;  %v448_v33 = vmul.f32 %v973_v40, %v256_v23  ;;  %v449_v34 = vmul.f32 %v973_v40, %v257_v24 }
  0xa1   : > { %v975_v41 = vpop.permute.xlu1 %409  ;;  %v977_v42 = vpop.permute.xlu0 %405 }
  0xa2   : > { %v454_v53 = vmul.f32 %v975_v41, %v262_v35 }
  0xa5   : > { %v979_v43 = vpop.permute.xlu1 %417  ;;  %v981_v44 = vpop.permute.xlu0 %413 }
  0xa9   : > { %v989_v45 = vpop.permute.xlu1 %425  ;;  %v991_v46 = vpop.permute.xlu0 %421 }
  0xad   : > { %v997_v51 = vpop.permute.xlu1 %433  ;;  %v999_v52 = vpop.permute.xlu0 %429 }
  0xb1   : > { %v570_v61 = vpop.permute.xlu1 %569  ;;  %v566_v62 = vpop.permute.xlu0 %565 }
  0xb2   : > { %v630_v63 = vadd.f32 %v570_v61, %v438_v56  ;;  %v631_v0 = vadd.f32 %v570_v61, %v439_v57  ;;  %v628_v1 = vadd.f32 %v566_v62, %v436_v54  ;;  %v629_v2 = vadd.f32 %v566_v62, %v437_v55  ;;  %v266_v57 = vld [vmem:[%s987_s26 + $0xb0] sm:$0xff] }
  0xb3   : > { %v455_v54 = vmul.f32 %v975_v41, %v263_v36  ;;  %v452_v55 = vmul.f32 %v977_v42, %v260_v37  ;;  %v453_v56 = vmul.f32 %v977_v42, %v261_v38 }
  0xb4   : > { %662 = vst [vmem:[%s1005_s29 + $0x10] sm:$0xff] %v630_v63  ;;  %663 = vst [vmem:[%s1005_s29 + $0x18] sm:$0xff] %v631_v0 }
  0xb5   : > { %660 = vst [vmem:[%s1005_s29] sm:$0xff] %v628_v1  ;;  %661 = vst [vmem:[%s1005_s29 + $0x8] sm:$0xff] %v629_v2  ;;  %v578_v11 = vpop.permute.xlu1 %577  ;;  %v574_v12 = vpop.permute.xlu0 %573  ;;  %v458_v1 = vmul.f32 %v979_v43, %v266_v57  ;;  %v459_v2 = vmul.f32 %v979_v43, %v267_v58 }
  0xb6   : > { %v634_v13 = vadd.f32 %v578_v11, %v442_v5  ;;  %v635_v14 = vadd.f32 %v578_v11, %v443_v6  ;;  %v632_v15 = vadd.f32 %v574_v12, %v440_v3  ;;  %v633_v16 = vadd.f32 %v574_v12, %v441_v4  ;;  %v270_v5 = vld [vmem:[%s987_s26 + $0xd0] sm:$0xff]  ;;  %v271_v6 = vld [vmem:[%s987_s26 + $0xd8] sm:$0xff] }
  0xb7   : > { %v456_v3 = vmul.f32 %v981_v44, %v264_v59  ;;  %v457_v4 = vmul.f32 %v981_v44, %v265_v60 }
  0xb8   : > { %666 = vst [vmem:[%s1005_s29 + $0x30] sm:$0xff] %v634_v13  ;;  %667 = vst [vmem:[%s1005_s29 + $0x38] sm:$0xff] %v635_v14  ;;  %v462_v13 = vmul.f32 %v989_v45, %v270_v5  ;;  %v463_v14 = vmul.f32 %v989_v45, %v271_v6 }
  0xb9   : > { %664 = vst [vmem:[%s1005_s29 + $0x20] sm:$0xff] %v632_v15  ;;  %665 = vst [vmem:[%s1005_s29 + $0x28] sm:$0xff] %v633_v16  ;;  %v586_v25 = vpop.permute.xlu1 %585  ;;  %v582_v26 = vpop.permute.xlu0 %581  ;;  %v460_v15 = vmul.f32 %v991_v46, %v268_v7  ;;  %v461_v16 = vmul.f32 %v991_v46, %v269_v8 }
  0xba   : > { %v638_v27 = vadd.f32 %v586_v25, %v446_v17  ;;  %v639_v28 = vadd.f32 %v586_v25, %v447_v18  ;;  %v636_v29 = vadd.f32 %v582_v26, %v444_v19  ;;  %v637_v30 = vadd.f32 %v582_v26, %v445_v20  ;;  %v274_v17 = vld [vmem:[%s987_s26 + $0xf0] sm:$0xff]  ;;  %v275_v18 = vld [vmem:[%s987_s26 + $0xf8] sm:$0xff]  ;;  %v272_v19 = vld [vmem:[%s987_s26 + $0xe0] sm:$0xff] }
  0xbb   : > { %v273_v20 = vld [vmem:[%s987_s26 + $0xe8] sm:$0xff]  ;;  %v466_v46 = vmul.f32 %v997_v51, %v274_v17  ;;  %v467_v26 = vmul.f32 %v997_v51, %v275_v18 }
  0xbc   : > { %670 = vst [vmem:[%s1005_s29 + $0x50] sm:$0xff] %v638_v27  ;;  %671 = vst [vmem:[%s1005_s29 + $0x58] sm:$0xff] %v639_v28  ;;  %v464_v27 = vmul.f32 %v999_v52, %v272_v19  ;;  %v465_v28 = vmul.f32 %v999_v52, %v273_v20 }
  0xbd   : > { %668 = vst [vmem:[%s1005_s29 + $0x40] sm:$0xff] %v636_v29  ;;  %669 = vst [vmem:[%s1005_s29 + $0x48] sm:$0xff] %v637_v30  ;;  %v594_v47 = vpop.permute.xlu1 %593  ;;  %v590_v39 = vpop.permute.xlu0 %589 }
  0xbe   : > { %v642_v48 = vadd.f32 %v594_v47, %v450_v31  ;;  %v643_v40 = vadd.f32 %v594_v47, %v451_v32  ;;  %v640_v49 = vadd.f32 %v590_v39, %v448_v33  ;;  %v641_v50 = vadd.f32 %v590_v39, %v449_v34 }
  0xc0   : > { %674 = vst [vmem:[%s1005_s29 + $0x70] sm:$0xff] %v642_v48  ;;  %675 = vst [vmem:[%s1005_s29 + $0x78] sm:$0xff] %v643_v40 }
  0xc1   : > { %672 = vst [vmem:[%s1005_s29 + $0x60] sm:$0xff] %v640_v49  ;;  %673 = vst [vmem:[%s1005_s29 + $0x68] sm:$0xff] %v641_v50  ;;  %v602_v61 = vpop.permute.xlu1 %601  ;;  %v598_v41 = vpop.permute.xlu0 %597 }
  0xc2   : > { %v646_v62 = vadd.f32 %v602_v61, %v454_v53  ;;  %v647_v42 = vadd.f32 %v602_v61, %v455_v54  ;;  %v644_v63 = vadd.f32 %v598_v41, %v452_v55  ;;  %v645_v0 = vadd.f32 %v598_v41, %v453_v56 }
  0xc4   : > { %678 = vst [vmem:[%s1005_s29 + $0x90] sm:$0xff] %v646_v62  ;;  %679 = vst [vmem:[%s1005_s29 + $0x98] sm:$0xff] %v647_v42 }
  0xc5   : > { %676 = vst [vmem:[%s1005_s29 + $0x80] sm:$0xff] %v644_v63  ;;  %677 = vst [vmem:[%s1005_s29 + $0x88] sm:$0xff] %v645_v0  ;;  %v610_v9 = vpop.permute.xlu1 %609  ;;  %v606_v43 = vpop.permute.xlu0 %605 }
  0xc6   : > { %v650_v10 = vadd.f32 %v610_v9, %v458_v1  ;;  %v651_v44 = vadd.f32 %v610_v9, %v459_v2  ;;  %v648_v11 = vadd.f32 %v606_v43, %v456_v3  ;;  %v649_v12 = vadd.f32 %v606_v43, %v457_v4 }
  0xc8   : > { %682 = vst [vmem:[%s1005_s29 + $0xb0] sm:$0xff] %v650_v10  ;;  %683 = vst [vmem:[%s1005_s29 + $0xb8] sm:$0xff] %v651_v44 }
  0xc9   : > { %680 = vst [vmem:[%s1005_s29 + $0xa0] sm:$0xff] %v648_v11  ;;  %681 = vst [vmem:[%s1005_s29 + $0xa8] sm:$0xff] %v649_v12  ;;  %v618_v21 = vpop.permute.xlu1 %617  ;;  %v614_v22 = vpop.permute.xlu0 %613 }
  0xca   : > { %v654_v23 = vadd.f32 %v618_v21, %v462_v13  ;;  %v655_v45 = vadd.f32 %v618_v21, %v463_v14  ;;  %v652_v24 = vadd.f32 %v614_v22, %v460_v15  ;;  %v653_v25 = vadd.f32 %v614_v22, %v461_v16 }
  0xcc   : > { %686 = vst [vmem:[%s1005_s29 + $0xd0] sm:$0xff] %v654_v23  ;;  %687 = vst [vmem:[%s1005_s29 + $0xd8] sm:$0xff] %v655_v45 }
  0xcd   : > { %684 = vst [vmem:[%s1005_s29 + $0xc0] sm:$0xff] %v652_v24  ;;  %685 = vst [vmem:[%s1005_s29 + $0xc8] sm:$0xff] %v653_v25  ;;  %v626_v29 = vpop.permute.xlu1 %625  ;;  %v622_v30 = vpop.permute.xlu0 %621 }
  0xce   : > { %v658_v31 = vadd.f32 %v626_v29, %v466_v46  ;;  %v659_v32 = vadd.f32 %v626_v29, %v467_v26  ;;  %v656_v33 = vadd.f32 %v622_v30, %v464_v27  ;;  %v657_v34 = vadd.f32 %v622_v30, %v465_v28 }
  0xd0   : > { %690 = vst [vmem:[%s1005_s29 + $0xf0] sm:$0xff] %v658_v31  ;;  %691 = vst [vmem:[%s1005_s29 + $0xf8] sm:$0xff] %v659_v32 }
  0xd1   : > { %688 = vst [vmem:[%s1005_s29 + $0xe0] sm:$0xff] %v656_v33  ;;  %689 = vst [vmem:[%s1005_s29 + $0xe8] sm:$0xff] %v657_v34 }
  0xd2 PF: > { %s13_s14 = sadd.s32 1, %s899_s14   ;;  %s1099_s12 = smov %s895_s13 }
  0xd3   : > { %p10_p5 = scmp.ge.s32.totalorder %s13_s14, 4   ;;  %s1100_s13 = smov %s1102_s15 }
  0xd5   :  { %12 = sbr.rel (!%p10_p5) target bundleno = 2 (0x2), region = 68 }

// kernel: run.38
= control target key start
LH: loop header
LB: loop body
LE: loop exit
PB: predicated region body
PF: predicated region fallthrough
CT: control target
= control target key end

     0   :  { %s431_s9 = smov 0   ;;  %s433_s10 = smov 0   ;;  %s497_s0 = inlined_call_operand.vmem [shape: f32[2,144,128], index: 0, kind: input, shape index: {}]   ;;  %s498_s1 = inlined_call_operand.vmem [shape: f32[2,1,128], index: 1, kind: output, shape index: {0}]   ;;  %s499_s2 = inlined_call_operand.vmem [shape: f32[2,1,128], index: 2, kind: output, shape index: {1}]  }
   0x1   :  { %s435_s11 = smov 0  }
   0x2 LB: > { %s25_s12 = sadd.s32 1, %s409_s10  ;;  %p361_p0 = scmp.ge.s32.totalorder %s413_s11, 1  ;;  %s413_s11 = sphi %s435_s11, %s13_s11   ;;  %s409_s10 = sphi %s433_s10, %s501_s10   ;;  %s405_s9 = sphi %s431_s9, %s500_s9  }
   0x3   : > { %p27_p1 = scmp.ge.s32.totalorder %s25_s12, 2  ;;  %p134_p2 = scmp.lt.s32.totalorder %s413_s11, 3 }
   0x5   : > { %s503_s12 = smov (%p27_p1, %s25_s12), 0  ;;  %p135_p3 = pnand %p361_p0, %p134_p2 }
   0x6   : > { %p162_p4 = scmp.lt.s32.totalorder (!%p135_p3), %s405_s9, 1  ;;  %v415_v0 = vmov (!%p135_p3), 0.0  }
   0x7   : > { %138 = sbr.rel (%p135_p3) target bundleno = 70 (0x46), region = 24 }
   0xe   : > { %s505_s9 = smov (!%p162_p4, %s405_s9), 1 }
   0xf   : > { %s365_s13 = smul.u32 144, %s505_s9  ;;  %s452_s16 = scalar_lea.vmem %s498_s1, %s505_s9 }
  0x10   : > { %181 = vst [vmem:[%s452_s16] sm:$0x1] %v415_v0  ;;  %s458_s19 = scalar_lea.vmem %s499_s2, %s505_s9 }
  0x11   : > { %s463_s22 = scalar_lea.vmem %s497_s0, %s365_s13  ;;  %182 = vst [vmem:[%s458_s19] sm:$0x1] %v415_v0 }
  0x12   : > { %v183_v1 = vld [vmem:[%s463_s22] sm:$0xff]  ;;  %v184_v2 = vld [vmem:[%s463_s22 + $0x8] sm:$0xff]  ;;  %v185_v3 = vld [vmem:[%s463_s22 + $0x10] sm:$0xff] }
  0x13   : > { %v186_v4 = vld [vmem:[%s463_s22 + $0x18] sm:$0xff]  ;;  %v202_v5 = vadd.f32 %v184_v2, %v183_v1  ;;  %v228_v6 = vmul.f32 %v183_v1, %v183_v1  ;;  %v229_v7 = vmul.f32 %v184_v2, %v184_v2  ;;  %v230_v8 = vmul.f32 %v185_v3, %v185_v3  ;;  %v187_v9 = vld [vmem:[%s463_s22 + $0x20] sm:$0xff]  ;;  %v188_v13 = vld [vmem:[%s463_s22 + $0x28] sm:$0xff] }
  0x14   : > { %v231_v11 = vmul.f32 %v186_v4, %v186_v4  ;;  %v232_v15 = vmul.f32 %v187_v9, %v187_v9  ;;  %v189_v17 = vld [vmem:[%s463_s22 + $0x30] sm:$0xff]  ;;  %v233_v19 = vmul.f32 %v188_v13, %v188_v13  ;;  %v190_v21 = vld [vmem:[%s463_s22 + $0x38] sm:$0xff]  ;;  %v191_v25 = vld [vmem:[%s463_s22 + $0x40] sm:$0xff] }
  0x15   : > { %v203_v10 = vadd.f32 %v202_v5, %v185_v3  ;;  %v246_v12 = vadd.f32 %v229_v7, %v228_v6  ;;  %v234_v23 = vmul.f32 %v189_v17, %v189_v17  ;;  %v235_v27 = vmul.f32 %v190_v21, %v190_v21  ;;  %v192_v29 = vld [vmem:[%s463_s22 + $0x48] sm:$0xff]  ;;  %v193_v33 = vld [vmem:[%s463_s22 + $0x50] sm:$0xff]  ;;  %v194_v37 = vld [vmem:[%s463_s22 + $0x58] sm:$0xff] }
  0x16   : > { %v236_v31 = vmul.f32 %v191_v25, %v191_v25  ;;  %v237_v35 = vmul.f32 %v192_v29, %v192_v29  ;;  %v238_v39 = vmul.f32 %v193_v33, %v193_v33  ;;  %v195_v41 = vld [vmem:[%s463_s22 + $0x60] sm:$0xff]  ;;  %v239_v43 = vmul.f32 %v194_v37, %v194_v37  ;;  %v196_v45 = vld [vmem:[%s463_s22 + $0x68] sm:$0xff]  ;;  %v197_v49 = vld [vmem:[%s463_s22 + $0x70] sm:$0xff] }
  0x17   : > { %v204_v14 = vadd.f32 %v203_v10, %v186_v4  ;;  %v247_v16 = vadd.f32 %v246_v12, %v230_v8  ;;  %v240_v47 = vmul.f32 %v195_v41, %v195_v41  ;;  %v241_v51 = vmul.f32 %v196_v45, %v196_v45  ;;  %v198_v53 = vld [vmem:[%s463_s22 + $0x78] sm:$0xff]  ;;  %v199_v57 = vld [vmem:[%s463_s22 + $0x80] sm:$0xff]  ;;  %v200_v61 = vld [vmem:[%s463_s22 + $0x88] sm:$0xff] }
  0x18   : > { %v242_v55 = vmul.f32 %v197_v49, %v197_v49  ;;  %v243_v59 = vmul.f32 %v198_v53, %v198_v53  ;;  %v244_v63 = vmul.f32 %v199_v57, %v199_v57  ;;  %v245_v2 = vmul.f32 %v200_v61, %v200_v61 }
  0x19   : > { %v205_v18 = vadd.f32 %v204_v14, %v187_v9  ;;  %v248_v20 = vadd.f32 %v247_v16, %v231_v11 }
  0x1b   : > { %v206_v22 = vadd.f32 %v205_v18, %v188_v13  ;;  %v249_v24 = vadd.f32 %v248_v20, %v232_v15  ;;  %v201_v15 = vld [vmem:[%s452_s16] sm:$0x1] }
  0x1c   : > { %v227_v20 = vld [vmem:[%s458_s19] sm:$0x1] }
  0x1d   : > { %v207_v26 = vadd.f32 %v206_v22, %v189_v17  ;;  %v250_v28 = vadd.f32 %v249_v24, %v233_v19 }
  0x1f   : > { %v208_v30 = vadd.f32 %v207_v26, %v190_v21  ;;  %v251_v32 = vadd.f32 %v250_v28, %v234_v23 }
  0x21   : > { %v209_v34 = vadd.f32 %v208_v30, %v191_v25  ;;  %v252_v36 = vadd.f32 %v251_v32, %v235_v27 }
  0x23   : > { %v210_v38 = vadd.f32 %v209_v34, %v192_v29  ;;  %v253_v40 = vadd.f32 %v252_v36, %v236_v31 }
  0x25   : > { %v211_v42 = vadd.f32 %v210_v38, %v193_v33  ;;  %v254_v44 = vadd.f32 %v253_v40, %v237_v35 }
  0x27   : > { %v212_v46 = vadd.f32 %v211_v42, %v194_v37  ;;  %v255_v48 = vadd.f32 %v254_v44, %v238_v39 }
  0x29   : > { %v213_v50 = vadd.f32 %v212_v46, %v195_v41  ;;  %v256_v52 = vadd.f32 %v255_v48, %v239_v43 }
  0x2b   : > { %v214_v54 = vadd.f32 %v213_v50, %v196_v45  ;;  %v257_v56 = vadd.f32 %v256_v52, %v240_v47 }
  0x2d   : > { %v215_v58 = vadd.f32 %v214_v54, %v197_v49  ;;  %v258_v60 = vadd.f32 %v257_v56, %v241_v51 }
  0x2f   : > { %v216_v62 = vadd.f32 %v215_v58, %v198_v53  ;;  %v259_v0 = vadd.f32 %v258_v60, %v242_v55 }
  0x31   : > { %v217_v1 = vadd.f32 %v216_v62, %v199_v57  ;;  %v260_v3 = vadd.f32 %v259_v0, %v243_v59 }
  0x33   : > { %v218_v4 = vadd.f32 %v217_v1, %v200_v61  ;;  %v261_v5 = vadd.f32 %v260_v3, %v244_v63 }
  0x35   : > { %v219_v6 = vrot.slane %v218_v4, 4  ;;  %v262_v7 = vadd.f32 %v261_v5, %v245_v2 }
  0x37   : > { %v220_v8 = vadd.f32 %v219_v6, %v218_v4  ;;  %v263_v9 = vrot.slane %v262_v7, 4 }
  0x39   : > { %v221_v10 = vrot.slane %v220_v8, 2  ;;  %v264_v11 = vadd.f32 %v263_v9, %v262_v7 }
  0x3b   : > { %v222_v12 = vadd.f32 %v221_v10, %v220_v8  ;;  %v265_v13 = vrot.slane %v264_v11, 2 }
  0x3d   : > { %v223_v14 = vrot.slane %v222_v12, 1  ;;  %v266_v16 = vadd.f32 %v265_v13, %v264_v11 }
  0x3f   : > { %v224_v17 = vadd.f32 %v223_v14, %v222_v12  ;;  %v267_v18 = vrot.slane %v266_v16, 1 }
  0x41   : > { %v225_v19 = vadd.f32 %v224_v17, %v201_v15  ;;  %v268_v21 = vadd.f32 %v267_v18, %v266_v16 }
  0x43   : > { %226 = vst [vmem:[%s452_s16] sm:$0x1] %v225_v19  ;;  %v269_v22 = vadd.f32 %v268_v21, %v227_v20 }
  0x45   : > { %270 = vst [vmem:[%s458_s19] sm:$0x1] %v269_v22 }
  0x46 PF: > { %s13_s11 = sadd.s32 1, %s413_s11   ;;  %s500_s9 = smov %s409_s10 }
  0x47   : > { %p10_p5 = scmp.ge.s32.totalorder %s13_s11, 4   ;;  %s501_s10 = smov %s503_s12 }
  0x49   :  { %12 = sbr.rel (!%p10_p5) target bundleno = 2 (0x2), region = 70 }

// kernel: run.40
= control target key start
LH: loop header
LB: loop body
LE: loop exit
PB: predicated region body
PF: predicated region fallthrough
CT: control target
= control target key end

     0   :  { %s1031_s12 = smov 0   ;;  %s1033_s13 = smov 0   ;;  %s1635_s0 = inlined_call_operand.vmem [shape: f32[2,16,16,128], index: 0, kind: input, shape index: {}]   ;;  %s1636_s1 = inlined_call_operand.vmem [shape: f32[1,16,1,1], index: 1, kind: input, shape index: {}]   ;;  %s1637_s2 = inlined_call_operand.vmem [shape: f32[1,16,1,1], index: 2, kind: input, shape index: {}]   ;;  %s1638_s3 = inlined_call_operand.vmem [shape: f32[2,16,16,128], index: 3, kind: output, shape index: {}]  }
   0x1   :  { %s1035_s14 = smov 0  }
   0x2 LB: > { %s25_s15 = sadd.s32 1, %s1004_s13  ;;  %p914_p0 = scmp.ge.s32.totalorder %s1008_s14, 1  ;;  %s1008_s14 = sphi %s1035_s14, %s13_s14   ;;  %s1004_s13 = sphi %s1033_s13, %s1640_s13   ;;  %s1000_s12 = sphi %s1031_s12, %s1639_s12  }
   0x3   : > { %p27_p1 = scmp.ge.s32.totalorder %s25_s15, 2  ;;  %p158_p2 = scmp.lt.s32.totalorder %s1008_s14, 3 }
   0x5   : > { %s1642_s15 = smov (%p27_p1, %s25_s15), 0  ;;  %p159_p3 = pnand %p914_p0, %p158_p2 }
   0x6   : > { %v921_v0 = vld [vmem:[%s1636_s1 + $0x2] ss:$0 sm:$0xff] (!%p159_p3)  ;;  %v919_v1 = vld [vmem:[%s1636_s1] ss:$0 sm:$0xff] (!%p159_p3)  ;;  %v1010_v2 = vmov (!%p159_p3), 0   ;;  %p191_p4 = scmp.lt.s32.totalorder (!%p159_p3), %s1000_s12, 1 }
   0x7   : > { %162 = sbr.rel (%p159_p3) target bundleno = 200 (0xc8), region = 32  ;;  %981 = vset.pattern.permute.xlu1 (!%p159_p3), %v1010_v2  ;;  %980 = vset.pattern.permute.xlu0 (!%p159_p3), %v1010_v2  ;;  %v922_v3 = vld [vmem:[%s1636_s1 + $0x3] ss:$0 sm:$0xff] (!%p159_p3)  ;;  %v920_v4 = vld [vmem:[%s1636_s1 + $0x1] ss:$0 sm:$0xff] (!%p159_p3) }
   0x8   : > { %512 = vperm.xlu1 (!%p159_p3), %981, %v921_v0   ;;  %504 = vperm.xlu0 (!%p159_p3), %980, %v919_v1   ;;  %v924_v5 = vld [vmem:[%s1636_s1 + $0x5] ss:$0 sm:$0xff] (!%p159_p3)  ;;  %v923_v6 = vld [vmem:[%s1636_s1 + $0x4] ss:$0 sm:$0xff] (!%p159_p3)  ;;  %v926_v7 = vld [vmem:[%s1636_s1 + $0x7] ss:$0 sm:$0xff] (!%p159_p3) }
   0x9   : > { %v925_v8 = vld [vmem:[%s1636_s1 + $0x6] ss:$0 sm:$0xff] (!%p159_p3)  ;;  %v928_v9 = vld [vmem:[%s1636_s1 + $0x9] ss:$0 sm:$0xff] (!%p159_p3)  ;;  %v927_v10 = vld [vmem:[%s1636_s1 + $0x8] ss:$0 sm:$0xff] (!%p159_p3) }
   0xa   : > { %v930_v22 = vld [vmem:[%s1636_s1 + $0xb] ss:$0 sm:$0xff] (!%p159_p3)  ;;  %v929_v23 = vld [vmem:[%s1636_s1 + $0xa] ss:$0 sm:$0xff] (!%p159_p3)  ;;  %v932_v32 = vld [vmem:[%s1636_s1 + $0xd] ss:$0 sm:$0xff] (!%p159_p3) }
   0xb   : > { %v931_v33 = vld [vmem:[%s1636_s1 + $0xc] ss:$0 sm:$0xff] (!%p159_p3)  ;;  %v934_v42 = vld [vmem:[%s1636_s1 + $0xf] ss:$0 sm:$0xff] (!%p159_p3)  ;;  %v933_v43 = vld [vmem:[%s1636_s1 + $0xe] ss:$0 sm:$0xff] (!%p159_p3) }
   0xc   : > { %516 = vperm.xlu1 (!%p159_p3), %981, %v922_v3   ;;  %508 = vperm.xlu0 (!%p159_p3), %980, %v920_v4   ;;  %v936_v50 = vld [vmem:[%s1637_s2 + $0x1] ss:$0 sm:$0xff] (!%p159_p3)  ;;  %v935_v51 = vld [vmem:[%s1637_s2] ss:$0 sm:$0xff] (!%p159_p3)  ;;  %v938_v56 = vld [vmem:[%s1637_s2 + $0x3] ss:$0 sm:$0xff] (!%p159_p3) }
   0xd   : > { %v937_v57 = vld [vmem:[%s1637_s2 + $0x2] ss:$0 sm:$0xff] (!%p159_p3)  ;;  %v940_v62 = vld [vmem:[%s1637_s2 + $0x5] ss:$0 sm:$0xff] (!%p159_p3)  ;;  %v939_v63 = vld [vmem:[%s1637_s2 + $0x4] ss:$0 sm:$0xff] (!%p159_p3) }
   0xe   : > { %s1644_s12 = smov (!%p191_p4, %s1000_s12), 1  ;;  %v942_v4 = vld [vmem:[%s1637_s2 + $0x7] ss:$0 sm:$0xff] }
   0xf   : > { %s953_s5 = sshll.u32 %s1644_s12, 8 }
  0x10   : > { %524 = vperm.xlu1 %981, %v924_v5   ;;  %520 = vperm.xlu0 %980, %v923_v6   ;;  %s1087_s16 = scalar_lea.vmem %s1635_s0, %s953_s5  ;;  %v941_v5 = vld [vmem:[%s1637_s2 + $0x6] ss:$0 sm:$0xff]  ;;  %s1524_s20 = scalar_lea.vmem %s1638_s3, %s953_s5 }
  0x11   : > { %v1090_v11 = vld [vmem:[%s1087_s16] sm:$0xff]  ;;  %v1093_v12 = vld [vmem:[%s1087_s16 + $0x8] sm:$0xff]  ;;  %v1096_v13 = vld [vmem:[%s1087_s16 + $0x10] sm:$0xff] }
  0x12   : > { %v1099_v14 = vld [vmem:[%s1087_s16 + $0x18] sm:$0xff]  ;;  %v1102_v15 = vld [vmem:[%s1087_s16 + $0x20] sm:$0xff]  ;;  %v1105_v16 = vld [vmem:[%s1087_s16 + $0x28] sm:$0xff]  ;;  %v242_v17 = vadd.f32 %v1096_v13, %v1090_v11 }
  0x13   : > { %v1110_v18 = vld [vmem:[%s1087_s16 + $0x30] sm:$0xff]  ;;  %v257_v19 = vadd.f32 %v1099_v14, %v1093_v12  ;;  %v1115_v20 = vld [vmem:[%s1087_s16 + $0x38] sm:$0xff]  ;;  %v1125_v24 = vld [vmem:[%s1087_s16 + $0x40] sm:$0xff] }
  0x14   : > { %532 = vperm.xlu1 %981, %v926_v7   ;;  %528 = vperm.xlu0 %980, %v925_v8   ;;  %v243_v21 = vadd.f32 %v242_v17, %v1102_v15  ;;  %v1129_v26 = vld [vmem:[%s1087_s16 + $0x48] sm:$0xff]  ;;  %v1133_v28 = vld [vmem:[%s1087_s16 + $0x50] sm:$0xff]  ;;  %v1137_v30 = vld [vmem:[%s1087_s16 + $0x58] sm:$0xff] }
  0x15   : > { %v258_v25 = vadd.f32 %v257_v19, %v1105_v16  ;;  %v1147_v34 = vld [vmem:[%s1087_s16 + $0x60] sm:$0xff]  ;;  %v1151_v36 = vld [vmem:[%s1087_s16 + $0x68] sm:$0xff]  ;;  %v1155_v38 = vld [vmem:[%s1087_s16 + $0x70] sm:$0xff] }
  0x16   : > { %v244_v27 = vadd.f32 %v243_v21, %v1110_v18  ;;  %v1159_v40 = vld [vmem:[%s1087_s16 + $0x78] sm:$0xff]  ;;  %v1169_v44 = vld [vmem:[%s1087_s16 + $0x80] sm:$0xff]  ;;  %v1173_v46 = vld [vmem:[%s1087_s16 + $0x88] sm:$0xff] }
  0x17   : > { %v259_v29 = vadd.f32 %v258_v25, %v1115_v20  ;;  %v1185_v52 = vld [vmem:[%s1087_s16 + $0x90] sm:$0xff]  ;;  %v1189_v54 = vld [vmem:[%s1087_s16 + $0x98] sm:$0xff]  ;;  %v1199_v58 = vld [vmem:[%s1087_s16 + $0xa0] sm:$0xff] }
  0x18   : > { %540 = vperm.xlu1 %981, %v928_v9   ;;  %536 = vperm.xlu0 %980, %v927_v10   ;;  %v245_v31 = vadd.f32 %v244_v27, %v1125_v24  ;;  %v1203_v60 = vld [vmem:[%s1087_s16 + $0xa8] sm:$0xff]  ;;  %v1213_v0 = vld [vmem:[%s1087_s16 + $0xb0] sm:$0xff]  ;;  %v1217_v2 = vld [vmem:[%s1087_s16 + $0xb8] sm:$0xff] }
  0x19   : > { %v260_v35 = vadd.f32 %v259_v29, %v1129_v26  ;;  %v1227_v6 = vld [vmem:[%s1087_s16 + $0xc0] sm:$0xff]  ;;  %v1231_v8 = vld [vmem:[%s1087_s16 + $0xc8] sm:$0xff]  ;;  %v1241_v19 = vld [vmem:[%s1087_s16 + $0xd0] sm:$0xff] }
  0x1a   : > { %v246_v37 = vadd.f32 %v245_v31, %v1133_v28  ;;  %v944_v10 = vld [vmem:[%s1637_s2 + $0x9] ss:$0 sm:$0xff]  ;;  %v943_v17 = vld [vmem:[%s1637_s2 + $0x8] ss:$0 sm:$0xff]  ;;  %v946_v25 = vld [vmem:[%s1637_s2 + $0xb] ss:$0 sm:$0xff] }
  0x1b   : > { %v261_v39 = vadd.f32 %v260_v35, %v1137_v30  ;;  %v945_v27 = vld [vmem:[%s1637_s2 + $0xa] ss:$0 sm:$0xff]  ;;  %v1255_v29 = vld [vmem:[%s1087_s16 + $0xe0] sm:$0xff]  ;;  %v948_v35 = vld [vmem:[%s1637_s2 + $0xd] ss:$0 sm:$0xff] }
  0x1c   : > { %548 = vperm.xlu1 %981, %v930_v22   ;;  %544 = vperm.xlu0 %980, %v929_v23   ;;  %v247_v41 = vadd.f32 %v246_v37, %v1147_v34  ;;  %v1245_v22 = vld [vmem:[%s1087_s16 + $0xd8] sm:$0xff]  ;;  %v947_v37 = vld [vmem:[%s1637_s2 + $0xc] ss:$0 sm:$0xff] }
  0x1d   : > { %v262_v45 = vadd.f32 %v261_v39, %v1151_v36  ;;  %v1269_v39 = vld [vmem:[%s1087_s16 + $0xf0] sm:$0xff] }
  0x1e   : > { %v248_v47 = vadd.f32 %v247_v41, %v1155_v38 }
  0x1f   : > { %v263_v48 = vadd.f32 %v262_v45, %v1159_v40  ;;  %v950_v45 = vld [vmem:[%s1637_s2 + $0xf] ss:$0 sm:$0xff] }
  0x20   : > { %556 = vperm.xlu1 %981, %v932_v32   ;;  %552 = vperm.xlu0 %980, %v931_v33   ;;  %v249_v49 = vadd.f32 %v248_v47, %v1169_v44  ;;  %v1259_v32 = vld [vmem:[%s1087_s16 + $0xe8] sm:$0xff] }
  0x21   : > { %v264_v53 = vadd.f32 %v263_v48, %v1173_v46  ;;  %v949_v47 = vld [vmem:[%s1637_s2 + $0xe] ss:$0 sm:$0xff] }
  0x22   : > { %v250_v55 = vadd.f32 %v249_v49, %v1185_v52 }
  0x23   : > { %v265_v59 = vadd.f32 %v264_v53, %v1189_v54 }
  0x24   : > { %564 = vperm.xlu1 %981, %v934_v42   ;;  %560 = vperm.xlu0 %980, %v933_v43   ;;  %v251_v61 = vadd.f32 %v250_v55, %v1199_v58  ;;  %v1273_v42 = vld [vmem:[%s1087_s16 + $0xf8] sm:$0xff] }
  0x25   : > { %v266_v1 = vadd.f32 %v265_v59, %v1203_v60 }
  0x26   : > { %v252_v3 = vadd.f32 %v251_v61, %v1213_v0 }
  0x27   : > { %v267_v7 = vadd.f32 %v266_v1, %v1217_v2 }
  0x28   : > { %700 = vperm.xlu1 %981, %v936_v50   ;;  %696 = vperm.xlu0 %980, %v935_v51   ;;  %v253_v9 = vadd.f32 %v252_v3, %v1227_v6 }
  0x29   : > { %v268_v21 = vadd.f32 %v267_v7, %v1231_v8 }
  0x2a   : > { %v254_v23 = vadd.f32 %v253_v9, %v1241_v19 }
  0x2b   : > { %v269_v31 = vadd.f32 %v268_v21, %v1245_v22 }
  0x2c   : > { %708 = vperm.xlu1 %981, %v938_v56   ;;  %704 = vperm.xlu0 %980, %v937_v57   ;;  %v255_v33 = vadd.f32 %v254_v23, %v1255_v29 }
  0x2d   : > { %v270_v41 = vadd.f32 %v269_v31, %v1259_v32 }
  0x2e   : > { %v256_v43 = vadd.f32 %v255_v33, %v1269_v39 }
  0x2f   : > { %v271_v48 = vadd.f32 %v270_v41, %v1273_v42 }
  0x30   : > { %716 = vperm.xlu1 %981, %v940_v62   ;;  %712 = vperm.xlu0 %980, %v939_v63   ;;  %v1283_v49 = vmul.f32 0.0625, %v256_v43 }
  0x31   : > { %v1285_v50 = vmul.f32 0.0625, %v271_v48 }
  0x32   : > { %v1289_v51 = vsub.f32 %v1090_v11, %v1283_v49  ;;  %v1293_v53 = vsub.f32 %v1096_v13, %v1283_v49  ;;  %v1305_v57 = vsub.f32 %v1102_v15, %v1283_v49  ;;  %v1321_v15 = vsub.f32 %v1110_v18, %v1283_v49 }
  0x33   : > { %v1297_v55 = vsub.f32 %v1093_v12, %v1285_v50  ;;  %v1301_v56 = vsub.f32 %v1099_v14, %v1285_v50  ;;  %v1313_v13 = vsub.f32 %v1105_v16, %v1285_v50  ;;  %v1327_v63 = vsub.f32 %v1115_v20, %v1285_v50 }
  0x34   : > { %724 = vperm.xlu1 %981, %v942_v4   ;;  %720 = vperm.xlu0 %980, %v941_v5   ;;  %v307_v11 = vmul.f32 %v1289_v51, %v1289_v51  ;;  %v309_v59 = vmul.f32 %v1293_v53, %v1293_v53  ;;  %v311_v61 = vmul.f32 %v1305_v57, %v1305_v57 }
  0x35   : > { %v308_v12 = vmul.f32 %v1297_v55, %v1297_v55  ;;  %v310_v14 = vmul.f32 %v1301_v56, %v1301_v56  ;;  %v312_v16 = vmul.f32 %v1313_v13, %v1313_v13  ;;  %v1333_v3 = vsub.f32 %v1125_v24, %v1283_v49 }
  0x36   : > { %v339_v62 = vadd.f32 %v309_v59, %v307_v11  ;;  %v313_v18 = vmul.f32 %v1321_v15, %v1321_v15  ;;  %v1339_v5 = vsub.f32 %v1129_v26, %v1285_v50  ;;  %v314_v20 = vmul.f32 %v1327_v63, %v1327_v63 }
  0x37   : > { %v354_v1 = vadd.f32 %v310_v14, %v308_v12  ;;  %v1345_v9 = vsub.f32 %v1133_v28, %v1283_v49  ;;  %v315_v24 = vmul.f32 %v1333_v3, %v1333_v3  ;;  %v1357_v23 = vsub.f32 %v1147_v34, %v1283_v49 }
  0x38   : > { %732 = vperm.xlu1 %981, %v944_v10   ;;  %728 = vperm.xlu0 %980, %v943_v17   ;;  %v340_v4 = vadd.f32 %v339_v62, %v311_v61  ;;  %v1351_v17 = vsub.f32 %v1137_v30, %v1285_v50  ;;  %v316_v26 = vmul.f32 %v1339_v5, %v1339_v5 }
  0x39   : > { %v355_v7 = vadd.f32 %v354_v1, %v312_v16  ;;  %v317_v28 = vmul.f32 %v1345_v9, %v1345_v9  ;;  %v1369_v33 = vsub.f32 %v1155_v38, %v1283_v49  ;;  %v319_v34 = vmul.f32 %v1357_v23, %v1357_v23 }
  0x3a   : > { %v341_v10 = vadd.f32 %v340_v4, %v313_v18  ;;  %v318_v30 = vmul.f32 %v1351_v17, %v1351_v17  ;;  %v1381_v43 = vsub.f32 %v1169_v44, %v1283_v49  ;;  %v1393_v11 = vsub.f32 %v1185_v52, %v1283_v49 }
  0x3b   : > { %v356_v21 = vadd.f32 %v355_v7, %v314_v20  ;;  %v321_v38 = vmul.f32 %v1369_v33, %v1369_v33  ;;  %v1399_v12 = vsub.f32 %v1189_v54, %v1285_v50  ;;  %v1405_v61 = vsub.f32 %v1199_v58, %v1283_v49 }
  0x3c   : > { %740 = vperm.xlu1 %981, %v946_v25   ;;  %736 = vperm.xlu0 %980, %v945_v27   ;;  %v342_v25 = vadd.f32 %v341_v10, %v315_v24  ;;  %v1363_v27 = vsub.f32 %v1151_v36, %v1285_v50  ;;  %v323_v44 = vmul.f32 %v1381_v43, %v1381_v43 }
  0x3d   : > { %v357_v31 = vadd.f32 %v356_v21, %v316_v26  ;;  %v325_v52 = vmul.f32 %v1393_v11, %v1393_v11  ;;  %v1411_v16 = vsub.f32 %v1203_v60, %v1285_v50  ;;  %v326_v54 = vmul.f32 %v1399_v12, %v1399_v12 }
  0x3e   : > { %v320_v36 = vmul.f32 %v1363_v27, %v1363_v27  ;;  %v1417_v18 = vsub.f32 %v1213_v0, %v1283_v49  ;;  %v327_v58 = vmul.f32 %v1405_v61, %v1405_v61  ;;  %v1423_v20 = vsub.f32 %v1217_v2, %v1285_v50 }
  0x3f   : > { %v358_v41 = vadd.f32 %v357_v31, %v318_v30  ;;  %v328_v60 = vmul.f32 %v1411_v16, %v1411_v16  ;;  %v1429_v24 = vsub.f32 %v1227_v6, %v1283_v49  ;;  %v1435_v26 = vsub.f32 %v1231_v8, %v1285_v50 }
  0x40   : > { %748 = vperm.xlu1 %981, %v948_v35   ;;  %744 = vperm.xlu0 %980, %v947_v37   ;;  %v343_v35 = vadd.f32 %v342_v25, %v317_v28  ;;  %v1375_v37 = vsub.f32 %v1159_v40, %v1285_v50  ;;  %v329_v0 = vmul.f32 %v1417_v18, %v1417_v18 }
  0x41   : > { %v359_v48 = vadd.f32 %v358_v41, %v320_v36  ;;  %v330_v2 = vmul.f32 %v1423_v20, %v1423_v20  ;;  %v1441_v28 = vsub.f32 %v1241_v19, %v1283_v49  ;;  %v331_v6 = vmul.f32 %v1429_v24, %v1429_v24 }
  0x42   : > { %v322_v40 = vmul.f32 %v1375_v37, %v1375_v37  ;;  %v1447_v30 = vsub.f32 %v1245_v22, %v1285_v50  ;;  %v332_v8 = vmul.f32 %v1435_v26, %v1435_v26  ;;  %v1459_v36 = vsub.f32 %v1259_v32, %v1285_v50 }
  0x43   : > { %v333_v19 = vmul.f32 %v1441_v28, %v1441_v28 }
  0x44   : > { %756 = vperm.xlu1 %981, %v950_v45   ;;  %752 = vperm.xlu0 %980, %v949_v47   ;;  %v344_v45 = vadd.f32 %v343_v35, %v319_v34  ;;  %v1387_v47 = vsub.f32 %v1173_v46, %v1285_v50  ;;  %v360_v14 = vadd.f32 %v359_v48, %v322_v40 }
  0x45   : > { %v1453_v34 = vsub.f32 %v1255_v29, %v1283_v49  ;;  %v334_v22 = vmul.f32 %v1447_v30, %v1447_v30  ;;  %v1471_v40 = vsub.f32 %v1273_v42, %v1285_v50  ;;  %v336_v32 = vmul.f32 %v1459_v36, %v1459_v36 }
  0x46   : > { %v345_v59 = vadd.f32 %v344_v45, %v321_v38  ;;  %v324_v46 = vmul.f32 %v1387_v47, %v1387_v47  ;;  %v1465_v38 = vsub.f32 %v1269_v39, %v1283_v49 }
  0x47   : > { %v335_v29 = vmul.f32 %v1453_v34, %v1453_v34  ;;  %v338_v39 = vmul.f32 %v1471_v40, %v1471_v40 }
  0x48   : > { %v346_v62 = vadd.f32 %v345_v59, %v323_v44  ;;  %v361_v1 = vadd.f32 %v360_v14, %v324_v46  ;;  %v337_v44 = vmul.f32 %v1465_v38, %v1465_v38 }
  0x4a   : > { %v347_v4 = vadd.f32 %v346_v62, %v325_v52  ;;  %v362_v7 = vadd.f32 %v361_v1, %v326_v54 }
  0x4c   : > { %v348_v10 = vadd.f32 %v347_v4, %v327_v58  ;;  %v363_v21 = vadd.f32 %v362_v7, %v328_v60 }
  0x4e   : > { %v349_v25 = vadd.f32 %v348_v10, %v329_v0  ;;  %v364_v31 = vadd.f32 %v363_v21, %v330_v2 }
  0x50   : > { %v350_v35 = vadd.f32 %v349_v25, %v331_v6  ;;  %v365_v41 = vadd.f32 %v364_v31, %v332_v8 }
  0x52   : > { %v351_v45 = vadd.f32 %v350_v35, %v333_v19  ;;  %v366_v48 = vadd.f32 %v365_v41, %v334_v22 }
  0x54   : > { %v352_v59 = vadd.f32 %v351_v45, %v335_v29  ;;  %v367_v49 = vadd.f32 %v366_v48, %v336_v32 }
  0x56   : > { %v353_v52 = vadd.f32 %v352_v59, %v337_v44  ;;  %v368_v62 = vadd.f32 %v367_v49, %v338_v39 }
  0x58   : > { %v369_v42 = vmul.f32 0.0625, %v353_v52  ;;  %v370_v50 = vmul.f32 0.0625, %v368_v62 }
  0x5a   : > { %v371_v60 = vadd.f32 1e-05, %v369_v42  ;;  %v372_v7 = vadd.f32 1e-05, %v370_v50 }
  0x5c   : > { %982 = vrsqrt.f32 %v371_v60 }
  0x5d   : > { %984 = vrsqrt.f32 %v372_v7 }
  0x66   : > { %v1491_v8 = vpop.eup %982 }
  0x67   : > { %v1493_v31 = vpop.eup %984  ;;  %v375_v22 = vmul.f32 %v1491_v8, %v1289_v51  ;;  %v377_v29 = vmul.f32 %v1491_v8, %v1293_v53  ;;  %v379_v44 = vmul.f32 %v1491_v8, %v1305_v57  ;;  %v381_v51 = vmul.f32 %v1491_v8, %v1321_v15 }
  0x68   : > { %v376_v41 = vmul.f32 %v1493_v31, %v1297_v55  ;;  %v378_v45 = vmul.f32 %v1493_v31, %v1301_v56  ;;  %v380_v59 = vmul.f32 %v1493_v31, %v1313_v13  ;;  %v382_v55 = vmul.f32 %v1493_v31, %v1327_v63 }
  0x69   : > { %v383_v42 = vmul.f32 %v1491_v8, %v1333_v3  ;;  %v384_v50 = vmul.f32 %v1493_v31, %v1339_v5  ;;  %v389_v5 = vmul.f32 %v1491_v8, %v1369_v33 }
  0x87   : > { %v513_v46 = vpop.permute.xlu1 %512  ;;  %v505_v14 = vpop.permute.xlu0 %504 }
  0x88   : > { %v567_v53 = vmul.f32 %v505_v14, %v375_v22  ;;  %v568_v39 = vmul.f32 %v505_v14, %v376_v41  ;;  %v385_v14 = vmul.f32 %v1491_v8, %v1345_v9  ;;  %v571_v60 = vmul.f32 %v513_v46, %v379_v44 }
  0x89   : > { %v572_v7 = vmul.f32 %v513_v46, %v380_v59  ;;  %v390_v46 = vmul.f32 %v1493_v31, %v1375_v37  ;;  %v388_v44 = vmul.f32 %v1493_v31, %v1363_v27  ;;  %v393_v27 = vmul.f32 %v1491_v8, %v1393_v11 }
  0x8b   : > { %v517_v54 = vpop.permute.xlu1 %516  ;;  %v509_v1 = vpop.permute.xlu0 %508 }
  0x8c   : > { %v569_v49 = vmul.f32 %v509_v1, %v377_v29  ;;  %v570_v56 = vmul.f32 %v509_v1, %v378_v45  ;;  %v386_v1 = vmul.f32 %v1493_v31, %v1351_v17  ;;  %v573_v22 = vmul.f32 %v517_v54, %v381_v51 }
  0x8d   : > { %v574_v41 = vmul.f32 %v517_v54, %v382_v55  ;;  %v387_v54 = vmul.f32 %v1491_v8, %v1357_v23 }
  0x8f   : > { %v525_v58 = vpop.permute.xlu1 %524  ;;  %v521_v4 = vpop.permute.xlu0 %520 }
  0x90   : > { %v577_v59 = vmul.f32 %v525_v58, %v385_v14  ;;  %v578_v51 = vmul.f32 %v525_v58, %v386_v1  ;;  %v575_v55 = vmul.f32 %v521_v4, %v383_v42  ;;  %v394_v58 = vmul.f32 %v1493_v31, %v1399_v12 }
  0x91   : > { %v395_v42 = vmul.f32 %v1491_v8, %v1405_v61 }
  0x93   : > { %v1479_v0 = vpop.permute.xlu1 %532  ;;  %v1481_v10 = vpop.permute.xlu0 %528 }
  0x97   : > { %v1483_v2 = vpop.permute.xlu1 %540  ;;  %v1485_v21 = vpop.permute.xlu0 %536 }
  0x9b   : > { %v1487_v6 = vpop.permute.xlu1 %548  ;;  %v1489_v25 = vpop.permute.xlu0 %544 }
  0x9f   : > { %v1495_v19 = vpop.permute.xlu1 %556  ;;  %v1497_v35 = vpop.permute.xlu0 %552 }
  0xa3   : > { %v1507_v32 = vpop.permute.xlu1 %564  ;;  %v1509_v48 = vpop.permute.xlu0 %560 }
  0xa7   : > { %v701_v52 = vpop.permute.xlu1 %700  ;;  %v697_v57 = vpop.permute.xlu0 %696 }
  0xa8   : > { %v761_v13 = vadd.f32 %v701_v52, %v569_v49  ;;  %v762_v15 = vadd.f32 %v701_v52, %v570_v56  ;;  %v759_v62 = vadd.f32 %v697_v57, %v567_v53  ;;  %v760_v63 = vadd.f32 %v697_v57, %v568_v39 }
  0xa9   : > { %v576_v39 = vmul.f32 %v521_v4, %v384_v50  ;;  %v391_v4 = vmul.f32 %v1491_v8, %v1381_v43  ;;  %v392_v57 = vmul.f32 %v1493_v31, %v1387_v47  ;;  %v396_v50 = vmul.f32 %v1493_v31, %v1411_v16 }
  0xaa   : > { %793 = vst [vmem:[%s1524_s20 + $0x10] sm:$0xff] %v761_v13  ;;  %794 = vst [vmem:[%s1524_s20 + $0x18] sm:$0xff] %v762_v15  ;;  %v581_v13 = vmul.f32 %v1479_v0, %v389_v5  ;;  %v582_v15 = vmul.f32 %v1479_v0, %v390_v46  ;;  %v397_v0 = vmul.f32 %v1491_v8, %v1417_v18 }
  0xab   : > { %791 = vst [vmem:[%s1524_s20] sm:$0xff] %v759_v62  ;;  %792 = vst [vmem:[%s1524_s20 + $0x8] sm:$0xff] %v760_v63  ;;  %v709_v9 = vpop.permute.xlu1 %708  ;;  %v705_v29 = vpop.permute.xlu0 %704  ;;  %v579_v62 = vmul.f32 %v1481_v10, %v387_v54  ;;  %v580_v63 = vmul.f32 %v1481_v10, %v388_v44  ;;  %v398_v10 = vmul.f32 %v1493_v31, %v1423_v20 }
  0xac   : > { %v765_v17 = vadd.f32 %v709_v9, %v573_v22  ;;  %v766_v45 = vadd.f32 %v709_v9, %v574_v41  ;;  %v763_v3 = vadd.f32 %v705_v29, %v571_v60  ;;  %v764_v53 = vadd.f32 %v705_v29, %v572_v7 }
  0xad   : > { %v585_v60 = vmul.f32 %v1483_v2, %v393_v27  ;;  %v586_v7 = vmul.f32 %v1483_v2, %v394_v58  ;;  %v583_v22 = vmul.f32 %v1485_v21, %v391_v4  ;;  %v584_v41 = vmul.f32 %v1485_v21, %v392_v57 }
  0xae   : > { %797 = vst [vmem:[%s1524_s20 + $0x30] sm:$0xff] %v765_v17  ;;  %798 = vst [vmem:[%s1524_s20 + $0x38] sm:$0xff] %v766_v45  ;;  %v401_v2 = vmul.f32 %v1491_v8, %v1441_v28  ;;  %v402_v21 = vmul.f32 %v1493_v31, %v1447_v30  ;;  %v399_v17 = vmul.f32 %v1491_v8, %v1429_v24 }
  0xaf   : > { %795 = vst [vmem:[%s1524_s20 + $0x20] sm:$0xff] %v763_v3  ;;  %796 = vst [vmem:[%s1524_s20 + $0x28] sm:$0xff] %v764_v53  ;;  %v717_v33 = vpop.permute.xlu1 %716  ;;  %v713_v49 = vpop.permute.xlu0 %712  ;;  %v400_v45 = vmul.f32 %v1493_v31, %v1435_v26  ;;  %v589_v3 = vmul.f32 %v1487_v6, %v397_v0  ;;  %v590_v53 = vmul.f32 %v1487_v6, %v398_v10 }
  0xb0   : > { %v769_v37 = vadd.f32 %v717_v33, %v577_v59  ;;  %v770_v56 = vadd.f32 %v717_v33, %v578_v51  ;;  %v767_v23 = vadd.f32 %v713_v49, %v575_v55  ;;  %v768_v52 = vadd.f32 %v713_v49, %v576_v39 }
  0xb1   : > { %v587_v5 = vmul.f32 %v1489_v25, %v395_v42  ;;  %v588_v46 = vmul.f32 %v1489_v25, %v396_v50  ;;  %v405_v6 = vmul.f32 %v1491_v8, %v1465_v38  ;;  %v406_v25 = vmul.f32 %v1493_v31, %v1471_v40 }
  0xb2   : > { %801 = vst [vmem:[%s1524_s20 + $0x50] sm:$0xff] %v769_v37  ;;  %802 = vst [vmem:[%s1524_s20 + $0x58] sm:$0xff] %v770_v56  ;;  %v403_v59 = vmul.f32 %v1491_v8, %v1453_v34  ;;  %v404_v51 = vmul.f32 %v1493_v31, %v1459_v36  ;;  %v593_v55 = vmul.f32 %v1495_v19, %v401_v2 }
  0xb3   : > { %799 = vst [vmem:[%s1524_s20 + $0x40] sm:$0xff] %v767_v23  ;;  %800 = vst [vmem:[%s1524_s20 + $0x48] sm:$0xff] %v768_v52  ;;  %v725_v11 = vpop.permute.xlu1 %724  ;;  %v721_v43 = vpop.permute.xlu0 %720  ;;  %v594_v39 = vmul.f32 %v1495_v19, %v402_v21  ;;  %v591_v33 = vmul.f32 %v1497_v35, %v399_v17  ;;  %v592_v49 = vmul.f32 %v1497_v35, %v400_v45 }
  0xb4   : > { %v773_v12 = vadd.f32 %v725_v11, %v581_v13  ;;  %v774_v47 = vadd.f32 %v725_v11, %v582_v15  ;;  %v771_v14 = vadd.f32 %v721_v43, %v579_v62  ;;  %v772_v1 = vadd.f32 %v721_v43, %v580_v63 }
  0xb5   : > { %v597_v19 = vmul.f32 %v1507_v32, %v405_v6  ;;  %v598_v35 = vmul.f32 %v1507_v32, %v406_v25  ;;  %v595_v37 = vmul.f32 %v1509_v48, %v403_v59  ;;  %v596_v56 = vmul.f32 %v1509_v48, %v404_v51 }
  0xb6   : > { %805 = vst [vmem:[%s1524_s20 + $0x70] sm:$0xff] %v773_v12  ;;  %806 = vst [vmem:[%s1524_s20 + $0x78] sm:$0xff] %v774_v47 }
  0xb7   : > { %803 = vst [vmem:[%s1524_s20 + $0x60] sm:$0xff] %v771_v14  ;;  %804 = vst [vmem:[%s1524_s20 + $0x68] sm:$0xff] %v772_v1  ;;  %v733_v18 = vpop.permute.xlu1 %732  ;;  %v729_v61 = vpop.permute.xlu0 %728 }
  0xb8   : > { %v777_v20 = vadd.f32 %v733_v18, %v585_v60  ;;  %v778_v16 = vadd.f32 %v733_v18, %v586_v7  ;;  %v775_v9 = vadd.f32 %v729_v61, %v583_v22  ;;  %v776_v29 = vadd.f32 %v729_v61, %v584_v41 }
  0xba   : > { %809 = vst [vmem:[%s1524_s20 + $0x90] sm:$0xff] %v777_v20  ;;  %810 = vst [vmem:[%s1524_s20 + $0x98] sm:$0xff] %v778_v16 }
  0xbb   : > { %807 = vst [vmem:[%s1524_s20 + $0x80] sm:$0xff] %v775_v9  ;;  %808 = vst [vmem:[%s1524_s20 + $0x88] sm:$0xff] %v776_v29  ;;  %v741_v28 = vpop.permute.xlu1 %740  ;;  %v737_v24 = vpop.permute.xlu0 %736 }
  0xbc   : > { %v781_v30 = vadd.f32 %v741_v28, %v589_v3  ;;  %v782_v26 = vadd.f32 %v741_v28, %v590_v53  ;;  %v779_v54 = vadd.f32 %v737_v24, %v587_v5  ;;  %v780_v44 = vadd.f32 %v737_v24, %v588_v46 }
  0xbe   : > { %813 = vst [vmem:[%s1524_s20 + $0xb0] sm:$0xff] %v781_v30  ;;  %814 = vst [vmem:[%s1524_s20 + $0xb8] sm:$0xff] %v782_v26 }
  0xbf   : > { %811 = vst [vmem:[%s1524_s20 + $0xa0] sm:$0xff] %v779_v54  ;;  %812 = vst [vmem:[%s1524_s20 + $0xa8] sm:$0xff] %v780_v44  ;;  %v749_v34 = vpop.permute.xlu1 %748  ;;  %v745_v38 = vpop.permute.xlu0 %744 }
  0xc0   : > { %v785_v40 = vadd.f32 %v749_v34, %v593_v55  ;;  %v786_v36 = vadd.f32 %v749_v34, %v594_v39  ;;  %v783_v8 = vadd.f32 %v745_v38, %v591_v33  ;;  %v784_v31 = vadd.f32 %v745_v38, %v592_v49 }
  0xc2   : > { %817 = vst [vmem:[%s1524_s20 + $0xd0] sm:$0xff] %v785_v40  ;;  %818 = vst [vmem:[%s1524_s20 + $0xd8] sm:$0xff] %v786_v36 }
  0xc3   : > { %815 = vst [vmem:[%s1524_s20 + $0xc0] sm:$0xff] %v783_v8  ;;  %816 = vst [vmem:[%s1524_s20 + $0xc8] sm:$0xff] %v784_v31  ;;  %v757_v23 = vpop.permute.xlu1 %756  ;;  %v753_v52 = vpop.permute.xlu0 %752 }
  0xc4   : > { %v789_v27 = vadd.f32 %v757_v23, %v597_v19  ;;  %v790_v58 = vadd.f32 %v757_v23, %v598_v35  ;;  %v787_v4 = vadd.f32 %v753_v52, %v595_v37  ;;  %v788_v57 = vadd.f32 %v753_v52, %v596_v56 }
  0xc6   : > { %821 = vst [vmem:[%s1524_s20 + $0xf0] sm:$0xff] %v789_v27  ;;  %822 = vst [vmem:[%s1524_s20 + $0xf8] sm:$0xff] %v790_v58 }
  0xc7   : > { %819 = vst [vmem:[%s1524_s20 + $0xe0] sm:$0xff] %v787_v4  ;;  %820 = vst [vmem:[%s1524_s20 + $0xe8] sm:$0xff] %v788_v57 }
  0xc8 PF: > { %s13_s14 = sadd.s32 1, %s1008_s14   ;;  %s1639_s12 = smov %s1004_s13 }
  0xc9   : > { %p10_p5 = scmp.ge.s32.totalorder %s13_s14, 4   ;;  %s1640_s13 = smov %s1642_s15 }
  0xcb   :  { %12 = sbr.rel (!%p10_p5) target bundleno = 2 (0x2), region = 62 }

// kernel: run.41
= control target key start
LH: loop header
LB: loop body
LE: loop exit
PB: predicated region body
PF: predicated region fallthrough
CT: control target
= control target key end

     0   :  { %s1693_s12 = smov 0   ;;  %s1695_s13 = smov 0   ;;  %s2137_s0 = inlined_call_operand.vmem [shape: bf16[256,128], index: 0, kind: input, shape index: {}]   ;;  %s2138_s1 = inlined_call_operand.vmem [shape: bf16[128,1024], index: 1, kind: input, shape index: {}]   ;;  %s2139_s2 = inlined_call_operand.vmem [shape: f32[1,1024], index: 2, kind: input, shape index: {}]   ;;  %s2140_s3 = inlined_call_operand.vmem [shape: f32[256,1024], index: 3, kind: output, shape index: {}]  }
   0x1   :  { %s1697_s14 = smov 0   ;;  %s1699_s15 = smov 0  }
   0x2   :  { %s1701_s16 = smov 0  }
   0x3 LB: > { %s28_s17 = sadd.s32 1, %s1666_s15  ;;  %s1484_s18 = sadd.s32 4294967295, %s1670_s16   ;;  %s1670_s16 = sphi %s1701_s16, %s13_s16   ;;  %s1666_s15 = sphi %s1699_s15, %s2145_s15   ;;  %s1662_s14 = sphi %s1697_s14, %s2144_s14   ;;  %s1658_s13 = sphi %s1695_s13, %s2143_s13   ;;  %s1654_s12 = sphi %s1693_s12, %s2142_s12  }
   0x4   : > { %p30_p0 = scmp.ge.s32.totalorder %s28_s17, 4  ;;  %p76_p1 = scmp.ne.s32.totalorder %s1658_s13, %s1654_s12 }
   0x5   : > { %p77_p2 = scmp.eq.s32.totalorder %s1670_s16, 0  ;;  %p134_p4 = scmp.eq.s32.totalorder %s1484_s18, 3 }
   0x6   : > { %s2147_s17 = smov (%p30_p0, %s28_s17), 0  ;;  %s69_s20 = sadd.s32 1, %s1658_s13 }
   0x7   : > { %p78_p3 = por %p77_p2, %p76_p1  ;;  %s65_s19 = ssub.s32 %s1666_s15, %s2147_s17 }
   0x8   : > { %p67_p5 = scmp.eq.s32.totalorder %s65_s19, 0  ;;  %p1728_p6 = por %p134_p4, %p76_p1 }
   0x9   : > { %p1488_p7 = scmp.ge.s32.totalorder %s1670_s16, 4 }
   0xa   : > { %s1733_s22 = scalar_select %p67_p5, %s1658_s13, %s69_s20  }
   0xb   : > { %168 = sbr.rel (%p1488_p7) target bundleno = 38 (0x26), region = 20 }
  0x12   : > { %171 = sbr.rel (!%p78_p3) target bundleno = 38 (0x26), region = 24  ;;  %s173_s23 = sand.u32 (%p78_p3), 1, %s1658_s13  }
  0x13   : > { %s1533_s24 = sshll.u32 (%p78_p3), %s1666_s15, 3  ;;  %s1489_s25 = sshll.u32 (%p78_p3), %s173_s23, 7 }
  0x14   : > { %s1741_s28 = scalar_lea.vmem (%p78_p3), %s2138_s1, %s1533_s24  ;;  %s175_s29 = scalar_lea.vmem (%p78_p3), [#allocation3], %s1489_s25 }
  0x15   : > { %v239_v0 = vld [vmem:[%s1741_s28] sm:$0xff] (%p78_p3) }
  0x16   : > { %v241_v1 = vld [vmem:[%s1741_s28 + $0x20] sm:$0xff] (%p78_p3)  ;;  %240 = vst [vmem:[%s175_s29] sm:$0xff] (%p78_p3), %v239_v0 }
  0x17   : > { %v243_v2 = vld [vmem:[%s1741_s28 + $0x40] sm:$0xff] (%p78_p3)  ;;  %242 = vst [vmem:[%s175_s29 + $0x8] sm:$0xff] (%p78_p3), %v241_v1 }
  0x18   : > { %244 = vst [vmem:[%s175_s29 + $0x10] sm:$0xff] (%p78_p3), %v243_v2  ;;  %v245_v3 = vld [vmem:[%s1741_s28 + $0x60] sm:$0xff] (%p78_p3) }
  0x19   : > { %v247_v4 = vld [vmem:[%s1741_s28 + $0x80] sm:$0xff]  ;;  %246 = vst [vmem:[%s175_s29 + $0x18] sm:$0xff] %v245_v3 }
  0x1a   : > { %v249_v5 = vld [vmem:[%s1741_s28 + $0xa0] sm:$0xff]  ;;  %248 = vst [vmem:[%s175_s29 + $0x20] sm:$0xff] %v247_v4 }
  0x1b   : > { %250 = vst [vmem:[%s175_s29 + $0x28] sm:$0xff] %v249_v5  ;;  %v251_v6 = vld [vmem:[%s1741_s28 + $0xc0] sm:$0xff] }
  0x1c   : > { %v253_v7 = vld [vmem:[%s1741_s28 + $0xe0] sm:$0xff]  ;;  %252 = vst [vmem:[%s175_s29 + $0x30] sm:$0xff] %v251_v6 }
  0x1d   : > { %v255_v8 = vld [vmem:[%s1741_s28 + $0x100] sm:$0xff]  ;;  %254 = vst [vmem:[%s175_s29 + $0x38] sm:$0xff] %v253_v7 }
  0x1e   : > { %256 = vst [vmem:[%s175_s29 + $0x40] sm:$0xff] %v255_v8  ;;  %v257_v9 = vld [vmem:[%s1741_s28 + $0x120] sm:$0xff] }
  0x1f   : > { %v259_v10 = vld [vmem:[%s1741_s28 + $0x140] sm:$0xff]  ;;  %258 = vst [vmem:[%s175_s29 + $0x48] sm:$0xff] %v257_v9 }
  0x20   : > { %v261_v11 = vld [vmem:[%s1741_s28 + $0x160] sm:$0xff]  ;;  %260 = vst [vmem:[%s175_s29 + $0x50] sm:$0xff] %v259_v10 }
  0x21   : > { %262 = vst [vmem:[%s175_s29 + $0x58] sm:$0xff] %v261_v11  ;;  %v263_v12 = vld [vmem:[%s1741_s28 + $0x180] sm:$0xff] }
  0x22   : > { %v265_v13 = vld [vmem:[%s1741_s28 + $0x1a0] sm:$0xff]  ;;  %264 = vst [vmem:[%s175_s29 + $0x60] sm:$0xff] %v263_v12 }
  0x23   : > { %v267_v14 = vld [vmem:[%s1741_s28 + $0x1c0] sm:$0xff]  ;;  %266 = vst [vmem:[%s175_s29 + $0x68] sm:$0xff] %v265_v13 }
  0x24   : > { %268 = vst [vmem:[%s175_s29 + $0x70] sm:$0xff] %v267_v14  ;;  %v269_v15 = vld [vmem:[%s1741_s28 + $0x1e0] sm:$0xff] }
  0x25   : > { %270 = vst [vmem:[%s175_s29 + $0x78] sm:$0xff] %v269_v15 }
  0x26 PF: > { %p1492_p8 = scmp.ge.s32.totalorder %s1670_s16, 1  ;;  %p283_p9 = scmp.lt.s32.totalorder %s1670_s16, 5 }
  0x28   : > { %p284_p10 = pnand %p1492_p8, %p283_p9 }
  0x29   : > { %s290_s30 = sand.u32 (!%p284_p10), 1, %s1654_s12   ;;  %v1672_v16 = vmov (!%p284_p10), 0   ;;  %v1616_v33 = vld [vmem:[%s2137_s0] sm:$0xff] (!%p284_p10)   ;;  %v1618_v35 = vld [vmem:[%s2137_s0 + $0x8] sm:$0xff] (!%p284_p10)   ;;  %v1620_v37 = vld [vmem:[%s2137_s0 + $0x10] sm:$0xff] (!%p284_p10)   ;;  %s1495_s28 = sshll.u32 (!%p284_p10), %s1662_s14, 1  ;;  %v1089_v49 = vlaneseq (!%p284_p10) }
  0x2a   : > { %287 = sbr.rel (%p284_p10) target bundleno = 371 (0x173), region = 66  ;;  %s1493_s4 = sshll.u32 (!%p284_p10), %s290_s30, 7  ;;  %731 = vmatprep.mubr.bf16.mxu0 (!%p284_p10), %v1672_v16  ;;  %811 = vmatprep.mubr.bf16.mxu1 (!%p284_p10), %v1672_v16  ;;  %v1617_v34 = vld [vmem:[%s2137_s0 + $0x40] sm:$0xff] (!%p284_p10)   ;;  %v1619_v36 = vld [vmem:[%s2137_s0 + $0x48] sm:$0xff] (!%p284_p10)   ;;  %v1621_v38 = vld [vmem:[%s2137_s0 + $0x50] sm:$0xff] (!%p284_p10)  }
  0x2b   : > { %s1766_s5 = scalar_lea.vmem (!%p284_p10), [#allocation3], %s1493_s4  ;;  %v1622_v39 = vld [vmem:[%s2137_s0 + $0x18] sm:$0xff] (!%p284_p10)   ;;  %v1624_v41 = vld [vmem:[%s2137_s0 + $0x20] sm:$0xff] (!%p284_p10)   ;;  %v1626_v43 = vld [vmem:[%s2137_s0 + $0x28] sm:$0xff] (!%p284_p10)   ;;  %p336_p11 = scmp.lt.s32.totalorder (!%p284_p10), %s1495_s28, 7  ;;  %v1090_v50 = vshrl.u32 (!%p284_p10), %v1089_v49, 7 }
  0x2c   : > { %v1592_v17 = vld [vmem:[%s1766_s5 + $0x4] ss:$8 sps:$4 sm:$0xff] (!%p284_p10)   ;;  %v1594_v18 = vld [vmem:[%s1766_s5] ss:$8 sps:$4 sm:$0xff] (!%p284_p10)   ;;  %v1595_v19 = vld [vmem:[%s1766_s5 + $0x14] ss:$8 sps:$4 sm:$0xff] (!%p284_p10)  }
  0x2d   : > { %699 = vmatprep.subr.bf16.mxu0 (!%p284_p10), %v1592_v17  ;;  %1535 = vmatprep.subr.bf16.mxu1 (!%p284_p10), %v1592_v17  ;;  %v1597_v20 = vld [vmem:[%s1766_s5 + $0x10] ss:$8 sps:$4 sm:$0xff] (!%p284_p10)   ;;  %v1598_v21 = vld [vmem:[%s1766_s5 + $0x24] ss:$8 sps:$4 sm:$0xff] (!%p284_p10)   ;;  %v1600_v22 = vld [vmem:[%s1766_s5 + $0x20] ss:$8 sps:$4 sm:$0xff] (!%p284_p10)  }
  0x2e   : > { %700 = vmatpush1.bf16.msra.mxu0 (!%p284_p10), %v1594_v18  ;;  %1543 = vmatpush1.bf16.msra.mxu1 (!%p284_p10), %v1594_v18  ;;  %v1601_v23 = vld [vmem:[%s1766_s5 + $0x34] ss:$8 sps:$4 sm:$0xff] (!%p284_p10)   ;;  %v1603_v24 = vld [vmem:[%s1766_s5 + $0x30] ss:$8 sps:$4 sm:$0xff] (!%p284_p10)   ;;  %v1604_v25 = vld [vmem:[%s1766_s5 + $0x44] ss:$8 sps:$4 sm:$0xff] (!%p284_p10)  }
  0x2f   : > { %701 = vmatprep.subr.bf16.mxu0 (!%p284_p10), %v1595_v19  ;;  %1536 = vmatprep.subr.bf16.mxu1 (!%p284_p10), %v1595_v19  ;;  %v1606_v26 = vld [vmem:[%s1766_s5 + $0x40] ss:$8 sps:$4 sm:$0xff] (!%p284_p10)   ;;  %v1607_v27 = vld [vmem:[%s1766_s5 + $0x54] ss:$8 sps:$4 sm:$0xff] (!%p284_p10)   ;;  %v1609_v28 = vld [vmem:[%s1766_s5 + $0x50] ss:$8 sps:$4 sm:$0xff] (!%p284_p10)  }
  0x30   : > { %v1610_v29 = vld [vmem:[%s1766_s5 + $0x64] ss:$8 sps:$4 sm:$0xff] (!%p284_p10)   ;;  %v1612_v30 = vld [vmem:[%s1766_s5 + $0x60] ss:$8 sps:$4 sm:$0xff] (!%p284_p10)   ;;  %v1613_v31 = vld [vmem:[%s1766_s5 + $0x74] ss:$8 sps:$4 sm:$0xff] (!%p284_p10)  }
  0x31   : > { %v1615_v32 = vld [vmem:[%s1766_s5 + $0x70] ss:$8 sps:$4 sm:$0xff]   ;;  %v1625_v42 = vld [vmem:[%s2137_s0 + $0x60] sm:$0xff]   ;;  %v1627_v44 = vld [vmem:[%s2137_s0 + $0x68] sm:$0xff]   ;;  %s2149_s28 = smov (!%p336_p11, %s1495_s28), 7  ;;  %v1091_v51 = vsub.s32 0, %v1090_v50 }
  0x32   : > { %702 = vmatpush1.bf16.msra.mxu0 %v1597_v20  ;;  %1544 = vmatpush1.bf16.msra.mxu1 %v1597_v20  ;;  %v1623_v40 = vld [vmem:[%s2137_s0 + $0x58] sm:$0xff]   ;;  %v1628_v45 = vld [vmem:[%s2137_s0 + $0x30] sm:$0xff]   ;;  %s338_s5 = scalar_lea.vmem %s2139_s2, %s2149_s28  ;;  %v1095_v53 = vsub.s32 1, %v1090_v50  ;;  %s1494_s6 = sshll.u32 %s290_s30, 9 }
  0x33   : > { %703 = vmatprep.subr.bf16.mxu0 %v1598_v21  ;;  %1537 = vmatprep.subr.bf16.mxu1 %v1598_v21  ;;  %v1629_v46 = vld [vmem:[%s2137_s0 + $0x70] sm:$0xff]   ;;  %v1630_v47 = vld [vmem:[%s2137_s0 + $0x38] sm:$0xff]   ;;  %v1087_v52 = vld [vmem:[%s338_s5] sm:$0x3]  ;;  %s1860_s12 = scalar_lea.vmem [#allocation4], %s1494_s6  ;;  %s1534_s30 = sshll.u32 (%p1728_p6), %s1662_s14, 4 }
  0x34   : > { %v1631_v48 = vld [vmem:[%s2137_s0 + $0x78] sm:$0xff]   ;;  %v1852_v54 = vrot.slane %v1087_v52, %v1091_v51  ;;  %v1854_v55 = vrot.slane %v1087_v52, %v1095_v53  ;;  %s1995_s9 = scalar_lea.vmem (%p1728_p6), %s2140_s3, %s1534_s30 }
  0x36   : > { %704 = vmatpush1.bf16.msra.mxu0 %v1600_v22  ;;  %1545 = vmatpush1.bf16.msra.mxu1 %v1600_v22 }
  0x37   : > { %705 = vmatprep.subr.bf16.mxu0 %v1601_v23  ;;  %1538 = vmatprep.subr.bf16.mxu1 %v1601_v23 }
  0x3a   : > { %706 = vmatpush1.bf16.msra.mxu0 %v1603_v24  ;;  %1546 = vmatpush1.bf16.msra.mxu1 %v1603_v24 }
  0x3b   : > { %707 = vmatprep.subr.bf16.mxu0 %v1604_v25  ;;  %1539 = vmatprep.subr.bf16.mxu1 %v1604_v25 }
  0x3e   : > { %708 = vmatpush1.bf16.msra.mxu0 %v1606_v26  ;;  %1547 = vmatpush1.bf16.msra.mxu1 %v1606_v26 }
  0x3f   : > { %709 = vmatprep.subr.bf16.mxu0 %v1607_v27  ;;  %1540 = vmatprep.subr.bf16.mxu1 %v1607_v27 }
  0x42   : > { %710 = vmatpush1.bf16.msra.mxu0 %v1609_v28  ;;  %1548 = vmatpush1.bf16.msra.mxu1 %v1609_v28 }
  0x43   : > { %711 = vmatprep.subr.bf16.mxu0 %v1610_v29  ;;  %1541 = vmatprep.subr.bf16.mxu1 %v1610_v29 }
  0x46   : > { %712 = vmatpush1.bf16.msra.mxu0 %v1612_v30  ;;  %1549 = vmatpush1.bf16.msra.mxu1 %v1612_v30 }
  0x47   : > { %713 = vmatprep.subr.bf16.mxu0 %v1613_v31  ;;  %1542 = vmatprep.subr.bf16.mxu1 %v1613_v31 }
  0x4a   : > { %714 = vmatpush1.bf16.msra.mxu0 %v1615_v32  ;;  %1550 = vmatpush1.bf16.msra.mxu1 %v1615_v32 }
  0x4d   : > { %732 = vmatmul.mubr.bf16.vlgmr.msra.gmra.mrb[0].mxu0 %v1616_v33  ;;  %812 = vmatmul.mubr.bf16.vlgmr.msra.gmra.mrb[0].mxu1 %v1617_v34 }
  0x4e   : > { %741 = vmatprep.mubr.bf16.mxu0 %v1672_v16  ;;  %821 = vmatprep.mubr.bf16.mxu1 %v1672_v16 }
  0x55   : > { %742 = vmatmul.mubr.bf16.gmra.mrb[4].mxu0 %v1618_v35  ;;  %822 = vmatmul.mubr.bf16.gmra.mrb[4].mxu1 %v1619_v36 }
  0x56   : > { %751 = vmatprep.mubr.bf16.mxu0 %v1672_v16  ;;  %831 = vmatprep.mubr.bf16.mxu1 %v1672_v16 }
  0x5d   : > { %752 = vmatmul.mubr.bf16.gmra.mrb[8].mxu0 %v1620_v37  ;;  %832 = vmatmul.mubr.bf16.gmra.mrb[8].mxu1 %v1621_v38 }
  0x5e   : > { %761 = vmatprep.mubr.bf16.mxu0 %v1672_v16  ;;  %841 = vmatprep.mubr.bf16.mxu1 %v1672_v16 }
  0x65   : > { %762 = vmatmul.mubr.bf16.gmra.mrb[12].mxu0 %v1622_v39  ;;  %842 = vmatmul.mubr.bf16.gmra.mrb[12].mxu1 %v1623_v40 }
  0x66   : > { %771 = vmatprep.mubr.bf16.mxu0 %v1672_v16  ;;  %851 = vmatprep.mubr.bf16.mxu1 %v1672_v16 }
  0x6d   : > { %772 = vmatmul.mubr.bf16.gmra.mrb[16].mxu0 %v1624_v41  ;;  %852 = vmatmul.mubr.bf16.gmra.mrb[16].mxu1 %v1625_v42 }
  0x6e   : > { %781 = vmatprep.mubr.bf16.mxu0 %v1672_v16  ;;  %861 = vmatprep.mubr.bf16.mxu1 %v1672_v16 }
  0x75   : > { %782 = vmatmul.mubr.bf16.gmra.mrb[20].mxu0 %v1626_v43  ;;  %862 = vmatmul.mubr.bf16.gmra.mrb[20].mxu1 %v1627_v44 }
  0x76   : > { %791 = vmatprep.mubr.bf16.mxu0 %v1672_v16  ;;  %871 = vmatprep.mubr.bf16.mxu1 %v1672_v16 }
  0x7d   : > { %792 = vmatmul.mubr.bf16.gmra.mrb[24].mxu0 %v1628_v45  ;;  %872 = vmatmul.mubr.bf16.gmra.mrb[24].mxu1 %v1629_v46 }
  0x7e   : > { %801 = vmatprep.mubr.bf16.mxu0 %v1672_v16  ;;  %881 = vmatprep.mubr.bf16.mxu1 %v1672_v16 }
  0x85   : > { %802 = vmatmul.mubr.bf16.gmra.mrb[28].mxu0 %v1630_v47  ;;  %882 = vmatmul.mubr.bf16.gmra.mrb[28].mxu1 %v1631_v48 }
 0x120   : > { %v733_v56 = vpop.f32.mrb[0].mxu0  ;;  %v813_v57 = vpop.f32.mrb[0].mxu1 }
 0x121   : > { %v1099_v58 = vadd.f32 %v1852_v54, %v733_v56  ;;  %v1131_v59 = vadd.f32 %v1852_v54, %v813_v57  ;;  %v735_v60 = vpop.f32.mrb[1].mxu0  ;;  %v815_v61 = vpop.f32.mrb[1].mxu1 }
 0x122   : > { %v1100_v62 = vadd.f32 %v1854_v55, %v735_v60  ;;  %v1132_v63 = vadd.f32 %v1854_v55, %v815_v61  ;;  %v737_v0 = vpop.f32.mrb[2].mxu0  ;;  %v817_v1 = vpop.f32.mrb[2].mxu1 }
 0x123   : > { %1163 = vst [vmem:[%s1860_s12] sm:$0xff] %v1099_v58  ;;  %1195 = vst [vmem:[%s1860_s12 + $0x100] sm:$0xff] %v1131_v59  ;;  %v1101_v2 = vadd.f32 %v1852_v54, %v737_v0  ;;  %v1133_v3 = vadd.f32 %v1852_v54, %v817_v1  ;;  %v739_v4 = vpop.f32.mrb[3].mxu0  ;;  %v819_v5 = vpop.f32.mrb[3].mxu1 }
 0x124   : > { %1164 = vst [vmem:[%s1860_s12 + $0x8] sm:$0xff] %v1100_v62  ;;  %1196 = vst [vmem:[%s1860_s12 + $0x108] sm:$0xff] %v1132_v63  ;;  %v1102_v6 = vadd.f32 %v1854_v55, %v739_v4  ;;  %v1134_v7 = vadd.f32 %v1854_v55, %v819_v5 }
 0x125   : > { %1165 = vst [vmem:[%s1860_s12 + $0x10] sm:$0xff] %v1101_v2  ;;  %1197 = vst [vmem:[%s1860_s12 + $0x110] sm:$0xff] %v1133_v3 }
 0x126   : > { %1166 = vst [vmem:[%s1860_s12 + $0x18] sm:$0xff] %v1102_v6  ;;  %1198 = vst [vmem:[%s1860_s12 + $0x118] sm:$0xff] %v1134_v7 }
 0x128   : > { %v743_v8 = vpop.f32.mrb[4].mxu0  ;;  %v823_v9 = vpop.f32.mrb[4].mxu1 }
 0x129   : > { %v1103_v10 = vadd.f32 %v1852_v54, %v743_v8  ;;  %v1135_v11 = vadd.f32 %v1852_v54, %v823_v9  ;;  %v745_v12 = vpop.f32.mrb[5].mxu0  ;;  %v825_v13 = vpop.f32.mrb[5].mxu1 }
 0x12a   : > { %v1104_v14 = vadd.f32 %v1854_v55, %v745_v12  ;;  %v1136_v15 = vadd.f32 %v1854_v55, %v825_v13  ;;  %v747_v16 = vpop.f32.mrb[6].mxu0  ;;  %v827_v17 = vpop.f32.mrb[6].mxu1 }
 0x12b   : > { %1167 = vst [vmem:[%s1860_s12 + $0x20] sm:$0xff] %v1103_v10  ;;  %1199 = vst [vmem:[%s1860_s12 + $0x120] sm:$0xff] %v1135_v11  ;;  %v1105_v18 = vadd.f32 %v1852_v54, %v747_v16  ;;  %v1137_v19 = vadd.f32 %v1852_v54, %v827_v17  ;;  %v749_v20 = vpop.f32.mrb[7].mxu0  ;;  %v829_v21 = vpop.f32.mrb[7].mxu1 }
 0x12c   : > { %1168 = vst [vmem:[%s1860_s12 + $0x28] sm:$0xff] %v1104_v14  ;;  %1200 = vst [vmem:[%s1860_s12 + $0x128] sm:$0xff] %v1136_v15  ;;  %v1106_v22 = vadd.f32 %v1854_v55, %v749_v20  ;;  %v1138_v23 = vadd.f32 %v1854_v55, %v829_v21 }
 0x12d   : > { %1169 = vst [vmem:[%s1860_s12 + $0x30] sm:$0xff] %v1105_v18  ;;  %1201 = vst [vmem:[%s1860_s12 + $0x130] sm:$0xff] %v1137_v19 }
 0x12e   : > { %1170 = vst [vmem:[%s1860_s12 + $0x38] sm:$0xff] %v1106_v22  ;;  %1202 = vst [vmem:[%s1860_s12 + $0x138] sm:$0xff] %v1138_v23 }
 0x130   : > { %v753_v24 = vpop.f32.mrb[8].mxu0  ;;  %v833_v25 = vpop.f32.mrb[8].mxu1 }
 0x131   : > { %v1107_v26 = vadd.f32 %v1852_v54, %v753_v24  ;;  %v1139_v27 = vadd.f32 %v1852_v54, %v833_v25  ;;  %v755_v28 = vpop.f32.mrb[9].mxu0  ;;  %v835_v29 = vpop.f32.mrb[9].mxu1 }
 0x132   : > { %v1108_v30 = vadd.f32 %v1854_v55, %v755_v28  ;;  %v1140_v31 = vadd.f32 %v1854_v55, %v835_v29  ;;  %v757_v32 = vpop.f32.mrb[10].mxu0  ;;  %v837_v33 = vpop.f32.mrb[10].mxu1 }
 0x133   : > { %1171 = vst [vmem:[%s1860_s12 + $0x40] sm:$0xff] %v1107_v26  ;;  %1203 = vst [vmem:[%s1860_s12 + $0x140] sm:$0xff] %v1139_v27  ;;  %v1109_v34 = vadd.f32 %v1852_v54, %v757_v32  ;;  %v1141_v35 = vadd.f32 %v1852_v54, %v837_v33  ;;  %v759_v36 = vpop.f32.mrb[11].mxu0  ;;  %v839_v37 = vpop.f32.mrb[11].mxu1 }
 0x134   : > { %1172 = vst [vmem:[%s1860_s12 + $0x48] sm:$0xff] %v1108_v30  ;;  %1204 = vst [vmem:[%s1860_s12 + $0x148] sm:$0xff] %v1140_v31  ;;  %v1110_v38 = vadd.f32 %v1854_v55, %v759_v36  ;;  %v1142_v39 = vadd.f32 %v1854_v55, %v839_v37 }
 0x135   : > { %1173 = vst [vmem:[%s1860_s12 + $0x50] sm:$0xff] %v1109_v34  ;;  %1205 = vst [vmem:[%s1860_s12 + $0x150] sm:$0xff] %v1141_v35 }
 0x136   : > { %1174 = vst [vmem:[%s1860_s12 + $0x58] sm:$0xff] %v1110_v38  ;;  %1206 = vst [vmem:[%s1860_s12 + $0x158] sm:$0xff] %v1142_v39 }
 0x138   : > { %v763_v40 = vpop.f32.mrb[12].mxu0  ;;  %v843_v41 = vpop.f32.mrb[12].mxu1 }
 0x139   : > { %v1111_v42 = vadd.f32 %v1852_v54, %v763_v40  ;;  %v1143_v43 = vadd.f32 %v1852_v54, %v843_v41  ;;  %v765_v44 = vpop.f32.mrb[13].mxu0  ;;  %v845_v45 = vpop.f32.mrb[13].mxu1 }
 0x13a   : > { %v1112_v46 = vadd.f32 %v1854_v55, %v765_v44  ;;  %v1144_v47 = vadd.f32 %v1854_v55, %v845_v45  ;;  %v767_v48 = vpop.f32.mrb[14].mxu0  ;;  %v847_v49 = vpop.f32.mrb[14].mxu1 }
 0x13b   : > { %1175 = vst [vmem:[%s1860_s12 + $0x60] sm:$0xff] %v1111_v42  ;;  %1207 = vst [vmem:[%s1860_s12 + $0x160] sm:$0xff] %v1143_v43  ;;  %v1113_v50 = vadd.f32 %v1852_v54, %v767_v48  ;;  %v1145_v51 = vadd.f32 %v1852_v54, %v847_v49  ;;  %v769_v52 = vpop.f32.mrb[15].mxu0  ;;  %v849_v53 = vpop.f32.mrb[15].mxu1 }
 0x13c   : > { %1176 = vst [vmem:[%s1860_s12 + $0x68] sm:$0xff] %v1112_v46  ;;  %1208 = vst [vmem:[%s1860_s12 + $0x168] sm:$0xff] %v1144_v47  ;;  %v1114_v56 = vadd.f32 %v1854_v55, %v769_v52  ;;  %v1146_v57 = vadd.f32 %v1854_v55, %v849_v53 }
 0x13d   : > { %1177 = vst [vmem:[%s1860_s12 + $0x70] sm:$0xff] %v1113_v50  ;;  %1209 = vst [vmem:[%s1860_s12 + $0x170] sm:$0xff] %v1145_v51 }
 0x13e   : > { %1178 = vst [vmem:[%s1860_s12 + $0x78] sm:$0xff] %v1114_v56  ;;  %1210 = vst [vmem:[%s1860_s12 + $0x178] sm:$0xff] %v1146_v57 }
 0x140   : > { %v773_v58 = vpop.f32.mrb[16].mxu0  ;;  %v853_v59 = vpop.f32.mrb[16].mxu1 }
 0x141   : > { %v1115_v60 = vadd.f32 %v1852_v54, %v773_v58  ;;  %v1147_v61 = vadd.f32 %v1852_v54, %v853_v59  ;;  %v775_v62 = vpop.f32.mrb[17].mxu0  ;;  %v855_v63 = vpop.f32.mrb[17].mxu1 }
 0x142   : > { %v1116_v0 = vadd.f32 %v1854_v55, %v775_v62  ;;  %v1148_v1 = vadd.f32 %v1854_v55, %v855_v63  ;;  %v777_v2 = vpop.f32.mrb[18].mxu0  ;;  %v857_v3 = vpop.f32.mrb[18].mxu1  ;;  %v1260_v62 = vld [vmem:[%s1860_s12 + $0x20] sm:$0xff] (%p1728_p6)  ;;  %v1262_v63 = vld [vmem:[%s1860_s12 + $0x28] sm:$0xff] (%p1728_p6) }
 0x143   : > { %1179 = vst [vmem:[%s1860_s12 + $0x80] sm:$0xff] %v1115_v60  ;;  %1211 = vst [vmem:[%s1860_s12 + $0x180] sm:$0xff] %v1147_v61  ;;  %v1117_v4 = vadd.f32 %v1852_v54, %v777_v2  ;;  %v1149_v5 = vadd.f32 %v1852_v54, %v857_v3  ;;  %v779_v6 = vpop.f32.mrb[19].mxu0  ;;  %v859_v7 = vpop.f32.mrb[19].mxu1  ;;  %v1256_v60 = vld [vmem:[%s1860_s12 + $0x10] sm:$0xff] (%p1728_p6)  ;;  %v1258_v61 = vld [vmem:[%s1860_s12 + $0x18] sm:$0xff] (%p1728_p6) }
 0x144   : > { %1180 = vst [vmem:[%s1860_s12 + $0x88] sm:$0xff] %v1116_v0  ;;  %1212 = vst [vmem:[%s1860_s12 + $0x188] sm:$0xff] %v1148_v1  ;;  %v1118_v8 = vadd.f32 %v1854_v55, %v779_v6  ;;  %v1150_v9 = vadd.f32 %v1854_v55, %v859_v7  ;;  %v1264_v0 = vld [vmem:[%s1860_s12 + $0x30] sm:$0xff] (%p1728_p6)  ;;  %v1266_v1 = vld [vmem:[%s1860_s12 + $0x38] sm:$0xff] (%p1728_p6) }
 0x145   : > { %1181 = vst [vmem:[%s1860_s12 + $0x90] sm:$0xff] %v1117_v4  ;;  %1213 = vst [vmem:[%s1860_s12 + $0x190] sm:$0xff] %v1149_v5  ;;  %v1268_v2 = vld [vmem:[%s1860_s12 + $0x40] sm:$0xff] (%p1728_p6)  ;;  %v1270_v3 = vld [vmem:[%s1860_s12 + $0x48] sm:$0xff] (%p1728_p6) }
 0x146   : > { %1182 = vst [vmem:[%s1860_s12 + $0x98] sm:$0xff] %v1118_v8  ;;  %1214 = vst [vmem:[%s1860_s12 + $0x198] sm:$0xff] %v1150_v9  ;;  %v1272_v4 = vld [vmem:[%s1860_s12 + $0x50] sm:$0xff] (%p1728_p6)  ;;  %v1274_v5 = vld [vmem:[%s1860_s12 + $0x58] sm:$0xff] (%p1728_p6) }
 0x147   : > { %1257 = vst [vmem:[%s1995_s9 + $0x40] sm:$0xff] (%p1728_p6), %v1256_v60  ;;  %1259 = vst [vmem:[%s1995_s9 + $0x48] sm:$0xff] (%p1728_p6), %v1258_v61  ;;  %v1276_v6 = vld [vmem:[%s1860_s12 + $0x60] sm:$0xff] (%p1728_p6)  ;;  %v1278_v7 = vld [vmem:[%s1860_s12 + $0x68] sm:$0xff] (%p1728_p6) }
 0x148   : > { %v783_v10 = vpop.f32.mrb[20].mxu0  ;;  %v863_v11 = vpop.f32.mrb[20].mxu1  ;;  %1261 = vst [vmem:[%s1995_s9 + $0x80] sm:$0xff] (%p1728_p6), %v1260_v62  ;;  %1263 = vst [vmem:[%s1995_s9 + $0x88] sm:$0xff] (%p1728_p6), %v1262_v63  ;;  %v1280_v8 = vld [vmem:[%s1860_s12 + $0x70] sm:$0xff] (%p1728_p6)  ;;  %v1282_v9 = vld [vmem:[%s1860_s12 + $0x78] sm:$0xff] (%p1728_p6) }
 0x149   : > { %v1119_v12 = vadd.f32 %v1852_v54, %v783_v10  ;;  %v1151_v13 = vadd.f32 %v1852_v54, %v863_v11  ;;  %v785_v14 = vpop.f32.mrb[21].mxu0  ;;  %v865_v15 = vpop.f32.mrb[21].mxu1  ;;  %1265 = vst [vmem:[%s1995_s9 + $0xc0] sm:$0xff] (%p1728_p6), %v1264_v0  ;;  %1267 = vst [vmem:[%s1995_s9 + $0xc8] sm:$0xff] (%p1728_p6), %v1266_v1 }
 0x14a   : > { %v1120_v16 = vadd.f32 %v1854_v55, %v785_v14  ;;  %v1152_v17 = vadd.f32 %v1854_v55, %v865_v15  ;;  %v787_v18 = vpop.f32.mrb[22].mxu0  ;;  %v867_v19 = vpop.f32.mrb[22].mxu1  ;;  %1269 = vst [vmem:[%s1995_s9 + $0x100] sm:$0xff] (%p1728_p6), %v1268_v2  ;;  %1271 = vst [vmem:[%s1995_s9 + $0x108] sm:$0xff] (%p1728_p6), %v1270_v3  ;;  %v1284_v10 = vld [vmem:[%s1860_s12 + $0x80] sm:$0xff] (%p1728_p6) }
 0x14b   : > { %1183 = vst [vmem:[%s1860_s12 + $0xa0] sm:$0xff] %v1119_v12  ;;  %1215 = vst [vmem:[%s1860_s12 + $0x1a0] sm:$0xff] %v1151_v13  ;;  %v1121_v20 = vadd.f32 %v1852_v54, %v787_v18  ;;  %v1153_v21 = vadd.f32 %v1852_v54, %v867_v19  ;;  %v789_v22 = vpop.f32.mrb[23].mxu0  ;;  %v869_v23 = vpop.f32.mrb[23].mxu1  ;;  %v1286_v11 = vld [vmem:[%s1860_s12 + $0x88] sm:$0xff] (%p1728_p6) }
 0x14c   : > { %1184 = vst [vmem:[%s1860_s12 + $0xa8] sm:$0xff] %v1120_v16  ;;  %1216 = vst [vmem:[%s1860_s12 + $0x1a8] sm:$0xff] %v1152_v17  ;;  %v1122_v24 = vadd.f32 %v1854_v55, %v789_v22  ;;  %v1154_v25 = vadd.f32 %v1854_v55, %v869_v23  ;;  %v1288_v12 = vld [vmem:[%s1860_s12 + $0x90] sm:$0xff] (%p1728_p6) }
 0x14d   : > { %1185 = vst [vmem:[%s1860_s12 + $0xb0] sm:$0xff] %v1121_v20  ;;  %1217 = vst [vmem:[%s1860_s12 + $0x1b0] sm:$0xff] %v1153_v21  ;;  %v1290_v13 = vld [vmem:[%s1860_s12 + $0x98] sm:$0xff] (%p1728_p6) }
 0x14e   : > { %1186 = vst [vmem:[%s1860_s12 + $0xb8] sm:$0xff] %v1122_v24  ;;  %1218 = vst [vmem:[%s1860_s12 + $0x1b8] sm:$0xff] %v1154_v25 }
 0x14f   : > { %1273 = vst [vmem:[%s1995_s9 + $0x140] sm:$0xff] (%p1728_p6), %v1272_v4  ;;  %1275 = vst [vmem:[%s1995_s9 + $0x148] sm:$0xff] (%p1728_p6), %v1274_v5 }
 0x150   : > { %v793_v26 = vpop.f32.mrb[24].mxu0  ;;  %v873_v27 = vpop.f32.mrb[24].mxu1  ;;  %1277 = vst [vmem:[%s1995_s9 + $0x180] sm:$0xff] (%p1728_p6), %v1276_v6  ;;  %1279 = vst [vmem:[%s1995_s9 + $0x188] sm:$0xff] (%p1728_p6), %v1278_v7 }
 0x151   : > { %v1123_v28 = vadd.f32 %v1852_v54, %v793_v26  ;;  %v1155_v29 = vadd.f32 %v1852_v54, %v873_v27  ;;  %v795_v30 = vpop.f32.mrb[25].mxu0  ;;  %v875_v31 = vpop.f32.mrb[25].mxu1  ;;  %1281 = vst [vmem:[%s1995_s9 + $0x1c0] sm:$0xff] (%p1728_p6), %v1280_v8  ;;  %1283 = vst [vmem:[%s1995_s9 + $0x1c8] sm:$0xff] (%p1728_p6), %v1282_v9  ;;  %v1316_v26 = vld [vmem:[%s1860_s12 + $0x100] sm:$0xff] (%p1728_p6)  ;;  %v1318_v27 = vld [vmem:[%s1860_s12 + $0x108] sm:$0xff] (%p1728_p6) }
 0x152   : > { %v1124_v32 = vadd.f32 %v1854_v55, %v795_v30  ;;  %v1156_v33 = vadd.f32 %v1854_v55, %v875_v31  ;;  %v797_v34 = vpop.f32.mrb[26].mxu0  ;;  %v877_v35 = vpop.f32.mrb[26].mxu1  ;;  %1285 = vst [vmem:[%s1995_s9 + $0x200] sm:$0xff] (%p1728_p6), %v1284_v10  ;;  %1287 = vst [vmem:[%s1995_s9 + $0x208] sm:$0xff] (%p1728_p6), %v1286_v11  ;;  %v1292_v14 = vld [vmem:[%s1860_s12 + $0xa0] sm:$0xff] (%p1728_p6)  ;;  %v1326_v31 = vld [vmem:[%s1860_s12 + $0x128] sm:$0xff] (%p1728_p6) }
 0x153   : > { %1187 = vst [vmem:[%s1860_s12 + $0xc0] sm:$0xff] %v1123_v28  ;;  %1219 = vst [vmem:[%s1860_s12 + $0x1c0] sm:$0xff] %v1155_v29  ;;  %v1125_v36 = vadd.f32 %v1852_v54, %v797_v34  ;;  %v1157_v37 = vadd.f32 %v1852_v54, %v877_v35  ;;  %v799_v38 = vpop.f32.mrb[27].mxu0  ;;  %v879_v39 = vpop.f32.mrb[27].mxu1  ;;  %v1294_v15 = vld [vmem:[%s1860_s12 + $0xa8] sm:$0xff] (%p1728_p6)  ;;  %v1320_v28 = vld [vmem:[%s1860_s12 + $0x110] sm:$0xff] (%p1728_p6) }
 0x154   : > { %1188 = vst [vmem:[%s1860_s12 + $0xc8] sm:$0xff] %v1124_v32  ;;  %1220 = vst [vmem:[%s1860_s12 + $0x1c8] sm:$0xff] %v1156_v33  ;;  %v1126_v40 = vadd.f32 %v1854_v55, %v799_v38  ;;  %v1158_v41 = vadd.f32 %v1854_v55, %v879_v39  ;;  %v1296_v16 = vld [vmem:[%s1860_s12 + $0xb0] sm:$0xff] (%p1728_p6)  ;;  %v1322_v29 = vld [vmem:[%s1860_s12 + $0x118] sm:$0xff] (%p1728_p6) }
 0x155   : > { %1189 = vst [vmem:[%s1860_s12 + $0xd0] sm:$0xff] %v1125_v36  ;;  %1221 = vst [vmem:[%s1860_s12 + $0x1d0] sm:$0xff] %v1157_v37  ;;  %v1298_v17 = vld [vmem:[%s1860_s12 + $0xb8] sm:$0xff] (%p1728_p6)  ;;  %v1324_v30 = vld [vmem:[%s1860_s12 + $0x120] sm:$0xff] (%p1728_p6) }
 0x156   : > { %1190 = vst [vmem:[%s1860_s12 + $0xd8] sm:$0xff] %v1126_v40  ;;  %1222 = vst [vmem:[%s1860_s12 + $0x1d8] sm:$0xff] %v1158_v41  ;;  %v1328_v32 = vld [vmem:[%s1860_s12 + $0x130] sm:$0xff] (%p1728_p6)  ;;  %v1330_v33 = vld [vmem:[%s1860_s12 + $0x138] sm:$0xff] (%p1728_p6) }
 0x157   : > { %1289 = vst [vmem:[%s1995_s9 + $0x240] sm:$0xff] (%p1728_p6), %v1288_v12  ;;  %1291 = vst [vmem:[%s1995_s9 + $0x248] sm:$0xff] (%p1728_p6), %v1290_v13  ;;  %v1332_v34 = vld [vmem:[%s1860_s12 + $0x140] sm:$0xff] (%p1728_p6)  ;;  %v1334_v35 = vld [vmem:[%s1860_s12 + $0x148] sm:$0xff] (%p1728_p6) }
 0x158   : > { %v803_v42 = vpop.f32.mrb[28].mxu0  ;;  %v883_v43 = vpop.f32.mrb[28].mxu1  ;;  %1233 = sbr.rel (!%p1728_p6) target bundleno = 371 (0x173), region = 82  ;;  %1293 = vst [vmem:[%s1995_s9 + $0x280] sm:$0xff] (%p1728_p6), %v1292_v14  ;;  %1295 = vst [vmem:[%s1995_s9 + $0x288] sm:$0xff] (%p1728_p6), %v1294_v15  ;;  %v1336_v36 = vld [vmem:[%s1860_s12 + $0x150] sm:$0xff] (%p1728_p6) }
 0x159   : > { %v1127_v44 = vadd.f32 %v1852_v54, %v803_v42  ;;  %v1159_v45 = vadd.f32 %v1852_v54, %v883_v43  ;;  %v805_v46 = vpop.f32.mrb[29].mxu0  ;;  %v885_v47 = vpop.f32.mrb[29].mxu1  ;;  %1297 = vst [vmem:[%s1995_s9 + $0x2c0] sm:$0xff] (%p1728_p6), %v1296_v16  ;;  %1299 = vst [vmem:[%s1995_s9 + $0x2c8] sm:$0xff] (%p1728_p6), %v1298_v17  ;;  %v1338_v37 = vld [vmem:[%s1860_s12 + $0x158] sm:$0xff] (%p1728_p6)  ;;  %v1340_v38 = vld [vmem:[%s1860_s12 + $0x160] sm:$0xff] (%p1728_p6) }
 0x15a   : > { %v1128_v48 = vadd.f32 %v1854_v55, %v805_v46  ;;  %v1160_v49 = vadd.f32 %v1854_v55, %v885_v47  ;;  %v807_v50 = vpop.f32.mrb[30].mxu0  ;;  %v887_v51 = vpop.f32.mrb[30].mxu1  ;;  %v1300_v18 = vld [vmem:[%s1860_s12 + $0xc0] sm:$0xff] (%p1728_p6)  ;;  %1317 = vst [vmem:[%s1995_s9 + $0x400] sm:$0xff] (%p1728_p6), %v1316_v26  ;;  %1319 = vst [vmem:[%s1995_s9 + $0x408] sm:$0xff] (%p1728_p6), %v1318_v27  ;;  %v1342_v39 = vld [vmem:[%s1860_s12 + $0x168] sm:$0xff] (%p1728_p6) }
 0x15b   : > { %1191 = vst [vmem:[%s1860_s12 + $0xe0] sm:$0xff] %v1127_v44  ;;  %1223 = vst [vmem:[%s1860_s12 + $0x1e0] sm:$0xff] %v1159_v45  ;;  %v1129_v52 = vadd.f32 %v1852_v54, %v807_v50  ;;  %v1161_v53 = vadd.f32 %v1852_v54, %v887_v51  ;;  %v809_v56 = vpop.f32.mrb[31].mxu0  ;;  %v889_v57 = vpop.f32.mrb[31].mxu1  ;;  %v1252_v54 = vld [vmem:[%s1860_s12] sm:$0xff] (%p1728_p6)  ;;  %v1302_v19 = vld [vmem:[%s1860_s12 + $0xc8] sm:$0xff] (%p1728_p6) }
 0x15c   : > { %1192 = vst [vmem:[%s1860_s12 + $0xe8] sm:$0xff] %v1128_v48  ;;  %1224 = vst [vmem:[%s1860_s12 + $0x1e8] sm:$0xff] %v1160_v49  ;;  %v1130_v58 = vadd.f32 %v1854_v55, %v809_v56  ;;  %v1162_v59 = vadd.f32 %v1854_v55, %v889_v57  ;;  %v1254_v55 = vld [vmem:[%s1860_s12 + $0x8] sm:$0xff] (%p1728_p6)  ;;  %v1304_v20 = vld [vmem:[%s1860_s12 + $0xd0] sm:$0xff] (%p1728_p6) }
 0x15d   : > { %1193 = vst [vmem:[%s1860_s12 + $0xf0] sm:$0xff] %v1129_v52  ;;  %1225 = vst [vmem:[%s1860_s12 + $0x1f0] sm:$0xff] %v1161_v53  ;;  %v1306_v21 = vld [vmem:[%s1860_s12 + $0xd8] sm:$0xff] (%p1728_p6)  ;;  %v1344_v40 = vld [vmem:[%s1860_s12 + $0x170] sm:$0xff] (%p1728_p6) }
 0x15e   : > { %1194 = vst [vmem:[%s1860_s12 + $0xf8] sm:$0xff] %v1130_v58  ;;  %1226 = vst [vmem:[%s1860_s12 + $0x1f8] sm:$0xff] %v1162_v59  ;;  %v1346_v41 = vld [vmem:[%s1860_s12 + $0x178] sm:$0xff] (%p1728_p6)  ;;  %v1348_v42 = vld [vmem:[%s1860_s12 + $0x180] sm:$0xff] (%p1728_p6) }
 0x15f   : > { %1253 = vst [vmem:[%s1995_s9] sm:$0xff] %v1252_v54  ;;  %1255 = vst [vmem:[%s1995_s9 + $0x8] sm:$0xff] %v1254_v55  ;;  %v1350_v43 = vld [vmem:[%s1860_s12 + $0x188] sm:$0xff]  ;;  %v1352_v44 = vld [vmem:[%s1860_s12 + $0x190] sm:$0xff] }
 0x160   : > { %1301 = vst [vmem:[%s1995_s9 + $0x300] sm:$0xff] %v1300_v18  ;;  %1303 = vst [vmem:[%s1995_s9 + $0x308] sm:$0xff] %v1302_v19  ;;  %v1354_v45 = vld [vmem:[%s1860_s12 + $0x198] sm:$0xff]  ;;  %v1356_v46 = vld [vmem:[%s1860_s12 + $0x1a0] sm:$0xff] }
 0x161   : > { %1305 = vst [vmem:[%s1995_s9 + $0x340] sm:$0xff] %v1304_v20  ;;  %1307 = vst [vmem:[%s1995_s9 + $0x348] sm:$0xff] %v1306_v21  ;;  %v1358_v47 = vld [vmem:[%s1860_s12 + $0x1a8] sm:$0xff]  ;;  %v1360_v48 = vld [vmem:[%s1860_s12 + $0x1b0] sm:$0xff] }
 0x162   : > { %v1308_v22 = vld [vmem:[%s1860_s12 + $0xe0] sm:$0xff]  ;;  %1321 = vst [vmem:[%s1995_s9 + $0x440] sm:$0xff] %v1320_v28  ;;  %1323 = vst [vmem:[%s1995_s9 + $0x448] sm:$0xff] %v1322_v29  ;;  %v1362_v49 = vld [vmem:[%s1860_s12 + $0x1b8] sm:$0xff] }
 0x163   : > { %v1310_v23 = vld [vmem:[%s1860_s12 + $0xe8] sm:$0xff]  ;;  %1309 = vst [vmem:[%s1995_s9 + $0x380] sm:$0xff] %v1308_v22  ;;  %1325 = vst [vmem:[%s1995_s9 + $0x480] sm:$0xff] %v1324_v30  ;;  %v1364_v50 = vld [vmem:[%s1860_s12 + $0x1c0] sm:$0xff] }
 0x164   : > { %1311 = vst [vmem:[%s1995_s9 + $0x388] sm:$0xff] %v1310_v23  ;;  %v1312_v24 = vld [vmem:[%s1860_s12 + $0xf0] sm:$0xff]  ;;  %1327 = vst [vmem:[%s1995_s9 + $0x488] sm:$0xff] %v1326_v31  ;;  %v1366_v51 = vld [vmem:[%s1860_s12 + $0x1c8] sm:$0xff] }
 0x165   : > { %v1314_v25 = vld [vmem:[%s1860_s12 + $0xf8] sm:$0xff]  ;;  %1313 = vst [vmem:[%s1995_s9 + $0x3c0] sm:$0xff] %v1312_v24  ;;  %1329 = vst [vmem:[%s1995_s9 + $0x4c0] sm:$0xff] %v1328_v32  ;;  %v1368_v52 = vld [vmem:[%s1860_s12 + $0x1d0] sm:$0xff] }
 0x166   : > { %1315 = vst [vmem:[%s1995_s9 + $0x3c8] sm:$0xff] %v1314_v25  ;;  %1331 = vst [vmem:[%s1995_s9 + $0x4c8] sm:$0xff] %v1330_v33  ;;  %v1370_v53 = vld [vmem:[%s1860_s12 + $0x1d8] sm:$0xff]  ;;  %v1372_v56 = vld [vmem:[%s1860_s12 + $0x1e0] sm:$0xff] }
 0x167   : > { %1333 = vst [vmem:[%s1995_s9 + $0x500] sm:$0xff] %v1332_v34  ;;  %1335 = vst [vmem:[%s1995_s9 + $0x508] sm:$0xff] %v1334_v35  ;;  %v1374_v57 = vld [vmem:[%s1860_s12 + $0x1e8] sm:$0xff]  ;;  %v1376_v58 = vld [vmem:[%s1860_s12 + $0x1f0] sm:$0xff] }
 0x168   : > { %1337 = vst [vmem:[%s1995_s9 + $0x540] sm:$0xff] %v1336_v36  ;;  %1339 = vst [vmem:[%s1995_s9 + $0x548] sm:$0xff] %v1338_v37  ;;  %v1378_v59 = vld [vmem:[%s1860_s12 + $0x1f8] sm:$0xff] }
 0x169   : > { %1341 = vst [vmem:[%s1995_s9 + $0x580] sm:$0xff] %v1340_v38  ;;  %1343 = vst [vmem:[%s1995_s9 + $0x588] sm:$0xff] %v1342_v39 }
 0x16a   : > { %1345 = vst [vmem:[%s1995_s9 + $0x5c0] sm:$0xff] %v1344_v40  ;;  %1347 = vst [vmem:[%s1995_s9 + $0x5c8] sm:$0xff] %v1346_v41 }
 0x16b   : > { %1349 = vst [vmem:[%s1995_s9 + $0x600] sm:$0xff] %v1348_v42  ;;  %1351 = vst [vmem:[%s1995_s9 + $0x608] sm:$0xff] %v1350_v43 }
 0x16c   : > { %1353 = vst [vmem:[%s1995_s9 + $0x640] sm:$0xff] %v1352_v44  ;;  %1355 = vst [vmem:[%s1995_s9 + $0x648] sm:$0xff] %v1354_v45 }
 0x16d   : > { %1357 = vst [vmem:[%s1995_s9 + $0x680] sm:$0xff] %v1356_v46  ;;  %1359 = vst [vmem:[%s1995_s9 + $0x688] sm:$0xff] %v1358_v47 }
 0x16e   : > { %1361 = vst [vmem:[%s1995_s9 + $0x6c0] sm:$0xff] %v1360_v48  ;;  %1363 = vst [vmem:[%s1995_s9 + $0x6c8] sm:$0xff] %v1362_v49 }
 0x16f   : > { %1365 = vst [vmem:[%s1995_s9 + $0x700] sm:$0xff] %v1364_v50  ;;  %1367 = vst [vmem:[%s1995_s9 + $0x708] sm:$0xff] %v1366_v51 }
 0x170   : > { %1369 = vst [vmem:[%s1995_s9 + $0x740] sm:$0xff] %v1368_v52  ;;  %1371 = vst [vmem:[%s1995_s9 + $0x748] sm:$0xff] %v1370_v53 }
 0x171   : > { %1373 = vst [vmem:[%s1995_s9 + $0x780] sm:$0xff] %v1372_v56  ;;  %1375 = vst [vmem:[%s1995_s9 + $0x788] sm:$0xff] %v1374_v57 }
 0x172   : > { %1377 = vst [vmem:[%s1995_s9 + $0x7c0] sm:$0xff] %v1376_v58  ;;  %1379 = vst [vmem:[%s1995_s9 + $0x7c8] sm:$0xff] %v1378_v59 }
 0x173 PF: > { %s13_s16 = sadd.s32 1, %s1670_s16   ;;  %s2142_s12 = smov %s1658_s13 }
 0x174   : > { %p10_p12 = scmp.ge.s32.totalorder %s13_s16, 6   ;;  %s2143_s13 = smov %s1733_s22 }
 0x175   : > { %s2144_s14 = smov %s1666_s15  ;;  %s2145_s15 = smov %s2147_s17 }
 0x176   :  { %12 = sbr.rel (!%p10_p12) target bundleno = 3 (0x3), region = 142 }

// kernel: run.42
= control target key start
LH: loop header
LB: loop body
LE: loop exit
PB: predicated region body
PF: predicated region fallthrough
CT: control target
= control target key end

     0   :  { %v1205_v0 = vmov 0.0   ;;  %s1227_s12 = smov 0   ;;  %s1487_s0 = inlined_call_operand.vmem [shape: f32[14,24,1024], index: 0, kind: input, shape index: {}]   ;;  %s1488_s1 = inlined_call_operand.vmem [shape: bf16[2,128,512], index: 1, kind: input, shape index: {}]   ;;  %s1489_s2 = inlined_call_operand.vmem [shape: f32[14,24,128], index: 2, kind: output, shape index: {0}]   ;;  %s1490_s3 = inlined_call_operand.vmem [shape: f32[14,24,128], index: 3, kind: output, shape index: {1}]  }
   0x1   :  { %14 = vst [vmem:[#allocation2] sm:$0xff] %v1205_v0  ;;  %15 = vst [vmem:[#allocation2 + $0x8] sm:$0xff] %v1205_v0 }
   0x2   :  { %16 = vst [vmem:[#allocation2 + $0x10] sm:$0xff] %v1205_v0  ;;  %17 = vst [vmem:[#allocation3] sm:$0xff] %v1205_v0 }
   0x3   :  { %18 = vst [vmem:[#allocation3 + $0x8] sm:$0xff] %v1205_v0  ;;  %19 = vst [vmem:[#allocation3 + $0x10] sm:$0xff] %v1205_v0 }
   0x4   :  { %20 = vst [vmem:[#allocation4] sm:$0xff] %v1205_v0  ;;  %21 = vst [vmem:[#allocation4 + $0x8] sm:$0xff] %v1205_v0 }
   0x5   :  { %22 = vst [vmem:[#allocation4 + $0x10] sm:$0xff] %v1205_v0  ;;  %23 = vst [vmem:[#allocation5] sm:$0xff] %v1205_v0 }
   0x6   :  { %24 = vst [vmem:[#allocation5 + $0x8] sm:$0xff] %v1205_v0  ;;  %25 = vst [vmem:[#allocation5 + $0x10] sm:$0xff] %v1205_v0 }
   0x7 LB: > { %v1005_v1 = vld [vmem:[%s1488_s1 + $0x4] ss:$16 sps:$4 sm:$0xff]   ;;  %v1007_v2 = vld [vmem:[%s1488_s1] ss:$16 sps:$4 sm:$0xff]   ;;  %v1206_v3 = vmov 0   ;;  %s993_s10 = smul.u32 192, %s1203_s12  ;;  %s1203_s12 = sphi %s1227_s12, %s31_s12  }
   0x8   : > { %292 = vmatprep.mubr.bf16.mxu0 %v1206_v3  ;;  %343 = vmatprep.mubr.bf16.mxu1 %v1206_v3  ;;  %v1008_v4 = vld [vmem:[%s1488_s1 + $0x24] ss:$16 sps:$4 sm:$0xff]   ;;  %v1010_v5 = vld [vmem:[%s1488_s1 + $0x20] ss:$16 sps:$4 sm:$0xff]   ;;  %v1016_v7 = vld [vmem:[%s1488_s1 + $0xc] ss:$16 sps:$4 sm:$0xff]  }
   0x9   : > { %260 = vmatprep.subr.bf16.mxu0 %v1005_v1  ;;  %v1011_v6 = vld [vmem:[%s1488_s1 + $0x44] ss:$16 sps:$4 sm:$0xff]   ;;  %v1019_v8 = vld [vmem:[%s1488_s1 + $0x8] ss:$16 sps:$4 sm:$0xff]   ;;  %v1013_v9 = vld [vmem:[%s1488_s1 + $0x40] ss:$16 sps:$4 sm:$0xff]   ;;  %311 = vmatprep.subr.bf16.mxu1 %v1016_v7  ;;  %s1436_s14 = scalar_lea.vmem %s1487_s0, %s993_s10 }
   0xa   : > { %261 = vmatpush1.bf16.msra.mxu0 %v1007_v2  ;;  %v1014_v10 = vld [vmem:[%s1488_s1 + $0x64] ss:$16 sps:$4 sm:$0xff]   ;;  %312 = vmatpush1.bf16.msra.mxu1 %v1019_v8  ;;  %v1022_v11 = vld [vmem:[%s1488_s1 + $0x2c] ss:$16 sps:$4 sm:$0xff]   ;;  %v1025_v12 = vld [vmem:[%s1488_s1 + $0x28] ss:$16 sps:$4 sm:$0xff]  }
   0xb   : > { %262 = vmatprep.subr.bf16.mxu0 %v1008_v4  ;;  %313 = vmatprep.subr.bf16.mxu1 %v1022_v11  ;;  %v1018_v13 = vld [vmem:[%s1488_s1 + $0x60] ss:$16 sps:$4 sm:$0xff]   ;;  %v1020_v14 = vld [vmem:[%s1488_s1 + $0x84] ss:$16 sps:$4 sm:$0xff]   ;;  %v1028_v15 = vld [vmem:[%s1488_s1 + $0x4c] ss:$16 sps:$4 sm:$0xff]  }
   0xc   : > { %v1031_v16 = vld [vmem:[%s1488_s1 + $0x48] ss:$16 sps:$4 sm:$0xff]   ;;  %v1034_v17 = vld [vmem:[%s1488_s1 + $0x6c] ss:$16 sps:$4 sm:$0xff]   ;;  %v1024_v18 = vld [vmem:[%s1488_s1 + $0x80] ss:$16 sps:$4 sm:$0xff]  }
   0xd   : > { %v1026_v19 = vld [vmem:[%s1488_s1 + $0xa4] ss:$16 sps:$4 sm:$0xff]   ;;  %v1037_v20 = vld [vmem:[%s1488_s1 + $0x68] ss:$16 sps:$4 sm:$0xff]   ;;  %v1040_v21 = vld [vmem:[%s1488_s1 + $0x8c] ss:$16 sps:$4 sm:$0xff]  }
   0xe   : > { %263 = vmatpush1.bf16.msra.mxu0 %v1010_v5  ;;  %314 = vmatpush1.bf16.msra.mxu1 %v1025_v12  ;;  %v1030_v22 = vld [vmem:[%s1488_s1 + $0xa0] ss:$16 sps:$4 sm:$0xff]   ;;  %v1032_v23 = vld [vmem:[%s1488_s1 + $0xc4] ss:$16 sps:$4 sm:$0xff]   ;;  %v1043_v24 = vld [vmem:[%s1488_s1 + $0x88] ss:$16 sps:$4 sm:$0xff]  }
   0xf   : > { %264 = vmatprep.subr.bf16.mxu0 %v1011_v6  ;;  %315 = vmatprep.subr.bf16.mxu1 %v1028_v15  ;;  %v1044_v25 = vld [vmem:[%s1488_s1 + $0xac] ss:$16 sps:$4 sm:$0xff]   ;;  %v1036_v26 = vld [vmem:[%s1488_s1 + $0xc0] ss:$16 sps:$4 sm:$0xff]   ;;  %v1038_v27 = vld [vmem:[%s1488_s1 + $0xe4] ss:$16 sps:$4 sm:$0xff]  }
  0x10   : > { %v1049_v28 = vld [vmem:[%s1488_s1 + $0xa8] ss:$16 sps:$4 sm:$0xff]   ;;  %v1042_v29 = vld [vmem:[%s1488_s1 + $0xe0] ss:$16 sps:$4 sm:$0xff]   ;;  %v1050_v30 = vld [vmem:[%s1488_s1 + $0xcc] ss:$16 sps:$4 sm:$0xff]  }
  0x11   : > { %v63_v31 = vld [vmem:[#allocation2] sm:$0xff]  ;;  %v64_v32 = vld [vmem:[#allocation2 + $0x8] sm:$0xff]  ;;  %v65_v42 = vld [vmem:[#allocation2 + $0x10] sm:$0xff]  ;;  %s32_s15 = ssub.s32 13, %s1203_s12  ;;  %s33_s20 = smul.u32 24, %s1203_s12 }
  0x12   : > { %265 = vmatpush1.bf16.msra.mxu0 %v1013_v9  ;;  %316 = vmatpush1.bf16.msra.mxu1 %v1031_v16  ;;  %v1048_v33 = vld [vmem:[%s1488_s1 + $0x104] ss:$16 sps:$4 sm:$0xff]   ;;  %v1055_v34 = vld [vmem:[%s1488_s1 + $0xc8] ss:$16 sps:$4 sm:$0xff]   ;;  %v1056_v35 = vld [vmem:[%s1488_s1 + $0xec] ss:$16 sps:$4 sm:$0xff]   ;;  %v66_v36 = vpack.c.bf16 %v64_v32, %v63_v31  ;;  %v67_v46 = vpack.c.bf16 %v65_v42, %v65_v42 }
  0x13   : > { %266 = vmatprep.subr.bf16.mxu0 %v1014_v10  ;;  %317 = vmatprep.subr.bf16.mxu1 %v1034_v17  ;;  %v1046_v37 = vld [vmem:[%s1488_s1 + $0x100] ss:$16 sps:$4 sm:$0xff]   ;;  %v1054_v38 = vld [vmem:[%s1488_s1 + $0x124] ss:$16 sps:$4 sm:$0xff]   ;;  %v1061_v39 = vld [vmem:[%s1488_s1 + $0xe8] ss:$16 sps:$4 sm:$0xff]   ;;  %s1472_s23 = scalar_lea.vmem %s1489_s2, %s33_s20 }
  0x14   : > { %v1067_v40 = vld [vmem:[%s1488_s1 + $0x10c] ss:$16 sps:$4 sm:$0xff]   ;;  %v1052_v41 = vld [vmem:[%s1488_s1 + $0x120] ss:$16 sps:$4 sm:$0xff]   ;;  %v1060_v43 = vld [vmem:[%s1488_s1 + $0x144] ss:$16 sps:$4 sm:$0xff]  }
  0x15   : > { %v1065_v44 = vld [vmem:[%s1488_s1 + $0x108] ss:$16 sps:$4 sm:$0xff]   ;;  %v1073_v45 = vld [vmem:[%s1488_s1 + $0x12c] ss:$16 sps:$4 sm:$0xff]   ;;  %v1058_v47 = vld [vmem:[%s1488_s1 + $0x140] ss:$16 sps:$4 sm:$0xff]  }
  0x16   : > { %267 = vmatpush1.bf16.msra.mxu0 %v1018_v13  ;;  %318 = vmatpush1.bf16.msra.mxu1 %v1037_v20  ;;  %v1064_v48 = vld [vmem:[%s1488_s1 + $0x164] ss:$16 sps:$4 sm:$0xff]   ;;  %v1071_v49 = vld [vmem:[%s1488_s1 + $0x128] ss:$16 sps:$4 sm:$0xff]   ;;  %v1079_v50 = vld [vmem:[%s1488_s1 + $0x14c] ss:$16 sps:$4 sm:$0xff]  }
  0x17   : > { %268 = vmatprep.subr.bf16.mxu0 %v1020_v14  ;;  %319 = vmatprep.subr.bf16.mxu1 %v1040_v21  ;;  %v1062_v51 = vld [vmem:[%s1488_s1 + $0x160] ss:$16 sps:$4 sm:$0xff]   ;;  %v1070_v52 = vld [vmem:[%s1488_s1 + $0x184] ss:$16 sps:$4 sm:$0xff]   ;;  %v1077_v53 = vld [vmem:[%s1488_s1 + $0x148] ss:$16 sps:$4 sm:$0xff]  }
  0x18   : > { %v1085_v54 = vld [vmem:[%s1488_s1 + $0x16c] ss:$16 sps:$4 sm:$0xff]   ;;  %v1068_v55 = vld [vmem:[%s1488_s1 + $0x180] ss:$16 sps:$4 sm:$0xff]   ;;  %v1076_v56 = vld [vmem:[%s1488_s1 + $0x1a4] ss:$16 sps:$4 sm:$0xff]  }
  0x19   : > { %v1083_v57 = vld [vmem:[%s1488_s1 + $0x168] ss:$16 sps:$4 sm:$0xff]   ;;  %v1091_v58 = vld [vmem:[%s1488_s1 + $0x18c] ss:$16 sps:$4 sm:$0xff]   ;;  %v1074_v59 = vld [vmem:[%s1488_s1 + $0x1a0] ss:$16 sps:$4 sm:$0xff]  }
  0x1a   : > { %269 = vmatpush1.bf16.msra.mxu0 %v1024_v18  ;;  %320 = vmatpush1.bf16.msra.mxu1 %v1043_v24  ;;  %v1082_v60 = vld [vmem:[%s1488_s1 + $0x1c4] ss:$16 sps:$4 sm:$0xff]   ;;  %v1089_v61 = vld [vmem:[%s1488_s1 + $0x188] ss:$16 sps:$4 sm:$0xff]   ;;  %v1094_v62 = vld [vmem:[%s1488_s1 + $0x1ac] ss:$16 sps:$4 sm:$0xff]  }
  0x1b   : > { %270 = vmatprep.subr.bf16.mxu0 %v1026_v19  ;;  %321 = vmatprep.subr.bf16.mxu1 %v1044_v25  ;;  %v1080_v63 = vld [vmem:[%s1488_s1 + $0x1c0] ss:$16 sps:$4 sm:$0xff]   ;;  %v1088_v0 = vld [vmem:[%s1488_s1 + $0x1e4] ss:$16 sps:$4 sm:$0xff]   ;;  %v1092_v1 = vld [vmem:[%s1488_s1 + $0x1a8] ss:$16 sps:$4 sm:$0xff]  }
  0x1c   : > { %v1097_v2 = vld [vmem:[%s1488_s1 + $0x1cc] ss:$16 sps:$4 sm:$0xff]   ;;  %v1086_v4 = vld [vmem:[%s1488_s1 + $0x1e0] ss:$16 sps:$4 sm:$0xff]   ;;  %v1095_v7 = vld [vmem:[%s1488_s1 + $0x1c8] ss:$16 sps:$4 sm:$0xff]  }
  0x1d   : > { %v374_v5 = vld [vmem:[#allocation4] sm:$0xff]  ;;  %v375_v6 = vld [vmem:[#allocation4 + $0x8] sm:$0xff]  ;;  %v376_v11 = vld [vmem:[#allocation4 + $0x10] sm:$0xff]  ;;  %s994_s16 = smul.u32 192, %s32_s15  ;;  %s31_s12 = sadd.s32 1, %s1203_s12  }
  0x1e   : > { %271 = vmatpush1.bf16.msra.mxu0 %v1030_v22  ;;  %322 = vmatpush1.bf16.msra.mxu1 %v1049_v28  ;;  %v1100_v8 = vld [vmem:[%s1488_s1 + $0x1ec] ss:$16 sps:$4 sm:$0xff]   ;;  %v377_v9 = vpack.c.bf16 %v375_v6, %v374_v5  ;;  %v1098_v10 = vld [vmem:[%s1488_s1 + $0x1e8] ss:$16 sps:$4 sm:$0xff]   ;;  %v378_v12 = vpack.c.bf16 %v376_v11, %v376_v11  ;;  %v36_v13 = vld [vmem:[%s1436_s14] sm:$0xff]  ;;  %s48_s24 = smul.u32 24, %s32_s15 }
  0x1f   : > { %272 = vmatprep.subr.bf16.mxu0 %v1032_v23  ;;  %323 = vmatprep.subr.bf16.mxu1 %v1050_v30  ;;  %v37_v14 = vld [vmem:[%s1436_s14 + $0x8] sm:$0xff]  ;;  %v40_v16 = vld [vmem:[%s1436_s14 + $0x40] sm:$0xff]  ;;  %v38_v28 = vld [vmem:[%s1436_s14 + $0x10] sm:$0xff]  ;;  %s1456_s19 = scalar_lea.vmem %s1487_s0, %s994_s16  ;;  %p28_p0 = scmp.ge.s32.totalorder %s31_s12, 14  }
  0x20   : > { %v41_v18 = vld [vmem:[%s1436_s14 + $0x48] sm:$0xff]  ;;  %v43_v32 = vld [vmem:[%s1436_s14 + $0x58] sm:$0xff]  ;;  %s852_s27 = scalar_lea.vmem %s1490_s3, %s48_s24 }
  0x22   : > { %273 = vmatpush1.bf16.msra.mxu0 %v1036_v26  ;;  %324 = vmatpush1.bf16.msra.mxu1 %v1055_v34  ;;  %v39_v26 = vld [vmem:[%s1436_s14 + $0x18] sm:$0xff] }
  0x23   : > { %274 = vmatprep.subr.bf16.mxu0 %v1038_v27  ;;  %325 = vmatprep.subr.bf16.mxu1 %v1056_v35 }
  0x26   : > { %275 = vmatpush1.bf16.msra.mxu0 %v1042_v29  ;;  %326 = vmatpush1.bf16.msra.mxu1 %v1061_v39 }
  0x27   : > { %572 = vmatprep.subr.bf16.mxu0 %v1048_v33  ;;  %623 = vmatprep.subr.bf16.mxu1 %v1067_v40  ;;  %v44_v33 = vld [vmem:[%s1436_s14 + $0x80] sm:$0xff] }
  0x29   : > { %293 = vmatmul.mubr.bf16.vlgmr.msra.gmra.mrb[0].mxu0 %v66_v36  ;;  %344 = vmatmul.mubr.bf16.vlgmr.msra.gmra.mrb[0].mxu1 %v66_v36  ;;  %v45_v36 = vld [vmem:[%s1436_s14 + $0x88] sm:$0xff] }
  0x2a   : > { %573 = vmatpush1.bf16.msra.mxu0 %v1046_v37  ;;  %302 = vmatprep.mubr.bf16.mxu0 %v1206_v3 }
  0x2b   : > { %574 = vmatprep.subr.bf16.mxu0 %v1054_v38  ;;  %624 = vmatpush1.bf16.msra.mxu1 %v1065_v44 }
  0x2c   : > { %625 = vmatprep.subr.bf16.mxu1 %v1073_v45  ;;  %353 = vmatprep.mubr.bf16.mxu1 %v1206_v3 }
  0x2e   : > { %575 = vmatpush1.bf16.msra.mxu0 %v1052_v41  ;;  %v42_v41 = vld [vmem:[%s1436_s14 + $0x50] sm:$0xff] }
  0x2f   : > { %576 = vmatprep.subr.bf16.mxu0 %v1060_v43  ;;  %626 = vmatpush1.bf16.msra.mxu1 %v1071_v49 }
  0x30   : > { %627 = vmatprep.subr.bf16.mxu1 %v1079_v50 }
  0x31   : > { %303 = vmatmul.mubr.bf16.gmra.mrb[4].mxu0 %v67_v46  ;;  %354 = vmatmul.mubr.bf16.gmra.mrb[4].mxu1 %v67_v46 }
  0x32   : > { %577 = vmatpush1.bf16.msra.mxu0 %v1058_v47  ;;  %604 = vmatprep.mubr.bf16.mxu0 %v1206_v3 }
  0x33   : > { %578 = vmatprep.subr.bf16.mxu0 %v1064_v48  ;;  %628 = vmatpush1.bf16.msra.mxu1 %v1077_v53  ;;  %v47_v53 = vld [vmem:[%s1436_s14 + $0x98] sm:$0xff] }
  0x34   : > { %629 = vmatprep.subr.bf16.mxu1 %v1085_v54  ;;  %655 = vmatprep.mubr.bf16.mxu1 %v1206_v3 }
  0x36   : > { %579 = vmatpush1.bf16.msra.mxu0 %v1062_v51 }
  0x37   : > { %580 = vmatprep.subr.bf16.mxu0 %v1070_v52  ;;  %630 = vmatpush1.bf16.msra.mxu1 %v1083_v57 }
  0x38   : > { %631 = vmatprep.subr.bf16.mxu1 %v1091_v58 }
  0x3a   : > { %581 = vmatpush1.bf16.msra.mxu0 %v1068_v55 }
  0x3b   : > { %582 = vmatprep.subr.bf16.mxu0 %v1076_v56  ;;  %632 = vmatpush1.bf16.msra.mxu1 %v1089_v61 }
  0x3c   : > { %633 = vmatprep.subr.bf16.mxu1 %v1094_v62 }
  0x3e   : > { %583 = vmatpush1.bf16.msra.mxu0 %v1074_v59 }
  0x3f   : > { %584 = vmatprep.subr.bf16.mxu0 %v1082_v60  ;;  %634 = vmatpush1.bf16.msra.mxu1 %v1092_v1  ;;  %v46_v1 = vld [vmem:[%s1436_s14 + $0x90] sm:$0xff] }
  0x40   : > { %635 = vmatprep.subr.bf16.mxu1 %v1097_v2 }
  0x42   : > { %585 = vmatpush1.bf16.msra.mxu0 %v1080_v63 }
  0x43   : > { %586 = vmatprep.subr.bf16.mxu0 %v1088_v0  ;;  %636 = vmatpush1.bf16.msra.mxu1 %v1095_v7 }
  0x44   : > { %637 = vmatprep.subr.bf16.mxu1 %v1100_v8 }
  0x46   : > { %587 = vmatpush1.bf16.msra.mxu0 %v1086_v4 }
  0x47   : > { %638 = vmatpush1.bf16.msra.mxu1 %v1098_v10 }
  0x49   : > { %605 = vmatmul.mubr.bf16.vlgmr.msra.gmra.mrb[8].mxu0 %v377_v9 }
  0x4a   : > { %614 = vmatprep.mubr.bf16.mxu0 %v1206_v3  ;;  %656 = vmatmul.mubr.bf16.vlgmr.msra.gmra.mrb[8].mxu1 %v377_v9 }
  0x4b   : > { %665 = vmatprep.mubr.bf16.mxu1 %v1206_v3 }
  0x51   : > { %615 = vmatmul.mubr.bf16.gmra.mrb[12].mxu0 %v378_v12 }
  0x52   : > { %666 = vmatmul.mubr.bf16.gmra.mrb[12].mxu1 %v378_v12 }
  0xfc   : > { %v294_v15 = vpop.f32.mrb[0].mxu0  ;;  %v345_v29 = vpop.f32.mrb[0].mxu1 }
  0xfd   : > { %v362_v17 = vadd.f32 %v294_v15, %v36_v13  ;;  %v296_v3 = vpop.f32.mrb[1].mxu0  ;;  %v347_v31 = vpop.f32.mrb[1].mxu1  ;;  %v364_v37 = vadd.f32 %v345_v29, %v38_v28  ;;  %v55_v29 = vld [vmem:[%s1456_s19 + $0x60] sm:$0xff] }
  0xfe   : > { %v363_v19 = vadd.f32 %v296_v3, %v37_v14  ;;  %v298_v20 = vpop.f32.mrb[2].mxu0  ;;  %v365_v34 = vadd.f32 %v347_v31, %v39_v26  ;;  %v349_v35 = vpop.f32.mrb[2].mxu1  ;;  %v686_v14 = vld [vmem:[#allocation3] sm:$0xff]  ;;  %v687_v3 = vld [vmem:[#allocation3 + $0x8] sm:$0xff] }
  0xff   : > { %v975_v21 = vmul.f32 -1.442695, %v362_v17  ;;  %v366_v22 = vadd.f32 %v298_v20, %v40_v16  ;;  %v300_v23 = vpop.f32.mrb[3].mxu0  ;;  %v351_v38 = vpop.f32.mrb[3].mxu1  ;;  %v368_v49 = vadd.f32 %v349_v35, %v42_v41  ;;  %v688_v41 = vld [vmem:[#allocation3 + $0x10] sm:$0xff] }
 0x100   : > { %v978_v24 = vmul.f32 -1.442695, %v363_v19  ;;  %v367_v25 = vadd.f32 %v300_v23, %v41_v18  ;;  %v981_v40 = vmul.f32 -1.442695, %v365_v34  ;;  %v369_v42 = vadd.f32 %v351_v38, %v43_v32  ;;  %v56_v32 = vld [vmem:[%s1456_s19 + $0x68] sm:$0xff] }
 0x101   : > { %1101 = vpow2.f32 %v975_v21  ;;  %v976_v27 = vmul.f32 -1.442695, %v366_v22  ;;  %v51_v21 = vld [vmem:[%s1456_s19 + $0x20] sm:$0xff] }
 0x102   : > { %1103 = vpow2.f32 %v978_v24  ;;  %v979_v30 = vmul.f32 -1.442695, %v367_v25  ;;  %v982_v51 = vmul.f32 -1.442695, %v369_v42  ;;  %v52_v25 = vld [vmem:[%s1456_s19 + $0x28] sm:$0xff] }
 0x103   : > { %1105 = vpow2.f32 %v976_v27 }
 0x104   : > { %1107 = vpow2.f32 %v979_v30  ;;  %v304_v39 = vpop.f32.mrb[4].mxu0  ;;  %v355_v52 = vpop.f32.mrb[4].mxu1 }
 0x105   : > { %v370_v43 = vadd.f32 %v304_v39, %v44_v33  ;;  %v306_v44 = vpop.f32.mrb[5].mxu0  ;;  %1109 = vtanh.f32 %v364_v37  ;;  %v357_v54 = vpop.f32.mrb[5].mxu1  ;;  %v372_v5 = vadd.f32 %v355_v52, %v46_v1 }
 0x106   : > { %v371_v45 = vadd.f32 %v306_v44, %v45_v36  ;;  %v308_v46 = vpop.f32.mrb[6].mxu0  ;;  %1111 = vpow2.f32 %v981_v40  ;;  %v359_v56 = vpop.f32.mrb[6].mxu1  ;;  %v373_v59 = vadd.f32 %v357_v54, %v47_v53  ;;  %v54_v44 = vld [vmem:[%s1456_s19 + $0x38] sm:$0xff]  ;;  %v59_v53 = vld [vmem:[%s1456_s19 + $0xa0] sm:$0xff] }
 0x107   : > { %v977_v47 = vmul.f32 -1.442695, %v370_v43  ;;  %v309_v48 = vpop.f32.mrb[7].mxu0  ;;  %v360_v60 = vpop.f32.mrb[7].mxu1  ;;  %v60_v56 = vld [vmem:[%s1456_s19 + $0xa8] sm:$0xff] }
 0x108   : > { %v980_v50 = vmul.f32 -1.442695, %v371_v45  ;;  %v983_v4 = vmul.f32 -1.442695, %v373_v59  ;;  %v53_v48 = vld [vmem:[%s1456_s19 + $0x30] sm:$0xff]  ;;  %v58_v59 = vld [vmem:[%s1456_s19 + $0x78] sm:$0xff] }
 0x109   : > { %1113 = vpow2.f32 %v977_v47 }
 0x10a   : > { %1115 = vpow2.f32 %v980_v50 }
 0x10b   : > { %v1102_v55 = vpop.eup %1101  ;;  %1117 = vtanh.f32 %v368_v49 }
 0x10c   : > { %v1104_v57 = vpop.eup %1103  ;;  %v698_v58 = vadd.f32 1.0, %v1102_v55  ;;  %1119 = vpow2.f32 %v982_v51 }
 0x10d   : > { %v1106_v61 = vpop.eup %1105  ;;  %v716_v62 = vadd.f32 1.0, %v1104_v57 }
 0x10e   : > { %v1108_v63 = vpop.eup %1107  ;;  %1121 = vrcp.f32 %v698_v58  ;;  %v699_v0 = vadd.f32 1.0, %v1106_v61 }
 0x10f   : > { %1123 = vrcp.f32 %v716_v62  ;;  %v717_v2 = vadd.f32 1.0, %v1108_v63  ;;  %v1110_v6 = vpop.eup %1109 }
 0x110   : > { %1125 = vrcp.f32 %v699_v0  ;;  %v1112_v7 = vpop.eup %1111 }
 0x111   : > { %1127 = vrcp.f32 %v717_v2  ;;  %v737_v16 = vadd.f32 1.0, %v1112_v7  ;;  %v57_v2 = vld [vmem:[%s1456_s19 + $0x70] sm:$0xff] }
 0x112   : > { %1129 = vpow2.f32 %v983_v4 }
 0x113   : > { %v1114_v8 = vpop.eup %1113  ;;  %1131 = vtanh.f32 %v372_v5 }
 0x114   : > { %v1116_v9 = vpop.eup %1115  ;;  %v700_v10 = vadd.f32 1.0, %v1114_v8 }
 0x115   : > { %v1118_v11 = vpop.eup %1117  ;;  %v718_v12 = vadd.f32 1.0, %v1116_v9 }
 0x116   : > { %v1120_v13 = vpop.eup %1119  ;;  %1133 = vrcp.f32 %v700_v10 }
 0x117   : > { %1135 = vrcp.f32 %v718_v12  ;;  %v738_v24 = vadd.f32 1.0, %v1120_v13 }
 0x118   : > { %v1122_v15 = vpop.eup %1121  ;;  %1137 = vrcp.f32 %v737_v16 }
 0x119   : > { %v1124_v17 = vpop.eup %1123  ;;  %v749_v18 = vmul.f32 %v1122_v15, %v1110_v6 }
 0x11a   : > { %v1126_v19 = vpop.eup %1125  ;;  %v746_v20 = vmul.f32 %v1124_v17, %v686_v14  ;;  %v62_v14 = vld [vmem:[%s1456_s19 + $0xb8] sm:$0xff] }
 0x11b   : > { %v1128_v22 = vpop.eup %1127  ;;  %v750_v23 = vmul.f32 %v1126_v19, %v1118_v11 }
 0x11c   : > { %v747_v26 = vmul.f32 %v1128_v22, %v687_v3  ;;  %v752_v27 = vadd.f32 %v749_v18, %v746_v20  ;;  %v606_v28 = vpop.f32.mrb[8].mxu0  ;;  %v1130_v33 = vpop.eup %1129 }
 0x11d   : > { %v674_v30 = vadd.f32 %v606_v28, %v51_v21  ;;  %v608_v31 = vpop.f32.mrb[9].mxu0  ;;  %v1132_v37 = vpop.eup %1131  ;;  %v739_v47 = vadd.f32 1.0, %v1130_v33 }
 0x11e   : > { %1139 = vtanh.f32 %v752_v27  ;;  %839 = vst [vmem:[#allocation3] sm:$0xff] %v752_v27  ;;  %v753_v34 = vadd.f32 %v750_v23, %v747_v26  ;;  %v675_v35 = vadd.f32 %v608_v31, %v52_v25  ;;  %v610_v36 = vpop.f32.mrb[10].mxu0  ;;  %v657_v49 = vpop.f32.mrb[8].mxu1 }
 0x11f   : > { %1141 = vrcp.f32 %v738_v24  ;;  %v984_v38 = vmul.f32 -1.442695, %v674_v30  ;;  %v678_v39 = vadd.f32 %v610_v36, %v55_v29  ;;  %v612_v40 = vpop.f32.mrb[11].mxu0  ;;  %v659_v54 = vpop.f32.mrb[9].mxu1  ;;  %v676_v61 = vadd.f32 %v657_v49, %v53_v48  ;;  %v61_v29 = vld [vmem:[%s1456_s19 + $0xb0] sm:$0xff] }
 0x120   : > { %1143 = vtanh.f32 %v753_v34  ;;  %840 = vst [vmem:[#allocation3 + $0x8] sm:$0xff] %v753_v34  ;;  %v987_v42 = vmul.f32 -1.442695, %v675_v35  ;;  %v679_v43 = vadd.f32 %v612_v40, %v56_v32  ;;  %v1134_v45 = vpop.eup %1133  ;;  %v677_v57 = vadd.f32 %v659_v54, %v54_v44  ;;  %v661_v58 = vpop.f32.mrb[10].mxu1 }
 0x121   : > { %1145 = vpow2.f32 %v984_v38  ;;  %v985_v46 = vmul.f32 -1.442695, %v678_v39  ;;  %v1136_v50 = vpop.eup %1135  ;;  %v751_v52 = vmul.f32 %v1134_v45, %v1132_v37  ;;  %v663_v62 = vpop.f32.mrb[11].mxu1  ;;  %v680_v13 = vadd.f32 %v661_v58, %v57_v2 }
 0x122   : > { %1147 = vpow2.f32 %v987_v42  ;;  %v988_v51 = vmul.f32 -1.442695, %v679_v43  ;;  %v748_v55 = vmul.f32 %v1136_v50, %v688_v41  ;;  %v1138_v4 = vpop.eup %1137  ;;  %v681_v7 = vadd.f32 %v663_v62, %v58_v59  ;;  %v762_v50 = vld [vmem:[#allocation5 + $0x8] sm:$0xff]  ;;  %v763_v62 = vld [vmem:[#allocation5 + $0x10] sm:$0xff] }
 0x123   : > { %1149 = vpow2.f32 %v985_v46  ;;  %v990_v10 = vmul.f32 -1.442695, %v677_v57  ;;  %v761_v46 = vld [vmem:[#allocation5] sm:$0xff] }
 0x124   : > { %1151 = vpow2.f32 %v988_v51  ;;  %v616_v60 = vpop.f32.mrb[12].mxu0  ;;  %v754_v63 = vadd.f32 %v751_v52, %v748_v55  ;;  %v991_v17 = vmul.f32 -1.442695, %v681_v7 }
 0x125   : > { %1153 = vrcp.f32 %v739_v47  ;;  %v682_v0 = vadd.f32 %v616_v60, %v59_v53  ;;  %v618_v1 = vpop.f32.mrb[13].mxu0  ;;  %v667_v3 = vpop.f32.mrb[12].mxu1 }
 0x126   : > { %v683_v5 = vadd.f32 %v618_v1, %v60_v56  ;;  %v620_v6 = vpop.f32.mrb[14].mxu0  ;;  %1155 = vtanh.f32 %v754_v63  ;;  %841 = vst [vmem:[#allocation3 + $0x10] sm:$0xff] %v754_v63  ;;  %v669_v19 = vpop.f32.mrb[13].mxu1  ;;  %v684_v35 = vadd.f32 %v667_v3, %v61_v29 }
 0x127   : > { %v986_v8 = vmul.f32 -1.442695, %v682_v0  ;;  %v621_v9 = vpop.f32.mrb[15].mxu0  ;;  %1157 = vtanh.f32 %v676_v61  ;;  %v685_v22 = vadd.f32 %v669_v19, %v62_v14  ;;  %v671_v23 = vpop.f32.mrb[14].mxu1 }
 0x128   : > { %v1140_v11 = vpop.eup %1139  ;;  %v989_v12 = vmul.f32 -1.442695, %v683_v5  ;;  %v672_v26 = vpop.f32.mrb[15].mxu1 }
 0x129   : > { %v1142_v15 = vpop.eup %1141  ;;  %v758_v16 = vmul.f32 %v1140_v11, %v1138_v4  ;;  %1159 = vpow2.f32 %v986_v8  ;;  %v992_v34 = vmul.f32 -1.442695, %v685_v22 }
 0x12a   : > { %v1144_v18 = vpop.eup %1143  ;;  %1161 = vpow2.f32 %v989_v12 }
 0x12b   : > { %v1146_v20 = vpop.eup %1145  ;;  %836 = vst [vmem:[#allocation2] sm:$0xff] %v758_v16  ;;  %849 = vst [vmem:[%s1472_s23] sm:$0xff] %v758_v16  ;;  %v759_v21 = vmul.f32 %v1144_v18, %v1142_v15  ;;  %1163 = vpow2.f32 %v990_v10 }
 0x12c   : > { %v1148_v24 = vpop.eup %1147  ;;  %v773_v25 = vadd.f32 1.0, %v1146_v20  ;;  %1165 = vtanh.f32 %v680_v13 }
 0x12d   : > { %v1150_v27 = vpop.eup %1149  ;;  %837 = vst [vmem:[#allocation2 + $0x8] sm:$0xff] %v759_v21  ;;  %850 = vst [vmem:[%s1472_s23 + $0x8] sm:$0xff] %v759_v21  ;;  %v791_v28 = vadd.f32 1.0, %v1148_v24  ;;  %1167 = vpow2.f32 %v991_v17 }
 0x12e   : > { %v1152_v30 = vpop.eup %1151  ;;  %1169 = vrcp.f32 %v773_v25  ;;  %v774_v31 = vadd.f32 1.0, %v1150_v27 }
 0x12f   : > { %v1154_v32 = vpop.eup %1153  ;;  %1171 = vrcp.f32 %v791_v28  ;;  %v792_v33 = vadd.f32 1.0, %v1152_v30 }
 0x130   : > { %1173 = vrcp.f32 %v774_v31  ;;  %v1156_v36 = vpop.eup %1155 }
 0x131   : > { %1175 = vrcp.f32 %v792_v33  ;;  %v1158_v37 = vpop.eup %1157  ;;  %v760_v38 = vmul.f32 %v1156_v36, %v1154_v32 }
 0x132   : > { %1177 = vpow2.f32 %v992_v34 }
 0x133   : > { %v1160_v39 = vpop.eup %1159  ;;  %838 = vst [vmem:[#allocation2 + $0x10] sm:$0xff] %v760_v38  ;;  %851 = vst [vmem:[%s1472_s23 + $0x10] sm:$0xff] %v760_v38  ;;  %1179 = vtanh.f32 %v684_v35 }
 0x134   : > { %v1162_v40 = vpop.eup %1161  ;;  %v775_v41 = vadd.f32 1.0, %v1160_v39 }
 0x135   : > { %v1164_v42 = vpop.eup %1163  ;;  %v793_v43 = vadd.f32 1.0, %v1162_v40 }
 0x136   : > { %v1166_v44 = vpop.eup %1165  ;;  %1181 = vrcp.f32 %v775_v41  ;;  %v812_v48 = vadd.f32 1.0, %v1164_v42 }
 0x137   : > { %v1168_v45 = vpop.eup %1167  ;;  %1183 = vrcp.f32 %v793_v43 }
 0x138   : > { %v1170_v47 = vpop.eup %1169  ;;  %v813_v56 = vadd.f32 1.0, %v1168_v45  ;;  %1185 = vrcp.f32 %v812_v48 }
 0x139   : > { %v1172_v49 = vpop.eup %1171  ;;  %v824_v51 = vmul.f32 %v1170_v47, %v1158_v37 }
 0x13a   : > { %v1174_v52 = vpop.eup %1173  ;;  %v821_v53 = vmul.f32 %v1172_v49, %v761_v46 }
 0x13b   : > { %v1176_v54 = vpop.eup %1175  ;;  %v825_v55 = vmul.f32 %v1174_v52, %v1166_v44 }
 0x13c   : > { %v822_v57 = vmul.f32 %v1176_v54, %v762_v50  ;;  %v827_v58 = vadd.f32 %v824_v51, %v821_v53  ;;  %v1178_v59 = vpop.eup %1177 }
 0x13d   : > { %v1180_v60 = vpop.eup %1179  ;;  %v814_v0 = vadd.f32 1.0, %v1178_v59 }
 0x13e   : > { %1187 = vtanh.f32 %v827_v58  ;;  %845 = vst [vmem:[#allocation5] sm:$0xff] %v827_v58  ;;  %v828_v61 = vadd.f32 %v825_v55, %v822_v57 }
 0x13f   : > { %1189 = vrcp.f32 %v813_v56 }
 0x140   : > { %v1182_v63 = vpop.eup %1181  ;;  %1191 = vtanh.f32 %v828_v61  ;;  %846 = vst [vmem:[#allocation5 + $0x8] sm:$0xff] %v828_v61 }
 0x141   : > { %v1184_v1 = vpop.eup %1183  ;;  %v826_v2 = vmul.f32 %v1182_v63, %v1180_v60  ;;  %1193 = vrcp.f32 %v814_v0 }
 0x142   : > { %v823_v4 = vmul.f32 %v1184_v1, %v763_v62  ;;  %v1186_v6 = vpop.eup %1185 }
 0x144   : > { %v829_v5 = vadd.f32 %v826_v2, %v823_v4 }
 0x146   : > { %1195 = vtanh.f32 %v829_v5  ;;  %847 = vst [vmem:[#allocation5 + $0x10] sm:$0xff] %v829_v5 }
 0x148   : > { %v1188_v7 = vpop.eup %1187 }
 0x149   : > { %v1190_v8 = vpop.eup %1189  ;;  %v833_v9 = vmul.f32 %v1188_v7, %v1186_v6 }
 0x14a   : > { %v1192_v10 = vpop.eup %1191 }
 0x14b   : > { %842 = vst [vmem:[#allocation4] sm:$0xff] %v833_v9  ;;  %853 = vst [vmem:[%s852_s27] sm:$0xff] %v833_v9  ;;  %v834_v11 = vmul.f32 %v1192_v10, %v1190_v8  ;;  %v1194_v12 = vpop.eup %1193 }
 0x14d   : > { %843 = vst [vmem:[#allocation4 + $0x8] sm:$0xff] %v834_v11  ;;  %854 = vst [vmem:[%s852_s27 + $0x8] sm:$0xff] %v834_v11  ;;  %30 = sbr.rel (!%p28_p0) target bundleno = 7 (0x7), region = 48 }
 0x150   : > { %v1196_v13 = vpop.eup %1195 }
 0x151   : > { %v835_v14 = vmul.f32 %v1196_v13, %v1194_v12 }
 0x153   : > { %844 = vst [vmem:[#allocation4 + $0x10] sm:$0xff] %v835_v14  ;;  %855 = vst [vmem:[%s852_s27 + $0x10] sm:$0xff] %v835_v14 }

// kernel: run.43
= control target key start
LH: loop header
LB: loop body
LE: loop exit
PB: predicated region body
PF: predicated region fallthrough
CT: control target
= control target key end

     0   :  { %s1191_s1 = inlined_call_operand.vmem [shape: bf16[256,128], index: 1, kind: input, shape index: {}]   ;;  %s1192_s0 = inlined_call_operand.vmem [shape: bf16[256,256], index: 0, kind: input, shape index: {}]   ;;  %s1193_s2 = inlined_call_operand.vmem [shape: f32[256,128], index: 2, kind: output, shape index: {}]  }
   0x1   :  { %v872_v0 = vld [vmem:[%s1191_s1 + $0x40] sm:$0xff]   ;;  %v874_v2 = vld [vmem:[%s1191_s1 + $0x48] sm:$0xff]   ;;  %v876_v4 = vld [vmem:[%s1191_s1 + $0x50] sm:$0xff]  }
   0x2   :  { %v873_v1 = vld [vmem:[%s1191_s1] sm:$0xff]   ;;  %744 = vmatprep.subr.bf16.mxu0 %v872_v0  ;;  %856 = vmatprep.subr.bf16.mxu1 %v872_v0  ;;  %v875_v3 = vld [vmem:[%s1191_s1 + $0x8] sm:$0xff]   ;;  %v877_v5 = vld [vmem:[%s1191_s1 + $0x10] sm:$0xff]  }
   0x3   :  { %745 = vmatpush3.bf16.msra.mxu0 %v873_v1  ;;  %864 = vmatpush3.bf16.msra.mxu1 %v873_v1  ;;  %v878_v6 = vld [vmem:[%s1191_s1 + $0x58] sm:$0xff]   ;;  %v880_v8 = vld [vmem:[%s1191_s1 + $0x60] sm:$0xff]   ;;  %v882_v10 = vld [vmem:[%s1191_s1 + $0x68] sm:$0xff]  }
   0x4   :  { %746 = vmatprep.subr.bf16.mxu0 %v874_v2  ;;  %857 = vmatprep.subr.bf16.mxu1 %v874_v2  ;;  %v879_v7 = vld [vmem:[%s1191_s1 + $0x18] sm:$0xff]   ;;  %v881_v9 = vld [vmem:[%s1191_s1 + $0x20] sm:$0xff]   ;;  %v883_v13 = vld [vmem:[%s1191_s1 + $0x28] sm:$0xff]  }
   0x5   :  { %v890_v11 = vld [vmem:[%s1192_s0 + $0x4] ss:$8 sps:$4 sm:$0xff]   ;;  %v884_v14 = vld [vmem:[%s1191_s1 + $0x70] sm:$0xff]   ;;  %v886_v16 = vld [vmem:[%s1191_s1 + $0x78] sm:$0xff]  }
   0x6   :  { %v893_v12 = vld [vmem:[%s1192_s0 + $0x84] ss:$8 sps:$4 sm:$0xff]   ;;  %432 = vmatprep.mubr.bf16.mxu0 %v890_v11  ;;  %v885_v15 = vld [vmem:[%s1191_s1 + $0x30] sm:$0xff]   ;;  %v887_v17 = vld [vmem:[%s1191_s1 + $0x38] sm:$0xff]  }
   0x7   :  { %747 = vmatpush3.bf16.msra.mxu0 %v875_v3  ;;  %865 = vmatpush3.bf16.msra.mxu1 %v875_v3  ;;  %v888_v18 = vld [vmem:[%s1192_s0] ss:$8 sps:$4 sm:$0xff]   ;;  %v894_v20 = vld [vmem:[%s1192_s0 + $0x14] ss:$8 sps:$4 sm:$0xff]   ;;  %v898_v22 = vld [vmem:[%s1192_s0 + $0x10] ss:$8 sps:$4 sm:$0xff]  }
   0x8   :  { %748 = vmatprep.subr.bf16.mxu0 %v876_v4  ;;  %858 = vmatprep.subr.bf16.mxu1 %v876_v4  ;;  %v891_v19 = vld [vmem:[%s1192_s0 + $0x80] ss:$8 sps:$4 sm:$0xff]   ;;  %v896_v21 = vld [vmem:[%s1192_s0 + $0x94] ss:$8 sps:$4 sm:$0xff]   ;;  %v899_v23 = vld [vmem:[%s1192_s0 + $0x90] ss:$8 sps:$4 sm:$0xff]  }
   0x9   :  { %496 = vmatprep.mubr.bf16.mxu1 %v893_v12  ;;  %v900_v24 = vld [vmem:[%s1192_s0 + $0x24] ss:$8 sps:$4 sm:$0xff]   ;;  %v904_v26 = vld [vmem:[%s1192_s0 + $0x20] ss:$8 sps:$4 sm:$0xff]   ;;  %v906_v28 = vld [vmem:[%s1192_s0 + $0x34] ss:$8 sps:$4 sm:$0xff]  }
   0xa   :  { %v902_v25 = vld [vmem:[%s1192_s0 + $0xa4] ss:$8 sps:$4 sm:$0xff]   ;;  %v905_v27 = vld [vmem:[%s1192_s0 + $0xa0] ss:$8 sps:$4 sm:$0xff]   ;;  %v908_v29 = vld [vmem:[%s1192_s0 + $0xb4] ss:$8 sps:$4 sm:$0xff]  }
   0xb   :  { %749 = vmatpush3.bf16.msra.mxu0 %v877_v5  ;;  %866 = vmatpush3.bf16.msra.mxu1 %v877_v5  ;;  %v910_v30 = vld [vmem:[%s1192_s0 + $0x30] ss:$8 sps:$4 sm:$0xff]   ;;  %v912_v32 = vld [vmem:[%s1192_s0 + $0x44] ss:$8 sps:$4 sm:$0xff]   ;;  %v916_v34 = vld [vmem:[%s1192_s0 + $0x40] ss:$8 sps:$4 sm:$0xff]  }
   0xc   :  { %750 = vmatprep.subr.bf16.mxu0 %v878_v6  ;;  %859 = vmatprep.subr.bf16.mxu1 %v878_v6  ;;  %v911_v31 = vld [vmem:[%s1192_s0 + $0xb0] ss:$8 sps:$4 sm:$0xff]   ;;  %v914_v33 = vld [vmem:[%s1192_s0 + $0xc4] ss:$8 sps:$4 sm:$0xff]   ;;  %v917_v35 = vld [vmem:[%s1192_s0 + $0xc0] ss:$8 sps:$4 sm:$0xff]  }
   0xd   :  { %v918_v36 = vld [vmem:[%s1192_s0 + $0x54] ss:$8 sps:$4 sm:$0xff]   ;;  %v922_v38 = vld [vmem:[%s1192_s0 + $0x50] ss:$8 sps:$4 sm:$0xff]   ;;  %v924_v40 = vld [vmem:[%s1192_s0 + $0x64] ss:$8 sps:$4 sm:$0xff]  }
   0xe   :  { %v920_v37 = vld [vmem:[%s1192_s0 + $0xd4] ss:$8 sps:$4 sm:$0xff]   ;;  %v923_v39 = vld [vmem:[%s1192_s0 + $0xd0] ss:$8 sps:$4 sm:$0xff]   ;;  %v926_v41 = vld [vmem:[%s1192_s0 + $0xe4] ss:$8 sps:$4 sm:$0xff]  }
   0xf   :  { %751 = vmatpush3.bf16.msra.mxu0 %v879_v7  ;;  %867 = vmatpush3.bf16.msra.mxu1 %v879_v7  ;;  %v928_v42 = vld [vmem:[%s1192_s0 + $0x60] ss:$8 sps:$4 sm:$0xff]   ;;  %v930_v44 = vld [vmem:[%s1192_s0 + $0x74] ss:$8 sps:$4 sm:$0xff]   ;;  %v934_v46 = vld [vmem:[%s1192_s0 + $0x70] ss:$8 sps:$4 sm:$0xff]  }
  0x10   :  { %752 = vmatprep.subr.bf16.mxu0 %v880_v8  ;;  %860 = vmatprep.subr.bf16.mxu1 %v880_v8  ;;  %v929_v43 = vld [vmem:[%s1192_s0 + $0xe0] ss:$8 sps:$4 sm:$0xff]   ;;  %v932_v45 = vld [vmem:[%s1192_s0 + $0xf4] ss:$8 sps:$4 sm:$0xff]   ;;  %v935_v47 = vld [vmem:[%s1192_s0 + $0xf0] ss:$8 sps:$4 sm:$0xff]  }
  0x13   :  { %753 = vmatpush3.bf16.msra.mxu0 %v881_v9  ;;  %868 = vmatpush3.bf16.msra.mxu1 %v881_v9 }
  0x14   :  { %754 = vmatprep.subr.bf16.mxu0 %v882_v10  ;;  %861 = vmatprep.subr.bf16.mxu1 %v882_v10 }
  0x17   :  { %755 = vmatpush3.bf16.msra.mxu0 %v883_v13  ;;  %869 = vmatpush3.bf16.msra.mxu1 %v883_v13 }
  0x18   :  { %756 = vmatprep.subr.bf16.mxu0 %v884_v14  ;;  %862 = vmatprep.subr.bf16.mxu1 %v884_v14 }
  0x1b   :  { %757 = vmatpush3.bf16.msra.mxu0 %v885_v15  ;;  %870 = vmatpush3.bf16.msra.mxu1 %v885_v15 }
  0x1c   :  { %758 = vmatprep.subr.bf16.mxu0 %v886_v16  ;;  %863 = vmatprep.subr.bf16.mxu1 %v886_v16 }
  0x1f   :  { %759 = vmatpush3.bf16.msra.mxu0 %v887_v17  ;;  %871 = vmatpush3.bf16.msra.mxu1 %v887_v17 }
  0x22   :  { %433 = vmatmul.mubr.bf16.vlgmr.msra.gmra.mrb[0].mxu0 %v888_v18  ;;  %497 = vmatmul.mubr.bf16.vlgmr.msra.gmra.mrb[0].mxu1 %v891_v19 }
  0x23   :  { %440 = vmatprep.mubr.bf16.mxu0 %v894_v20  ;;  %504 = vmatprep.mubr.bf16.mxu1 %v896_v21 }
  0x2a   :  { %441 = vmatmul.mubr.bf16.gmra.mrb[4].mxu0 %v898_v22  ;;  %505 = vmatmul.mubr.bf16.gmra.mrb[4].mxu1 %v899_v23 }
  0x2b   :  { %448 = vmatprep.mubr.bf16.mxu0 %v900_v24  ;;  %512 = vmatprep.mubr.bf16.mxu1 %v902_v25 }
  0x32   :  { %449 = vmatmul.mubr.bf16.gmra.mrb[8].mxu0 %v904_v26  ;;  %513 = vmatmul.mubr.bf16.gmra.mrb[8].mxu1 %v905_v27 }
  0x33   :  { %456 = vmatprep.mubr.bf16.mxu0 %v906_v28  ;;  %520 = vmatprep.mubr.bf16.mxu1 %v908_v29 }
  0x3a   :  { %457 = vmatmul.mubr.bf16.gmra.mrb[12].mxu0 %v910_v30  ;;  %521 = vmatmul.mubr.bf16.gmra.mrb[12].mxu1 %v911_v31 }
  0x3b   :  { %464 = vmatprep.mubr.bf16.mxu0 %v912_v32  ;;  %528 = vmatprep.mubr.bf16.mxu1 %v914_v33 }
  0x42   :  { %465 = vmatmul.mubr.bf16.gmra.mrb[16].mxu0 %v916_v34  ;;  %529 = vmatmul.mubr.bf16.gmra.mrb[16].mxu1 %v917_v35 }
  0x43   :  { %472 = vmatprep.mubr.bf16.mxu0 %v918_v36  ;;  %536 = vmatprep.mubr.bf16.mxu1 %v920_v37 }
  0x4a   :  { %473 = vmatmul.mubr.bf16.gmra.mrb[20].mxu0 %v922_v38  ;;  %537 = vmatmul.mubr.bf16.gmra.mrb[20].mxu1 %v923_v39 }
  0x4b   :  { %480 = vmatprep.mubr.bf16.mxu0 %v924_v40  ;;  %544 = vmatprep.mubr.bf16.mxu1 %v926_v41 }
  0x52   :  { %481 = vmatmul.mubr.bf16.gmra.mrb[24].mxu0 %v928_v42  ;;  %545 = vmatmul.mubr.bf16.gmra.mrb[24].mxu1 %v929_v43 }
  0x53   :  { %488 = vmatprep.mubr.bf16.mxu0 %v930_v44  ;;  %552 = vmatprep.mubr.bf16.mxu1 %v932_v45 }
  0x5a   :  { %489 = vmatmul.mubr.bf16.gmra.mrb[28].mxu0 %v934_v46  ;;  %553 = vmatmul.mubr.bf16.gmra.mrb[28].mxu1 %v935_v47 }
  0xf5   :  { %v760_v48 = vpop.f32.mrb[0].mxu0  ;;  %v808_v49 = vpop.f32.mrb[0].mxu1 }
  0xf6   :  { %v761_v50 = vpop.f32.mrb[1].mxu0  ;;  %v809_v51 = vpop.f32.mrb[1].mxu1 }
  0xf7   :  { %v762_v52 = vadd.f32 %v761_v50, %v760_v48  ;;  %v810_v53 = vadd.f32 %v809_v51, %v808_v49  ;;  %v763_v54 = vpop.f32.mrb[2].mxu0  ;;  %v811_v55 = vpop.f32.mrb[2].mxu1 }
  0xf8   :  { %v764_v56 = vpop.f32.mrb[3].mxu0  ;;  %v812_v57 = vpop.f32.mrb[3].mxu1 }
  0xf9   :  { %660 = vst [vmem:[%s1193_s2] sm:$0xff] %v762_v52  ;;  %676 = vst [vmem:[%s1193_s2 + $0x80] sm:$0xff] %v810_v53  ;;  %v765_v58 = vadd.f32 %v764_v56, %v763_v54  ;;  %v813_v59 = vadd.f32 %v812_v57, %v811_v55 }
  0xfb   :  { %661 = vst [vmem:[%s1193_s2 + $0x8] sm:$0xff] %v765_v58  ;;  %677 = vst [vmem:[%s1193_s2 + $0x88] sm:$0xff] %v813_v59 }
  0xfd   :  { %v766_v60 = vpop.f32.mrb[4].mxu0  ;;  %v814_v61 = vpop.f32.mrb[4].mxu1 }
  0xfe   :  { %v767_v62 = vpop.f32.mrb[5].mxu0  ;;  %v815_v63 = vpop.f32.mrb[5].mxu1 }
  0xff   :  { %v768_v0 = vadd.f32 %v767_v62, %v766_v60  ;;  %v816_v1 = vadd.f32 %v815_v63, %v814_v61  ;;  %v769_v2 = vpop.f32.mrb[6].mxu0  ;;  %v817_v3 = vpop.f32.mrb[6].mxu1 }
 0x100   :  { %v770_v4 = vpop.f32.mrb[7].mxu0  ;;  %v818_v5 = vpop.f32.mrb[7].mxu1 }
 0x101   :  { %662 = vst [vmem:[%s1193_s2 + $0x10] sm:$0xff] %v768_v0  ;;  %678 = vst [vmem:[%s1193_s2 + $0x90] sm:$0xff] %v816_v1  ;;  %v771_v6 = vadd.f32 %v770_v4, %v769_v2  ;;  %v819_v7 = vadd.f32 %v818_v5, %v817_v3 }
 0x103   :  { %663 = vst [vmem:[%s1193_s2 + $0x18] sm:$0xff] %v771_v6  ;;  %679 = vst [vmem:[%s1193_s2 + $0x98] sm:$0xff] %v819_v7 }
 0x105   :  { %v772_v8 = vpop.f32.mrb[8].mxu0  ;;  %v820_v9 = vpop.f32.mrb[8].mxu1 }
 0x106   :  { %v773_v10 = vpop.f32.mrb[9].mxu0  ;;  %v821_v11 = vpop.f32.mrb[9].mxu1 }
 0x107   :  { %v774_v12 = vadd.f32 %v773_v10, %v772_v8  ;;  %v822_v13 = vadd.f32 %v821_v11, %v820_v9  ;;  %v775_v14 = vpop.f32.mrb[10].mxu0  ;;  %v823_v15 = vpop.f32.mrb[10].mxu1 }
 0x108   :  { %v776_v16 = vpop.f32.mrb[11].mxu0  ;;  %v824_v17 = vpop.f32.mrb[11].mxu1 }
 0x109   :  { %664 = vst [vmem:[%s1193_s2 + $0x20] sm:$0xff] %v774_v12  ;;  %680 = vst [vmem:[%s1193_s2 + $0xa0] sm:$0xff] %v822_v13  ;;  %v777_v18 = vadd.f32 %v776_v16, %v775_v14  ;;  %v825_v19 = vadd.f32 %v824_v17, %v823_v15 }
 0x10b   :  { %665 = vst [vmem:[%s1193_s2 + $0x28] sm:$0xff] %v777_v18  ;;  %681 = vst [vmem:[%s1193_s2 + $0xa8] sm:$0xff] %v825_v19 }
 0x10d   :  { %v778_v20 = vpop.f32.mrb[12].mxu0  ;;  %v826_v21 = vpop.f32.mrb[12].mxu1 }
 0x10e   :  { %v779_v22 = vpop.f32.mrb[13].mxu0  ;;  %v827_v23 = vpop.f32.mrb[13].mxu1 }
 0x10f   :  { %v780_v24 = vadd.f32 %v779_v22, %v778_v20  ;;  %v828_v25 = vadd.f32 %v827_v23, %v826_v21  ;;  %v781_v26 = vpop.f32.mrb[14].mxu0  ;;  %v829_v27 = vpop.f32.mrb[14].mxu1 }
 0x110   :  { %v782_v28 = vpop.f32.mrb[15].mxu0  ;;  %v830_v29 = vpop.f32.mrb[15].mxu1 }
 0x111   :  { %666 = vst [vmem:[%s1193_s2 + $0x30] sm:$0xff] %v780_v24  ;;  %682 = vst [vmem:[%s1193_s2 + $0xb0] sm:$0xff] %v828_v25  ;;  %v783_v30 = vadd.f32 %v782_v28, %v781_v26  ;;  %v831_v31 = vadd.f32 %v830_v29, %v829_v27 }
 0x113   :  { %667 = vst [vmem:[%s1193_s2 + $0x38] sm:$0xff] %v783_v30  ;;  %683 = vst [vmem:[%s1193_s2 + $0xb8] sm:$0xff] %v831_v31 }
 0x115   :  { %v784_v32 = vpop.f32.mrb[16].mxu0  ;;  %v832_v33 = vpop.f32.mrb[16].mxu1 }
 0x116   :  { %v785_v34 = vpop.f32.mrb[17].mxu0  ;;  %v833_v35 = vpop.f32.mrb[17].mxu1 }
 0x117   :  { %v786_v36 = vadd.f32 %v785_v34, %v784_v32  ;;  %v834_v37 = vadd.f32 %v833_v35, %v832_v33  ;;  %v787_v38 = vpop.f32.mrb[18].mxu0  ;;  %v835_v39 = vpop.f32.mrb[18].mxu1 }
 0x118   :  { %v788_v40 = vpop.f32.mrb[19].mxu0  ;;  %v836_v41 = vpop.f32.mrb[19].mxu1 }
 0x119   :  { %668 = vst [vmem:[%s1193_s2 + $0x40] sm:$0xff] %v786_v36  ;;  %684 = vst [vmem:[%s1193_s2 + $0xc0] sm:$0xff] %v834_v37  ;;  %v789_v42 = vadd.f32 %v788_v40, %v787_v38  ;;  %v837_v43 = vadd.f32 %v836_v41, %v835_v39 }
 0x11b   :  { %669 = vst [vmem:[%s1193_s2 + $0x48] sm:$0xff] %v789_v42  ;;  %685 = vst [vmem:[%s1193_s2 + $0xc8] sm:$0xff] %v837_v43 }
 0x11d   :  { %v790_v44 = vpop.f32.mrb[20].mxu0  ;;  %v838_v45 = vpop.f32.mrb[20].mxu1 }
 0x11e   :  { %v791_v46 = vpop.f32.mrb[21].mxu0  ;;  %v839_v47 = vpop.f32.mrb[21].mxu1 }
 0x11f   :  { %v792_v48 = vadd.f32 %v791_v46, %v790_v44  ;;  %v840_v49 = vadd.f32 %v839_v47, %v838_v45  ;;  %v793_v50 = vpop.f32.mrb[22].mxu0  ;;  %v841_v51 = vpop.f32.mrb[22].mxu1 }
 0x120   :  { %v794_v52 = vpop.f32.mrb[23].mxu0  ;;  %v842_v53 = vpop.f32.mrb[23].mxu1 }
 0x121   :  { %670 = vst [vmem:[%s1193_s2 + $0x50] sm:$0xff] %v792_v48  ;;  %686 = vst [vmem:[%s1193_s2 + $0xd0] sm:$0xff] %v840_v49  ;;  %v795_v54 = vadd.f32 %v794_v52, %v793_v50  ;;  %v843_v55 = vadd.f32 %v842_v53, %v841_v51 }
 0x123   :  { %671 = vst [vmem:[%s1193_s2 + $0x58] sm:$0xff] %v795_v54  ;;  %687 = vst [vmem:[%s1193_s2 + $0xd8] sm:$0xff] %v843_v55 }
 0x125   :  { %v796_v56 = vpop.f32.mrb[24].mxu0  ;;  %v844_v57 = vpop.f32.mrb[24].mxu1 }
 0x126   :  { %v797_v58 = vpop.f32.mrb[25].mxu0  ;;  %v845_v59 = vpop.f32.mrb[25].mxu1 }
 0x127   :  { %v798_v60 = vadd.f32 %v797_v58, %v796_v56  ;;  %v846_v61 = vadd.f32 %v845_v59, %v844_v57  ;;  %v799_v62 = vpop.f32.mrb[26].mxu0  ;;  %v847_v63 = vpop.f32.mrb[26].mxu1 }
 0x128   :  { %v800_v0 = vpop.f32.mrb[27].mxu0  ;;  %v848_v1 = vpop.f32.mrb[27].mxu1 }
 0x129   :  { %672 = vst [vmem:[%s1193_s2 + $0x60] sm:$0xff] %v798_v60  ;;  %688 = vst [vmem:[%s1193_s2 + $0xe0] sm:$0xff] %v846_v61  ;;  %v801_v2 = vadd.f32 %v800_v0, %v799_v62  ;;  %v849_v3 = vadd.f32 %v848_v1, %v847_v63 }
 0x12b   :  { %673 = vst [vmem:[%s1193_s2 + $0x68] sm:$0xff] %v801_v2  ;;  %689 = vst [vmem:[%s1193_s2 + $0xe8] sm:$0xff] %v849_v3 }
 0x12d   :  { %v802_v4 = vpop.f32.mrb[28].mxu0  ;;  %v850_v5 = vpop.f32.mrb[28].mxu1 }
 0x12e   :  { %v803_v6 = vpop.f32.mrb[29].mxu0  ;;  %v851_v7 = vpop.f32.mrb[29].mxu1 }
 0x12f   :  { %v804_v8 = vadd.f32 %v803_v6, %v802_v4  ;;  %v852_v9 = vadd.f32 %v851_v7, %v850_v5  ;;  %v805_v10 = vpop.f32.mrb[30].mxu0  ;;  %v853_v11 = vpop.f32.mrb[30].mxu1 }
 0x130   :  { %v806_v12 = vpop.f32.mrb[31].mxu0  ;;  %v854_v13 = vpop.f32.mrb[31].mxu1 }
 0x131   :  { %674 = vst [vmem:[%s1193_s2 + $0x70] sm:$0xff] %v804_v8  ;;  %690 = vst [vmem:[%s1193_s2 + $0xf0] sm:$0xff] %v852_v9  ;;  %v807_v14 = vadd.f32 %v806_v12, %v805_v10  ;;  %v855_v15 = vadd.f32 %v854_v13, %v853_v11 }
 0x133   :  { %675 = vst [vmem:[%s1193_s2 + $0x78] sm:$0xff] %v807_v14  ;;  %691 = vst [vmem:[%s1193_s2 + $0xf8] sm:$0xff] %v855_v15 }

// kernel: run.45
= control target key start
LH: loop header
LB: loop body
LE: loop exit
PB: predicated region body
PF: predicated region fallthrough
CT: control target
= control target key end

     0   :  { %s1524_s12 = smov 0   ;;  %s1526_s13 = smov 0   ;;  %s1908_s0 = inlined_call_operand.vmem [shape: bf16[208,128], index: 0, kind: input, shape index: {}]   ;;  %s1909_s1 = inlined_call_operand.vmem [shape: bf16[128,1024], index: 1, kind: input, shape index: {}]   ;;  %s1910_s2 = inlined_call_operand.vmem [shape: f32[1,1024], index: 2, kind: input, shape index: {}]   ;;  %s1911_s3 = inlined_call_operand.vmem [shape: f32[208,1024], index: 3, kind: output, shape index: {}]  }
   0x1   :  { %s1528_s14 = smov 0   ;;  %s1530_s15 = smov 0  }
   0x2   :  { %s1532_s16 = smov 0  }
   0x3 LB: > { %s28_s17 = sadd.s32 1, %s1497_s15  ;;  %s1322_s18 = sadd.s32 4294967295, %s1501_s16   ;;  %s1501_s16 = sphi %s1532_s16, %s13_s16   ;;  %s1497_s15 = sphi %s1530_s15, %s1916_s15   ;;  %s1493_s14 = sphi %s1528_s14, %s1915_s14   ;;  %s1489_s13 = sphi %s1526_s13, %s1914_s13   ;;  %s1485_s12 = sphi %s1524_s12, %s1913_s12  }
   0x4   : > { %p30_p0 = scmp.ge.s32.totalorder %s28_s17, 4  ;;  %p76_p1 = scmp.ne.s32.totalorder %s1489_s13, %s1485_s12 }
   0x5   : > { %p77_p2 = scmp.eq.s32.totalorder %s1501_s16, 0  ;;  %p134_p4 = scmp.eq.s32.totalorder %s1322_s18, 3 }
   0x6   : > { %s1918_s17 = smov (%p30_p0, %s28_s17), 0  ;;  %s69_s20 = sadd.s32 1, %s1489_s13 }
   0x7   : > { %p78_p3 = por %p77_p2, %p76_p1  ;;  %s65_s19 = ssub.s32 %s1497_s15, %s1918_s17 }
   0x8   : > { %p67_p5 = scmp.eq.s32.totalorder %s65_s19, 0  ;;  %p1559_p6 = por %p134_p4, %p76_p1 }
   0x9   : > { %p1326_p7 = scmp.ge.s32.totalorder %s1501_s16, 4 }
   0xa   : > { %s1564_s22 = scalar_select %p67_p5, %s1489_s13, %s69_s20  }
   0xb   : > { %168 = sbr.rel (%p1326_p7) target bundleno = 38 (0x26), region = 20 }
  0x12   : > { %171 = sbr.rel (!%p78_p3) target bundleno = 38 (0x26), region = 24  ;;  %s173_s23 = sand.u32 (%p78_p3), 1, %s1489_s13  }
  0x13   : > { %s1366_s24 = sshll.u32 (%p78_p3), %s1497_s15, 3  ;;  %s1327_s25 = sshll.u32 (%p78_p3), %s173_s23, 7 }
  0x14   : > { %s1572_s28 = scalar_lea.vmem (%p78_p3), %s1909_s1, %s1366_s24  ;;  %s175_s29 = scalar_lea.vmem (%p78_p3), [#allocation3], %s1327_s25 }
  0x15   : > { %v239_v0 = vld [vmem:[%s1572_s28] sm:$0xff] (%p78_p3) }
  0x16   : > { %v241_v1 = vld [vmem:[%s1572_s28 + $0x20] sm:$0xff] (%p78_p3)  ;;  %240 = vst [vmem:[%s175_s29] sm:$0xff] (%p78_p3), %v239_v0 }
  0x17   : > { %v243_v2 = vld [vmem:[%s1572_s28 + $0x40] sm:$0xff] (%p78_p3)  ;;  %242 = vst [vmem:[%s175_s29 + $0x8] sm:$0xff] (%p78_p3), %v241_v1 }
  0x18   : > { %244 = vst [vmem:[%s175_s29 + $0x10] sm:$0xff] (%p78_p3), %v243_v2  ;;  %v245_v3 = vld [vmem:[%s1572_s28 + $0x60] sm:$0xff] (%p78_p3) }
  0x19   : > { %v247_v4 = vld [vmem:[%s1572_s28 + $0x80] sm:$0xff]  ;;  %246 = vst [vmem:[%s175_s29 + $0x18] sm:$0xff] %v245_v3 }
  0x1a   : > { %v249_v5 = vld [vmem:[%s1572_s28 + $0xa0] sm:$0xff]  ;;  %248 = vst [vmem:[%s175_s29 + $0x20] sm:$0xff] %v247_v4 }
  0x1b   : > { %250 = vst [vmem:[%s175_s29 + $0x28] sm:$0xff] %v249_v5  ;;  %v251_v6 = vld [vmem:[%s1572_s28 + $0xc0] sm:$0xff] }
  0x1c   : > { %v253_v7 = vld [vmem:[%s1572_s28 + $0xe0] sm:$0xff]  ;;  %252 = vst [vmem:[%s175_s29 + $0x30] sm:$0xff] %v251_v6 }
  0x1d   : > { %v255_v8 = vld [vmem:[%s1572_s28 + $0x100] sm:$0xff]  ;;  %254 = vst [vmem:[%s175_s29 + $0x38] sm:$0xff] %v253_v7 }
  0x1e   : > { %256 = vst [vmem:[%s175_s29 + $0x40] sm:$0xff] %v255_v8  ;;  %v257_v9 = vld [vmem:[%s1572_s28 + $0x120] sm:$0xff] }
  0x1f   : > { %v259_v10 = vld [vmem:[%s1572_s28 + $0x140] sm:$0xff]  ;;  %258 = vst [vmem:[%s175_s29 + $0x48] sm:$0xff] %v257_v9 }
  0x20   : > { %v261_v11 = vld [vmem:[%s1572_s28 + $0x160] sm:$0xff]  ;;  %260 = vst [vmem:[%s175_s29 + $0x50] sm:$0xff] %v259_v10 }
  0x21   : > { %262 = vst [vmem:[%s175_s29 + $0x58] sm:$0xff] %v261_v11  ;;  %v263_v12 = vld [vmem:[%s1572_s28 + $0x180] sm:$0xff] }
  0x22   : > { %v265_v13 = vld [vmem:[%s1572_s28 + $0x1a0] sm:$0xff]  ;;  %264 = vst [vmem:[%s175_s29 + $0x60] sm:$0xff] %v263_v12 }
  0x23   : > { %v267_v14 = vld [vmem:[%s1572_s28 + $0x1c0] sm:$0xff]  ;;  %266 = vst [vmem:[%s175_s29 + $0x68] sm:$0xff] %v265_v13 }
  0x24   : > { %268 = vst [vmem:[%s175_s29 + $0x70] sm:$0xff] %v267_v14  ;;  %v269_v15 = vld [vmem:[%s1572_s28 + $0x1e0] sm:$0xff] }
  0x25   : > { %270 = vst [vmem:[%s175_s29 + $0x78] sm:$0xff] %v269_v15 }
  0x26 PF: > { %p1330_p8 = scmp.ge.s32.totalorder %s1501_s16, 1  ;;  %p283_p9 = scmp.lt.s32.totalorder %s1501_s16, 5 }
  0x28   : > { %p284_p10 = pnand %p1330_p8, %p283_p9 }
  0x29   : > { %s290_s30 = sand.u32 (!%p284_p10), 1, %s1485_s12   ;;  %v1503_v16 = vmov (!%p284_p10), 0   ;;  %v1450_v33 = vld [vmem:[%s1908_s0] sm:$0xff] (!%p284_p10)   ;;  %v1451_v34 = vld [vmem:[%s1908_s0 + $0x38] sm:$0xff] (!%p284_p10)   ;;  %v1452_v35 = vld [vmem:[%s1908_s0 + $0x8] sm:$0xff] (!%p284_p10)   ;;  %s1332_s20 = sshll.u32 (!%p284_p10), %s1493_s14, 1  ;;  %v975_v46 = vlaneseq (!%p284_p10) }
  0x2a   : > { %287 = sbr.rel (%p284_p10) target bundleno = 354 (0x162), region = 66  ;;  %s1331_s4 = sshll.u32 (!%p284_p10), %s290_s30, 7  ;;  %683 = vmatprep.mubr.bf16.mxu0 (!%p284_p10), %v1503_v16  ;;  %753 = vmatprep.mubr.bf16.mxu1 (!%p284_p10), %v1503_v16  ;;  %v1453_v36 = vld [vmem:[%s1908_s0 + $0x40] sm:$0xff] (!%p284_p10)   ;;  %v1454_v37 = vld [vmem:[%s1908_s0 + $0x10] sm:$0xff] (!%p284_p10)   ;;  %v1455_v38 = vld [vmem:[%s1908_s0 + $0x48] sm:$0xff] (!%p284_p10)  }
  0x2b   : > { %s1597_s5 = scalar_lea.vmem (!%p284_p10), [#allocation3], %s1331_s4  ;;  %v1456_v39 = vld [vmem:[%s1908_s0 + $0x18] sm:$0xff] (!%p284_p10)   ;;  %v1457_v40 = vld [vmem:[%s1908_s0 + $0x50] sm:$0xff] (!%p284_p10)   ;;  %v1458_v41 = vld [vmem:[%s1908_s0 + $0x20] sm:$0xff] (!%p284_p10)   ;;  %p336_p11 = scmp.lt.s32.totalorder (!%p284_p10), %s1332_s20, 7  ;;  %v976_v47 = vshrl.u32 (!%p284_p10), %v975_v46, 7 }
  0x2c   : > { %v1426_v17 = vld [vmem:[%s1597_s5 + $0x4] ss:$8 sps:$4 sm:$0xff] (!%p284_p10)   ;;  %v1428_v18 = vld [vmem:[%s1597_s5] ss:$8 sps:$4 sm:$0xff] (!%p284_p10)   ;;  %v1429_v19 = vld [vmem:[%s1597_s5 + $0x14] ss:$8 sps:$4 sm:$0xff] (!%p284_p10)  }
  0x2d   : > { %651 = vmatprep.subr.bf16.mxu0 (!%p284_p10), %v1426_v17  ;;  %1368 = vmatprep.subr.bf16.mxu1 (!%p284_p10), %v1426_v17  ;;  %v1431_v20 = vld [vmem:[%s1597_s5 + $0x10] ss:$8 sps:$4 sm:$0xff] (!%p284_p10)   ;;  %v1432_v21 = vld [vmem:[%s1597_s5 + $0x24] ss:$8 sps:$4 sm:$0xff] (!%p284_p10)   ;;  %v1434_v22 = vld [vmem:[%s1597_s5 + $0x20] ss:$8 sps:$4 sm:$0xff] (!%p284_p10)  }
  0x2e   : > { %652 = vmatpush1.bf16.msra.mxu0 (!%p284_p10), %v1428_v18  ;;  %1376 = vmatpush1.bf16.msra.mxu1 (!%p284_p10), %v1428_v18  ;;  %v1435_v23 = vld [vmem:[%s1597_s5 + $0x34] ss:$8 sps:$4 sm:$0xff] (!%p284_p10)   ;;  %v1437_v24 = vld [vmem:[%s1597_s5 + $0x30] ss:$8 sps:$4 sm:$0xff] (!%p284_p10)   ;;  %v1438_v25 = vld [vmem:[%s1597_s5 + $0x44] ss:$8 sps:$4 sm:$0xff] (!%p284_p10)  }
  0x2f   : > { %653 = vmatprep.subr.bf16.mxu0 (!%p284_p10), %v1429_v19  ;;  %1369 = vmatprep.subr.bf16.mxu1 (!%p284_p10), %v1429_v19  ;;  %v1440_v26 = vld [vmem:[%s1597_s5 + $0x40] ss:$8 sps:$4 sm:$0xff] (!%p284_p10)   ;;  %v1441_v27 = vld [vmem:[%s1597_s5 + $0x54] ss:$8 sps:$4 sm:$0xff] (!%p284_p10)   ;;  %v1443_v28 = vld [vmem:[%s1597_s5 + $0x50] ss:$8 sps:$4 sm:$0xff] (!%p284_p10)  }
  0x30   : > { %v1444_v29 = vld [vmem:[%s1597_s5 + $0x64] ss:$8 sps:$4 sm:$0xff] (!%p284_p10)   ;;  %v1446_v30 = vld [vmem:[%s1597_s5 + $0x60] ss:$8 sps:$4 sm:$0xff] (!%p284_p10)   ;;  %v1447_v31 = vld [vmem:[%s1597_s5 + $0x74] ss:$8 sps:$4 sm:$0xff] (!%p284_p10)  }
  0x31   : > { %v1449_v32 = vld [vmem:[%s1597_s5 + $0x70] ss:$8 sps:$4 sm:$0xff]   ;;  %v1460_v43 = vld [vmem:[%s1908_s0 + $0x28] sm:$0xff]   ;;  %v1461_v44 = vld [vmem:[%s1908_s0 + $0x60] sm:$0xff]   ;;  %s1920_s20 = smov (!%p336_p11, %s1332_s20), 7  ;;  %v977_v48 = vsub.s32 0, %v976_v47 }
  0x32   : > { %654 = vmatpush1.bf16.msra.mxu0 %v1431_v20  ;;  %1377 = vmatpush1.bf16.msra.mxu1 %v1431_v20  ;;  %v1459_v42 = vld [vmem:[%s1908_s0 + $0x58] sm:$0xff]   ;;  %v1462_v45 = vld [vmem:[%s1908_s0 + $0x30] sm:$0xff]   ;;  %s338_s25 = scalar_lea.vmem %s1910_s2, %s1920_s20  ;;  %v981_v50 = vsub.s32 1, %v976_v47  ;;  %s1384_s26 = smul.u32 416, %s290_s30 }
  0x33   : > { %655 = vmatprep.subr.bf16.mxu0 %v1432_v21  ;;  %1370 = vmatprep.subr.bf16.mxu1 %v1432_v21  ;;  %v973_v49 = vld [vmem:[%s338_s25] sm:$0x3]  ;;  %s1367_s30 = sshll.u32 (%p1559_p6), %s1493_s14, 4 }
  0x34   : > { %v1671_v51 = vrot.slane %v973_v49, %v977_v48  ;;  %v1673_v52 = vrot.slane %v973_v49, %v981_v50  ;;  %s1679_s12 = scalar_lea.vmem [#allocation4], %s1384_s26  ;;  %s1790_s29 = scalar_lea.vmem (%p1559_p6), %s1911_s3, %s1367_s30 }
  0x36   : > { %656 = vmatpush1.bf16.msra.mxu0 %v1434_v22  ;;  %1378 = vmatpush1.bf16.msra.mxu1 %v1434_v22 }
  0x37   : > { %657 = vmatprep.subr.bf16.mxu0 %v1435_v23  ;;  %1371 = vmatprep.subr.bf16.mxu1 %v1435_v23 }
  0x3a   : > { %658 = vmatpush1.bf16.msra.mxu0 %v1437_v24  ;;  %1379 = vmatpush1.bf16.msra.mxu1 %v1437_v24 }
  0x3b   : > { %659 = vmatprep.subr.bf16.mxu0 %v1438_v25  ;;  %1372 = vmatprep.subr.bf16.mxu1 %v1438_v25 }
  0x3e   : > { %660 = vmatpush1.bf16.msra.mxu0 %v1440_v26  ;;  %1380 = vmatpush1.bf16.msra.mxu1 %v1440_v26 }
  0x3f   : > { %661 = vmatprep.subr.bf16.mxu0 %v1441_v27  ;;  %1373 = vmatprep.subr.bf16.mxu1 %v1441_v27 }
  0x42   : > { %662 = vmatpush1.bf16.msra.mxu0 %v1443_v28  ;;  %1381 = vmatpush1.bf16.msra.mxu1 %v1443_v28 }
  0x43   : > { %663 = vmatprep.subr.bf16.mxu0 %v1444_v29  ;;  %1374 = vmatprep.subr.bf16.mxu1 %v1444_v29 }
  0x46   : > { %664 = vmatpush1.bf16.msra.mxu0 %v1446_v30  ;;  %1382 = vmatpush1.bf16.msra.mxu1 %v1446_v30 }
  0x47   : > { %665 = vmatprep.subr.bf16.mxu0 %v1447_v31  ;;  %1375 = vmatprep.subr.bf16.mxu1 %v1447_v31 }
  0x4a   : > { %666 = vmatpush1.bf16.msra.mxu0 %v1449_v32  ;;  %1383 = vmatpush1.bf16.msra.mxu1 %v1449_v32 }
  0x4d   : > { %684 = vmatmul.mubr.bf16.vlgmr.msra.gmra.mrb[0].mxu0 %v1450_v33  ;;  %754 = vmatmul.mubr.bf16.vlgmr.msra.gmra.mrb[0].mxu1 %v1451_v34 }
  0x4e   : > { %693 = vmatprep.mubr.bf16.mxu0 %v1503_v16  ;;  %763 = vmatprep.mubr.bf16.mxu1 %v1503_v16 }
  0x55   : > { %694 = vmatmul.mubr.bf16.gmra.mrb[4].mxu0 %v1452_v35  ;;  %764 = vmatmul.mubr.bf16.gmra.mrb[4].mxu1 %v1453_v36 }
  0x56   : > { %703 = vmatprep.mubr.bf16.mxu0 %v1503_v16  ;;  %773 = vmatprep.mubr.bf16.mxu1 %v1503_v16 }
  0x5d   : > { %704 = vmatmul.mubr.bf16.gmra.mrb[8].mxu0 %v1454_v37  ;;  %774 = vmatmul.mubr.bf16.gmra.mrb[8].mxu1 %v1455_v38 }
  0x5e   : > { %713 = vmatprep.mubr.bf16.mxu0 %v1503_v16  ;;  %783 = vmatprep.mubr.bf16.mxu1 %v1503_v16 }
  0x65   : > { %714 = vmatmul.mubr.bf16.gmra.mrb[12].mxu0 %v1456_v39  ;;  %784 = vmatmul.mubr.bf16.gmra.mrb[12].mxu1 %v1457_v40 }
  0x66   : > { %723 = vmatprep.mubr.bf16.mxu0 %v1503_v16  ;;  %793 = vmatprep.mubr.bf16.mxu1 %v1503_v16 }
  0x6d   : > { %724 = vmatmul.mubr.bf16.gmra.mrb[16].mxu0 %v1458_v41  ;;  %794 = vmatmul.mubr.bf16.gmra.mrb[16].mxu1 %v1459_v42 }
  0x6e   : > { %733 = vmatprep.mubr.bf16.mxu0 %v1503_v16  ;;  %803 = vmatprep.mubr.bf16.mxu1 %v1503_v16 }
  0x75   : > { %734 = vmatmul.mubr.bf16.gmra.mrb[20].mxu0 %v1460_v43  ;;  %804 = vmatmul.mubr.bf16.gmra.mrb[20].mxu1 %v1461_v44 }
  0x76   : > { %743 = vmatprep.mubr.bf16.mxu0 %v1503_v16 }
  0x7d   : > { %744 = vmatmul.mubr.bf16.gmra.mrb[24].mxu0 %v1462_v45 }
 0x120   : > { %v685_v53 = vpop.f32.mrb[0].mxu0  ;;  %v755_v54 = vpop.f32.mrb[0].mxu1 }
 0x121   : > { %v985_v55 = vadd.f32 %v1671_v51, %v685_v53  ;;  %v687_v56 = vpop.f32.mrb[1].mxu0  ;;  %v1013_v57 = vadd.f32 %v1671_v51, %v755_v54  ;;  %v757_v58 = vpop.f32.mrb[1].mxu1 }
 0x122   : > { %v986_v59 = vadd.f32 %v1673_v52, %v687_v56  ;;  %v689_v60 = vpop.f32.mrb[2].mxu0  ;;  %v1014_v61 = vadd.f32 %v1673_v52, %v757_v58  ;;  %v759_v62 = vpop.f32.mrb[2].mxu1 }
 0x123   : > { %1037 = vst [vmem:[%s1679_s12] sm:$0xff] %v985_v55  ;;  %v987_v63 = vadd.f32 %v1671_v51, %v689_v60  ;;  %v691_v0 = vpop.f32.mrb[3].mxu0  ;;  %1065 = vst [vmem:[%s1679_s12 + $0xe0] sm:$0xff] %v1013_v57  ;;  %v1015_v1 = vadd.f32 %v1671_v51, %v759_v62  ;;  %v761_v2 = vpop.f32.mrb[3].mxu1 }
 0x124   : > { %1038 = vst [vmem:[%s1679_s12 + $0x8] sm:$0xff] %v986_v59  ;;  %v988_v3 = vadd.f32 %v1673_v52, %v691_v0  ;;  %1066 = vst [vmem:[%s1679_s12 + $0xe8] sm:$0xff] %v1014_v61  ;;  %v1016_v4 = vadd.f32 %v1673_v52, %v761_v2 }
 0x125   : > { %1039 = vst [vmem:[%s1679_s12 + $0x10] sm:$0xff] %v987_v63  ;;  %1067 = vst [vmem:[%s1679_s12 + $0xf0] sm:$0xff] %v1015_v1 }
 0x126   : > { %1040 = vst [vmem:[%s1679_s12 + $0x18] sm:$0xff] %v988_v3  ;;  %1068 = vst [vmem:[%s1679_s12 + $0xf8] sm:$0xff] %v1016_v4 }
 0x128   : > { %v695_v5 = vpop.f32.mrb[4].mxu0  ;;  %v765_v6 = vpop.f32.mrb[4].mxu1 }
 0x129   : > { %v989_v7 = vadd.f32 %v1671_v51, %v695_v5  ;;  %v697_v8 = vpop.f32.mrb[5].mxu0  ;;  %v1017_v9 = vadd.f32 %v1671_v51, %v765_v6  ;;  %v767_v10 = vpop.f32.mrb[5].mxu1 }
 0x12a   : > { %v990_v11 = vadd.f32 %v1673_v52, %v697_v8  ;;  %v699_v12 = vpop.f32.mrb[6].mxu0  ;;  %v1018_v13 = vadd.f32 %v1673_v52, %v767_v10  ;;  %v769_v14 = vpop.f32.mrb[6].mxu1 }
 0x12b   : > { %1041 = vst [vmem:[%s1679_s12 + $0x20] sm:$0xff] %v989_v7  ;;  %v991_v15 = vadd.f32 %v1671_v51, %v699_v12  ;;  %v701_v16 = vpop.f32.mrb[7].mxu0  ;;  %1069 = vst [vmem:[%s1679_s12 + $0x100] sm:$0xff] %v1017_v9  ;;  %v1019_v17 = vadd.f32 %v1671_v51, %v769_v14  ;;  %v771_v18 = vpop.f32.mrb[7].mxu1 }
 0x12c   : > { %1042 = vst [vmem:[%s1679_s12 + $0x28] sm:$0xff] %v990_v11  ;;  %v992_v19 = vadd.f32 %v1673_v52, %v701_v16  ;;  %1070 = vst [vmem:[%s1679_s12 + $0x108] sm:$0xff] %v1018_v13  ;;  %v1020_v20 = vadd.f32 %v1673_v52, %v771_v18 }
 0x12d   : > { %1043 = vst [vmem:[%s1679_s12 + $0x30] sm:$0xff] %v991_v15  ;;  %1071 = vst [vmem:[%s1679_s12 + $0x110] sm:$0xff] %v1019_v17 }
 0x12e   : > { %1044 = vst [vmem:[%s1679_s12 + $0x38] sm:$0xff] %v992_v19  ;;  %1072 = vst [vmem:[%s1679_s12 + $0x118] sm:$0xff] %v1020_v20 }
 0x130   : > { %v705_v21 = vpop.f32.mrb[8].mxu0  ;;  %v775_v22 = vpop.f32.mrb[8].mxu1 }
 0x131   : > { %v993_v23 = vadd.f32 %v1671_v51, %v705_v21  ;;  %v707_v24 = vpop.f32.mrb[9].mxu0  ;;  %v1021_v25 = vadd.f32 %v1671_v51, %v775_v22  ;;  %v777_v26 = vpop.f32.mrb[9].mxu1 }
 0x132   : > { %v994_v27 = vadd.f32 %v1673_v52, %v707_v24  ;;  %v709_v28 = vpop.f32.mrb[10].mxu0  ;;  %v1022_v29 = vadd.f32 %v1673_v52, %v777_v26  ;;  %v779_v30 = vpop.f32.mrb[10].mxu1 }
 0x133   : > { %1045 = vst [vmem:[%s1679_s12 + $0x40] sm:$0xff] %v993_v23  ;;  %v995_v31 = vadd.f32 %v1671_v51, %v709_v28  ;;  %v711_v32 = vpop.f32.mrb[11].mxu0  ;;  %1073 = vst [vmem:[%s1679_s12 + $0x120] sm:$0xff] %v1021_v25  ;;  %v1023_v33 = vadd.f32 %v1671_v51, %v779_v30  ;;  %v781_v34 = vpop.f32.mrb[11].mxu1 }
 0x134   : > { %1046 = vst [vmem:[%s1679_s12 + $0x48] sm:$0xff] %v994_v27  ;;  %v996_v35 = vadd.f32 %v1673_v52, %v711_v32  ;;  %1074 = vst [vmem:[%s1679_s12 + $0x128] sm:$0xff] %v1022_v29  ;;  %v1024_v36 = vadd.f32 %v1673_v52, %v781_v34  ;;  %v1118_v32 = vld [vmem:[%s1679_s12 + $0x10] sm:$0xff] (%p1559_p6)  ;;  %v1124_v34 = vld [vmem:[%s1679_s12 + $0x28] sm:$0xff] (%p1559_p6) }
 0x135   : > { %1047 = vst [vmem:[%s1679_s12 + $0x50] sm:$0xff] %v995_v31  ;;  %1075 = vst [vmem:[%s1679_s12 + $0x130] sm:$0xff] %v1023_v33  ;;  %v1116_v31 = vld [vmem:[%s1679_s12 + $0x8] sm:$0xff] (%p1559_p6)  ;;  %v1122_v33 = vld [vmem:[%s1679_s12 + $0x20] sm:$0xff] (%p1559_p6) }
 0x136   : > { %1048 = vst [vmem:[%s1679_s12 + $0x58] sm:$0xff] %v996_v35  ;;  %1076 = vst [vmem:[%s1679_s12 + $0x138] sm:$0xff] %v1024_v36  ;;  %v1126_v35 = vld [vmem:[%s1679_s12 + $0x30] sm:$0xff] (%p1559_p6)  ;;  %v1128_v36 = vld [vmem:[%s1679_s12 + $0x38] sm:$0xff] (%p1559_p6) }
 0x137   : > { %1117 = vst [vmem:[%s1790_s29 + $0x8] sm:$0xff] (%p1559_p6), %v1116_v31  ;;  %1119 = vst [vmem:[%s1790_s29 + $0x40] sm:$0xff] (%p1559_p6), %v1118_v32 }
 0x138   : > { %v715_v37 = vpop.f32.mrb[12].mxu0  ;;  %v785_v38 = vpop.f32.mrb[12].mxu1  ;;  %1123 = vst [vmem:[%s1790_s29 + $0x80] sm:$0xff] (%p1559_p6), %v1122_v33  ;;  %1125 = vst [vmem:[%s1790_s29 + $0x88] sm:$0xff] (%p1559_p6), %v1124_v34 }
 0x139   : > { %v997_v39 = vadd.f32 %v1671_v51, %v715_v37  ;;  %v717_v40 = vpop.f32.mrb[13].mxu0  ;;  %v1025_v41 = vadd.f32 %v1671_v51, %v785_v38  ;;  %v787_v42 = vpop.f32.mrb[13].mxu1  ;;  %1127 = vst [vmem:[%s1790_s29 + $0xc0] sm:$0xff] (%p1559_p6), %v1126_v35  ;;  %1129 = vst [vmem:[%s1790_s29 + $0xc8] sm:$0xff] (%p1559_p6), %v1128_v36 }
 0x13a   : > { %v998_v43 = vadd.f32 %v1673_v52, %v717_v40  ;;  %v719_v44 = vpop.f32.mrb[14].mxu0  ;;  %v1026_v45 = vadd.f32 %v1673_v52, %v787_v42  ;;  %v789_v46 = vpop.f32.mrb[14].mxu1  ;;  %v1130_v37 = vld [vmem:[%s1679_s12 + $0x40] sm:$0xff] (%p1559_p6) }
 0x13b   : > { %1049 = vst [vmem:[%s1679_s12 + $0x60] sm:$0xff] %v997_v39  ;;  %v999_v47 = vadd.f32 %v1671_v51, %v719_v44  ;;  %v721_v48 = vpop.f32.mrb[15].mxu0  ;;  %1077 = vst [vmem:[%s1679_s12 + $0x140] sm:$0xff] %v1025_v41  ;;  %v1027_v49 = vadd.f32 %v1671_v51, %v789_v46  ;;  %v791_v50 = vpop.f32.mrb[15].mxu1  ;;  %v1132_v38 = vld [vmem:[%s1679_s12 + $0x48] sm:$0xff] (%p1559_p6) }
 0x13c   : > { %1050 = vst [vmem:[%s1679_s12 + $0x68] sm:$0xff] %v998_v43  ;;  %v1000_v53 = vadd.f32 %v1673_v52, %v721_v48  ;;  %1078 = vst [vmem:[%s1679_s12 + $0x148] sm:$0xff] %v1026_v45  ;;  %v1028_v54 = vadd.f32 %v1673_v52, %v791_v50  ;;  %v1134_v39 = vld [vmem:[%s1679_s12 + $0x50] sm:$0xff] (%p1559_p6) }
 0x13d   : > { %1051 = vst [vmem:[%s1679_s12 + $0x70] sm:$0xff] %v999_v47  ;;  %1079 = vst [vmem:[%s1679_s12 + $0x150] sm:$0xff] %v1027_v49  ;;  %v1136_v40 = vld [vmem:[%s1679_s12 + $0x58] sm:$0xff] (%p1559_p6) }
 0x13e   : > { %1052 = vst [vmem:[%s1679_s12 + $0x78] sm:$0xff] %v1000_v53  ;;  %1080 = vst [vmem:[%s1679_s12 + $0x158] sm:$0xff] %v1028_v54 }
 0x13f   : > { %1131 = vst [vmem:[%s1790_s29 + $0x100] sm:$0xff] (%p1559_p6), %v1130_v37  ;;  %1133 = vst [vmem:[%s1790_s29 + $0x108] sm:$0xff] (%p1559_p6), %v1132_v38 }
 0x140   : > { %v725_v55 = vpop.f32.mrb[16].mxu0  ;;  %v795_v56 = vpop.f32.mrb[16].mxu1  ;;  %1135 = vst [vmem:[%s1790_s29 + $0x140] sm:$0xff] (%p1559_p6), %v1134_v39  ;;  %1137 = vst [vmem:[%s1790_s29 + $0x148] sm:$0xff] (%p1559_p6), %v1136_v40 }
 0x141   : > { %v1001_v57 = vadd.f32 %v1671_v51, %v725_v55  ;;  %v727_v58 = vpop.f32.mrb[17].mxu0  ;;  %v1029_v59 = vadd.f32 %v1671_v51, %v795_v56  ;;  %v797_v60 = vpop.f32.mrb[17].mxu1 }
 0x142   : > { %v1002_v61 = vadd.f32 %v1673_v52, %v727_v58  ;;  %v729_v62 = vpop.f32.mrb[18].mxu0  ;;  %v1030_v63 = vadd.f32 %v1673_v52, %v797_v60  ;;  %v799_v0 = vpop.f32.mrb[18].mxu1  ;;  %v1138_v41 = vld [vmem:[%s1679_s12 + $0x60] sm:$0xff] (%p1559_p6)  ;;  %v1172_v60 = vld [vmem:[%s1679_s12 + $0xe8] sm:$0xff] (%p1559_p6) }
 0x143   : > { %1053 = vst [vmem:[%s1679_s12 + $0x80] sm:$0xff] %v1001_v57  ;;  %v1003_v1 = vadd.f32 %v1671_v51, %v729_v62  ;;  %v731_v2 = vpop.f32.mrb[19].mxu0  ;;  %1081 = vst [vmem:[%s1679_s12 + $0x160] sm:$0xff] %v1029_v59  ;;  %v1031_v3 = vadd.f32 %v1671_v51, %v799_v0  ;;  %v801_v4 = vpop.f32.mrb[19].mxu1  ;;  %v1140_v42 = vld [vmem:[%s1679_s12 + $0x68] sm:$0xff] (%p1559_p6)  ;;  %v1170_v59 = vld [vmem:[%s1679_s12 + $0xe0] sm:$0xff] (%p1559_p6) }
 0x144   : > { %1054 = vst [vmem:[%s1679_s12 + $0x88] sm:$0xff] %v1002_v61  ;;  %v1004_v5 = vadd.f32 %v1673_v52, %v731_v2  ;;  %1082 = vst [vmem:[%s1679_s12 + $0x168] sm:$0xff] %v1030_v63  ;;  %v1032_v6 = vadd.f32 %v1673_v52, %v801_v4  ;;  %v1142_v43 = vld [vmem:[%s1679_s12 + $0x70] sm:$0xff] (%p1559_p6)  ;;  %v1176_v62 = vld [vmem:[%s1679_s12 + $0xf8] sm:$0xff] (%p1559_p6) }
 0x145   : > { %1055 = vst [vmem:[%s1679_s12 + $0x90] sm:$0xff] %v1003_v1  ;;  %1083 = vst [vmem:[%s1679_s12 + $0x170] sm:$0xff] %v1031_v3  ;;  %v1144_v44 = vld [vmem:[%s1679_s12 + $0x78] sm:$0xff] (%p1559_p6)  ;;  %v1174_v61 = vld [vmem:[%s1679_s12 + $0xf0] sm:$0xff] (%p1559_p6) }
 0x146   : > { %1056 = vst [vmem:[%s1679_s12 + $0x98] sm:$0xff] %v1004_v5  ;;  %1084 = vst [vmem:[%s1679_s12 + $0x178] sm:$0xff] %v1032_v6  ;;  %v1178_v63 = vld [vmem:[%s1679_s12 + $0x100] sm:$0xff] (%p1559_p6)  ;;  %v1180_v0 = vld [vmem:[%s1679_s12 + $0x108] sm:$0xff] (%p1559_p6) }
 0x147   : > { %1139 = vst [vmem:[%s1790_s29 + $0x180] sm:$0xff] (%p1559_p6), %v1138_v41  ;;  %1141 = vst [vmem:[%s1790_s29 + $0x188] sm:$0xff] (%p1559_p6), %v1140_v42  ;;  %v1182_v1 = vld [vmem:[%s1679_s12 + $0x110] sm:$0xff] (%p1559_p6)  ;;  %v1184_v2 = vld [vmem:[%s1679_s12 + $0x118] sm:$0xff] (%p1559_p6) }
 0x148   : > { %v735_v7 = vpop.f32.mrb[20].mxu0  ;;  %v805_v8 = vpop.f32.mrb[20].mxu1  ;;  %1143 = vst [vmem:[%s1790_s29 + $0x1c0] sm:$0xff] (%p1559_p6), %v1142_v43  ;;  %1145 = vst [vmem:[%s1790_s29 + $0x1c8] sm:$0xff] (%p1559_p6), %v1144_v44  ;;  %v1186_v3 = vld [vmem:[%s1679_s12 + $0x120] sm:$0xff] (%p1559_p6)  ;;  %v1188_v4 = vld [vmem:[%s1679_s12 + $0x128] sm:$0xff] (%p1559_p6) }
 0x149   : > { %v1005_v9 = vadd.f32 %v1671_v51, %v735_v7  ;;  %v737_v10 = vpop.f32.mrb[21].mxu0  ;;  %v1033_v11 = vadd.f32 %v1671_v51, %v805_v8  ;;  %v807_v12 = vpop.f32.mrb[21].mxu1  ;;  %1171 = vst [vmem:[%s1790_s29 + $0x380] sm:$0xff] (%p1559_p6), %v1170_v59  ;;  %1173 = vst [vmem:[%s1790_s29 + $0x388] sm:$0xff] (%p1559_p6), %v1172_v60  ;;  %v1190_v5 = vld [vmem:[%s1679_s12 + $0x130] sm:$0xff] (%p1559_p6)  ;;  %v1192_v6 = vld [vmem:[%s1679_s12 + $0x138] sm:$0xff] (%p1559_p6) }
 0x14a   : > { %v1006_v13 = vadd.f32 %v1673_v52, %v737_v10  ;;  %v739_v14 = vpop.f32.mrb[22].mxu0  ;;  %v1034_v15 = vadd.f32 %v1673_v52, %v807_v12  ;;  %v809_v16 = vpop.f32.mrb[22].mxu1  ;;  %v1146_v45 = vld [vmem:[%s1679_s12 + $0x80] sm:$0xff] (%p1559_p6)  ;;  %1175 = vst [vmem:[%s1790_s29 + $0x3c0] sm:$0xff] (%p1559_p6), %v1174_v61  ;;  %1177 = vst [vmem:[%s1790_s29 + $0x3c8] sm:$0xff] (%p1559_p6), %v1176_v62  ;;  %v1196_v8 = vld [vmem:[%s1679_s12 + $0x148] sm:$0xff] (%p1559_p6) }
 0x14b   : > { %1057 = vst [vmem:[%s1679_s12 + $0xa0] sm:$0xff] %v1005_v9  ;;  %v1007_v17 = vadd.f32 %v1671_v51, %v739_v14  ;;  %v741_v18 = vpop.f32.mrb[23].mxu0  ;;  %1085 = vst [vmem:[%s1679_s12 + $0x180] sm:$0xff] %v1033_v11  ;;  %v1035_v19 = vadd.f32 %v1671_v51, %v809_v16  ;;  %v811_v20 = vpop.f32.mrb[23].mxu1  ;;  %v1148_v46 = vld [vmem:[%s1679_s12 + $0x88] sm:$0xff] (%p1559_p6)  ;;  %v1194_v7 = vld [vmem:[%s1679_s12 + $0x140] sm:$0xff] (%p1559_p6) }
 0x14c   : > { %1058 = vst [vmem:[%s1679_s12 + $0xa8] sm:$0xff] %v1006_v13  ;;  %v1008_v21 = vadd.f32 %v1673_v52, %v741_v18  ;;  %1086 = vst [vmem:[%s1679_s12 + $0x188] sm:$0xff] %v1034_v15  ;;  %v1036_v22 = vadd.f32 %v1673_v52, %v811_v20  ;;  %v1150_v47 = vld [vmem:[%s1679_s12 + $0x90] sm:$0xff] (%p1559_p6)  ;;  %v1200_v10 = vld [vmem:[%s1679_s12 + $0x158] sm:$0xff] (%p1559_p6) }
 0x14d   : > { %1059 = vst [vmem:[%s1679_s12 + $0xb0] sm:$0xff] %v1007_v17  ;;  %1087 = vst [vmem:[%s1679_s12 + $0x190] sm:$0xff] %v1035_v19  ;;  %v1152_v48 = vld [vmem:[%s1679_s12 + $0x98] sm:$0xff] (%p1559_p6)  ;;  %v1198_v9 = vld [vmem:[%s1679_s12 + $0x150] sm:$0xff] (%p1559_p6) }
 0x14e   : > { %1060 = vst [vmem:[%s1679_s12 + $0xb8] sm:$0xff] %v1008_v21  ;;  %1088 = vst [vmem:[%s1679_s12 + $0x198] sm:$0xff] %v1036_v22  ;;  %v1202_v11 = vld [vmem:[%s1679_s12 + $0x160] sm:$0xff] (%p1559_p6)  ;;  %v1204_v12 = vld [vmem:[%s1679_s12 + $0x168] sm:$0xff] (%p1559_p6) }
 0x14f   : > { %1147 = vst [vmem:[%s1790_s29 + $0x200] sm:$0xff] (%p1559_p6), %v1146_v45  ;;  %1149 = vst [vmem:[%s1790_s29 + $0x208] sm:$0xff] (%p1559_p6), %v1148_v46  ;;  %v1206_v13 = vld [vmem:[%s1679_s12 + $0x170] sm:$0xff] (%p1559_p6)  ;;  %v1208_v14 = vld [vmem:[%s1679_s12 + $0x178] sm:$0xff] (%p1559_p6) }
 0x150   : > { %v745_v23 = vpop.f32.mrb[24].mxu0  ;;  %1095 = sbr.rel (!%p1559_p6) target bundleno = 354 (0x162), region = 82  ;;  %1151 = vst [vmem:[%s1790_s29 + $0x240] sm:$0xff] (%p1559_p6), %v1150_v47  ;;  %1153 = vst [vmem:[%s1790_s29 + $0x248] sm:$0xff] (%p1559_p6), %v1152_v48 }
 0x151   : > { %v1009_v24 = vadd.f32 %v1671_v51, %v745_v23  ;;  %v747_v25 = vpop.f32.mrb[25].mxu0  ;;  %1179 = vst [vmem:[%s1790_s29 + $0x400] sm:$0xff] (%p1559_p6), %v1178_v63  ;;  %1181 = vst [vmem:[%s1790_s29 + $0x408] sm:$0xff] (%p1559_p6), %v1180_v0 }
 0x152   : > { %v1010_v26 = vadd.f32 %v1673_v52, %v747_v25  ;;  %v749_v27 = vpop.f32.mrb[26].mxu0  ;;  %v1154_v49 = vld [vmem:[%s1679_s12 + $0xa0] sm:$0xff] (%p1559_p6)  ;;  %1183 = vst [vmem:[%s1790_s29 + $0x440] sm:$0xff] (%p1559_p6), %v1182_v1  ;;  %1185 = vst [vmem:[%s1790_s29 + $0x448] sm:$0xff] (%p1559_p6), %v1184_v2 }
 0x153   : > { %1061 = vst [vmem:[%s1679_s12 + $0xc0] sm:$0xff] %v1009_v24  ;;  %v1011_v28 = vadd.f32 %v1671_v51, %v749_v27  ;;  %v751_v29 = vpop.f32.mrb[27].mxu0  ;;  %v1114_v51 = vld [vmem:[%s1679_s12] sm:$0xff] (%p1559_p6)  ;;  %1155 = vst [vmem:[%s1790_s29 + $0x280] sm:$0xff] (%p1559_p6), %v1154_v49  ;;  %v1156_v50 = vld [vmem:[%s1679_s12 + $0xa8] sm:$0xff] (%p1559_p6) }
 0x154   : > { %1062 = vst [vmem:[%s1679_s12 + $0xc8] sm:$0xff] %v1010_v26  ;;  %v1012_v30 = vadd.f32 %v1673_v52, %v751_v29  ;;  %v1120_v52 = vld [vmem:[%s1679_s12 + $0x18] sm:$0xff] (%p1559_p6)  ;;  %1115 = vst [vmem:[%s1790_s29] sm:$0xff] (%p1559_p6), %v1114_v51  ;;  %v1158_v53 = vld [vmem:[%s1679_s12 + $0xb0] sm:$0xff] (%p1559_p6) }
 0x155   : > { %1063 = vst [vmem:[%s1679_s12 + $0xd0] sm:$0xff] %v1011_v28  ;;  %1121 = vst [vmem:[%s1790_s29 + $0x48] sm:$0xff] (%p1559_p6), %v1120_v52  ;;  %v1160_v54 = vld [vmem:[%s1679_s12 + $0xb8] sm:$0xff] (%p1559_p6)  ;;  %v1210_v15 = vld [vmem:[%s1679_s12 + $0x180] sm:$0xff] (%p1559_p6) }
 0x156   : > { %1064 = vst [vmem:[%s1679_s12 + $0xd8] sm:$0xff] %v1012_v30  ;;  %1157 = vst [vmem:[%s1790_s29 + $0x288] sm:$0xff] (%p1559_p6), %v1156_v50  ;;  %v1212_v16 = vld [vmem:[%s1679_s12 + $0x188] sm:$0xff] (%p1559_p6)  ;;  %v1214_v17 = vld [vmem:[%s1679_s12 + $0x190] sm:$0xff] (%p1559_p6) }
 0x157   : > { %1159 = vst [vmem:[%s1790_s29 + $0x2c0] sm:$0xff] %v1158_v53  ;;  %1161 = vst [vmem:[%s1790_s29 + $0x2c8] sm:$0xff] %v1160_v54  ;;  %v1216_v18 = vld [vmem:[%s1679_s12 + $0x198] sm:$0xff] }
 0x158   : > { %1187 = vst [vmem:[%s1790_s29 + $0x480] sm:$0xff] %v1186_v3  ;;  %1189 = vst [vmem:[%s1790_s29 + $0x488] sm:$0xff] %v1188_v4 }
 0x159   : > { %1191 = vst [vmem:[%s1790_s29 + $0x4c0] sm:$0xff] %v1190_v5  ;;  %1193 = vst [vmem:[%s1790_s29 + $0x4c8] sm:$0xff] %v1192_v6 }
 0x15a   : > { %v1162_v55 = vld [vmem:[%s1679_s12 + $0xc0] sm:$0xff]  ;;  %1195 = vst [vmem:[%s1790_s29 + $0x500] sm:$0xff] %v1194_v7  ;;  %1197 = vst [vmem:[%s1790_s29 + $0x508] sm:$0xff] %v1196_v8 }
 0x15b   : > { %v1164_v56 = vld [vmem:[%s1679_s12 + $0xc8] sm:$0xff]  ;;  %1163 = vst [vmem:[%s1790_s29 + $0x300] sm:$0xff] %v1162_v55  ;;  %1199 = vst [vmem:[%s1790_s29 + $0x540] sm:$0xff] %v1198_v9 }
 0x15c   : > { %v1166_v57 = vld [vmem:[%s1679_s12 + $0xd0] sm:$0xff]  ;;  %1165 = vst [vmem:[%s1790_s29 + $0x308] sm:$0xff] %v1164_v56  ;;  %1201 = vst [vmem:[%s1790_s29 + $0x548] sm:$0xff] %v1200_v10 }
 0x15d   : > { %1167 = vst [vmem:[%s1790_s29 + $0x340] sm:$0xff] %v1166_v57  ;;  %v1168_v58 = vld [vmem:[%s1679_s12 + $0xd8] sm:$0xff]  ;;  %1203 = vst [vmem:[%s1790_s29 + $0x580] sm:$0xff] %v1202_v11 }
 0x15e   : > { %1169 = vst [vmem:[%s1790_s29 + $0x348] sm:$0xff] %v1168_v58  ;;  %1205 = vst [vmem:[%s1790_s29 + $0x588] sm:$0xff] %v1204_v12 }
 0x15f   : > { %1207 = vst [vmem:[%s1790_s29 + $0x5c0] sm:$0xff] %v1206_v13  ;;  %1209 = vst [vmem:[%s1790_s29 + $0x5c8] sm:$0xff] %v1208_v14 }
 0x160   : > { %1211 = vst [vmem:[%s1790_s29 + $0x600] sm:$0xff] %v1210_v15  ;;  %1213 = vst [vmem:[%s1790_s29 + $0x608] sm:$0xff] %v1212_v16 }
 0x161   : > { %1215 = vst [vmem:[%s1790_s29 + $0x640] sm:$0xff] %v1214_v17  ;;  %1217 = vst [vmem:[%s1790_s29 + $0x648] sm:$0xff] %v1216_v18 }
 0x162 PF: > { %s13_s16 = sadd.s32 1, %s1501_s16   ;;  %s1913_s12 = smov %s1489_s13 }
 0x163   : > { %p10_p12 = scmp.ge.s32.totalorder %s13_s16, 6   ;;  %s1914_s13 = smov %s1564_s22 }
 0x164   : > { %s1915_s14 = smov %s1497_s15  ;;  %s1916_s15 = smov %s1918_s17 }
 0x165   :  { %12 = sbr.rel (!%p10_p12) target bundleno = 3 (0x3), region = 142 }

// kernel: run.47
= control target key start
LH: loop header
LB: loop body
LE: loop exit
PB: predicated region body
PF: predicated region fallthrough
CT: control target
= control target key end

     0   :  { %s1026_s1 = inlined_call_operand.vmem [shape: bf16[256,128], index: 1, kind: input, shape index: {}]   ;;  %s1027_s0 = inlined_call_operand.vmem [shape: bf16[208,256], index: 0, kind: input, shape index: {}]   ;;  %s1028_s2 = inlined_call_operand.vmem [shape: f32[208,128], index: 2, kind: output, shape index: {}]  }
   0x1   :  { %v752_v0 = vld [vmem:[%s1026_s1 + $0x40] sm:$0xff]   ;;  %v754_v2 = vld [vmem:[%s1026_s1 + $0x48] sm:$0xff]   ;;  %v756_v4 = vld [vmem:[%s1026_s1 + $0x50] sm:$0xff]  }
   0x2   :  { %v753_v1 = vld [vmem:[%s1026_s1] sm:$0xff]   ;;  %642 = vmatprep.subr.bf16.mxu0 %v752_v0  ;;  %736 = vmatprep.subr.bf16.mxu1 %v752_v0  ;;  %v755_v3 = vld [vmem:[%s1026_s1 + $0x8] sm:$0xff]   ;;  %v757_v5 = vld [vmem:[%s1026_s1 + $0x10] sm:$0xff]  }
   0x3   :  { %643 = vmatpush3.bf16.msra.mxu0 %v753_v1  ;;  %744 = vmatpush3.bf16.msra.mxu1 %v753_v1  ;;  %v758_v6 = vld [vmem:[%s1026_s1 + $0x58] sm:$0xff]   ;;  %v760_v8 = vld [vmem:[%s1026_s1 + $0x60] sm:$0xff]   ;;  %v762_v10 = vld [vmem:[%s1026_s1 + $0x68] sm:$0xff]  }
   0x4   :  { %644 = vmatprep.subr.bf16.mxu0 %v754_v2  ;;  %737 = vmatprep.subr.bf16.mxu1 %v754_v2  ;;  %v759_v7 = vld [vmem:[%s1026_s1 + $0x18] sm:$0xff]   ;;  %v761_v9 = vld [vmem:[%s1026_s1 + $0x20] sm:$0xff]   ;;  %v763_v13 = vld [vmem:[%s1026_s1 + $0x28] sm:$0xff]  }
   0x5   :  { %v770_v11 = vld [vmem:[%s1027_s0 + $0x4] ss:$8 sps:$4 sm:$0xff]   ;;  %v773_v12 = vld [vmem:[%s1027_s0 + $0x74] ss:$8 sps:$4 sm:$0xff]   ;;  %v768_v18 = vld [vmem:[%s1027_s0] ss:$8 sps:$4 sm:$0xff]  }
   0x6   :  { %v764_v14 = vld [vmem:[%s1026_s1 + $0x70] sm:$0xff]   ;;  %384 = vmatprep.mubr.bf16.mxu0 %v770_v11  ;;  %440 = vmatprep.mubr.bf16.mxu1 %v773_v12  ;;  %v766_v16 = vld [vmem:[%s1026_s1 + $0x78] sm:$0xff]   ;;  %v777_v21 = vld [vmem:[%s1027_s0 + $0x84] ss:$8 sps:$4 sm:$0xff]  }
   0x7   :  { %645 = vmatpush3.bf16.msra.mxu0 %v755_v3  ;;  %745 = vmatpush3.bf16.msra.mxu1 %v755_v3  ;;  %v765_v15 = vld [vmem:[%s1026_s1 + $0x30] sm:$0xff]   ;;  %v767_v17 = vld [vmem:[%s1026_s1 + $0x38] sm:$0xff]   ;;  %v779_v23 = vld [vmem:[%s1027_s0 + $0x80] ss:$8 sps:$4 sm:$0xff]  }
   0x8   :  { %646 = vmatprep.subr.bf16.mxu0 %v756_v4  ;;  %738 = vmatprep.subr.bf16.mxu1 %v756_v4  ;;  %v771_v19 = vld [vmem:[%s1027_s0 + $0x70] ss:$8 sps:$4 sm:$0xff]   ;;  %v774_v20 = vld [vmem:[%s1027_s0 + $0x14] ss:$8 sps:$4 sm:$0xff]   ;;  %v780_v24 = vld [vmem:[%s1027_s0 + $0x24] ss:$8 sps:$4 sm:$0xff]  }
   0x9   :  { %v776_v22 = vld [vmem:[%s1027_s0 + $0x10] ss:$8 sps:$4 sm:$0xff]   ;;  %v783_v25 = vld [vmem:[%s1027_s0 + $0x94] ss:$8 sps:$4 sm:$0xff]   ;;  %v782_v26 = vld [vmem:[%s1027_s0 + $0x20] ss:$8 sps:$4 sm:$0xff]  }
   0xa   :  { %v785_v27 = vld [vmem:[%s1027_s0 + $0x90] ss:$8 sps:$4 sm:$0xff]   ;;  %v786_v28 = vld [vmem:[%s1027_s0 + $0x34] ss:$8 sps:$4 sm:$0xff]   ;;  %v789_v29 = vld [vmem:[%s1027_s0 + $0xa4] ss:$8 sps:$4 sm:$0xff]  }
   0xb   :  { %647 = vmatpush3.bf16.msra.mxu0 %v757_v5  ;;  %746 = vmatpush3.bf16.msra.mxu1 %v757_v5  ;;  %v788_v30 = vld [vmem:[%s1027_s0 + $0x30] ss:$8 sps:$4 sm:$0xff]   ;;  %v791_v31 = vld [vmem:[%s1027_s0 + $0xa0] ss:$8 sps:$4 sm:$0xff]   ;;  %v792_v32 = vld [vmem:[%s1027_s0 + $0x44] ss:$8 sps:$4 sm:$0xff]  }
   0xc   :  { %648 = vmatprep.subr.bf16.mxu0 %v758_v6  ;;  %739 = vmatprep.subr.bf16.mxu1 %v758_v6  ;;  %v795_v33 = vld [vmem:[%s1027_s0 + $0xb4] ss:$8 sps:$4 sm:$0xff]   ;;  %v794_v34 = vld [vmem:[%s1027_s0 + $0x40] ss:$8 sps:$4 sm:$0xff]   ;;  %v797_v35 = vld [vmem:[%s1027_s0 + $0xb0] ss:$8 sps:$4 sm:$0xff]  }
   0xd   :  { %v798_v36 = vld [vmem:[%s1027_s0 + $0x54] ss:$8 sps:$4 sm:$0xff]   ;;  %v801_v37 = vld [vmem:[%s1027_s0 + $0xc4] ss:$8 sps:$4 sm:$0xff]   ;;  %v800_v38 = vld [vmem:[%s1027_s0 + $0x50] ss:$8 sps:$4 sm:$0xff]  }
   0xe   :  { %v803_v39 = vld [vmem:[%s1027_s0 + $0xc0] ss:$8 sps:$4 sm:$0xff]   ;;  %v804_v40 = vld [vmem:[%s1027_s0 + $0x64] ss:$8 sps:$4 sm:$0xff]  }
   0xf   :  { %649 = vmatpush3.bf16.msra.mxu0 %v759_v7  ;;  %747 = vmatpush3.bf16.msra.mxu1 %v759_v7  ;;  %v806_v41 = vld [vmem:[%s1027_s0 + $0x60] ss:$8 sps:$4 sm:$0xff]  }
  0x10   :  { %650 = vmatprep.subr.bf16.mxu0 %v760_v8  ;;  %740 = vmatprep.subr.bf16.mxu1 %v760_v8 }
  0x13   :  { %651 = vmatpush3.bf16.msra.mxu0 %v761_v9  ;;  %748 = vmatpush3.bf16.msra.mxu1 %v761_v9 }
  0x14   :  { %652 = vmatprep.subr.bf16.mxu0 %v762_v10  ;;  %741 = vmatprep.subr.bf16.mxu1 %v762_v10 }
  0x17   :  { %653 = vmatpush3.bf16.msra.mxu0 %v763_v13  ;;  %749 = vmatpush3.bf16.msra.mxu1 %v763_v13 }
  0x18   :  { %654 = vmatprep.subr.bf16.mxu0 %v764_v14  ;;  %742 = vmatprep.subr.bf16.mxu1 %v764_v14 }
  0x1b   :  { %655 = vmatpush3.bf16.msra.mxu0 %v765_v15  ;;  %750 = vmatpush3.bf16.msra.mxu1 %v765_v15 }
  0x1c   :  { %656 = vmatprep.subr.bf16.mxu0 %v766_v16  ;;  %743 = vmatprep.subr.bf16.mxu1 %v766_v16 }
  0x1f   :  { %657 = vmatpush3.bf16.msra.mxu0 %v767_v17  ;;  %751 = vmatpush3.bf16.msra.mxu1 %v767_v17 }
  0x22   :  { %385 = vmatmul.mubr.bf16.vlgmr.msra.gmra.mrb[0].mxu0 %v768_v18  ;;  %441 = vmatmul.mubr.bf16.vlgmr.msra.gmra.mrb[0].mxu1 %v771_v19 }
  0x23   :  { %392 = vmatprep.mubr.bf16.mxu0 %v774_v20  ;;  %448 = vmatprep.mubr.bf16.mxu1 %v777_v21 }
  0x2a   :  { %393 = vmatmul.mubr.bf16.gmra.mrb[4].mxu0 %v776_v22  ;;  %449 = vmatmul.mubr.bf16.gmra.mrb[4].mxu1 %v779_v23 }
  0x2b   :  { %400 = vmatprep.mubr.bf16.mxu0 %v780_v24  ;;  %456 = vmatprep.mubr.bf16.mxu1 %v783_v25 }
  0x32   :  { %401 = vmatmul.mubr.bf16.gmra.mrb[8].mxu0 %v782_v26  ;;  %457 = vmatmul.mubr.bf16.gmra.mrb[8].mxu1 %v785_v27 }
  0x33   :  { %408 = vmatprep.mubr.bf16.mxu0 %v786_v28  ;;  %464 = vmatprep.mubr.bf16.mxu1 %v789_v29 }
  0x3a   :  { %409 = vmatmul.mubr.bf16.gmra.mrb[12].mxu0 %v788_v30  ;;  %465 = vmatmul.mubr.bf16.gmra.mrb[12].mxu1 %v791_v31 }
  0x3b   :  { %416 = vmatprep.mubr.bf16.mxu0 %v792_v32  ;;  %472 = vmatprep.mubr.bf16.mxu1 %v795_v33 }
  0x42   :  { %417 = vmatmul.mubr.bf16.gmra.mrb[16].mxu0 %v794_v34  ;;  %473 = vmatmul.mubr.bf16.gmra.mrb[16].mxu1 %v797_v35 }
  0x43   :  { %424 = vmatprep.mubr.bf16.mxu0 %v798_v36  ;;  %480 = vmatprep.mubr.bf16.mxu1 %v801_v37 }
  0x4a   :  { %425 = vmatmul.mubr.bf16.gmra.mrb[20].mxu0 %v800_v38  ;;  %481 = vmatmul.mubr.bf16.gmra.mrb[20].mxu1 %v803_v39 }
  0x4b   :  { %432 = vmatprep.mubr.bf16.mxu0 %v804_v40 }
  0x52   :  { %433 = vmatmul.mubr.bf16.gmra.mrb[24].mxu0 %v806_v41 }
  0xf5   :  { %v658_v42 = vpop.f32.mrb[0].mxu0  ;;  %v700_v43 = vpop.f32.mrb[0].mxu1 }
  0xf6   :  { %v659_v44 = vpop.f32.mrb[1].mxu0  ;;  %v701_v45 = vpop.f32.mrb[1].mxu1 }
  0xf7   :  { %v660_v46 = vadd.f32 %v659_v44, %v658_v42  ;;  %v661_v47 = vpop.f32.mrb[2].mxu0  ;;  %v702_v48 = vadd.f32 %v701_v45, %v700_v43  ;;  %v703_v49 = vpop.f32.mrb[2].mxu1 }
  0xf8   :  { %v662_v50 = vpop.f32.mrb[3].mxu0  ;;  %v704_v51 = vpop.f32.mrb[3].mxu1 }
  0xf9   :  { %570 = vst [vmem:[%s1028_s2] sm:$0xff] %v660_v46  ;;  %v663_v52 = vadd.f32 %v662_v50, %v661_v47  ;;  %584 = vst [vmem:[%s1028_s2 + $0x70] sm:$0xff] %v702_v48  ;;  %v705_v53 = vadd.f32 %v704_v51, %v703_v49 }
  0xfb   :  { %571 = vst [vmem:[%s1028_s2 + $0x8] sm:$0xff] %v663_v52  ;;  %585 = vst [vmem:[%s1028_s2 + $0x78] sm:$0xff] %v705_v53 }
  0xfd   :  { %v664_v54 = vpop.f32.mrb[4].mxu0  ;;  %v706_v55 = vpop.f32.mrb[4].mxu1 }
  0xfe   :  { %v665_v56 = vpop.f32.mrb[5].mxu0  ;;  %v707_v57 = vpop.f32.mrb[5].mxu1 }
  0xff   :  { %v666_v58 = vadd.f32 %v665_v56, %v664_v54  ;;  %v667_v59 = vpop.f32.mrb[6].mxu0  ;;  %v708_v60 = vadd.f32 %v707_v57, %v706_v55  ;;  %v709_v61 = vpop.f32.mrb[6].mxu1 }
 0x100   :  { %v668_v62 = vpop.f32.mrb[7].mxu0  ;;  %v710_v63 = vpop.f32.mrb[7].mxu1 }
 0x101   :  { %572 = vst [vmem:[%s1028_s2 + $0x10] sm:$0xff] %v666_v58  ;;  %v669_v0 = vadd.f32 %v668_v62, %v667_v59  ;;  %586 = vst [vmem:[%s1028_s2 + $0x80] sm:$0xff] %v708_v60  ;;  %v711_v1 = vadd.f32 %v710_v63, %v709_v61 }
 0x103   :  { %573 = vst [vmem:[%s1028_s2 + $0x18] sm:$0xff] %v669_v0  ;;  %587 = vst [vmem:[%s1028_s2 + $0x88] sm:$0xff] %v711_v1 }
 0x105   :  { %v670_v2 = vpop.f32.mrb[8].mxu0  ;;  %v712_v3 = vpop.f32.mrb[8].mxu1 }
 0x106   :  { %v671_v4 = vpop.f32.mrb[9].mxu0  ;;  %v713_v5 = vpop.f32.mrb[9].mxu1 }
 0x107   :  { %v672_v6 = vadd.f32 %v671_v4, %v670_v2  ;;  %v673_v7 = vpop.f32.mrb[10].mxu0  ;;  %v714_v8 = vadd.f32 %v713_v5, %v712_v3  ;;  %v715_v9 = vpop.f32.mrb[10].mxu1 }
 0x108   :  { %v674_v10 = vpop.f32.mrb[11].mxu0  ;;  %v716_v11 = vpop.f32.mrb[11].mxu1 }
 0x109   :  { %574 = vst [vmem:[%s1028_s2 + $0x20] sm:$0xff] %v672_v6  ;;  %v675_v12 = vadd.f32 %v674_v10, %v673_v7  ;;  %588 = vst [vmem:[%s1028_s2 + $0x90] sm:$0xff] %v714_v8  ;;  %v717_v13 = vadd.f32 %v716_v11, %v715_v9 }
 0x10b   :  { %575 = vst [vmem:[%s1028_s2 + $0x28] sm:$0xff] %v675_v12  ;;  %589 = vst [vmem:[%s1028_s2 + $0x98] sm:$0xff] %v717_v13 }
 0x10d   :  { %v676_v14 = vpop.f32.mrb[12].mxu0  ;;  %v718_v15 = vpop.f32.mrb[12].mxu1 }
 0x10e   :  { %v677_v16 = vpop.f32.mrb[13].mxu0  ;;  %v719_v17 = vpop.f32.mrb[13].mxu1 }
 0x10f   :  { %v678_v18 = vadd.f32 %v677_v16, %v676_v14  ;;  %v679_v19 = vpop.f32.mrb[14].mxu0  ;;  %v720_v20 = vadd.f32 %v719_v17, %v718_v15  ;;  %v721_v21 = vpop.f32.mrb[14].mxu1 }
 0x110   :  { %v680_v22 = vpop.f32.mrb[15].mxu0  ;;  %v722_v23 = vpop.f32.mrb[15].mxu1 }
 0x111   :  { %576 = vst [vmem:[%s1028_s2 + $0x30] sm:$0xff] %v678_v18  ;;  %v681_v24 = vadd.f32 %v680_v22, %v679_v19  ;;  %590 = vst [vmem:[%s1028_s2 + $0xa0] sm:$0xff] %v720_v20  ;;  %v723_v25 = vadd.f32 %v722_v23, %v721_v21 }
 0x113   :  { %577 = vst [vmem:[%s1028_s2 + $0x38] sm:$0xff] %v681_v24  ;;  %591 = vst [vmem:[%s1028_s2 + $0xa8] sm:$0xff] %v723_v25 }
 0x115   :  { %v682_v26 = vpop.f32.mrb[16].mxu0  ;;  %v724_v27 = vpop.f32.mrb[16].mxu1 }
 0x116   :  { %v683_v28 = vpop.f32.mrb[17].mxu0  ;;  %v725_v29 = vpop.f32.mrb[17].mxu1 }
 0x117   :  { %v684_v30 = vadd.f32 %v683_v28, %v682_v26  ;;  %v685_v31 = vpop.f32.mrb[18].mxu0  ;;  %v726_v32 = vadd.f32 %v725_v29, %v724_v27  ;;  %v727_v33 = vpop.f32.mrb[18].mxu1 }
 0x118   :  { %v686_v34 = vpop.f32.mrb[19].mxu0  ;;  %v728_v35 = vpop.f32.mrb[19].mxu1 }
 0x119   :  { %578 = vst [vmem:[%s1028_s2 + $0x40] sm:$0xff] %v684_v30  ;;  %v687_v36 = vadd.f32 %v686_v34, %v685_v31  ;;  %592 = vst [vmem:[%s1028_s2 + $0xb0] sm:$0xff] %v726_v32  ;;  %v729_v37 = vadd.f32 %v728_v35, %v727_v33 }
 0x11b   :  { %579 = vst [vmem:[%s1028_s2 + $0x48] sm:$0xff] %v687_v36  ;;  %593 = vst [vmem:[%s1028_s2 + $0xb8] sm:$0xff] %v729_v37 }
 0x11d   :  { %v688_v38 = vpop.f32.mrb[20].mxu0  ;;  %v730_v39 = vpop.f32.mrb[20].mxu1 }
 0x11e   :  { %v689_v40 = vpop.f32.mrb[21].mxu0  ;;  %v731_v41 = vpop.f32.mrb[21].mxu1 }
 0x11f   :  { %v690_v42 = vadd.f32 %v689_v40, %v688_v38  ;;  %v691_v43 = vpop.f32.mrb[22].mxu0  ;;  %v732_v44 = vadd.f32 %v731_v41, %v730_v39  ;;  %v733_v45 = vpop.f32.mrb[22].mxu1 }
 0x120   :  { %v692_v46 = vpop.f32.mrb[23].mxu0  ;;  %v734_v47 = vpop.f32.mrb[23].mxu1 }
 0x121   :  { %580 = vst [vmem:[%s1028_s2 + $0x50] sm:$0xff] %v690_v42  ;;  %v693_v48 = vadd.f32 %v692_v46, %v691_v43  ;;  %594 = vst [vmem:[%s1028_s2 + $0xc0] sm:$0xff] %v732_v44  ;;  %v735_v49 = vadd.f32 %v734_v47, %v733_v45 }
 0x123   :  { %581 = vst [vmem:[%s1028_s2 + $0x58] sm:$0xff] %v693_v48  ;;  %595 = vst [vmem:[%s1028_s2 + $0xc8] sm:$0xff] %v735_v49 }
 0x125   :  { %v694_v50 = vpop.f32.mrb[24].mxu0 }
 0x126   :  { %v695_v51 = vpop.f32.mrb[25].mxu0 }
 0x127   :  { %v696_v52 = vadd.f32 %v695_v51, %v694_v50  ;;  %v697_v53 = vpop.f32.mrb[26].mxu0 }
 0x128   :  { %v698_v54 = vpop.f32.mrb[27].mxu0 }
 0x129   :  { %582 = vst [vmem:[%s1028_s2 + $0x60] sm:$0xff] %v696_v52  ;;  %v699_v55 = vadd.f32 %v698_v54, %v697_v53 }
 0x12b   :  { %583 = vst [vmem:[%s1028_s2 + $0x68] sm:$0xff] %v699_v55 }

// kernel: run.46
= control target key start
LH: loop header
LB: loop body
LE: loop exit
PB: predicated region body
PF: predicated region fallthrough
CT: control target
= control target key end

     0   :  { %v1479_v0 = vmov 0.0   ;;  %s1501_s12 = smov 0   ;;  %s1829_s0 = inlined_call_operand.vmem [shape: f32[6,40,1024], index: 0, kind: input, shape index: {}]   ;;  %s1830_s1 = inlined_call_operand.vmem [shape: bf16[2,128,512], index: 1, kind: input, shape index: {}]   ;;  %s1831_s2 = inlined_call_operand.vmem [shape: f32[6,40,128], index: 2, kind: output, shape index: {0}]   ;;  %s1832_s3 = inlined_call_operand.vmem [shape: f32[6,40,128], index: 3, kind: output, shape index: {1}]  }
   0x1   :  { %14 = vst [vmem:[#allocation2] sm:$0xff] %v1479_v0  ;;  %15 = vst [vmem:[#allocation2 + $0x8] sm:$0xff] %v1479_v0 }
   0x2   :  { %16 = vst [vmem:[#allocation2 + $0x10] sm:$0xff] %v1479_v0  ;;  %17 = vst [vmem:[#allocation2 + $0x18] sm:$0xff] %v1479_v0 }
   0x3   :  { %18 = vst [vmem:[#allocation2 + $0x20] sm:$0xff] %v1479_v0  ;;  %19 = vst [vmem:[#allocation3] sm:$0xff] %v1479_v0 }
   0x4   :  { %20 = vst [vmem:[#allocation3 + $0x8] sm:$0xff] %v1479_v0  ;;  %21 = vst [vmem:[#allocation3 + $0x10] sm:$0xff] %v1479_v0 }
   0x5   :  { %22 = vst [vmem:[#allocation3 + $0x18] sm:$0xff] %v1479_v0  ;;  %23 = vst [vmem:[#allocation3 + $0x20] sm:$0xff] %v1479_v0 }
   0x6   :  { %24 = vst [vmem:[#allocation4] sm:$0xff] %v1479_v0  ;;  %25 = vst [vmem:[#allocation4 + $0x8] sm:$0xff] %v1479_v0 }
   0x7   :  { %26 = vst [vmem:[#allocation4 + $0x10] sm:$0xff] %v1479_v0  ;;  %27 = vst [vmem:[#allocation4 + $0x18] sm:$0xff] %v1479_v0 }
   0x8   :  { %28 = vst [vmem:[#allocation4 + $0x20] sm:$0xff] %v1479_v0  ;;  %29 = vst [vmem:[#allocation5] sm:$0xff] %v1479_v0 }
   0x9   :  { %30 = vst [vmem:[#allocation5 + $0x8] sm:$0xff] %v1479_v0  ;;  %31 = vst [vmem:[#allocation5 + $0x10] sm:$0xff] %v1479_v0 }
   0xa   :  { %32 = vst [vmem:[#allocation5 + $0x18] sm:$0xff] %v1479_v0  ;;  %33 = vst [vmem:[#allocation5 + $0x20] sm:$0xff] %v1479_v0 }
   0xb LB: > { %v1215_v1 = vld [vmem:[%s1830_s1 + $0x4] ss:$16 sps:$4 sm:$0xff]   ;;  %v1217_v2 = vld [vmem:[%s1830_s1] ss:$16 sps:$4 sm:$0xff]   ;;  %v1480_v3 = vmov 0   ;;  %v88_v32 = vld [vmem:[#allocation2 + $0x8] sm:$0xff]  ;;  %s1477_s12 = sphi %s1501_s12, %s39_s12  }
   0xc   : > { %319 = vmatprep.mubr.bf16.mxu0 %v1480_v3  ;;  %380 = vmatprep.mubr.bf16.mxu1 %v1480_v3  ;;  %v1218_v4 = vld [vmem:[%s1830_s1 + $0x24] ss:$16 sps:$4 sm:$0xff]   ;;  %v1220_v5 = vld [vmem:[%s1830_s1 + $0x20] ss:$16 sps:$4 sm:$0xff]   ;;  %v1226_v7 = vld [vmem:[%s1830_s1 + $0xc] ss:$16 sps:$4 sm:$0xff]  }
   0xd   : > { %287 = vmatprep.subr.bf16.mxu0 %v1215_v1  ;;  %v1221_v6 = vld [vmem:[%s1830_s1 + $0x44] ss:$16 sps:$4 sm:$0xff]   ;;  %v1229_v8 = vld [vmem:[%s1830_s1 + $0x8] ss:$16 sps:$4 sm:$0xff]   ;;  %v1223_v9 = vld [vmem:[%s1830_s1 + $0x40] ss:$16 sps:$4 sm:$0xff]   ;;  %348 = vmatprep.subr.bf16.mxu1 %v1226_v7 }
   0xe   : > { %288 = vmatpush1.bf16.msra.mxu0 %v1217_v2  ;;  %v1224_v10 = vld [vmem:[%s1830_s1 + $0x64] ss:$16 sps:$4 sm:$0xff]   ;;  %349 = vmatpush1.bf16.msra.mxu1 %v1229_v8  ;;  %v1232_v11 = vld [vmem:[%s1830_s1 + $0x2c] ss:$16 sps:$4 sm:$0xff]   ;;  %v1235_v12 = vld [vmem:[%s1830_s1 + $0x28] ss:$16 sps:$4 sm:$0xff]  }
   0xf   : > { %289 = vmatprep.subr.bf16.mxu0 %v1218_v4  ;;  %350 = vmatprep.subr.bf16.mxu1 %v1232_v11  ;;  %v1228_v13 = vld [vmem:[%s1830_s1 + $0x60] ss:$16 sps:$4 sm:$0xff]   ;;  %v1230_v14 = vld [vmem:[%s1830_s1 + $0x84] ss:$16 sps:$4 sm:$0xff]   ;;  %v1238_v15 = vld [vmem:[%s1830_s1 + $0x4c] ss:$16 sps:$4 sm:$0xff]  }
  0x10   : > { %v1241_v16 = vld [vmem:[%s1830_s1 + $0x48] ss:$16 sps:$4 sm:$0xff]   ;;  %v1244_v17 = vld [vmem:[%s1830_s1 + $0x6c] ss:$16 sps:$4 sm:$0xff]   ;;  %v1234_v18 = vld [vmem:[%s1830_s1 + $0x80] ss:$16 sps:$4 sm:$0xff]  }
  0x11   : > { %v1236_v19 = vld [vmem:[%s1830_s1 + $0xa4] ss:$16 sps:$4 sm:$0xff]   ;;  %v1247_v20 = vld [vmem:[%s1830_s1 + $0x68] ss:$16 sps:$4 sm:$0xff]   ;;  %v1250_v21 = vld [vmem:[%s1830_s1 + $0x8c] ss:$16 sps:$4 sm:$0xff]  }
  0x12   : > { %290 = vmatpush1.bf16.msra.mxu0 %v1220_v5  ;;  %351 = vmatpush1.bf16.msra.mxu1 %v1235_v12  ;;  %v1240_v22 = vld [vmem:[%s1830_s1 + $0xa0] ss:$16 sps:$4 sm:$0xff]   ;;  %v1242_v23 = vld [vmem:[%s1830_s1 + $0xc4] ss:$16 sps:$4 sm:$0xff]   ;;  %v1253_v24 = vld [vmem:[%s1830_s1 + $0x88] ss:$16 sps:$4 sm:$0xff]  }
  0x13   : > { %291 = vmatprep.subr.bf16.mxu0 %v1221_v6  ;;  %352 = vmatprep.subr.bf16.mxu1 %v1238_v15  ;;  %v1254_v25 = vld [vmem:[%s1830_s1 + $0xac] ss:$16 sps:$4 sm:$0xff]   ;;  %v1246_v26 = vld [vmem:[%s1830_s1 + $0xc0] ss:$16 sps:$4 sm:$0xff]   ;;  %v1248_v27 = vld [vmem:[%s1830_s1 + $0xe4] ss:$16 sps:$4 sm:$0xff]  }
  0x14   : > { %v1259_v28 = vld [vmem:[%s1830_s1 + $0xa8] ss:$16 sps:$4 sm:$0xff]   ;;  %v1252_v29 = vld [vmem:[%s1830_s1 + $0xe0] ss:$16 sps:$4 sm:$0xff]   ;;  %v1260_v30 = vld [vmem:[%s1830_s1 + $0xcc] ss:$16 sps:$4 sm:$0xff]  }
  0x15   : > { %v87_v31 = vld [vmem:[#allocation2] sm:$0xff]  ;;  %v1265_v34 = vld [vmem:[%s1830_s1 + $0xc8] ss:$16 sps:$4 sm:$0xff]   ;;  %v1266_v35 = vld [vmem:[%s1830_s1 + $0xec] ss:$16 sps:$4 sm:$0xff]   ;;  %s1203_s10 = smul.u32 320, %s1477_s12 }
  0x16   : > { %292 = vmatpush1.bf16.msra.mxu0 %v1223_v9  ;;  %353 = vmatpush1.bf16.msra.mxu1 %v1241_v16  ;;  %v1258_v33 = vld [vmem:[%s1830_s1 + $0x104] ss:$16 sps:$4 sm:$0xff]   ;;  %v92_v36 = vpack.c.bf16 %v88_v32, %v87_v31  ;;  %v1256_v37 = vld [vmem:[%s1830_s1 + $0x100] ss:$16 sps:$4 sm:$0xff]   ;;  %v1271_v39 = vld [vmem:[%s1830_s1 + $0xe8] ss:$16 sps:$4 sm:$0xff]  }
  0x17   : > { %293 = vmatprep.subr.bf16.mxu0 %v1224_v10  ;;  %354 = vmatprep.subr.bf16.mxu1 %v1244_v17  ;;  %v1264_v38 = vld [vmem:[%s1830_s1 + $0x124] ss:$16 sps:$4 sm:$0xff]   ;;  %v1277_v40 = vld [vmem:[%s1830_s1 + $0x10c] ss:$16 sps:$4 sm:$0xff]   ;;  %v1262_v41 = vld [vmem:[%s1830_s1 + $0x120] ss:$16 sps:$4 sm:$0xff]   ;;  %s1714_s14 = scalar_lea.vmem %s1829_s0, %s1203_s10 }
  0x18   : > { %v1270_v42 = vld [vmem:[%s1830_s1 + $0x144] ss:$16 sps:$4 sm:$0xff]   ;;  %v90_v44 = vld [vmem:[#allocation2 + $0x18] sm:$0xff]  ;;  %v1268_v48 = vld [vmem:[%s1830_s1 + $0x140] ss:$16 sps:$4 sm:$0xff]   ;;  %s40_s15 = ssub.s32 5, %s1477_s12 }
  0x19   : > { %v89_v43 = vld [vmem:[#allocation2 + $0x10] sm:$0xff]  ;;  %v1275_v45 = vld [vmem:[%s1830_s1 + $0x108] ss:$16 sps:$4 sm:$0xff]   ;;  %v1283_v46 = vld [vmem:[%s1830_s1 + $0x12c] ss:$16 sps:$4 sm:$0xff]   ;;  %s1204_s16 = smul.u32 320, %s40_s15 }
  0x1a   : > { %294 = vmatpush1.bf16.msra.mxu0 %v1228_v13  ;;  %355 = vmatpush1.bf16.msra.mxu1 %v1247_v20  ;;  %v93_v47 = vpack.c.bf16 %v90_v44, %v89_v43  ;;  %v1274_v49 = vld [vmem:[%s1830_s1 + $0x164] ss:$16 sps:$4 sm:$0xff]   ;;  %v1281_v50 = vld [vmem:[%s1830_s1 + $0x128] ss:$16 sps:$4 sm:$0xff]   ;;  %v1289_v51 = vld [vmem:[%s1830_s1 + $0x14c] ss:$16 sps:$4 sm:$0xff]  }
  0x1b   : > { %295 = vmatprep.subr.bf16.mxu0 %v1230_v14  ;;  %356 = vmatprep.subr.bf16.mxu1 %v1250_v21  ;;  %v1272_v52 = vld [vmem:[%s1830_s1 + $0x160] ss:$16 sps:$4 sm:$0xff]   ;;  %v1280_v53 = vld [vmem:[%s1830_s1 + $0x184] ss:$16 sps:$4 sm:$0xff]   ;;  %v1287_v55 = vld [vmem:[%s1830_s1 + $0x148] ss:$16 sps:$4 sm:$0xff]   ;;  %s1744_s19 = scalar_lea.vmem %s1829_s0, %s1204_s16 }
  0x1c   : > { %v91_v54 = vld [vmem:[#allocation2 + $0x20] sm:$0xff]  ;;  %v1295_v56 = vld [vmem:[%s1830_s1 + $0x16c] ss:$16 sps:$4 sm:$0xff]   ;;  %v1293_v60 = vld [vmem:[%s1830_s1 + $0x168] ss:$16 sps:$4 sm:$0xff]   ;;  %s41_s20 = smul.u32 40, %s1477_s12 }
  0x1d   : > { %v94_v57 = vpack.c.bf16 %v91_v54, %v91_v54  ;;  %v1278_v58 = vld [vmem:[%s1830_s1 + $0x180] ss:$16 sps:$4 sm:$0xff]   ;;  %v1286_v59 = vld [vmem:[%s1830_s1 + $0x1a4] ss:$16 sps:$4 sm:$0xff]   ;;  %v1301_v61 = vld [vmem:[%s1830_s1 + $0x18c] ss:$16 sps:$4 sm:$0xff]  }
  0x1e   : > { %296 = vmatpush1.bf16.msra.mxu0 %v1234_v18  ;;  %357 = vmatpush1.bf16.msra.mxu1 %v1253_v24  ;;  %v1284_v62 = vld [vmem:[%s1830_s1 + $0x1a0] ss:$16 sps:$4 sm:$0xff]   ;;  %v1292_v63 = vld [vmem:[%s1830_s1 + $0x1c4] ss:$16 sps:$4 sm:$0xff]   ;;  %v1299_v0 = vld [vmem:[%s1830_s1 + $0x188] ss:$16 sps:$4 sm:$0xff]   ;;  %s1771_s23 = scalar_lea.vmem %s1831_s2, %s41_s20 }
  0x1f   : > { %297 = vmatprep.subr.bf16.mxu0 %v1236_v19  ;;  %358 = vmatprep.subr.bf16.mxu1 %v1254_v25  ;;  %v1304_v1 = vld [vmem:[%s1830_s1 + $0x1ac] ss:$16 sps:$4 sm:$0xff]   ;;  %v1290_v2 = vld [vmem:[%s1830_s1 + $0x1c0] ss:$16 sps:$4 sm:$0xff]   ;;  %v1298_v4 = vld [vmem:[%s1830_s1 + $0x1e4] ss:$16 sps:$4 sm:$0xff]  }
  0x20   : > { %v1302_v5 = vld [vmem:[%s1830_s1 + $0x1a8] ss:$16 sps:$4 sm:$0xff]   ;;  %v1307_v6 = vld [vmem:[%s1830_s1 + $0x1cc] ss:$16 sps:$4 sm:$0xff]   ;;  %v1296_v7 = vld [vmem:[%s1830_s1 + $0x1e0] ss:$16 sps:$4 sm:$0xff]  }
  0x21   : > { %v429_v8 = vld [vmem:[#allocation4] sm:$0xff]  ;;  %v430_v9 = vld [vmem:[#allocation4 + $0x8] sm:$0xff]  ;;  %v431_v14 = vld [vmem:[#allocation4 + $0x10] sm:$0xff]  ;;  %s64_s24 = smul.u32 40, %s40_s15  ;;  %s39_s12 = sadd.s32 1, %s1477_s12  }
  0x22   : > { %298 = vmatpush1.bf16.msra.mxu0 %v1240_v22  ;;  %359 = vmatpush1.bf16.msra.mxu1 %v1259_v28  ;;  %v1305_v10 = vld [vmem:[%s1830_s1 + $0x1c8] ss:$16 sps:$4 sm:$0xff]   ;;  %v1310_v11 = vld [vmem:[%s1830_s1 + $0x1ec] ss:$16 sps:$4 sm:$0xff]   ;;  %v434_v12 = vpack.c.bf16 %v430_v9, %v429_v8  ;;  %v433_v17 = vld [vmem:[#allocation4 + $0x20] sm:$0xff]  ;;  %p36_p0 = scmp.ge.s32.totalorder %s39_s12, 6  }
  0x23   : > { %299 = vmatprep.subr.bf16.mxu0 %v1242_v23  ;;  %360 = vmatprep.subr.bf16.mxu1 %v1260_v30  ;;  %v1308_v13 = vld [vmem:[%s1830_s1 + $0x1e8] ss:$16 sps:$4 sm:$0xff]   ;;  %v436_v18 = vpack.c.bf16 %v433_v17, %v433_v17  ;;  %v44_v19 = vld [vmem:[%s1714_s14] sm:$0xff]  ;;  %v46_v30 = vld [vmem:[%s1714_s14 + $0x10] sm:$0xff]  ;;  %s1819_s27 = scalar_lea.vmem %s1832_s3, %s64_s24 }
  0x24   : > { %v432_v15 = vld [vmem:[#allocation4 + $0x18] sm:$0xff]  ;;  %v48_v22 = vld [vmem:[%s1714_s14 + $0x40] sm:$0xff] }
  0x25   : > { %v435_v16 = vpack.c.bf16 %v432_v15, %v431_v14  ;;  %v45_v20 = vld [vmem:[%s1714_s14 + $0x8] sm:$0xff] }
  0x26   : > { %300 = vmatpush1.bf16.msra.mxu0 %v1246_v26  ;;  %361 = vmatpush1.bf16.msra.mxu1 %v1265_v34  ;;  %v49_v24 = vld [vmem:[%s1714_s14 + $0x48] sm:$0xff] }
  0x27   : > { %301 = vmatprep.subr.bf16.mxu0 %v1248_v27  ;;  %362 = vmatprep.subr.bf16.mxu1 %v1266_v35 }
  0x2a   : > { %302 = vmatpush1.bf16.msra.mxu0 %v1252_v29  ;;  %363 = vmatpush1.bf16.msra.mxu1 %v1271_v39 }
  0x2b   : > { %630 = vmatprep.subr.bf16.mxu0 %v1258_v33  ;;  %691 = vmatprep.subr.bf16.mxu1 %v1277_v40  ;;  %v47_v33 = vld [vmem:[%s1714_s14 + $0x18] sm:$0xff] }
  0x2d   : > { %320 = vmatmul.mubr.bf16.vlgmr.msra.gmra.mrb[0].mxu0 %v92_v36  ;;  %381 = vmatmul.mubr.bf16.vlgmr.msra.gmra.mrb[0].mxu1 %v92_v36  ;;  %v50_v36 = vld [vmem:[%s1714_s14 + $0x50] sm:$0xff] }
  0x2e   : > { %631 = vmatpush1.bf16.msra.mxu0 %v1256_v37  ;;  %329 = vmatprep.mubr.bf16.mxu0 %v1480_v3 }
  0x2f   : > { %632 = vmatprep.subr.bf16.mxu0 %v1264_v38  ;;  %692 = vmatpush1.bf16.msra.mxu1 %v1275_v45  ;;  %v52_v38 = vld [vmem:[%s1714_s14 + $0x80] sm:$0xff] }
  0x30   : > { %693 = vmatprep.subr.bf16.mxu1 %v1283_v46  ;;  %390 = vmatprep.mubr.bf16.mxu1 %v1480_v3  ;;  %v56_v46 = vld [vmem:[%s1714_s14 + $0xc0] sm:$0xff] }
  0x32   : > { %633 = vmatpush1.bf16.msra.mxu0 %v1262_v41  ;;  %v51_v41 = vld [vmem:[%s1714_s14 + $0x58] sm:$0xff] }
  0x33   : > { %634 = vmatprep.subr.bf16.mxu0 %v1270_v42  ;;  %694 = vmatpush1.bf16.msra.mxu1 %v1281_v50  ;;  %v53_v42 = vld [vmem:[%s1714_s14 + $0x88] sm:$0xff] }
  0x34   : > { %695 = vmatprep.subr.bf16.mxu1 %v1289_v51 }
  0x35   : > { %330 = vmatmul.mubr.bf16.gmra.mrb[4].mxu0 %v93_v47  ;;  %391 = vmatmul.mubr.bf16.gmra.mrb[4].mxu1 %v93_v47 }
  0x36   : > { %635 = vmatpush1.bf16.msra.mxu0 %v1268_v48  ;;  %339 = vmatprep.mubr.bf16.mxu0 %v1480_v3 }
  0x37   : > { %636 = vmatprep.subr.bf16.mxu0 %v1274_v49  ;;  %696 = vmatpush1.bf16.msra.mxu1 %v1287_v55 }
  0x38   : > { %697 = vmatprep.subr.bf16.mxu1 %v1295_v56  ;;  %400 = vmatprep.mubr.bf16.mxu1 %v1480_v3 }
  0x3a   : > { %637 = vmatpush1.bf16.msra.mxu0 %v1272_v52  ;;  %v57_v52 = vld [vmem:[%s1714_s14 + $0xc8] sm:$0xff] }
  0x3b   : > { %638 = vmatprep.subr.bf16.mxu0 %v1280_v53  ;;  %698 = vmatpush1.bf16.msra.mxu1 %v1293_v60 }
  0x3c   : > { %699 = vmatprep.subr.bf16.mxu1 %v1301_v61 }
  0x3d   : > { %340 = vmatmul.mubr.bf16.gmra.mrb[8].mxu0 %v94_v57  ;;  %401 = vmatmul.mubr.bf16.gmra.mrb[8].mxu1 %v94_v57 }
  0x3e   : > { %639 = vmatpush1.bf16.msra.mxu0 %v1278_v58  ;;  %662 = vmatprep.mubr.bf16.mxu0 %v1480_v3 }
  0x3f   : > { %640 = vmatprep.subr.bf16.mxu0 %v1286_v59  ;;  %700 = vmatpush1.bf16.msra.mxu1 %v1299_v0 }
  0x40   : > { %701 = vmatprep.subr.bf16.mxu1 %v1304_v1  ;;  %723 = vmatprep.mubr.bf16.mxu1 %v1480_v3  ;;  %v60_v1 = vld [vmem:[%s1714_s14 + $0x100] sm:$0xff] }
  0x42   : > { %641 = vmatpush1.bf16.msra.mxu0 %v1284_v62 }
  0x43   : > { %642 = vmatprep.subr.bf16.mxu0 %v1292_v63  ;;  %702 = vmatpush1.bf16.msra.mxu1 %v1302_v5  ;;  %v61_v5 = vld [vmem:[%s1714_s14 + $0x108] sm:$0xff] }
  0x44   : > { %703 = vmatprep.subr.bf16.mxu1 %v1307_v6 }
  0x46   : > { %643 = vmatpush1.bf16.msra.mxu0 %v1290_v2 }
  0x47   : > { %644 = vmatprep.subr.bf16.mxu0 %v1298_v4  ;;  %704 = vmatpush1.bf16.msra.mxu1 %v1305_v10 }
  0x48   : > { %705 = vmatprep.subr.bf16.mxu1 %v1310_v11 }
  0x4a   : > { %645 = vmatpush1.bf16.msra.mxu0 %v1296_v7 }
  0x4b   : > { %706 = vmatpush1.bf16.msra.mxu1 %v1308_v13 }
  0x4d   : > { %663 = vmatmul.mubr.bf16.vlgmr.msra.gmra.mrb[12].mxu0 %v434_v12 }
  0x4e   : > { %672 = vmatprep.mubr.bf16.mxu0 %v1480_v3  ;;  %724 = vmatmul.mubr.bf16.vlgmr.msra.gmra.mrb[12].mxu1 %v434_v12 }
  0x4f   : > { %733 = vmatprep.mubr.bf16.mxu1 %v1480_v3 }
  0x55   : > { %673 = vmatmul.mubr.bf16.gmra.mrb[16].mxu0 %v435_v16 }
  0x56   : > { %682 = vmatprep.mubr.bf16.mxu0 %v1480_v3  ;;  %734 = vmatmul.mubr.bf16.gmra.mrb[16].mxu1 %v435_v16 }
  0x57   : > { %743 = vmatprep.mubr.bf16.mxu1 %v1480_v3 }
  0x5d   : > { %683 = vmatmul.mubr.bf16.gmra.mrb[20].mxu0 %v436_v18 }
  0x5e   : > { %744 = vmatmul.mubr.bf16.gmra.mrb[20].mxu1 %v436_v18 }
 0x100   : > { %v321_v21 = vpop.f32.mrb[0].mxu0  ;;  %v382_v35 = vpop.f32.mrb[0].mxu1 }
 0x101   : > { %v409_v3 = vadd.f32 %v321_v21, %v44_v19  ;;  %v323_v23 = vpop.f32.mrb[1].mxu0  ;;  %v411_v39 = vadd.f32 %v382_v35, %v46_v30  ;;  %v384_v40 = vpop.f32.mrb[1].mxu1  ;;  %v54_v19 = vld [vmem:[%s1714_s14 + $0x90] sm:$0xff]  ;;  %v59_v30 = vld [vmem:[%s1714_s14 + $0xd8] sm:$0xff] }
 0x102   : > { %v410_v25 = vadd.f32 %v323_v23, %v45_v20  ;;  %v325_v26 = vpop.f32.mrb[2].mxu0  ;;  %v412_v43 = vadd.f32 %v384_v40, %v47_v33  ;;  %v386_v44 = vpop.f32.mrb[2].mxu1  ;;  %v58_v40 = vld [vmem:[%s1714_s14 + $0xd0] sm:$0xff] }
 0x103   : > { %v1173_v27 = vmul.f32 -1.442695, %v409_v3  ;;  %v413_v28 = vadd.f32 %v325_v26, %v48_v22  ;;  %v327_v29 = vpop.f32.mrb[3].mxu0  ;;  %v415_v47 = vadd.f32 %v386_v44, %v50_v36  ;;  %v388_v48 = vpop.f32.mrb[3].mxu1 }
 0x104   : > { %v1178_v31 = vmul.f32 -1.442695, %v410_v25  ;;  %v414_v32 = vadd.f32 %v327_v29, %v49_v24  ;;  %v1183_v51 = vmul.f32 -1.442695, %v412_v43  ;;  %v416_v53 = vadd.f32 %v388_v48, %v51_v41  ;;  %v55_v24 = vld [vmem:[%s1714_s14 + $0x98] sm:$0xff] }
 0x105   : > { %1311 = vpow2.f32 %v1173_v27  ;;  %v1174_v34 = vmul.f32 -1.442695, %v413_v28 }
 0x106   : > { %1313 = vpow2.f32 %v1178_v31  ;;  %v1179_v37 = vmul.f32 -1.442695, %v414_v32  ;;  %v1184_v62 = vmul.f32 -1.442695, %v416_v53 }
 0x107   : > { %1315 = vpow2.f32 %v1174_v34 }
 0x108   : > { %1317 = vpow2.f32 %v1179_v37  ;;  %v331_v45 = vpop.f32.mrb[4].mxu0  ;;  %v392_v63 = vpop.f32.mrb[4].mxu1 }
 0x109   : > { %v417_v49 = vadd.f32 %v331_v45, %v52_v38  ;;  %v333_v50 = vpop.f32.mrb[5].mxu0  ;;  %1319 = vtanh.f32 %v411_v39  ;;  %v394_v2 = vpop.f32.mrb[5].mxu1  ;;  %v419_v26 = vadd.f32 %v392_v63, %v54_v19  ;;  %v772_v45 = vld [vmem:[#allocation3] sm:$0xff] }
 0x10a   : > { %v418_v54 = vadd.f32 %v333_v50, %v53_v42  ;;  %v335_v55 = vpop.f32.mrb[6].mxu0  ;;  %1321 = vpow2.f32 %v1183_v51  ;;  %v396_v6 = vpop.f32.mrb[6].mxu1  ;;  %v420_v33 = vadd.f32 %v394_v2, %v55_v24 }
 0x10b   : > { %v1175_v56 = vmul.f32 -1.442695, %v417_v49  ;;  %v421_v57 = vadd.f32 %v335_v55, %v56_v46  ;;  %v337_v58 = vpop.f32.mrb[7].mxu0  ;;  %1323 = vtanh.f32 %v415_v47  ;;  %v398_v10 = vpop.f32.mrb[7].mxu1  ;;  %v423_v50 = vadd.f32 %v396_v6, %v58_v40 }
 0x10c   : > { %v1180_v59 = vmul.f32 -1.442695, %v418_v54  ;;  %v422_v60 = vadd.f32 %v337_v58, %v57_v52  ;;  %v424_v41 = vadd.f32 %v398_v10, %v59_v30  ;;  %v1185_v47 = vmul.f32 -1.442695, %v420_v33  ;;  %v773_v52 = vld [vmem:[#allocation3 + $0x8] sm:$0xff]  ;;  %v775_v30 = vld [vmem:[#allocation3 + $0x18] sm:$0xff] }
 0x10d   : > { %1325 = vpow2.f32 %v1175_v56  ;;  %v1176_v61 = vmul.f32 -1.442695, %v421_v57  ;;  %v67_v57 = vld [vmem:[%s1744_s19 + $0x20] sm:$0xff] }
 0x10e   : > { %1327 = vpow2.f32 %v1180_v59  ;;  %v1181_v0 = vmul.f32 -1.442695, %v422_v60  ;;  %v1186_v54 = vmul.f32 -1.442695, %v424_v41  ;;  %v68_v60 = vld [vmem:[%s1744_s19 + $0x28] sm:$0xff]  ;;  %v75_v33 = vld [vmem:[%s1744_s19 + $0xa0] sm:$0xff] }
 0x10f   : > { %v1312_v4 = vpop.eup %1311  ;;  %1329 = vpow2.f32 %v1176_v61  ;;  %v79_v41 = vld [vmem:[%s1744_s19 + $0xe0] sm:$0xff] }
 0x110   : > { %v1314_v7 = vpop.eup %1313  ;;  %v792_v8 = vadd.f32 1.0, %v1312_v4  ;;  %1331 = vpow2.f32 %v1181_v0  ;;  %v341_v9 = vpop.f32.mrb[8].mxu0 }
 0x111   : > { %v1316_v11 = vpop.eup %1315  ;;  %v822_v12 = vadd.f32 1.0, %v1314_v7  ;;  %1333 = vpow2.f32 %v1184_v62  ;;  %v425_v13 = vadd.f32 %v341_v9, %v60_v1  ;;  %v343_v14 = vpop.f32.mrb[9].mxu0  ;;  %v71_v1 = vld [vmem:[%s1744_s19 + $0x60] sm:$0xff]  ;;  %v72_v7 = vld [vmem:[%s1744_s19 + $0x68] sm:$0xff] }
 0x112   : > { %v1318_v15 = vpop.eup %1317  ;;  %1335 = vrcp.f32 %v792_v8  ;;  %v793_v16 = vadd.f32 1.0, %v1316_v11  ;;  %v426_v17 = vadd.f32 %v343_v14, %v61_v5  ;;  %v345_v18 = vpop.f32.mrb[10].mxu0 }
 0x113   : > { %1337 = vrcp.f32 %v822_v12  ;;  %v823_v20 = vadd.f32 1.0, %v1318_v15  ;;  %v1177_v21 = vmul.f32 -1.442695, %v425_v13  ;;  %v346_v22 = vpop.f32.mrb[11].mxu0  ;;  %v1320_v3 = vpop.eup %1319  ;;  %v63_v13 = vld [vmem:[%s1714_s14 + $0x118] sm:$0xff] }
 0x114   : > { %1339 = vrcp.f32 %v793_v16  ;;  %v1182_v23 = vmul.f32 -1.442695, %v426_v17  ;;  %v1322_v25 = vpop.eup %1321  ;;  %v1733_v27 = vpop.f32.mrb[8].mxu1  ;;  %v774_v15 = vld [vmem:[#allocation3 + $0x10] sm:$0xff]  ;;  %v62_v22 = vld [vmem:[%s1714_s14 + $0x110] sm:$0xff] }
 0x115   : > { %1341 = vrcp.f32 %v823_v20  ;;  %v1324_v28 = vpop.eup %1323  ;;  %v857_v29 = vadd.f32 1.0, %v1322_v25  ;;  %v1736_v31 = vpop.f32.mrb[9].mxu1 }
 0x116   : > { %1343 = vpow2.f32 %v1177_v21  ;;  %v406_v34 = vpop.f32.mrb[10].mxu1  ;;  %v428_v25 = vadd.f32 %v1736_v31, %v63_v13  ;;  %v776_v13 = vld [vmem:[#allocation3 + $0x20] sm:$0xff] }
 0x117   : > { %v1326_v32 = vpop.eup %1325  ;;  %1345 = vpow2.f32 %v1182_v23  ;;  %v407_v37 = vpop.f32.mrb[11].mxu1 }
 0x118   : > { %v1328_v35 = vpop.eup %1327  ;;  %v794_v36 = vadd.f32 1.0, %v1326_v32  ;;  %1347 = vrcp.f32 %v857_v29  ;;  %v76_v37 = vld [vmem:[%s1744_s19 + $0xa8] sm:$0xff] }
 0x119   : > { %v1330_v38 = vpop.eup %1329  ;;  %v824_v39 = vadd.f32 1.0, %v1328_v35  ;;  %1349 = vtanh.f32 %v419_v26 }
 0x11a   : > { %v1332_v42 = vpop.eup %1331  ;;  %1351 = vrcp.f32 %v794_v36  ;;  %v795_v43 = vadd.f32 1.0, %v1330_v38  ;;  %v427_v36 = vadd.f32 %v1733_v27, %v62_v22 }
 0x11b   : > { %v1334_v44 = vpop.eup %1333  ;;  %1353 = vrcp.f32 %v824_v39  ;;  %v825_v46 = vadd.f32 1.0, %v1332_v42 }
 0x11c   : > { %v1336_v48 = vpop.eup %1335  ;;  %1355 = vrcp.f32 %v795_v43  ;;  %v858_v49 = vadd.f32 1.0, %v1334_v44 }
 0x11d   : > { %v1338_v51 = vpop.eup %1337  ;;  %v877_v53 = vmul.f32 %v1336_v48, %v1320_v3  ;;  %1357 = vrcp.f32 %v825_v46 }
 0x11e   : > { %v1340_v55 = vpop.eup %1339  ;;  %v872_v56 = vmul.f32 %v1338_v51, %v772_v45  ;;  %1359 = vrcp.f32 %v858_v49  ;;  %v1187_v45 = vmul.f32 -1.442695, %v428_v25 }
 0x11f   : > { %v1342_v58 = vpop.eup %1341  ;;  %v878_v59 = vmul.f32 %v1340_v55, %v1324_v28  ;;  %1361 = vpow2.f32 %v1185_v47 }
 0x120   : > { %v1344_v61 = vpop.eup %1343  ;;  %v873_v62 = vmul.f32 %v1342_v58, %v773_v52  ;;  %v882_v63 = vadd.f32 %v877_v53, %v872_v56  ;;  %1363 = vtanh.f32 %v423_v50  ;;  %v664_v0 = vpop.f32.mrb[12].mxu0  ;;  %v80_v58 = vld [vmem:[%s1744_s19 + $0xe8] sm:$0xff] }
 0x121   : > { %v1346_v2 = vpop.eup %1345  ;;  %v796_v4 = vadd.f32 1.0, %v1344_v61  ;;  %1365 = vpow2.f32 %v1186_v54  ;;  %v752_v5 = vadd.f32 %v664_v0, %v67_v57  ;;  %v666_v6 = vpop.f32.mrb[13].mxu0 }
 0x122   : > { %v1750_v8 = vpop.eup %1347  ;;  %1367 = vtanh.f32 %v882_v63  ;;  %1027 = vst [vmem:[#allocation3] sm:$0xff] %v882_v63  ;;  %v883_v9 = vadd.f32 %v878_v59, %v873_v62  ;;  %v826_v10 = vadd.f32 1.0, %v1346_v2  ;;  %v753_v11 = vadd.f32 %v666_v6, %v68_v60  ;;  %v668_v12 = vpop.f32.mrb[14].mxu0  ;;  %v70_v2 = vld [vmem:[%s1744_s19 + $0x38] sm:$0xff] }
 0x123   : > { %v1350_v14 = vpop.eup %1349  ;;  %1369 = vrcp.f32 %v796_v4  ;;  %v1188_v16 = vmul.f32 -1.442695, %v752_v5  ;;  %v756_v17 = vadd.f32 %v668_v12, %v71_v1  ;;  %v670_v18 = vpop.f32.mrb[15].mxu0 }
 0x124   : > { %v1352_v19 = vpop.eup %1351  ;;  %1371 = vtanh.f32 %v883_v9  ;;  %1028 = vst [vmem:[#allocation3 + $0x8] sm:$0xff] %v883_v9  ;;  %v1193_v20 = vmul.f32 -1.442695, %v753_v11  ;;  %v757_v21 = vadd.f32 %v670_v18, %v72_v7  ;;  %v1755_v26 = vpop.f32.mrb[12].mxu1 }
 0x125   : > { %v1354_v3 = vpop.eup %1353  ;;  %1373 = vrcp.f32 %v826_v10  ;;  %v879_v23 = vmul.f32 %v1352_v19, %v1350_v14  ;;  %v1189_v24 = vmul.f32 -1.442695, %v756_v17  ;;  %v1758_v34 = vpop.f32.mrb[13].mxu1 }
 0x126   : > { %v1356_v28 = vpop.eup %1355  ;;  %v874_v29 = vmul.f32 %v1354_v3, %v774_v15  ;;  %1375 = vpow2.f32 %v1188_v16  ;;  %v1194_v32 = vmul.f32 -1.442695, %v757_v21  ;;  %v1762_v38 = vpop.f32.mrb[14].mxu1  ;;  %v69_v15 = vld [vmem:[%s1744_s19 + $0x30] sm:$0xff]  ;;  %v755_v16 = vadd.f32 %v1758_v34, %v70_v2  ;;  %v74_v34 = vld [vmem:[%s1744_s19 + $0x78] sm:$0xff] }
 0x127   : > { %v1358_v35 = vpop.eup %1357  ;;  %1377 = vpow2.f32 %v1193_v20  ;;  %v1766_v42 = vpop.f32.mrb[15].mxu1 }
 0x128   : > { %v1360_v39 = vpop.eup %1359  ;;  %v884_v31 = vadd.f32 %v879_v23, %v874_v29  ;;  %1379 = vpow2.f32 %v1189_v24  ;;  %v674_v40 = vpop.f32.mrb[16].mxu0  ;;  %v875_v44 = vmul.f32 %v1358_v35, %v775_v30  ;;  %v754_v29 = vadd.f32 %v1755_v26, %v69_v15  ;;  %v73_v30 = vld [vmem:[%s1744_s19 + $0x70] sm:$0xff]  ;;  %v86_v15 = vld [vmem:[%s1744_s19 + $0x138] sm:$0xff] }
 0x129   : > { %v1362_v43 = vpop.eup %1361  ;;  %1381 = vpow2.f32 %v1194_v32  ;;  %v760_v46 = vadd.f32 %v674_v40, %v75_v33  ;;  %v676_v47 = vpop.f32.mrb[17].mxu0  ;;  %v1198_v33 = vmul.f32 -1.442695, %v755_v16  ;;  %v758_v26 = vadd.f32 %v1762_v38, %v73_v30 }
 0x12a   : > { %v1364_v48 = vpop.eup %1363  ;;  %1383 = vtanh.f32 %v884_v31  ;;  %1029 = vst [vmem:[#allocation3 + $0x10] sm:$0xff] %v884_v31  ;;  %v859_v27 = vadd.f32 1.0, %v1362_v43  ;;  %v761_v49 = vadd.f32 %v676_v47, %v76_v37  ;;  %v678_v50 = vpop.f32.mrb[18].mxu0  ;;  %v84_v43 = vld [vmem:[%s1744_s19 + $0x128] sm:$0xff] }
 0x12b   : > { %v1366_v51 = vpop.eup %1365  ;;  %v880_v52 = vmul.f32 %v1364_v48, %v1356_v28  ;;  %1385 = vtanh.f32 %v427_v36  ;;  %v764_v53 = vadd.f32 %v678_v50, %v79_v41  ;;  %v680_v54 = vpop.f32.mrb[19].mxu0  ;;  %v1190_v57 = vmul.f32 -1.442695, %v760_v46 }
 0x12c   : > { %v1368_v55 = vpop.eup %1367  ;;  %1387 = vrcp.f32 %v859_v27  ;;  %v860_v56 = vadd.f32 1.0, %v1366_v51  ;;  %v1195_v62 = vmul.f32 -1.442695, %v761_v49  ;;  %v1775_v63 = vpop.f32.mrb[16].mxu1  ;;  %v765_v7 = vadd.f32 %v680_v54, %v80_v58  ;;  %v77_v58 = vld [vmem:[%s1744_s19 + $0xb0] sm:$0xff] }
 0x12d   : > { %v1370_v59 = vpop.eup %1369  ;;  %v892_v60 = vmul.f32 %v1368_v55, %v1750_v8  ;;  %v885_v61 = vadd.f32 %v880_v52, %v875_v44  ;;  %1389 = vpow2.f32 %v1187_v45  ;;  %v1191_v1 = vmul.f32 -1.442695, %v764_v53  ;;  %v1778_v4 = vpop.f32.mrb[17].mxu1  ;;  %v78_v53 = vld [vmem:[%s1744_s19 + $0xb8] sm:$0xff] }
 0x12e   : > { %v1372_v0 = vpop.eup %1371  ;;  %1391 = vrcp.f32 %v860_v56  ;;  %v1781_v8 = vpop.f32.mrb[18].mxu1  ;;  %v1196_v3 = vmul.f32 -1.442695, %v765_v7  ;;  %v759_v48 = vadd.f32 %v1766_v42, %v74_v34  ;;  %v762_v7 = vadd.f32 %v1775_v63, %v77_v58 }
 0x12f   : > { %v1374_v5 = vpop.eup %1373  ;;  %1022 = vst [vmem:[#allocation2] sm:$0xff] %v892_v60  ;;  %1043 = vst [vmem:[%s1771_s23] sm:$0xff] %v892_v60  ;;  %v893_v6 = vmul.f32 %v1372_v0, %v1360_v39  ;;  %1393 = vtanh.f32 %v885_v61  ;;  %v1783_v11 = vpop.f32.mrb[19].mxu1  ;;  %v83_v39 = vld [vmem:[%s1744_s19 + $0x120] sm:$0xff] }
 0x130   : > { %1030 = vst [vmem:[#allocation3 + $0x18] sm:$0xff] %v885_v61  ;;  %v1376_v9 = vpop.eup %1375  ;;  %1395 = vpow2.f32 %v1190_v57  ;;  %v684_v10 = vpop.f32.mrb[20].mxu0  ;;  %v876_v25 = vmul.f32 %v1374_v5, %v776_v13  ;;  %v1199_v57 = vmul.f32 -1.442695, %v759_v48  ;;  %v82_v5 = vld [vmem:[%s1744_s19 + $0xf8] sm:$0xff]  ;;  %v900_v48 = vld [vmem:[#allocation5 + $0x18] sm:$0xff] }
 0x131   : > { %v1378_v12 = vpop.eup %1377  ;;  %1023 = vst [vmem:[#allocation2 + $0x8] sm:$0xff] %v893_v6  ;;  %1044 = vst [vmem:[%s1771_s23 + $0x8] sm:$0xff] %v893_v6  ;;  %v917_v14 = vadd.f32 1.0, %v1376_v9  ;;  %1397 = vpow2.f32 %v1195_v62  ;;  %v686_v17 = vpop.f32.mrb[21].mxu0  ;;  %v768_v50 = vadd.f32 %v684_v10, %v83_v39  ;;  %v763_v62 = vadd.f32 %v1778_v4, %v78_v53  ;;  %v899_v39 = vld [vmem:[#allocation5 + $0x10] sm:$0xff] }
 0x132   : > { %v1380_v18 = vpop.eup %1379  ;;  %v947_v19 = vadd.f32 1.0, %v1378_v12  ;;  %1399 = vpow2.f32 %v1191_v1  ;;  %v688_v20 = vpop.f32.mrb[22].mxu0  ;;  %v769_v38 = vadd.f32 %v686_v17, %v84_v43  ;;  %v897_v1 = vld [vmem:[#allocation5] sm:$0xff]  ;;  %v767_v4 = vadd.f32 %v1783_v11, %v82_v5  ;;  %v898_v17 = vld [vmem:[#allocation5 + $0x8] sm:$0xff] }
 0x133   : > { %v1382_v21 = vpop.eup %1381  ;;  %1401 = vrcp.f32 %v917_v14  ;;  %v918_v22 = vadd.f32 1.0, %v1380_v18  ;;  %v689_v23 = vpop.f32.mrb[23].mxu0  ;;  %v1192_v61 = vmul.f32 -1.442695, %v768_v50  ;;  %v1200_v13 = vmul.f32 -1.442695, %v763_v62 }
 0x134   : > { %v1384_v24 = vpop.eup %1383  ;;  %1403 = vrcp.f32 %v947_v19  ;;  %v948_v28 = vadd.f32 1.0, %v1382_v21  ;;  %v1791_v35 = vpop.f32.mrb[20].mxu1  ;;  %v1197_v2 = vmul.f32 -1.442695, %v769_v38  ;;  %v81_v14 = vld [vmem:[%s1744_s19 + $0xf0] sm:$0xff] }
 0x135   : > { %v1386_v32 = vpop.eup %1385  ;;  %1405 = vrcp.f32 %v918_v22  ;;  %v1794_v31 = vpop.f32.mrb[21].mxu1  ;;  %v85_v21 = vld [vmem:[%s1744_s19 + $0x130] sm:$0xff] }
 0x136   : > { %v1388_v36 = vpop.eup %1387  ;;  %1407 = vrcp.f32 %v948_v28  ;;  %v881_v37 = vmul.f32 %v1386_v32, %v1370_v59  ;;  %v749_v44 = vpop.f32.mrb[22].mxu1  ;;  %v771_v23 = vadd.f32 %v1794_v31, %v86_v15  ;;  %v1201_v28 = vmul.f32 -1.442695, %v767_v4 }
 0x137   : > { %v1390_v40 = vpop.eup %1389  ;;  %v894_v41 = vmul.f32 %v1388_v36, %v1384_v24  ;;  %1409 = vpow2.f32 %v1196_v3  ;;  %v750_v27 = vpop.f32.mrb[23].mxu1  ;;  %v766_v3 = vadd.f32 %v1781_v8, %v81_v14  ;;  %v770_v32 = vadd.f32 %v1791_v35, %v85_v21 }
 0x138   : > { %v1392_v45 = vpop.eup %1391  ;;  %v886_v46 = vadd.f32 %v881_v37, %v876_v25  ;;  %v861_v47 = vadd.f32 1.0, %v1390_v40  ;;  %1411 = vtanh.f32 %v754_v29  ;;  %v1202_v8 = vmul.f32 -1.442695, %v771_v23 }
 0x139   : > { %v1394_v49 = vpop.eup %1393  ;;  %1024 = vst [vmem:[#allocation2 + $0x10] sm:$0xff] %v894_v41  ;;  %1045 = vst [vmem:[%s1771_s23 + $0x10] sm:$0xff] %v894_v41  ;;  %1413 = vpow2.f32 %v1198_v33 }
 0x13a   : > { %v1396_v51 = vpop.eup %1395  ;;  %v895_v52 = vmul.f32 %v1394_v49, %v1392_v45  ;;  %1415 = vtanh.f32 %v886_v46  ;;  %1031 = vst [vmem:[#allocation3 + $0x20] sm:$0xff] %v886_v46 }
 0x13b   : > { %v1398_v54 = vpop.eup %1397  ;;  %1417 = vrcp.f32 %v861_v47  ;;  %v919_v55 = vadd.f32 1.0, %v1396_v51 }
 0x13c   : > { %v1400_v56 = vpop.eup %1399  ;;  %1025 = vst [vmem:[#allocation2 + $0x18] sm:$0xff] %v895_v52  ;;  %1046 = vst [vmem:[%s1771_s23 + $0x18] sm:$0xff] %v895_v52  ;;  %v949_v42 = vadd.f32 1.0, %v1398_v54  ;;  %1419 = vtanh.f32 %v758_v26 }
 0x13d   : > { %v1402_v59 = vpop.eup %1401  ;;  %1421 = vrcp.f32 %v919_v55  ;;  %v920_v60 = vadd.f32 1.0, %v1400_v56 }
 0x13e   : > { %v1404_v0 = vpop.eup %1403  ;;  %1423 = vrcp.f32 %v949_v42 }
 0x13f   : > { %v1406_v6 = vpop.eup %1405  ;;  %1425 = vrcp.f32 %v920_v60  ;;  %v997_v12 = vmul.f32 %v1404_v0, %v897_v1  ;;  %v901_v0 = vld [vmem:[#allocation5 + $0x20] sm:$0xff] }
 0x140   : > { %v1408_v9 = vpop.eup %1407  ;;  %1427 = vpow2.f32 %v1199_v57 }
 0x141   : > { %v1410_v10 = vpop.eup %1409  ;;  %1429 = vpow2.f32 %v1192_v61  ;;  %v998_v25 = vmul.f32 %v1408_v9, %v898_v17 }
 0x142   : > { %v1412_v16 = vpop.eup %1411  ;;  %v950_v18 = vadd.f32 1.0, %v1410_v10  ;;  %1431 = vpow2.f32 %v1197_v2 }
 0x143   : > { %v1414_v19 = vpop.eup %1413  ;;  %v1002_v20 = vmul.f32 %v1412_v16, %v1402_v59  ;;  %1433 = vtanh.f32 %v762_v7 }
 0x144   : > { %v1416_v63 = vpop.eup %1415  ;;  %1435 = vrcp.f32 %v950_v18  ;;  %v982_v22 = vadd.f32 1.0, %v1414_v19 }
 0x145   : > { %v1418_v24 = vpop.eup %1417  ;;  %v1007_v11 = vadd.f32 %v1002_v20, %v997_v12  ;;  %1437 = vpow2.f32 %v1200_v13 }
 0x146   : > { %v1420_v29 = vpop.eup %1419  ;;  %v896_v30 = vmul.f32 %v1418_v24, %v1416_v63  ;;  %1439 = vrcp.f32 %v982_v22 }
 0x147   : > { %v1422_v33 = vpop.eup %1421  ;;  %1441 = vtanh.f32 %v1007_v11  ;;  %1037 = vst [vmem:[#allocation5] sm:$0xff] %v1007_v11  ;;  %v1003_v34 = vmul.f32 %v1420_v29, %v1406_v6 }
 0x148   : > { %v1424_v36 = vpop.eup %1423  ;;  %1026 = vst [vmem:[#allocation2 + $0x20] sm:$0xff] %v896_v30  ;;  %1047 = vst [vmem:[%s1771_s23 + $0x20] sm:$0xff] %v896_v30  ;;  %1443 = vtanh.f32 %v766_v3 }
 0x149   : > { %v1426_v37 = vpop.eup %1425  ;;  %v1008_v31 = vadd.f32 %v1003_v34, %v998_v25  ;;  %1445 = vpow2.f32 %v1201_v28  ;;  %v999_v43 = vmul.f32 %v1424_v36, %v899_v39 }
 0x14a   : > { %v1428_v40 = vpop.eup %1427  ;;  %1447 = vtanh.f32 %v770_v32 }
 0x14b   : > { %v1430_v41 = vpop.eup %1429  ;;  %1449 = vtanh.f32 %v1008_v31  ;;  %1038 = vst [vmem:[#allocation5 + $0x8] sm:$0xff] %v1008_v31  ;;  %v983_v35 = vadd.f32 1.0, %v1428_v40 }
 0x14c   : > { %v1432_v26 = vpop.eup %1431  ;;  %v921_v44 = vadd.f32 1.0, %v1430_v41  ;;  %1451 = vpow2.f32 %v1202_v8 }
 0x14d   : > { %v1434_v45 = vpop.eup %1433  ;;  %1453 = vrcp.f32 %v983_v35  ;;  %v951_v46 = vadd.f32 1.0, %v1432_v26 }
 0x14e   : > { %v1436_v47 = vpop.eup %1435  ;;  %1455 = vrcp.f32 %v921_v44  ;;  %v1004_v27 = vmul.f32 %v1434_v45, %v1422_v33 }
 0x14f   : > { %v1438_v49 = vpop.eup %1437  ;;  %1457 = vrcp.f32 %v951_v46  ;;  %v1000_v53 = vmul.f32 %v1436_v47, %v900_v48 }
 0x150   : > { %v1440_v50 = vpop.eup %1439  ;;  %v1009_v51 = vadd.f32 %v1004_v27, %v999_v43  ;;  %v984_v52 = vadd.f32 1.0, %v1438_v49 }
 0x151   : > { %v1442_v38 = vpop.eup %1441 }
 0x152   : > { %v1444_v54 = vpop.eup %1443  ;;  %v1017_v55 = vmul.f32 %v1442_v38, %v1440_v50  ;;  %1459 = vtanh.f32 %v1009_v51  ;;  %1039 = vst [vmem:[#allocation5 + $0x10] sm:$0xff] %v1009_v51 }
 0x153   : > { %v1446_v56 = vpop.eup %1445  ;;  %1461 = vrcp.f32 %v984_v52  ;;  %v1005_v42 = vmul.f32 %v1444_v54, %v1426_v37 }
 0x154   : > { %v1448_v57 = vpop.eup %1447  ;;  %1032 = vst [vmem:[#allocation4] sm:$0xff] %v1017_v55  ;;  %1049 = vst [vmem:[%s1819_s27] sm:$0xff] %v1017_v55  ;;  %v985_v58 = vadd.f32 1.0, %v1446_v56 }
 0x155   : > { %v1450_v59 = vpop.eup %1449  ;;  %v1010_v60 = vadd.f32 %v1005_v42, %v1000_v53 }
 0x156   : > { %v1452_v61 = vpop.eup %1451  ;;  %1463 = vrcp.f32 %v985_v58 }
 0x157   : > { %v1454_v62 = vpop.eup %1453  ;;  %1465 = vtanh.f32 %v1010_v60  ;;  %1040 = vst [vmem:[#allocation5 + $0x18] sm:$0xff] %v1010_v60  ;;  %v986_v5 = vadd.f32 1.0, %v1452_v61 }
 0x158   : > { %v1456_v1 = vpop.eup %1455  ;;  %v1018_v2 = vmul.f32 %v1454_v62, %v1450_v59 }
 0x159   : > { %v1458_v6 = vpop.eup %1457  ;;  %v1006_v7 = vmul.f32 %v1456_v1, %v1448_v57  ;;  %1467 = vrcp.f32 %v986_v5 }
 0x15a   : > { %1033 = vst [vmem:[#allocation4 + $0x8] sm:$0xff] %v1018_v2  ;;  %1050 = vst [vmem:[%s1819_s27 + $0x8] sm:$0xff] %v1018_v2  ;;  %v1001_v9 = vmul.f32 %v1458_v6, %v901_v0 }
 0x15c   : > { %v1460_v10 = vpop.eup %1459  ;;  %v1011_v12 = vadd.f32 %v1006_v7, %v1001_v9 }
 0x15d   : > { %v1462_v13 = vpop.eup %1461 }
 0x15e   : > { %v1019_v14 = vmul.f32 %v1462_v13, %v1460_v10  ;;  %1469 = vtanh.f32 %v1011_v12  ;;  %1041 = vst [vmem:[#allocation5 + $0x20] sm:$0xff] %v1011_v12 }
 0x160   : > { %v1464_v4 = vpop.eup %1463  ;;  %1034 = vst [vmem:[#allocation4 + $0x10] sm:$0xff] %v1019_v14  ;;  %1051 = vst [vmem:[%s1819_s27 + $0x10] sm:$0xff] %v1019_v14 }
 0x161   : > { %v1466_v15 = vpop.eup %1465 }
 0x162   : > { %v1020_v16 = vmul.f32 %v1466_v15, %v1464_v4 }
 0x163   : > { %v1468_v17 = vpop.eup %1467 }
 0x164   : > { %1035 = vst [vmem:[#allocation4 + $0x18] sm:$0xff] %v1020_v16  ;;  %1052 = vst [vmem:[%s1819_s27 + $0x18] sm:$0xff] %v1020_v16 }
 0x165   :  { %38 = sbr.rel (!%p36_p0) target bundleno = 11 (0xb), region = 48 }
 0x168   : > { %v1470_v18 = vpop.eup %1469 }
 0x169   : > { %v1021_v19 = vmul.f32 %v1470_v18, %v1468_v17 }
 0x16b   : > { %1036 = vst [vmem:[#allocation4 + $0x20] sm:$0xff] %v1021_v19  ;;  %1053 = vst [vmem:[%s1819_s27 + $0x20] sm:$0xff] %v1021_v19 }

// kernel: run.49
= control target key start
LH: loop header
LB: loop body
LE: loop exit
PB: predicated region body
PF: predicated region fallthrough
CT: control target
= control target key end

     0   :  { %s572_s15 = smov 0   ;;  %s574_s16 = smov 0   ;;  %s624_s0 = inlined_call_operand.vmem [shape: f32[4,24,128], index: 0, kind: input, shape index: {}]   ;;  %s625_s1 = inlined_call_operand.vmem [shape: f32[4,1,1], index: 1, kind: input, shape index: {}]   ;;  %s626_s2 = inlined_call_operand.vmem [shape: f32[4,1,128], index: 2, kind: input, shape index: {}]   ;;  %s627_s3 = inlined_call_operand.vmem [shape: f32[4,1,128], index: 3, kind: input, shape index: {}]   ;;  %s628_s4 = inlined_call_operand.vmem [shape: f32[4,24,128], index: 4, kind: output, shape index: {}]  }
   0x1   :  { %s576_s17 = smov 0  }
   0x2 LB: > { %s26_s18 = sadd.s32 1, %s540_s16  ;;  %p481_p0 = scmp.ge.s32.totalorder %s544_s17, 1  ;;  %s544_s17 = sphi %s576_s17, %s14_s17   ;;  %s540_s16 = sphi %s574_s16, %s630_s16   ;;  %s536_s15 = sphi %s572_s15, %s629_s15  }
   0x3   : > { %p28_p1 = scmp.ge.s32.totalorder %s26_s18, 4  ;;  %p207_p2 = scmp.lt.s32.totalorder %s544_s17, 5 }
   0x5   : > { %s632_s18 = smov (%p28_p1, %s26_s18), 0  ;;  %p208_p3 = pnand %p481_p0, %p207_p2 }
   0x6   : > { %p251_p4 = scmp.lt.s32.totalorder (!%p208_p3), %s536_s15, 3  ;;  %v546_v0 = vmov (!%p208_p3), 0  }
   0x7   : > { %211 = sbr.rel (%p208_p3) target bundleno = 330 (0x14a), region = 36  ;;  %515 = vset.pattern.permute.xlu0 (!%p208_p3), %v546_v0 }
   0xe   : > { %s634_s15 = smov (!%p251_p4, %s536_s15), 3 }
   0xf   : > { %s262_s21 = scalar_lea.vmem %s625_s1, %s634_s15  ;;  %s489_s22 = smul.u32 24, %s634_s15 }
  0x10   : > { %v484_v1 = vld [vmem:[%s262_s21] ss:$0 sm:$0xff]  ;;  %s265_s28 = scalar_lea.vmem %s626_s2, %s634_s15  ;;  %s268_s5 = scalar_lea.vmem %s627_s3, %s634_s15 }
  0x11   : > { %292 = vperm.xlu0 %515, %v484_v1   ;;  %s258_s25 = scalar_lea.vmem %s624_s0, %s489_s22  ;;  %v485_v38 = vld [vmem:[%s265_s28] ss:$0 sm:$0xff]  ;;  %s277_s8 = scalar_lea.vmem %s628_s4, %s489_s22 }
  0x12   : > { %v279_v2 = vld [vmem:[%s258_s25] sm:$0xff]  ;;  %v280_v3 = vld [vmem:[%s258_s25 + $0x8] sm:$0xff]  ;;  %v281_v5 = vld [vmem:[%s258_s25 + $0x10] sm:$0xff] }
  0x13   : > { %vm283_vm0 = vcmp.ge.f32.partialorder %v280_v3, 0.0  ;;  %vm282_vm1 = vcmp.ge.f32.partialorder %v279_v2, 0.0  ;;  %vm284_vm2 = vcmp.ge.f32.partialorder %v281_v5, 0.0  ;;  %v486_v40 = vld [vmem:[%s268_s5] ss:$0 sm:$0xff] }
  0x90   : > { %v293_v4 = vpop.permute.xlu0 %292 }
  0x91   : > { %v295_v6 = vmul.f32 %v293_v4, %v279_v2  ;;  %v296_v7 = vmul.f32 %v293_v4, %v280_v3  ;;  %v297_v8 = vmul.f32 %v293_v4, %v281_v5 }
  0x93   : > { %v299_v9 = vsel %vm283_vm0, %v280_v3, %v296_v7  ;;  %v298_v10 = vsel %vm282_vm1, %v279_v2, %v295_v6  ;;  %v300_v11 = vsel %vm284_vm2, %v281_v5, %v297_v8 }
  0x94   : > { %303 = vadd.xlane.f32.xlu1 %v299_v9  ;;  %301 = vadd.xlane.f32.xlu0 %v298_v10  ;;  %v310_v12 = vmul.f32 %v298_v10, %v298_v10  ;;  %v311_v13 = vmul.f32 %v299_v9, %v299_v9  ;;  %v312_v14 = vmul.f32 %v300_v11, %v300_v11 }
  0x98   : > { %305 = vadd.xlane.f32.xlu1 %v300_v11 }
  0x9c   : > { %313 = vadd.xlane.f32.xlu1 %v310_v12 }
  0xa0   : > { %315 = vadd.xlane.f32.xlu1 %v311_v13 }
  0xa4   : > { %317 = vadd.xlane.f32.xlu1 %v312_v14 }
 0x121   : > { %v304_v15 = vpop.xlane.xlu1 %303  ;;  %v302_v16 = vpop.xlane.xlu0 %301 }
 0x122   : > { %v307_v18 = vmul.f32 0.014705882, %v302_v16  ;;  %v308_v20 = vmul.f32 0.014705882, %v304_v15 }
 0x124   : > { %v322_v21 = vmul.f32 %v307_v18, %v307_v18  ;;  %v323_v25 = vmul.f32 %v308_v20, %v308_v20  ;;  %v328_v36 = vsub.f32 %v298_v10, %v307_v18  ;;  %v329_v41 = vsub.f32 %v299_v9, %v308_v20 }
 0x125   : > { %v306_v17 = vpop.xlane.xlu1 %305 }
 0x126   : > { %v309_v26 = vmul.f32 0.014705882, %v306_v17 }
 0x128   : > { %v324_v31 = vmul.f32 %v309_v26, %v309_v26  ;;  %v330_v46 = vsub.f32 %v300_v11, %v309_v26 }
 0x129   : > { %v314_v19 = vpop.xlane.xlu1 %313 }
 0x12a   : > { %v319_v22 = vmul.f32 0.014705882, %v314_v19 }
 0x12c   : > { %v325_v23 = vsub.f32 %v319_v22, %v322_v21 }
 0x12d   : > { %v316_v24 = vpop.xlane.xlu1 %315 }
 0x12e   : > { %v331_v27 = vadd.f32 1e-05, %v325_v23  ;;  %v320_v28 = vmul.f32 0.014705882, %v316_v24 }
 0x130   : > { %516 = vrsqrt.f32 %v331_v27  ;;  %v326_v29 = vsub.f32 %v320_v28, %v323_v25 }
 0x131   : > { %v318_v30 = vpop.xlane.xlu1 %317 }
 0x132   : > { %v332_v32 = vadd.f32 1e-05, %v326_v29  ;;  %v321_v33 = vmul.f32 0.014705882, %v318_v30 }
 0x134   : > { %518 = vrsqrt.f32 %v332_v32  ;;  %v327_v34 = vsub.f32 %v321_v33, %v324_v31 }
 0x136   : > { %v333_v35 = vadd.f32 1e-05, %v327_v34 }
 0x138   : > { %520 = vrsqrt.f32 %v333_v35 }
 0x13a   : > { %v517_v37 = vpop.eup %516 }
 0x13b   : > { %v337_v39 = vmul.f32 %v517_v37, %v328_v36 }
 0x13d   : > { %v347_v42 = vmul.f32 %v485_v38, %v337_v39 }
 0x13e   : > { %v519_v43 = vpop.eup %518 }
 0x13f   : > { %v357_v44 = vadd.f32 %v486_v40, %v347_v42  ;;  %v338_v45 = vmul.f32 %v519_v43, %v329_v41 }
 0x141   : > { %360 = vst [vmem:[%s277_s8] sm:$0xff] %v357_v44  ;;  %v348_v47 = vmul.f32 %v485_v38, %v338_v45 }
 0x142   : > { %v521_v48 = vpop.eup %520 }
 0x143   : > { %v358_v49 = vadd.f32 %v486_v40, %v348_v47  ;;  %v339_v50 = vmul.f32 %v521_v48, %v330_v46 }
 0x145   : > { %361 = vst [vmem:[%s277_s8 + $0x8] sm:$0xff] %v358_v49  ;;  %v349_v51 = vmul.f32 %v485_v38, %v339_v50 }
 0x147   : > { %v359_v52 = vadd.f32 %v486_v40, %v349_v51 }
 0x149   : > { %362 = vst [vmem:[%s277_s8 + $0x10] sm:$0xff] %v359_v52 }
 0x14a PF: > { %s14_s17 = sadd.s32 1, %s544_s17   ;;  %s629_s15 = smov %s540_s16 }
 0x14b   : > { %p11_p5 = scmp.ge.s32.totalorder %s14_s17, 6   ;;  %s630_s16 = smov %s632_s18 }
 0x14d   :  { %13 = sbr.rel (!%p11_p5) target bundleno = 2 (0x2), region = 75 }

// kernel: run.50
= control target key start
LH: loop header
LB: loop body
LE: loop exit
PB: predicated region body
PF: predicated region fallthrough
CT: control target
= control target key end

     0   :  { %s644_s15 = smov 0   ;;  %s646_s16 = smov 0   ;;  %s731_s0 = inlined_call_operand.vmem [shape: f32[2,24,256], index: 0, kind: input, shape index: {}]   ;;  %s732_s1 = inlined_call_operand.vmem [shape: f32[2,1,1], index: 1, kind: input, shape index: {}]   ;;  %s733_s2 = inlined_call_operand.vmem [shape: f32[2,1,256], index: 2, kind: input, shape index: {}]   ;;  %s734_s3 = inlined_call_operand.vmem [shape: f32[2,1,256], index: 3, kind: input, shape index: {}]   ;;  %s735_s4 = inlined_call_operand.vmem [shape: f32[2,24,256], index: 4, kind: output, shape index: {}]  }
   0x1   :  { %s648_s17 = smov 0  }
   0x2 LB: > { %s26_s18 = sadd.s32 1, %s612_s16  ;;  %p553_p0 = scmp.ge.s32.totalorder %s616_s17, 1  ;;  %s616_s17 = sphi %s648_s17, %s14_s17   ;;  %s612_s16 = sphi %s646_s16, %s737_s16   ;;  %s608_s15 = sphi %s644_s15, %s736_s15  }
   0x3   : > { %p28_p1 = scmp.ge.s32.totalorder %s26_s18, 2  ;;  %p210_p2 = scmp.lt.s32.totalorder %s616_s17, 3 }
   0x5   : > { %s739_s18 = smov (%p28_p1, %s26_s18), 0  ;;  %p211_p3 = pnand %p553_p0, %p210_p2 }
   0x6   : > { %p258_p4 = scmp.lt.s32.totalorder (!%p211_p3), %s608_s15, 1  ;;  %v618_v0 = vmov (!%p211_p3), 0   ;;  %v380_v42 = vlaneseq (!%p211_p3) }
   0x7   : > { %214 = sbr.rel (%p211_p3) target bundleno = 332 (0x14c), region = 36  ;;  %587 = vset.pattern.permute.xlu0 (!%p211_p3), %v618_v0 }
   0x8   : > { %v381_v49 = vshrl.u32 (!%p211_p3), %v380_v42, 7 }
   0xa   : > { %v382_v55 = vsub.s32 (!%p211_p3), 0, %v381_v49  ;;  %v386_v56 = vsub.s32 (!%p211_p3), 1, %v381_v49 }
   0xe   : > { %s741_s15 = smov (!%p258_p4, %s608_s15), 1 }
   0xf   : > { %s270_s21 = scalar_lea.vmem %s732_s1, %s741_s15  ;;  %s561_s22 = smul.u32 48, %s741_s15 }
  0x10   : > { %v558_v1 = vld [vmem:[%s270_s21] ss:$0 sm:$0xff]  ;;  %s555_s26 = sshll.u32 %s741_s15, 1 }
  0x11   : > { %309 = vperm.xlu0 %587, %v558_v1   ;;  %s266_s25 = scalar_lea.vmem %s731_s0, %s561_s22  ;;  %s274_s29 = scalar_lea.vmem %s733_s2, %s555_s26 }
  0x12   : > { %v292_v2 = vld [vmem:[%s266_s25 + $0x10] sm:$0xff]  ;;  %v293_v3 = vld [vmem:[%s266_s25 + $0x18] sm:$0xff]  ;;  %v290_v4 = vld [vmem:[%s266_s25] sm:$0xff]  ;;  %s278_s6 = scalar_lea.vmem %s734_s3, %s555_s26  ;;  %s288_s9 = scalar_lea.vmem %s735_s4, %s561_s22 }
  0x13   : > { %v291_v5 = vld [vmem:[%s266_s25 + $0x8] sm:$0xff]  ;;  %v294_v6 = vld [vmem:[%s266_s25 + $0x20] sm:$0xff]  ;;  %vm298_vm0 = vcmp.ge.f32.partialorder %v292_v2, 0.0  ;;  %vm299_vm1 = vcmp.ge.f32.partialorder %v293_v3, 0.0  ;;  %vm296_vm2 = vcmp.ge.f32.partialorder %v290_v4, 0.0 }
  0x14   : > { %v295_v7 = vld [vmem:[%s266_s25 + $0x28] sm:$0xff]  ;;  %vm297_vm3 = vcmp.ge.f32.partialorder %v291_v5, 0.0  ;;  %vm300_vm4 = vcmp.ge.f32.partialorder %v294_v6, 0.0  ;;  %v378_v57 = vld [vmem:[%s274_s29] sm:$0x3] }
  0x15   : > { %vm301_vm5 = vcmp.ge.f32.partialorder %v295_v7, 0.0  ;;  %v396_v59 = vld [vmem:[%s278_s6] sm:$0x3]  ;;  %v383_v60 = vrot.slane %v378_v57, %v382_v55  ;;  %v387_v61 = vrot.slane %v378_v57, %v386_v56 }
  0x16   : > { %v401_v1 = vrot.slane %v396_v59, %v382_v55 }
  0x90   : > { %v310_v8 = vpop.permute.xlu0 %309 }
  0x91   : > { %v314_v9 = vmul.f32 %v310_v8, %v292_v2  ;;  %v315_v10 = vmul.f32 %v310_v8, %v293_v3  ;;  %v312_v11 = vmul.f32 %v310_v8, %v290_v4  ;;  %v313_v12 = vmul.f32 %v310_v8, %v291_v5 }
  0x92   : > { %v316_v13 = vmul.f32 %v310_v8, %v294_v6  ;;  %v317_v14 = vmul.f32 %v310_v8, %v295_v7 }
  0x93   : > { %v674_v15 = vsel %vm298_vm0, %v292_v2, %v314_v9  ;;  %v676_v16 = vsel %vm299_vm1, %v293_v3, %v315_v10  ;;  %v678_v17 = vsel %vm296_vm2, %v290_v4, %v312_v11  ;;  %v680_v18 = vsel %vm297_vm3, %v291_v5, %v313_v12 }
  0x94   : > { %v327_v19 = vadd.f32 %v676_v16, %v674_v15  ;;  %v324_v20 = vadd.f32 %v680_v18, %v678_v17  ;;  %v686_v21 = vsel %vm300_vm4, %v294_v6, %v316_v13  ;;  %v688_v22 = vsel %vm301_vm5, %v295_v7, %v317_v14 }
  0x95   : > { %v330_v23 = vadd.f32 %v688_v22, %v686_v21  ;;  %v336_v24 = vmul.f32 %v678_v17, %v678_v17  ;;  %v337_v25 = vmul.f32 %v680_v18, %v680_v18  ;;  %v338_v27 = vmul.f32 %v674_v15, %v674_v15 }
  0x96   : > { %328 = vadd.xlane.f32.xlu1 %v327_v19  ;;  %325 = vadd.xlane.f32.xlu0 %v324_v20  ;;  %v339_v28 = vmul.f32 %v676_v16, %v676_v16  ;;  %v340_v30 = vmul.f32 %v686_v21, %v686_v21  ;;  %v341_v31 = vmul.f32 %v688_v22, %v688_v22 }
  0x97   : > { %v342_v26 = vadd.f32 %v337_v25, %v336_v24  ;;  %v405_v2 = vrot.slane %v396_v59, %v386_v56 }
  0x98   : > { %v345_v29 = vadd.f32 %v339_v28, %v338_v27  ;;  %v348_v32 = vadd.f32 %v341_v31, %v340_v30 }
  0x9a   : > { %331 = vadd.xlane.f32.xlu1 %v330_v23 }
  0x9e   : > { %343 = vadd.xlane.f32.xlu1 %v342_v26 }
  0xa2   : > { %346 = vadd.xlane.f32.xlu1 %v345_v29 }
  0xa6   : > { %349 = vadd.xlane.f32.xlu1 %v348_v32 }
 0x123   : > { %v329_v33 = vpop.xlane.xlu1 %328  ;;  %v326_v34 = vpop.xlane.xlu0 %325 }
 0x124   : > { %v333_v36 = vmul.f32 0.007352941, %v326_v34  ;;  %v334_v38 = vmul.f32 0.007352941, %v329_v33 }
 0x126   : > { %v354_v39 = vmul.f32 %v333_v36, %v333_v36  ;;  %v355_v46 = vmul.f32 %v334_v38, %v334_v38  ;;  %v360_v62 = vsub.f32 %v678_v17, %v333_v36  ;;  %v361_v63 = vsub.f32 %v680_v18, %v333_v36 }
 0x127   : > { %v332_v35 = vpop.xlane.xlu1 %331  ;;  %v362_v5 = vsub.f32 %v674_v15, %v334_v38  ;;  %v363_v6 = vsub.f32 %v676_v16, %v334_v38 }
 0x128   : > { %v335_v44 = vmul.f32 0.007352941, %v332_v35 }
 0x12a   : > { %v356_v52 = vmul.f32 %v335_v44, %v335_v44  ;;  %v364_v14 = vsub.f32 %v686_v21, %v335_v44  ;;  %v365_v17 = vsub.f32 %v688_v22, %v335_v44 }
 0x12b   : > { %v344_v37 = vpop.xlane.xlu1 %343 }
 0x12c   : > { %v351_v40 = vmul.f32 0.007352941, %v344_v37 }
 0x12e   : > { %v357_v41 = vsub.f32 %v351_v40, %v354_v39 }
 0x12f   : > { %v347_v43 = vpop.xlane.xlu1 %346 }
 0x130   : > { %v366_v45 = vadd.f32 1e-05, %v357_v41  ;;  %v352_v47 = vmul.f32 0.007352941, %v347_v43 }
 0x132   : > { %588 = vrsqrt.f32 %v366_v45  ;;  %v358_v48 = vsub.f32 %v352_v47, %v355_v46 }
 0x133   : > { %v350_v50 = vpop.xlane.xlu1 %349 }
 0x134   : > { %v367_v51 = vadd.f32 1e-05, %v358_v48  ;;  %v353_v53 = vmul.f32 0.007352941, %v350_v50 }
 0x136   : > { %590 = vrsqrt.f32 %v367_v51  ;;  %v359_v54 = vsub.f32 %v353_v53, %v356_v52 }
 0x138   : > { %v368_v58 = vadd.f32 1e-05, %v359_v54 }
 0x13a   : > { %592 = vrsqrt.f32 %v368_v58 }
 0x13c   : > { %v589_v0 = vpop.eup %588 }
 0x13d   : > { %v372_v3 = vmul.f32 %v589_v0, %v360_v62  ;;  %v373_v4 = vmul.f32 %v589_v0, %v361_v63 }
 0x13f   : > { %v390_v7 = vmul.f32 %v383_v60, %v372_v3  ;;  %v391_v8 = vmul.f32 %v387_v61, %v373_v4 }
 0x140   : > { %v591_v9 = vpop.eup %590 }
 0x141   : > { %v408_v10 = vadd.f32 %v401_v1, %v390_v7  ;;  %v409_v11 = vadd.f32 %v405_v2, %v391_v8  ;;  %v374_v12 = vmul.f32 %v591_v9, %v362_v5  ;;  %v375_v13 = vmul.f32 %v591_v9, %v363_v6 }
 0x143   : > { %414 = vst [vmem:[%s288_s9] sm:$0xff] %v408_v10  ;;  %415 = vst [vmem:[%s288_s9 + $0x8] sm:$0xff] %v409_v11  ;;  %v392_v15 = vmul.f32 %v383_v60, %v374_v12  ;;  %v393_v16 = vmul.f32 %v387_v61, %v375_v13 }
 0x144   : > { %v593_v18 = vpop.eup %592 }
 0x145   : > { %v410_v19 = vadd.f32 %v401_v1, %v392_v15  ;;  %v411_v20 = vadd.f32 %v405_v2, %v393_v16  ;;  %v376_v23 = vmul.f32 %v593_v18, %v364_v14  ;;  %v377_v24 = vmul.f32 %v593_v18, %v365_v17 }
 0x147   : > { %416 = vst [vmem:[%s288_s9 + $0x10] sm:$0xff] %v410_v19  ;;  %417 = vst [vmem:[%s288_s9 + $0x18] sm:$0xff] %v411_v20  ;;  %v394_v25 = vmul.f32 %v383_v60, %v376_v23  ;;  %v395_v26 = vmul.f32 %v387_v61, %v377_v24 }
 0x149   : > { %v412_v27 = vadd.f32 %v401_v1, %v394_v25  ;;  %v413_v28 = vadd.f32 %v405_v2, %v395_v26 }
 0x14b   : > { %418 = vst [vmem:[%s288_s9 + $0x20] sm:$0xff] %v412_v27  ;;  %419 = vst [vmem:[%s288_s9 + $0x28] sm:$0xff] %v413_v28 }
 0x14c PF: > { %s14_s17 = sadd.s32 1, %s616_s17   ;;  %s736_s15 = smov %s612_s16 }
 0x14d   : > { %p11_p5 = scmp.ge.s32.totalorder %s14_s17, 4   ;;  %s737_s16 = smov %s739_s18 }
 0x14f   :  { %13 = sbr.rel (!%p11_p5) target bundleno = 2 (0x2), region = 75 }

// kernel: squeeze.34
= control target key start
LH: loop header
LB: loop body
LE: loop exit
PB: predicated region body
PF: predicated region fallthrough
CT: control target
= control target key end

     0   :  { %s797_s10 = smov 120   ;;  %vm3_vm0 = vcmask 138240   ;;  %s798_s4 = smov 111   ;;  %vm450_vm1 = vcmask 973824   ;;  %vm516_vm2 = vcmask 1039360   ;;  %vm454_vm3 = vcmask 72704   ;;  %s1590_s0 = inlined_call_operand.vmem [shape: f32[1,18,272], index: 0, kind: input, shape index: {}]   ;;  %s1591_s1 = inlined_call_operand.vmem [shape: f32[2,9,16,17], index: 1, kind: output, shape index: {}]  }
   0x1   :  { %v825_v0 = vld [vmem:[%s1590_s0 + $0x8] sm:$0xff]   ;;  %v595_v1 = vld [vmem:[%s1590_s0 + $0x38] sm:$0x3]   ;;  %v834_v2 = vld [vmem:[%s1590_s0] sm:$0xff]   ;;  %s799_s7 = smov 103   ;;  %s801_s13 = smov 86  }
   0x2   :  { %26 = vrot.lane.b32.xlu0 %v825_v0, %s797_s10  ;;  %52 = vrot.lane.b32.xlu1 %v595_v1, %s797_s10  ;;  %v839_v3 = vld [vmem:[%s1590_s0 + $0x18] sm:$0xff]   ;;  %v844_v4 = vld [vmem:[%s1590_s0 + $0x20] sm:$0xff]   ;;  %s802_s16 = smov 77   ;;  %v451_v9 = vsel %vm450_vm1, %v825_v0, %v834_v2  ;;  %s803_s23 = smov 9   ;;  %vm463_vm4 = vcmask 138312   ;;  %vm520_vm5 = vcmask 7168  }
   0x3   :  { %4 = vst.msk [vmem:[%s1591_s1] ss:$16 sm:$0x3] %vm3_vm0, %v834_v2   ;;  %5 = vst.msk [vmem:[%s1591_s1] ss:$16 sm:$0xc] %vm3_vm0, %v834_v2   ;;  %v477_v10 = vsel %vm450_vm1, %v844_v4, %v839_v3 }
   0x4   :  { %6 = vst.msk [vmem:[%s1591_s1] ss:$16 sm:$0x30] %vm3_vm0, %v834_v2   ;;  %7 = vst.msk [vmem:[%s1591_s1] ss:$16 sm:$0xc0] %vm3_vm0, %v834_v2  }
   0x5   :  { %579 = vst.msk [vmem:[%s1591_s1 + $0x80] ss:$16 sm:$0x3] %vm3_vm0, %v839_v3   ;;  %580 = vst.msk [vmem:[%s1591_s1 + $0x80] ss:$16 sm:$0xc] %vm3_vm0, %v839_v3  }
   0x6   :  { %581 = vst.msk [vmem:[%s1591_s1 + $0x80] ss:$16 sm:$0x30] %vm3_vm0, %v839_v3   ;;  %582 = vst.msk [vmem:[%s1591_s1 + $0x80] ss:$16 sm:$0xc0] %vm3_vm0, %v839_v3   ;;  %39 = vrot.lane.b32.xlu0 %v844_v4, %s797_s10  ;;  %58 = vrot.lane.b32.xlu1 %v834_v2, %s798_s4 }
   0x7   :  { %v606_v5 = vld [vmem:[%s1590_s0 + $0x30] sm:$0x3]   ;;  %v618_v6 = vld [vmem:[%s1590_s0 + $0x38] sm:$0x3]   ;;  %s800_s10 = smov 94   ;;  %v769_v16 = vld [vmem:[%s1590_s0 + $0x28] sm:$0xff]  }
   0x8   :  { %v629_v7 = vld [vmem:[%s1590_s0 + $0x30] sm:$0x3]   ;;  %v641_v8 = vld [vmem:[%s1590_s0 + $0x38] sm:$0x3]   ;;  %v779_v18 = vld [vmem:[%s1590_s0 + $0x40] sm:$0x3]   ;;  %v543_v19 = vsel %vm516_vm2, %v769_v16, %v844_v4 }
   0x9   :  { %v754_v11 = vld [vmem:[%s1590_s0 + $0x30] sm:$0x3]   ;;  %v755_v12 = vld [vmem:[%s1590_s0 + $0x38] sm:$0x3]   ;;  %s804_s30 = smov 1   ;;  %s811_s26 = smov 18  }
   0xa   :  { %71 = vrot.lane.b32.xlu0 %v839_v3, %s798_s4  ;;  %84 = vrot.lane.b32.xlu1 %v606_v5, %s798_s4  ;;  %v759_v13 = vld [vmem:[%s1590_s0 + $0x10] sm:$0xff]   ;;  %v503_v14 = vsel %vm450_vm1, %v755_v12, %v754_v11  ;;  %v778_v17 = vld [vmem:[%s1590_s0 + $0x38] sm:$0x3]   ;;  %s805_s4 = smov 69   ;;  %vm529_vm6 = vcmask 138248  }
   0xb   :  { %v517_v15 = vsel %vm516_vm2, %v759_v13, %v825_v0  ;;  %v569_v20 = vsel %vm516_vm2, %v779_v18, %v778_v17  ;;  %v652_v21 = vld [vmem:[%s1590_s0 + $0x30] sm:$0x3]   ;;  %v664_v22 = vld [vmem:[%s1590_s0 + $0x38] sm:$0x3]  }
   0xc   :  { %v675_v23 = vld [vmem:[%s1590_s0 + $0x30] sm:$0x3]   ;;  %v687_v24 = vld [vmem:[%s1590_s0 + $0x38] sm:$0x3]  }
   0xd   :  { %v698_v25 = vld [vmem:[%s1590_s0 + $0x30] sm:$0x3]   ;;  %v710_v26 = vld [vmem:[%s1590_s0 + $0x38] sm:$0x3]  }
   0xe   :  { %91 = vrot.lane.b32.xlu0 %v825_v0, %s799_s7  ;;  %104 = vrot.lane.b32.xlu1 %v844_v4, %s799_s7  ;;  %v583_v27 = vld [vmem:[%s1590_s0 + $0x30] sm:$0x3]   ;;  %v733_v29 = vld [vmem:[%s1590_s0 + $0x38] sm:$0x3]  }
   0xf   :  { %584 = vst.msk [vmem:[%s1591_s1 + $0x100] ss:$16 sm:$0x3] %vm3_vm0, %v583_v27   ;;  %v721_v28 = vld [vmem:[%s1590_s0 + $0x30] sm:$0x3]  }
  0x12   :  { %117 = vrot.lane.b32.xlu0 %v618_v6, %s799_s7  ;;  %123 = vrot.lane.b32.xlu1 %v834_v2, %s800_s10  ;;  %s806_s7 = smov 60  }
  0x16   :  { %136 = vrot.lane.b32.xlu0 %v839_v3, %s800_s10  ;;  %149 = vrot.lane.b32.xlu1 %v629_v7, %s800_s10  ;;  %s807_s10 = smov 52  }
  0x1a   :  { %156 = vrot.lane.b32.xlu0 %v825_v0, %s801_s13  ;;  %169 = vrot.lane.b32.xlu1 %v844_v4, %s801_s13 }
  0x1e   :  { %182 = vrot.lane.b32.xlu0 %v641_v8, %s801_s13  ;;  %188 = vrot.lane.b32.xlu1 %v834_v2, %s802_s16  ;;  %s808_s13 = smov 43  }
  0x22   :  { %452 = vrot.lane.b32.xlu0 %v451_v9, %s803_s23  ;;  %478 = vrot.lane.b32.xlu1 %v477_v10, %s803_s23 }
  0x26   :  { %504 = vrot.lane.b32.xlu0 %v503_v14, %s803_s23  ;;  %518 = vrot.lane.b32.xlu1 %v517_v15, %s804_s30  ;;  %s810_s23 = smov 26  }
  0x2a   :  { %544 = vrot.lane.b32.xlu0 %v543_v19, %s804_s30  ;;  %570 = vrot.lane.b32.xlu1 %v569_v20, %s804_s30 }
  0x2e   :  { %201 = vrot.lane.b32.xlu0 %v839_v3, %s802_s16  ;;  %214 = vrot.lane.b32.xlu1 %v652_v21, %s802_s16  ;;  %s809_s16 = smov 35  }
  0x32   :  { %221 = vrot.lane.b32.xlu0 %v825_v0, %s805_s4  ;;  %234 = vrot.lane.b32.xlu1 %v844_v4, %s805_s4 }
  0x36   :  { %247 = vrot.lane.b32.xlu0 %v664_v22, %s805_s4  ;;  %253 = vrot.lane.b32.xlu1 %v834_v2, %s806_s7 }
  0x3a   :  { %266 = vrot.lane.b32.xlu0 %v839_v3, %s806_s7  ;;  %279 = vrot.lane.b32.xlu1 %v675_v23, %s806_s7 }
  0x3e   :  { %286 = vrot.lane.b32.xlu0 %v825_v0, %s807_s10  ;;  %299 = vrot.lane.b32.xlu1 %v844_v4, %s807_s10 }
  0x42   :  { %312 = vrot.lane.b32.xlu0 %v687_v24, %s807_s10  ;;  %318 = vrot.lane.b32.xlu1 %v834_v2, %s808_s13 }
  0x46   :  { %331 = vrot.lane.b32.xlu0 %v839_v3, %s808_s13  ;;  %344 = vrot.lane.b32.xlu1 %v698_v25, %s808_s13 }
  0x4a   :  { %351 = vrot.lane.b32.xlu0 %v825_v0, %s809_s16  ;;  %364 = vrot.lane.b32.xlu1 %v844_v4, %s809_s16 }
  0x4e   :  { %377 = vrot.lane.b32.xlu0 %v710_v26, %s809_s16  ;;  %383 = vrot.lane.b32.xlu1 %v834_v2, %s810_s23 }
  0x52   :  { %396 = vrot.lane.b32.xlu0 %v839_v3, %s810_s23  ;;  %409 = vrot.lane.b32.xlu1 %v721_v28, %s810_s23 }
  0x56   :  { %416 = vrot.lane.b32.xlu0 %v825_v0, %s811_s26  ;;  %429 = vrot.lane.b32.xlu1 %v844_v4, %s811_s26 }
  0x5a   :  { %442 = vrot.lane.b32.xlu0 %v733_v29, %s811_s26 }
  0x74   :  { %v27_v30 = vpop.permute.xlu0 %26   ;;  %v53_v31 = vpop.permute.xlu1 %52  }
  0x75   :  { %586 = vst.msk [vmem:[%s1591_s1 + $0x8] ss:$16 sm:$0x3] %vm3_vm0, %v27_v30   ;;  %587 = vst.msk [vmem:[%s1591_s1 + $0x8] ss:$16 sm:$0xc] %vm3_vm0, %v27_v30  }
  0x76   :  { %588 = vst.msk [vmem:[%s1591_s1 + $0x8] ss:$16 sm:$0x30] %vm3_vm0, %v27_v30   ;;  %589 = vst.msk [vmem:[%s1591_s1 + $0x8] ss:$16 sm:$0xc0] %vm3_vm0, %v27_v30  }
  0x77   :  { %596 = vst.msk [vmem:[%s1591_s1 + $0x108] ss:$16 sm:$0x3] %vm3_vm0, %v53_v31  }
  0x78   :  { %v40_v32 = vpop.permute.xlu0 %39   ;;  %v59_v33 = vpop.permute.xlu1 %58  }
  0x79   :  { %591 = vst.msk [vmem:[%s1591_s1 + $0x88] ss:$16 sm:$0x3] %vm3_vm0, %v40_v32   ;;  %592 = vst.msk [vmem:[%s1591_s1 + $0x88] ss:$16 sm:$0xc] %vm3_vm0, %v40_v32  }
  0x7a   :  { %593 = vst.msk [vmem:[%s1591_s1 + $0x88] ss:$16 sm:$0x30] %vm3_vm0, %v40_v32   ;;  %594 = vst.msk [vmem:[%s1591_s1 + $0x88] ss:$16 sm:$0xc0] %vm3_vm0, %v40_v32  }
  0x7b   :  { %597 = vst.msk [vmem:[%s1591_s1 + $0x1] ss:$16 sm:$0x3] %vm3_vm0, %v59_v33   ;;  %598 = vst.msk [vmem:[%s1591_s1 + $0x1] ss:$16 sm:$0xc] %vm3_vm0, %v59_v33  }
  0x7c   :  { %599 = vst.msk [vmem:[%s1591_s1 + $0x1] ss:$16 sm:$0x30] %vm3_vm0, %v59_v33   ;;  %600 = vst.msk [vmem:[%s1591_s1 + $0x1] ss:$16 sm:$0xc0] %vm3_vm0, %v59_v33   ;;  %v72_v34 = vpop.permute.xlu0 %71   ;;  %v85_v35 = vpop.permute.xlu1 %84  }
  0x7d   :  { %602 = vst.msk [vmem:[%s1591_s1 + $0x81] ss:$16 sm:$0x3] %vm3_vm0, %v72_v34   ;;  %603 = vst.msk [vmem:[%s1591_s1 + $0x81] ss:$16 sm:$0xc] %vm3_vm0, %v72_v34  }
  0x7e   :  { %604 = vst.msk [vmem:[%s1591_s1 + $0x81] ss:$16 sm:$0x30] %vm3_vm0, %v72_v34   ;;  %605 = vst.msk [vmem:[%s1591_s1 + $0x81] ss:$16 sm:$0xc0] %vm3_vm0, %v72_v34  }
  0x7f   :  { %607 = vst.msk [vmem:[%s1591_s1 + $0x101] ss:$16 sm:$0x3] %vm3_vm0, %v85_v35  }
  0x80   :  { %v92_v36 = vpop.permute.xlu0 %91   ;;  %v105_v37 = vpop.permute.xlu1 %104  }
  0x81   :  { %609 = vst.msk [vmem:[%s1591_s1 + $0x9] ss:$16 sm:$0x3] %vm3_vm0, %v92_v36   ;;  %610 = vst.msk [vmem:[%s1591_s1 + $0x9] ss:$16 sm:$0xc] %vm3_vm0, %v92_v36  }
  0x82   :  { %611 = vst.msk [vmem:[%s1591_s1 + $0x9] ss:$16 sm:$0x30] %vm3_vm0, %v92_v36   ;;  %612 = vst.msk [vmem:[%s1591_s1 + $0x9] ss:$16 sm:$0xc0] %vm3_vm0, %v92_v36  }
  0x83   :  { %614 = vst.msk [vmem:[%s1591_s1 + $0x89] ss:$16 sm:$0x3] %vm3_vm0, %v105_v37   ;;  %615 = vst.msk [vmem:[%s1591_s1 + $0x89] ss:$16 sm:$0xc] %vm3_vm0, %v105_v37  }
  0x84   :  { %616 = vst.msk [vmem:[%s1591_s1 + $0x89] ss:$16 sm:$0x30] %vm3_vm0, %v105_v37   ;;  %617 = vst.msk [vmem:[%s1591_s1 + $0x89] ss:$16 sm:$0xc0] %vm3_vm0, %v105_v37   ;;  %v118_v38 = vpop.permute.xlu0 %117   ;;  %v124_v39 = vpop.permute.xlu1 %123  }
  0x85   :  { %619 = vst.msk [vmem:[%s1591_s1 + $0x109] ss:$16 sm:$0x3] %vm3_vm0, %v118_v38   ;;  %620 = vst.msk [vmem:[%s1591_s1 + $0x2] ss:$16 sm:$0x3] %vm3_vm0, %v124_v39  }
  0x86   :  { %621 = vst.msk [vmem:[%s1591_s1 + $0x2] ss:$16 sm:$0xc] %vm3_vm0, %v124_v39   ;;  %622 = vst.msk [vmem:[%s1591_s1 + $0x2] ss:$16 sm:$0x30] %vm3_vm0, %v124_v39  }
  0x87   :  { %623 = vst.msk [vmem:[%s1591_s1 + $0x2] ss:$16 sm:$0xc0] %vm3_vm0, %v124_v39  }
  0x88   :  { %v137_v40 = vpop.permute.xlu0 %136   ;;  %v150_v41 = vpop.permute.xlu1 %149  }
  0x89   :  { %625 = vst.msk [vmem:[%s1591_s1 + $0x82] ss:$16 sm:$0x3] %vm3_vm0, %v137_v40   ;;  %626 = vst.msk [vmem:[%s1591_s1 + $0x82] ss:$16 sm:$0xc] %vm3_vm0, %v137_v40  }
  0x8a   :  { %627 = vst.msk [vmem:[%s1591_s1 + $0x82] ss:$16 sm:$0x30] %vm3_vm0, %v137_v40   ;;  %628 = vst.msk [vmem:[%s1591_s1 + $0x82] ss:$16 sm:$0xc0] %vm3_vm0, %v137_v40  }
  0x8b   :  { %630 = vst.msk [vmem:[%s1591_s1 + $0x102] ss:$16 sm:$0x3] %vm3_vm0, %v150_v41  }
  0x8c   :  { %v157_v42 = vpop.permute.xlu0 %156   ;;  %v170_v43 = vpop.permute.xlu1 %169  }
  0x8d   :  { %632 = vst.msk [vmem:[%s1591_s1 + $0xa] ss:$16 sm:$0x3] %vm3_vm0, %v157_v42   ;;  %633 = vst.msk [vmem:[%s1591_s1 + $0xa] ss:$16 sm:$0xc] %vm3_vm0, %v157_v42  }
  0x8e   :  { %634 = vst.msk [vmem:[%s1591_s1 + $0xa] ss:$16 sm:$0x30] %vm3_vm0, %v157_v42   ;;  %635 = vst.msk [vmem:[%s1591_s1 + $0xa] ss:$16 sm:$0xc0] %vm3_vm0, %v157_v42  }
  0x8f   :  { %637 = vst.msk [vmem:[%s1591_s1 + $0x8a] ss:$16 sm:$0x3] %vm3_vm0, %v170_v43   ;;  %638 = vst.msk [vmem:[%s1591_s1 + $0x8a] ss:$16 sm:$0xc] %vm3_vm0, %v170_v43  }
  0x90   :  { %639 = vst.msk [vmem:[%s1591_s1 + $0x8a] ss:$16 sm:$0x30] %vm3_vm0, %v170_v43   ;;  %640 = vst.msk [vmem:[%s1591_s1 + $0x8a] ss:$16 sm:$0xc0] %vm3_vm0, %v170_v43   ;;  %v183_v44 = vpop.permute.xlu0 %182   ;;  %v189_v45 = vpop.permute.xlu1 %188  }
  0x91   :  { %642 = vst.msk [vmem:[%s1591_s1 + $0x10a] ss:$16 sm:$0x3] %vm3_vm0, %v183_v44   ;;  %643 = vst.msk [vmem:[%s1591_s1 + $0x3] ss:$16 sm:$0x3] %vm3_vm0, %v189_v45  }
  0x92   :  { %644 = vst.msk [vmem:[%s1591_s1 + $0x3] ss:$16 sm:$0xc] %vm3_vm0, %v189_v45   ;;  %645 = vst.msk [vmem:[%s1591_s1 + $0x3] ss:$16 sm:$0x30] %vm3_vm0, %v189_v45  }
  0x93   :  { %646 = vst.msk [vmem:[%s1591_s1 + $0x3] ss:$16 sm:$0xc0] %vm3_vm0, %v189_v45  }
  0x94   :  { %v453_v46 = vpop.permute.xlu0 %452   ;;  %v479_v47 = vpop.permute.xlu1 %478  }
  0x95   :  { %736 = vst.msk [vmem:[%s1591_s1 + $0x7] ss:$16 sm:$0x3] %vm454_vm3, %v453_v46   ;;  %737 = vst.msk [vmem:[%s1591_s1 + $0x7] ss:$16 sm:$0xc] %vm454_vm3, %v453_v46  }
  0x96   :  { %738 = vst.msk [vmem:[%s1591_s1 + $0x7] ss:$16 sm:$0x30] %vm454_vm3, %v453_v46   ;;  %739 = vst.msk [vmem:[%s1591_s1 + $0x7] ss:$16 sm:$0xc0] %vm454_vm3, %v453_v46  }
  0x97   :  { %746 = vst.msk [vmem:[%s1591_s1 + $0x87] ss:$16 sm:$0x3] %vm454_vm3, %v479_v47   ;;  %747 = vst.msk [vmem:[%s1591_s1 + $0x87] ss:$16 sm:$0xc] %vm454_vm3, %v479_v47  }
  0x98   :  { %748 = vst.msk [vmem:[%s1591_s1 + $0x87] ss:$16 sm:$0x30] %vm454_vm3, %v479_v47   ;;  %749 = vst.msk [vmem:[%s1591_s1 + $0x87] ss:$16 sm:$0xc0] %vm454_vm3, %v479_v47   ;;  %v505_v48 = vpop.permute.xlu0 %504   ;;  %v519_v49 = vpop.permute.xlu1 %518  }
  0x99   :  { %740 = vst.msk [vmem:[%s1591_s1 + $0x7] ss:$16 sm:$0x3] %vm463_vm4, %v453_v46   ;;  %741 = vst.msk [vmem:[%s1591_s1 + $0x7] ss:$16 sm:$0xc] %vm463_vm4, %v453_v46  }
  0x9a   :  { %742 = vst.msk [vmem:[%s1591_s1 + $0x7] ss:$16 sm:$0x30] %vm463_vm4, %v453_v46   ;;  %743 = vst.msk [vmem:[%s1591_s1 + $0x7] ss:$16 sm:$0xc0] %vm463_vm4, %v453_v46  }
  0x9b   :  { %750 = vst.msk [vmem:[%s1591_s1 + $0x87] ss:$16 sm:$0x3] %vm463_vm4, %v479_v47   ;;  %751 = vst.msk [vmem:[%s1591_s1 + $0x87] ss:$16 sm:$0xc] %vm463_vm4, %v479_v47  }
  0x9c   :  { %752 = vst.msk [vmem:[%s1591_s1 + $0x87] ss:$16 sm:$0x30] %vm463_vm4, %v479_v47   ;;  %753 = vst.msk [vmem:[%s1591_s1 + $0x87] ss:$16 sm:$0xc0] %vm463_vm4, %v479_v47   ;;  %v545_v50 = vpop.permute.xlu0 %544   ;;  %v571_v51 = vpop.permute.xlu1 %570  }
  0x9d   :  { %756 = vst.msk [vmem:[%s1591_s1 + $0x107] ss:$16 sm:$0x3] %vm454_vm3, %v505_v48  }
  0x9e   :  { %760 = vst.msk [vmem:[%s1591_s1 + $0xf] ss:$16 sm:$0x3] %vm520_vm5, %v519_v49   ;;  %761 = vst.msk [vmem:[%s1591_s1 + $0xf] ss:$16 sm:$0xc] %vm520_vm5, %v519_v49  }
  0x9f   :  { %762 = vst.msk [vmem:[%s1591_s1 + $0xf] ss:$16 sm:$0x30] %vm520_vm5, %v519_v49   ;;  %763 = vst.msk [vmem:[%s1591_s1 + $0xf] ss:$16 sm:$0xc0] %vm520_vm5, %v519_v49  }
  0xa0   :  { %757 = vst.msk [vmem:[%s1591_s1 + $0x107] ss:$16 sm:$0x3] %vm463_vm4, %v505_v48   ;;  %v202_v52 = vpop.permute.xlu0 %201   ;;  %v215_v53 = vpop.permute.xlu1 %214  }
  0xa1   :  { %764 = vst.msk [vmem:[%s1591_s1 + $0xf] ss:$16 sm:$0x3] %vm529_vm6, %v519_v49   ;;  %765 = vst.msk [vmem:[%s1591_s1 + $0xf] ss:$16 sm:$0xc] %vm529_vm6, %v519_v49  }
  0xa2   :  { %766 = vst.msk [vmem:[%s1591_s1 + $0xf] ss:$16 sm:$0x30] %vm529_vm6, %v519_v49   ;;  %767 = vst.msk [vmem:[%s1591_s1 + $0xf] ss:$16 sm:$0xc0] %vm529_vm6, %v519_v49  }
  0xa3   :  { %770 = vst.msk [vmem:[%s1591_s1 + $0x8f] ss:$16 sm:$0x3] %vm520_vm5, %v545_v50   ;;  %771 = vst.msk [vmem:[%s1591_s1 + $0x8f] ss:$16 sm:$0xc] %vm520_vm5, %v545_v50  }
  0xa4   :  { %772 = vst.msk [vmem:[%s1591_s1 + $0x8f] ss:$16 sm:$0x30] %vm520_vm5, %v545_v50   ;;  %773 = vst.msk [vmem:[%s1591_s1 + $0x8f] ss:$16 sm:$0xc0] %vm520_vm5, %v545_v50   ;;  %v222_v54 = vpop.permute.xlu0 %221   ;;  %v235_v55 = vpop.permute.xlu1 %234  }
  0xa5   :  { %780 = vst.msk [vmem:[%s1591_s1 + $0x10f] ss:$16 sm:$0x3] %vm520_vm5, %v571_v51  }
  0xa6   :  { %774 = vst.msk [vmem:[%s1591_s1 + $0x8f] ss:$16 sm:$0x3] %vm529_vm6, %v545_v50   ;;  %775 = vst.msk [vmem:[%s1591_s1 + $0x8f] ss:$16 sm:$0xc] %vm529_vm6, %v545_v50  }
  0xa7   :  { %776 = vst.msk [vmem:[%s1591_s1 + $0x8f] ss:$16 sm:$0x30] %vm529_vm6, %v545_v50   ;;  %777 = vst.msk [vmem:[%s1591_s1 + $0x8f] ss:$16 sm:$0xc0] %vm529_vm6, %v545_v50  }
  0xa8   :  { %781 = vst.msk [vmem:[%s1591_s1 + $0x10f] ss:$16 sm:$0x3] %vm529_vm6, %v571_v51   ;;  %v248_v56 = vpop.permute.xlu0 %247   ;;  %v254_v57 = vpop.permute.xlu1 %253  }
  0xa9   :  { %648 = vst.msk [vmem:[%s1591_s1 + $0x83] ss:$16 sm:$0x3] %vm3_vm0, %v202_v52   ;;  %649 = vst.msk [vmem:[%s1591_s1 + $0x83] ss:$16 sm:$0xc] %vm3_vm0, %v202_v52  }
  0xaa   :  { %650 = vst.msk [vmem:[%s1591_s1 + $0x83] ss:$16 sm:$0x30] %vm3_vm0, %v202_v52   ;;  %651 = vst.msk [vmem:[%s1591_s1 + $0x83] ss:$16 sm:$0xc0] %vm3_vm0, %v202_v52  }
  0xab   :  { %653 = vst.msk [vmem:[%s1591_s1 + $0x103] ss:$16 sm:$0x3] %vm3_vm0, %v215_v53   ;;  %655 = vst.msk [vmem:[%s1591_s1 + $0xb] ss:$16 sm:$0x3] %vm3_vm0, %v222_v54  }
  0xac   :  { %656 = vst.msk [vmem:[%s1591_s1 + $0xb] ss:$16 sm:$0xc] %vm3_vm0, %v222_v54   ;;  %657 = vst.msk [vmem:[%s1591_s1 + $0xb] ss:$16 sm:$0x30] %vm3_vm0, %v222_v54   ;;  %v267_v58 = vpop.permute.xlu0 %266   ;;  %v280_v59 = vpop.permute.xlu1 %279  }
  0xad   :  { %658 = vst.msk [vmem:[%s1591_s1 + $0xb] ss:$16 sm:$0xc0] %vm3_vm0, %v222_v54   ;;  %660 = vst.msk [vmem:[%s1591_s1 + $0x8b] ss:$16 sm:$0x3] %vm3_vm0, %v235_v55  }
  0xae   :  { %661 = vst.msk [vmem:[%s1591_s1 + $0x8b] ss:$16 sm:$0xc] %vm3_vm0, %v235_v55   ;;  %662 = vst.msk [vmem:[%s1591_s1 + $0x8b] ss:$16 sm:$0x30] %vm3_vm0, %v235_v55  }
  0xaf   :  { %663 = vst.msk [vmem:[%s1591_s1 + $0x8b] ss:$16 sm:$0xc0] %vm3_vm0, %v235_v55   ;;  %665 = vst.msk [vmem:[%s1591_s1 + $0x10b] ss:$16 sm:$0x3] %vm3_vm0, %v248_v56  }
  0xb0   :  { %666 = vst.msk [vmem:[%s1591_s1 + $0x4] ss:$16 sm:$0x3] %vm3_vm0, %v254_v57   ;;  %667 = vst.msk [vmem:[%s1591_s1 + $0x4] ss:$16 sm:$0xc] %vm3_vm0, %v254_v57   ;;  %v287_v60 = vpop.permute.xlu0 %286   ;;  %v300_v61 = vpop.permute.xlu1 %299  }
  0xb1   :  { %668 = vst.msk [vmem:[%s1591_s1 + $0x4] ss:$16 sm:$0x30] %vm3_vm0, %v254_v57   ;;  %669 = vst.msk [vmem:[%s1591_s1 + $0x4] ss:$16 sm:$0xc0] %vm3_vm0, %v254_v57  }
  0xb2   :  { %671 = vst.msk [vmem:[%s1591_s1 + $0x84] ss:$16 sm:$0x3] %vm3_vm0, %v267_v58   ;;  %672 = vst.msk [vmem:[%s1591_s1 + $0x84] ss:$16 sm:$0xc] %vm3_vm0, %v267_v58  }
  0xb3   :  { %673 = vst.msk [vmem:[%s1591_s1 + $0x84] ss:$16 sm:$0x30] %vm3_vm0, %v267_v58   ;;  %674 = vst.msk [vmem:[%s1591_s1 + $0x84] ss:$16 sm:$0xc0] %vm3_vm0, %v267_v58  }
  0xb4   :  { %676 = vst.msk [vmem:[%s1591_s1 + $0x104] ss:$16 sm:$0x3] %vm3_vm0, %v280_v59   ;;  %678 = vst.msk [vmem:[%s1591_s1 + $0xc] ss:$16 sm:$0x3] %vm3_vm0, %v287_v60   ;;  %v313_v62 = vpop.permute.xlu0 %312   ;;  %v319_v63 = vpop.permute.xlu1 %318  }
  0xb5   :  { %679 = vst.msk [vmem:[%s1591_s1 + $0xc] ss:$16 sm:$0xc] %vm3_vm0, %v287_v60   ;;  %680 = vst.msk [vmem:[%s1591_s1 + $0xc] ss:$16 sm:$0x30] %vm3_vm0, %v287_v60  }
  0xb6   :  { %681 = vst.msk [vmem:[%s1591_s1 + $0xc] ss:$16 sm:$0xc0] %vm3_vm0, %v287_v60   ;;  %683 = vst.msk [vmem:[%s1591_s1 + $0x8c] ss:$16 sm:$0x3] %vm3_vm0, %v300_v61  }
  0xb7   :  { %684 = vst.msk [vmem:[%s1591_s1 + $0x8c] ss:$16 sm:$0xc] %vm3_vm0, %v300_v61   ;;  %685 = vst.msk [vmem:[%s1591_s1 + $0x8c] ss:$16 sm:$0x30] %vm3_vm0, %v300_v61  }
  0xb8   :  { %686 = vst.msk [vmem:[%s1591_s1 + $0x8c] ss:$16 sm:$0xc0] %vm3_vm0, %v300_v61   ;;  %688 = vst.msk [vmem:[%s1591_s1 + $0x10c] ss:$16 sm:$0x3] %vm3_vm0, %v313_v62   ;;  %v332_v0 = vpop.permute.xlu0 %331   ;;  %v345_v1 = vpop.permute.xlu1 %344  }
  0xb9   :  { %689 = vst.msk [vmem:[%s1591_s1 + $0x5] ss:$16 sm:$0x3] %vm3_vm0, %v319_v63   ;;  %690 = vst.msk [vmem:[%s1591_s1 + $0x5] ss:$16 sm:$0xc] %vm3_vm0, %v319_v63  }
  0xba   :  { %691 = vst.msk [vmem:[%s1591_s1 + $0x5] ss:$16 sm:$0x30] %vm3_vm0, %v319_v63   ;;  %692 = vst.msk [vmem:[%s1591_s1 + $0x5] ss:$16 sm:$0xc0] %vm3_vm0, %v319_v63  }
  0xbb   :  { %694 = vst.msk [vmem:[%s1591_s1 + $0x85] ss:$16 sm:$0x3] %vm3_vm0, %v332_v0   ;;  %695 = vst.msk [vmem:[%s1591_s1 + $0x85] ss:$16 sm:$0xc] %vm3_vm0, %v332_v0  }
  0xbc   :  { %696 = vst.msk [vmem:[%s1591_s1 + $0x85] ss:$16 sm:$0x30] %vm3_vm0, %v332_v0   ;;  %697 = vst.msk [vmem:[%s1591_s1 + $0x85] ss:$16 sm:$0xc0] %vm3_vm0, %v332_v0   ;;  %v352_v2 = vpop.permute.xlu0 %351   ;;  %v365_v3 = vpop.permute.xlu1 %364  }
  0xbd   :  { %699 = vst.msk [vmem:[%s1591_s1 + $0x105] ss:$16 sm:$0x3] %vm3_vm0, %v345_v1   ;;  %701 = vst.msk [vmem:[%s1591_s1 + $0xd] ss:$16 sm:$0x3] %vm3_vm0, %v352_v2  }
  0xbe   :  { %702 = vst.msk [vmem:[%s1591_s1 + $0xd] ss:$16 sm:$0xc] %vm3_vm0, %v352_v2   ;;  %703 = vst.msk [vmem:[%s1591_s1 + $0xd] ss:$16 sm:$0x30] %vm3_vm0, %v352_v2  }
  0xbf   :  { %704 = vst.msk [vmem:[%s1591_s1 + $0xd] ss:$16 sm:$0xc0] %vm3_vm0, %v352_v2   ;;  %706 = vst.msk [vmem:[%s1591_s1 + $0x8d] ss:$16 sm:$0x3] %vm3_vm0, %v365_v3  }
  0xc0   :  { %707 = vst.msk [vmem:[%s1591_s1 + $0x8d] ss:$16 sm:$0xc] %vm3_vm0, %v365_v3   ;;  %708 = vst.msk [vmem:[%s1591_s1 + $0x8d] ss:$16 sm:$0x30] %vm3_vm0, %v365_v3   ;;  %v378_v4 = vpop.permute.xlu0 %377   ;;  %v384_v5 = vpop.permute.xlu1 %383  }
  0xc1   :  { %709 = vst.msk [vmem:[%s1591_s1 + $0x8d] ss:$16 sm:$0xc0] %vm3_vm0, %v365_v3   ;;  %711 = vst.msk [vmem:[%s1591_s1 + $0x10d] ss:$16 sm:$0x3] %vm3_vm0, %v378_v4  }
  0xc2   :  { %712 = vst.msk [vmem:[%s1591_s1 + $0x6] ss:$16 sm:$0x3] %vm3_vm0, %v384_v5   ;;  %713 = vst.msk [vmem:[%s1591_s1 + $0x6] ss:$16 sm:$0xc] %vm3_vm0, %v384_v5  }
  0xc3   :  { %714 = vst.msk [vmem:[%s1591_s1 + $0x6] ss:$16 sm:$0x30] %vm3_vm0, %v384_v5   ;;  %715 = vst.msk [vmem:[%s1591_s1 + $0x6] ss:$16 sm:$0xc0] %vm3_vm0, %v384_v5  }
  0xc4   :  { %v397_v6 = vpop.permute.xlu0 %396   ;;  %v410_v7 = vpop.permute.xlu1 %409  }
  0xc5   :  { %717 = vst.msk [vmem:[%s1591_s1 + $0x86] ss:$16 sm:$0x3] %vm3_vm0, %v397_v6   ;;  %718 = vst.msk [vmem:[%s1591_s1 + $0x86] ss:$16 sm:$0xc] %vm3_vm0, %v397_v6  }
  0xc6   :  { %719 = vst.msk [vmem:[%s1591_s1 + $0x86] ss:$16 sm:$0x30] %vm3_vm0, %v397_v6   ;;  %720 = vst.msk [vmem:[%s1591_s1 + $0x86] ss:$16 sm:$0xc0] %vm3_vm0, %v397_v6  }
  0xc7   :  { %722 = vst.msk [vmem:[%s1591_s1 + $0x106] ss:$16 sm:$0x3] %vm3_vm0, %v410_v7  }
  0xc8   :  { %v417_v8 = vpop.permute.xlu0 %416   ;;  %v430_v9 = vpop.permute.xlu1 %429  }
  0xc9   :  { %724 = vst.msk [vmem:[%s1591_s1 + $0xe] ss:$16 sm:$0x3] %vm3_vm0, %v417_v8   ;;  %725 = vst.msk [vmem:[%s1591_s1 + $0xe] ss:$16 sm:$0xc] %vm3_vm0, %v417_v8  }
  0xca   :  { %726 = vst.msk [vmem:[%s1591_s1 + $0xe] ss:$16 sm:$0x30] %vm3_vm0, %v417_v8   ;;  %727 = vst.msk [vmem:[%s1591_s1 + $0xe] ss:$16 sm:$0xc0] %vm3_vm0, %v417_v8  }
  0xcb   :  { %729 = vst.msk [vmem:[%s1591_s1 + $0x8e] ss:$16 sm:$0x3] %vm3_vm0, %v430_v9   ;;  %730 = vst.msk [vmem:[%s1591_s1 + $0x8e] ss:$16 sm:$0xc] %vm3_vm0, %v430_v9  }
  0xcc   :  { %731 = vst.msk [vmem:[%s1591_s1 + $0x8e] ss:$16 sm:$0x30] %vm3_vm0, %v430_v9   ;;  %732 = vst.msk [vmem:[%s1591_s1 + $0x8e] ss:$16 sm:$0xc0] %vm3_vm0, %v430_v9   ;;  %v443_v10 = vpop.permute.xlu0 %442  }
  0xcd   :  { %734 = vst.msk [vmem:[%s1591_s1 + $0x10e] ss:$16 sm:$0x3] %vm3_vm0, %v443_v10  }

// kernel: run.53
= control target key start
LH: loop header
LB: loop body
LE: loop exit
PB: predicated region body
PF: predicated region fallthrough
CT: control target
= control target key end

     0   :  { %v208_v0 = vmov 0   ;;  %v136_v60 = vlaneseq  ;;  %s367_s1 = inlined_call_operand.<no memory space> [shape: f32[1,1,1], index: 1, kind: input, shape index: {}]   ;;  %s368_s0 = inlined_call_operand.vmem [shape: f32[1,24,384], index: 0, kind: input, shape index: {}]   ;;  %s369_s2 = inlined_call_operand.vmem [shape: f32[1,1,384], index: 2, kind: input, shape index: {}]   ;;  %s370_s3 = inlined_call_operand.vmem [shape: f32[1,1,384], index: 3, kind: input, shape index: {}]   ;;  %s371_s4 = inlined_call_operand.vmem [shape: f32[1,24,384], index: 4, kind: output, shape index: {}]  }
   0x1   :  { %201 = vset.pattern.permute.xlu0 %v208_v0  ;;  %v9_v1 = vstv %s367_s1  ;;  %v22_v3 = vld [vmem:[%s368_s0 + $0x18] sm:$0xff]  ;;  %v23_v4 = vld [vmem:[%s368_s0 + $0x20] sm:$0xff]  ;;  %v24_v5 = vld [vmem:[%s368_s0 + $0x28] sm:$0xff] }
   0x2   :  { %10 = vst [vmem:[#allocation2] sm:$0x1] %v9_v1  ;;  %v19_v6 = vld [vmem:[%s368_s0] sm:$0xff]  ;;  %v20_v7 = vld [vmem:[%s368_s0 + $0x8] sm:$0xff]  ;;  %v21_v8 = vld [vmem:[%s368_s0 + $0x10] sm:$0xff]  ;;  %vm31_vm0 = vcmp.ge.f32.partialorder %v22_v3, 0.0 }
   0x3   :  { %v25_v9 = vld [vmem:[%s368_s0 + $0x30] sm:$0xff]  ;;  %v26_v10 = vld [vmem:[%s368_s0 + $0x38] sm:$0xff]  ;;  %vm32_vm1 = vcmp.ge.f32.partialorder %v23_v4, 0.0  ;;  %vm33_vm2 = vcmp.ge.f32.partialorder %v24_v5, 0.0  ;;  %vm28_vm3 = vcmp.ge.f32.partialorder %v19_v6, 0.0  ;;  %vm29_vm4 = vcmp.ge.f32.partialorder %v20_v7, 0.0 }
   0x4   :  { %vm30_vm5 = vcmp.ge.f32.partialorder %v21_v8, 0.0  ;;  %v27_v12 = vld [vmem:[%s368_s0 + $0x40] sm:$0xff]  ;;  %vm34_vm6 = vcmp.ge.f32.partialorder %v25_v9, 0.0  ;;  %vm35_vm7 = vcmp.ge.f32.partialorder %v26_v10, 0.0 }
   0x5   :  { %vm36_vm8 = vcmp.ge.f32.partialorder %v27_v12, 0.0 }
   0x9   :  { %v199_v2 = vld [vmem:[#allocation2] ss:$0 sm:$0xff] }
   0xa   :  { %44 = vperm.xlu0 %201, %v199_v2  }
  0x89   :  { %v45_v11 = vpop.permute.xlu0 %44 }
  0x8a   :  { %v50_v13 = vmul.f32 %v45_v11, %v22_v3  ;;  %v51_v14 = vmul.f32 %v45_v11, %v23_v4  ;;  %v52_v15 = vmul.f32 %v45_v11, %v24_v5  ;;  %v47_v16 = vmul.f32 %v45_v11, %v19_v6 }
  0x8b   :  { %v48_v17 = vmul.f32 %v45_v11, %v20_v7  ;;  %v49_v18 = vmul.f32 %v45_v11, %v21_v8  ;;  %v53_v19 = vmul.f32 %v45_v11, %v25_v9  ;;  %v54_v20 = vmul.f32 %v45_v11, %v26_v10 }
  0x8c   :  { %v265_v21 = vsel %vm31_vm0, %v22_v3, %v50_v13  ;;  %v268_v22 = vsel %vm32_vm1, %v23_v4, %v51_v14  ;;  %v271_v23 = vsel %vm28_vm3, %v19_v6, %v47_v16  ;;  %v274_v24 = vsel %vm33_vm2, %v24_v5, %v52_v15  ;;  %v160_v15 = vld [vmem:[%s370_s3] sm:$0x7] }
  0x8d   :  { %v69_v25 = vadd.f32 %v268_v22, %v265_v21  ;;  %v279_v26 = vsel %vm29_vm4, %v20_v7, %v48_v17  ;;  %v282_v27 = vsel %vm30_vm5, %v21_v8, %v49_v18  ;;  %v55_v29 = vmul.f32 %v45_v11, %v27_v12 }
  0x8e   :  { %v65_v28 = vadd.f32 %v279_v26, %v271_v23  ;;  %v287_v30 = vsel %vm34_vm6, %v25_v9, %v53_v19  ;;  %v290_v31 = vsel %vm35_vm7, %v26_v10, %v54_v20  ;;  %v80_v34 = vmul.f32 %v271_v23, %v271_v23 }
  0x8f   :  { %v70_v32 = vadd.f32 %v69_v25, %v274_v24  ;;  %v73_v33 = vadd.f32 %v290_v31, %v287_v30  ;;  %v81_v35 = vmul.f32 %v279_v26, %v279_v26  ;;  %v301_v37 = vsel %vm36_vm8, %v27_v12, %v55_v29  ;;  %v134_v12 = vld [vmem:[%s369_s2] sm:$0x7] }
  0x90   :  { %v66_v36 = vadd.f32 %v65_v28, %v282_v27  ;;  %v83_v40 = vmul.f32 %v265_v21, %v265_v21  ;;  %v84_v41 = vmul.f32 %v268_v22, %v268_v22  ;;  %v82_v42 = vmul.f32 %v282_v27, %v282_v27 }
  0x91   :  { %71 = vadd.xlane.f32.xlu1 %v70_v32  ;;  %v74_v38 = vadd.f32 %v73_v33, %v301_v37  ;;  %v89_v39 = vadd.f32 %v81_v35, %v80_v34  ;;  %v86_v45 = vmul.f32 %v287_v30, %v287_v30  ;;  %v87_v46 = vmul.f32 %v290_v31, %v290_v31 }
  0x92   :  { %67 = vadd.xlane.f32.xlu0 %v66_v36  ;;  %v93_v44 = vadd.f32 %v84_v41, %v83_v40  ;;  %v85_v47 = vmul.f32 %v274_v24, %v274_v24  ;;  %v88_v50 = vmul.f32 %v301_v37, %v301_v37  ;;  %v137_v3 = vshrl.u32 %v136_v60, 7 }
  0x93   :  { %v90_v43 = vadd.f32 %v89_v39, %v82_v42  ;;  %v97_v49 = vadd.f32 %v87_v46, %v86_v45 }
  0x94   :  { %v94_v48 = vadd.f32 %v93_v44, %v85_v47  ;;  %v138_v9 = vsub.s32 0, %v137_v3  ;;  %v142_v10 = vsub.s32 1, %v137_v3  ;;  %v146_v13 = vsub.s32 2, %v137_v3 }
  0x95   :  { %75 = vadd.xlane.f32.xlu1 %v74_v38  ;;  %v98_v51 = vadd.f32 %v97_v49, %v88_v50 }
  0x96   :  { %v139_v16 = vrot.slane %v134_v12, %v138_v9  ;;  %v143_v17 = vrot.slane %v134_v12, %v142_v10  ;;  %v147_v25 = vrot.slane %v134_v12, %v146_v13  ;;  %v165_v29 = vrot.slane %v160_v15, %v138_v9 }
  0x97   :  { %v169_v32 = vrot.slane %v160_v15, %v142_v10  ;;  %v173_v33 = vrot.slane %v160_v15, %v146_v13 }
  0x99   :  { %91 = vadd.xlane.f32.xlu1 %v90_v43 }
  0x9d   :  { %95 = vadd.xlane.f32.xlu1 %v94_v48 }
  0xa1   :  { %99 = vadd.xlane.f32.xlu1 %v98_v51 }
 0x11e   :  { %v72_v52 = vpop.xlane.xlu1 %71 }
 0x11f   :  { %v68_v53 = vpop.xlane.xlu0 %67  ;;  %v78_v57 = vmul.f32 0.0036764706, %v72_v52 }
 0x120   :  { %v77_v55 = vmul.f32 0.0036764706, %v68_v53 }
 0x121   :  { %v105_v1 = vmul.f32 %v78_v57, %v78_v57  ;;  %v113_v38 = vsub.f32 %v265_v21, %v78_v57 }
 0x122   :  { %v76_v54 = vpop.xlane.xlu1 %75  ;;  %v104_v59 = vmul.f32 %v77_v55, %v77_v55  ;;  %v110_v18 = vsub.f32 %v271_v23, %v77_v55  ;;  %v111_v19 = vsub.f32 %v279_v26, %v77_v55  ;;  %v112_v20 = vsub.f32 %v282_v27, %v77_v55 }
 0x123   :  { %v318_v63 = vmul.f32 0.0036764706, %v76_v54  ;;  %v114_v23 = vsub.f32 %v268_v22, %v78_v57  ;;  %v115_v26 = vsub.f32 %v274_v24, %v78_v57 }
 0x125   :  { %v106_v7 = vmul.f32 %v318_v63, %v318_v63  ;;  %v116_v48 = vsub.f32 %v287_v30, %v318_v63  ;;  %v117_v21 = vsub.f32 %v290_v31, %v318_v63  ;;  %v118_v49 = vsub.f32 %v301_v37, %v318_v63 }
 0x126   :  { %v92_v56 = vpop.xlane.xlu1 %91 }
 0x127   :  { %v101_v58 = vmul.f32 0.0036764706, %v92_v56 }
 0x129   :  { %v107_v61 = vsub.f32 %v101_v58, %v104_v59 }
 0x12a   :  { %v96_v62 = vpop.xlane.xlu1 %95 }
 0x12b   :  { %v119_v0 = vadd.f32 1e-05, %v107_v61  ;;  %v102_v2 = vmul.f32 0.0036764706, %v96_v62 }
 0x12d   :  { %202 = vrsqrt.f32 %v119_v0  ;;  %v108_v4 = vsub.f32 %v102_v2, %v105_v1 }
 0x12e   :  { %v100_v5 = vpop.xlane.xlu1 %99 }
 0x12f   :  { %v120_v6 = vadd.f32 1e-05, %v108_v4  ;;  %v103_v8 = vmul.f32 0.0036764706, %v100_v5 }
 0x131   :  { %204 = vrsqrt.f32 %v120_v6  ;;  %v109_v11 = vsub.f32 %v103_v8, %v106_v7 }
 0x133   :  { %v121_v14 = vadd.f32 1e-05, %v109_v11 }
 0x135   :  { %206 = vrsqrt.f32 %v121_v14 }
 0x137   :  { %v203_v28 = vpop.eup %202 }
 0x138   :  { %v125_v34 = vmul.f32 %v203_v28, %v110_v18  ;;  %v126_v35 = vmul.f32 %v203_v28, %v111_v19  ;;  %v127_v36 = vmul.f32 %v203_v28, %v112_v20 }
 0x13a   :  { %v151_v39 = vmul.f32 %v139_v16, %v125_v34  ;;  %v152_v40 = vmul.f32 %v143_v17, %v126_v35  ;;  %v153_v41 = vmul.f32 %v147_v25, %v127_v36 }
 0x13b   :  { %v205_v42 = vpop.eup %204 }
 0x13c   :  { %v177_v43 = vadd.f32 %v165_v29, %v151_v39  ;;  %v178_v27 = vadd.f32 %v169_v32, %v152_v40  ;;  %v179_v44 = vadd.f32 %v173_v33, %v153_v41  ;;  %v128_v45 = vmul.f32 %v205_v42, %v113_v38 }
 0x13d   :  { %v129_v46 = vmul.f32 %v205_v42, %v114_v23  ;;  %v130_v47 = vmul.f32 %v205_v42, %v115_v26 }
 0x13e   :  { %186 = vst [vmem:[%s371_s4] sm:$0xff] %v177_v43  ;;  %187 = vst [vmem:[%s371_s4 + $0x8] sm:$0xff] %v178_v27  ;;  %v154_v22 = vmul.f32 %v139_v16, %v128_v45 }
 0x13f   :  { %188 = vst [vmem:[%s371_s4 + $0x10] sm:$0xff] %v179_v44  ;;  %v207_v24 = vpop.eup %206  ;;  %v155_v30 = vmul.f32 %v143_v17, %v129_v46  ;;  %v156_v50 = vmul.f32 %v147_v25, %v130_v47 }
 0x140   :  { %v180_v31 = vadd.f32 %v165_v29, %v154_v22  ;;  %v131_v51 = vmul.f32 %v207_v24, %v116_v48  ;;  %v132_v52 = vmul.f32 %v207_v24, %v117_v21  ;;  %v133_v37 = vmul.f32 %v207_v24, %v118_v49 }
 0x141   :  { %v181_v53 = vadd.f32 %v169_v32, %v155_v30  ;;  %v182_v54 = vadd.f32 %v173_v33, %v156_v50 }
 0x142   :  { %189 = vst [vmem:[%s371_s4 + $0x18] sm:$0xff] %v180_v31  ;;  %v157_v55 = vmul.f32 %v139_v16, %v131_v51  ;;  %v158_v56 = vmul.f32 %v143_v17, %v132_v52  ;;  %v159_v57 = vmul.f32 %v147_v25, %v133_v37 }
 0x143   :  { %190 = vst [vmem:[%s371_s4 + $0x20] sm:$0xff] %v181_v53  ;;  %191 = vst [vmem:[%s371_s4 + $0x28] sm:$0xff] %v182_v54 }
 0x144   :  { %v183_v58 = vadd.f32 %v165_v29, %v157_v55  ;;  %v184_v59 = vadd.f32 %v169_v32, %v158_v56  ;;  %v185_v60 = vadd.f32 %v173_v33, %v159_v57 }
 0x146   :  { %192 = vst [vmem:[%s371_s4 + $0x30] sm:$0xff] %v183_v58  ;;  %193 = vst [vmem:[%s371_s4 + $0x38] sm:$0xff] %v184_v59 }
 0x147   :  { %194 = vst [vmem:[%s371_s4 + $0x40] sm:$0xff] %v185_v60 }

// kernel: run.51
= control target key start
LH: loop header
LB: loop body
LE: loop exit
PB: predicated region body
PF: predicated region fallthrough
CT: control target
= control target key end

     0   :  { %s801_s12 = smov 0   ;;  %s803_s13 = smov 0   ;;  %s858_s0 = inlined_call_operand.vmem [shape: bf16[4,16,128], index: 0, kind: input, shape index: {}]   ;;  %s859_s1 = inlined_call_operand.vmem [shape: bf16[4,16,128], index: 1, kind: input, shape index: {}]   ;;  %s860_s2 = inlined_call_operand.vmem [shape: bf16[4,16,256], index: 2, kind: input, shape index: {}]   ;;  %s861_s3 = inlined_call_operand.vmem [shape: f32[4,16,256], index: 3, kind: output, shape index: {}]  }
   0x1   :  { %s805_s14 = smov 0  }
   0x2 LB: > { %s32_s15 = sadd.s32 1, %s771_s13  ;;  %p678_p0 = scmp.ge.s32.totalorder %s775_s14, 1  ;;  %s775_s14 = sphi %s805_s14, %s13_s14   ;;  %s771_s13 = sphi %s803_s13, %s863_s13   ;;  %s767_s12 = sphi %s801_s12, %s862_s12  }
   0x3   : > { %p34_p1 = scmp.ge.s32.totalorder %s32_s15, 4  ;;  %p200_p2 = scmp.lt.s32.totalorder %s775_s14, 5 }
   0x5   : > { %s865_s15 = smov (%p34_p1, %s32_s15), 0  ;;  %p201_p3 = pnand %p678_p0, %p200_p2 }
   0x6   : > { %vm299_vm0 = vcmask (!%p201_p3), 7168   ;;  %p253_p4 = scmp.lt.s32.totalorder (!%p201_p3), %s767_s12, 3  ;;  %v777_v0 = vmov (!%p201_p3), 0.0   ;;  %vm778_vm1 = vmmov (!%p201_p3), 0   ;;  %v779_v3 = vmov (!%p201_p3), -inf  }
   0x7   : > { %204 = sbr.rel (%p201_p3) target bundleno = 827 (0x33b), region = 32  ;;  %302 = vst.msk [vmem:[#allocation3] sm:$0xff] (!%p201_p3), %vm299_vm0, %v777_v0  ;;  %303 = vst.msk [vmem:[#allocation3 + $0x8] sm:$0xff] (!%p201_p3), %vm299_vm0, %v777_v0  ;;  %700 = vmatprep.subr.bf16.mxu0 (!%p201_p3), %v777_v0  ;;  %702 = vmatprep.mubr.msk.bf16.mxu0 (!%p201_p3), %vm778_vm1, %v777_v0  ;;  %v368_v4 = vlaneseq (!%p201_p3)  ;;  %vm377_vm3 = vcmask (!%p201_p3), 130048   ;;  %v780_v16 = vmov (!%p201_p3), 0  }
   0x8   : > { %300 = vst.msk [vmem:[#allocation2] sm:$0xff] (!%p201_p3), %vm299_vm0, %v779_v3  ;;  %301 = vst.msk [vmem:[#allocation2 + $0x8] sm:$0xff] (!%p201_p3), %vm299_vm0, %v779_v3  ;;  %734 = vset.pattern.permute.xlu1 (!%p201_p3), %v780_v16  ;;  %489 = vmatprep.mubr.bf16.mxu1 (!%p201_p3), %v780_v16 }
   0x9   : > { %v369_v5 = vand.u32 (!%p201_p3), 127, %v368_v4  ;;  %735 = vset.pattern.permute.xlu0 (!%p201_p3), %v780_v16 }
   0xb   : > { %vm372_vm2 = vcmp.lt.s32.totalorder (!%p201_p3), %v369_v5, 9 }
   0xe   : > { %s867_s12 = smov (!%p253_p4, %s767_s12), 3  ;;  %v408_v42 = vld [vmem:[#allocation3] sm:$0xff]  ;;  %v409_v45 = vld [vmem:[#allocation3 + $0x8] sm:$0xff] }
   0xf   : > { %s694_s16 = sshll.u32 %s867_s12, 3  ;;  %v375_v17 = vld [vmem:[#allocation2] sm:$0xff]  ;;  %v376_v20 = vld [vmem:[#allocation2 + $0x8] sm:$0xff]  ;;  %s696_s23 = sshll.u32 %s867_s12, 4 }
  0x10   : > { %s270_s19 = scalar_lea.vmem %s859_s1, %s694_s16  ;;  %s260_s22 = scalar_lea.vmem %s858_s0, %s694_s16 }
  0x11   : > { %v736_v1 = vld [vmem:[%s270_s19] sm:$0xff]   ;;  %s281_s26 = scalar_lea.vmem %s860_s2, %s696_s23  ;;  %s697_s27 = sshll.u32 %s867_s12, 5 }
  0x12   : > { %701 = vmatpush3.bf16.xpose.msra.mxu0 %v736_v1  ;;  %v737_v2 = vld [vmem:[%s260_s22] sm:$0xff]   ;;  %s292_s30 = scalar_lea.vmem %s861_s3, %s697_s27 }
  0x13   : > { %v738_v25 = vld [vmem:[%s281_s26 + $0x4] ss:$8 sps:$4 sm:$0xff]   ;;  %v740_v26 = vld [vmem:[%s281_s26] ss:$8 sps:$4 sm:$0xff]  }
  0x14   : > { %457 = vmatprep.subr.bf16.mxu1 %v738_v25 }
  0x15   : > { %458 = vmatpush1.bf16.msra.mxu1 %v740_v26 }
  0x19   : > { %703 = vmatmul.mubr.bf16.vlgmr.msra.gmra.mrb[0].mxu0 %v737_v2 }
  0xec   : > { %v358_v6 = vpop.f32.mrb[0].mxu0 }
  0xed   : > { %v365_v7 = vmul.f32 0.12126781, %v358_v6  ;;  %v704_v8 = vpop.f32.mrb[1].mxu0 }
  0xee   : > { %v361_v9 = vpop.f32.mrb[2].mxu0 }
  0xef   : > { %v366_v10 = vmul.f32 0.12126781, %v361_v9  ;;  %v705_v11 = vpop.f32.mrb[3].mxu0  ;;  %v373_v12 = vsel %vm372_vm2, %v365_v7, -1e+30 }
  0xf0   : > { %v378_v13 = vsel %vm377_vm3, %v373_v12, -inf }
  0xf1   : > { %379 = vmax.xlane.f32.xlu0 %v378_v13  ;;  %v374_v14 = vsel %vm372_vm2, %v366_v10, -1e+30 }
  0xf2   : > { %v381_v15 = vsel %vm377_vm3, %v374_v14, -inf }
  0xf5   : > { %382 = vmax.xlane.f32.xlu0 %v381_v15 }
 0x17e   : > { %v380_v18 = vpop.xlane.xlu0 %379 }
 0x17f   : > { %v384_v19 = vmax.f32 %v375_v17, %v380_v18 }
 0x181   : > { %v386_v21 = vsub.f32 %v375_v17, %v384_v19  ;;  %508 = vst.msk [vmem:[#allocation2] sm:$0xff] %vm299_vm0, %v384_v19  ;;  %394 = vperm.xlu1 %734, %v384_v19  }
 0x182   : > { %v383_v22 = vpop.xlane.xlu0 %382 }
 0x183   : > { %v385_v23 = vmax.f32 %v376_v20, %v383_v22  ;;  %v388_v39 = vmul.f32 1.442695, %v386_v21 }
 0x185   : > { %v387_v24 = vsub.f32 %v376_v20, %v385_v23  ;;  %509 = vst.msk [vmem:[#allocation2 + $0x8] sm:$0xff] %vm299_vm0, %v385_v23  ;;  %399 = vperm.xlu1 %734, %v385_v23  }
 0x187   : > { %v390_v38 = vmul.f32 1.442695, %v387_v24 }
 0x200   : > { %v395_v27 = vpop.permute.xlu1 %394 }
 0x201   : > { %v402_v28 = vsub.f32 %v373_v12, %v395_v27 }
 0x203   : > { %v404_v29 = vmul.f32 1.442695, %v402_v28 }
 0x204   : > { %v400_v30 = vpop.permute.xlu1 %399 }
 0x205   : > { %741 = vpow2.f32 %v404_v29  ;;  %v403_v31 = vsub.f32 %v374_v14, %v400_v30 }
 0x207   : > { %v406_v32 = vmul.f32 1.442695, %v403_v31 }
 0x209   : > { %743 = vpow2.f32 %v406_v32 }
 0x20a   : > { %745 = vpow2.f32 %v390_v38 }
 0x20b   : > { %747 = vpow2.f32 %v388_v39 }
 0x20f   : > { %v742_v33 = vpop.eup %741 }
 0x210   : > { %v412_v34 = vsel %vm377_vm3, %v742_v33, 0.0 }
 0x211   : > { %413 = vadd.xlane.f32.xlu0 %v412_v34 }
 0x213   : > { %v744_v35 = vpop.eup %743 }
 0x214   : > { %v415_v36 = vsel %vm377_vm3, %v744_v35, 0.0  ;;  %v441_v37 = vpack.c.bf16 %v744_v35, %v742_v33  ;;  %v746_v40 = vpop.eup %745 }
 0x215   : > { %416 = vadd.xlane.f32.xlu1 %v415_v36  ;;  %v748_v41 = vpop.eup %747  ;;  %v411_v47 = vmul.f32 %v746_v40, %v409_v45 }
 0x216   : > { %691 = vmatmul.mubr.msk.bf16.vlgmr.msra.gmra.mrb[0].mxu1 %vm377_vm3, %v441_v37  ;;  %v410_v43 = vmul.f32 %v748_v41, %v408_v42 }
 0x226   : > { %434 = vperm.xlu1 %734, %v746_v40  }
 0x227   : > { %429 = vperm.xlu0 %735, %v748_v41  }
 0x29e   : > { %v414_v44 = vpop.xlane.xlu0 %413 }
 0x29f   : > { %v418_v46 = vadd.f32 %v414_v44, %v410_v43 }
 0x2a1   : > { %421 = vst.msk [vmem:[#allocation3] sm:$0xff] %vm299_vm0, %v418_v46 }
 0x2a2   : > { %v417_v48 = vpop.xlane.xlu1 %416 }
 0x2a3   : > { %v419_v49 = vadd.f32 %v417_v48, %v411_v47 }
 0x2a5   : > { %422 = vst.msk [vmem:[#allocation3 + $0x8] sm:$0xff] %vm299_vm0, %v419_v49 }
 0x2a6   : > { %v430_v58 = vpop.permute.xlu0 %429  ;;  %v435_v60 = vpop.permute.xlu1 %434 }
 0x2a7   : > { %v437_v59 = vmul.f32 0.0, %v430_v58  ;;  %v439_v0 = vmul.f32 0.0, %v435_v60 }
 0x2a8   : > { %v517_v50 = vld [vmem:[#allocation3] sm:$0xff] }
 0x2a9   : > { %749 = vrcp.f32 %v517_v50 }
 0x2ac   : > { %v518_v51 = vld [vmem:[#allocation3 + $0x8] sm:$0xff] }
 0x2ad   : > { %751 = vrcp.f32 %v518_v51 }
 0x2b3   : > { %v750_v52 = vpop.eup %749 }
 0x2b4   : > { %523 = vperm.xlu0 %735, %v750_v52  }
 0x2b7   : > { %v752_v53 = vpop.eup %751 }
 0x2b8   : > { %528 = vperm.xlu0 %735, %v752_v53  }
 0x2e9   : > { %v491_v54 = vpop.f32.mrb[0].mxu1 }
 0x2ea   : > { %v493_v55 = vpop.f32.mrb[1].mxu1  ;;  %v500_v61 = vadd.f32 %v491_v54, %v437_v59 }
 0x2eb   : > { %v495_v56 = vpop.f32.mrb[2].mxu1  ;;  %v501_v62 = vadd.f32 %v493_v55, %v437_v59 }
 0x2ec   : > { %v497_v57 = vpop.f32.mrb[3].mxu1  ;;  %v502_v3 = vadd.f32 %v495_v56, %v439_v0 }
 0x2ed   : > { %v503_v4 = vadd.f32 %v497_v57, %v439_v0 }
 0x333   : > { %v524_v63 = vpop.permute.xlu0 %523 }
 0x334   : > { %v531_v1 = vmul.f32 %v524_v63, %v500_v61  ;;  %v532_v2 = vmul.f32 %v524_v63, %v501_v62 }
 0x336   : > { %535 = vst [vmem:[%s292_s30] sm:$0xff] %v531_v1  ;;  %536 = vst [vmem:[%s292_s30 + $0x8] sm:$0xff] %v532_v2 }
 0x337   : > { %v529_v5 = vpop.permute.xlu0 %528 }
 0x338   : > { %v533_v6 = vmul.f32 %v529_v5, %v502_v3  ;;  %v534_v7 = vmul.f32 %v529_v5, %v503_v4 }
 0x33a   : > { %537 = vst [vmem:[%s292_s30 + $0x10] sm:$0xff] %v533_v6  ;;  %538 = vst [vmem:[%s292_s30 + $0x18] sm:$0xff] %v534_v7 }
 0x33b PF: > { %s13_s14 = sadd.s32 1, %s775_s14   ;;  %s862_s12 = smov %s771_s13 }
 0x33c   : > { %p10_p5 = scmp.ge.s32.totalorder %s13_s14, 6   ;;  %s863_s13 = smov %s865_s15 }
 0x33e   :  { %12 = sbr.rel (!%p10_p5) target bundleno = 2 (0x2), region = 76 }

</bundles_post_ra>
